<compile_context>
chip_gen: v7x
topology: tpu7x:2x2x1
jax: 0.10.0
libtpu: 0.0.40
codegen_flags: <defaults>
</compile_context>

<pallas_src>
import functools
import math

import jax
import jax.numpy as jnp
from jax import lax
from jax.experimental import pallas as pl
from jax.experimental.pallas import tpu as pltpu


# ----------------------------- fused model kernel -----------------------------

def _model_kernel(*refs, num_layers, nhead, d_model, seq_len, eps, ff_bf16):
    """One grid step == one batch element.
    refs layout: [x, in_w, in_b] + 12 refs per layer + [fc_w3, fc_b, out]."""
    hd = d_model // nhead
    S = seq_len

    x_ref, in_w_ref, in_b_ref = refs[0], refs[1], refs[2]
    fc_w_ref = refs[3 + 12 * num_layers]
    fc_b_ref = refs[4 + 12 * num_layers]
    o_ref = refs[5 + 12 * num_layers]

    x = x_ref[0]                                           # (S, IN) f32

    # input projection: (S, IN) @ (IN, D) + b
    h = jnp.dot(x, in_w_ref[...], preferred_element_type=jnp.float32) + in_b_ref[...]

    def layer_norm(y, g, b):                               # fused add+LN epilogue helper
        mu = jnp.mean(y, axis=-1, keepdims=True)
        c = y - mu
        var = jnp.mean(c * c, axis=-1, keepdims=True)
        return c * lax.rsqrt(var + eps) * g + b

    for l in range(num_layers):
        (qkv_w_ref, qkv_b_ref, out_w_ref, out_b_ref,
         ln1_g_ref, ln1_b_ref, ff1_w_ref, ff1_b_ref,
         ff2_w_ref, ff2_b_ref, ln2_g_ref, ln2_b_ref) = refs[3 + 12 * l: 3 + 12 * (l + 1)]

        # ---- multi-head self-attention ----
        # 1/sqrt(hd) scale is already folded into the Q slice of qkv_w / qkv_b.
        qkv = jnp.dot(h, qkv_w_ref[...], preferred_element_type=jnp.float32) + qkv_b_ref[...]
        out_w = out_w_ref[...]                             # (D, D)

        # scores for all heads stacked -> ONE batched softmax (fewer XLU/EUP issues)
        scores = jnp.stack(
            [lax.dot_general(qkv[:, hh * hd:(hh + 1) * hd],
                             qkv[:, d_model + hh * hd: d_model + (hh + 1) * hd],
                             (((1,), (1,)), ((), ())),     # contract last dims: q @ k^T
                             preferred_element_type=jnp.float32)
             for hh in range(nhead)], axis=0)              # (H, S, S)
        scores = scores - jnp.max(scores, axis=-1, keepdims=True)
        p = jnp.exp(scores)
        p = p * pl.reciprocal(jnp.sum(p, axis=-1, keepdims=True), approx=True)

        # per-head p@v folded straight into the matching slice of the out projection
        attn = out_b_ref[...]                              # (1, D), broadcasts over S
        for hh in range(nhead):
            v_h = qkv[:, 2 * d_model + hh * hd: 2 * d_model + (hh + 1) * hd]
            o_h = jnp.dot(p[hh], v_h, preferred_element_type=jnp.float32)     # (S, hd)
            attn = attn + jnp.dot(o_h, out_w[hh * hd:(hh + 1) * hd, :],
                                  preferred_element_type=jnp.float32)

        # add & norm 1 (post-norm, fused)
        h = layer_norm(attn + h, ln1_g_ref[...], ln1_b_ref[...])

        # ---- feed-forward: bf16 MXU operands, f32 accumulation ----
        ff = jnp.dot(h.astype(jnp.bfloat16), ff1_w_ref[...],
                     preferred_element_type=jnp.float32)
        if ff_bf16:
            # v6e/v7x: bias-add + ReLU in bf16 (ff1_b pre-cast), feeds ff2 directly
            ff = jnp.maximum(ff.astype(jnp.bfloat16) + ff1_b_ref[...], 0.0)
        else:
            # v5e: no bf16 VPU/EUP path -> keep the elementwise epilogue in f32
            ff = jnp.maximum(ff + ff1_b_ref[...], 0.0).astype(jnp.bfloat16)
        ff2 = jnp.dot(ff, ff2_w_ref[...],
                      preferred_element_type=jnp.float32) + ff2_b_ref[...]

        # add & norm 2 (post-norm, fused)
        h = layer_norm(ff2 + h, ln2_g_ref[...], ln2_b_ref[...])

    # ---- fused final fc: flatten(h) @ fc_w + fc_b ----
    # Expressed as sum_s h[s] @ fc_w3[s]  (fc_w host-reshaped to (S, D, OUT));
    # avoids an in-kernel (S, D) -> (1, S*D) relayout reshape.
    out = fc_b_ref[...]                                    # (1, OUT) f32
    for s in range(S):
        out = out + jnp.dot(h[s:s + 1, :], fc_w_ref[s],
                            preferred_element_type=jnp.float32)
    o_ref[0] = out


# ----------------------------- wrapper -----------------------------

def prepack_params(params, *, d_model, nhead, ff_bf16):
    """One-time host-side weight prep: fold attention scale into Q weight/bias,
    cast FF weights (and, on bf16-VPU chips, ff1_b) to bf16, reshape biases to
    (1, N) rows and fc_w to (S, D, OUT)."""
    hd = d_model // nhead
    scale = 1.0 / math.sqrt(hd)
    ff_b_dtype = jnp.bfloat16 if ff_bf16 else jnp.float32

    pre = {
        "in_proj_w": params["in_proj_w"],
        "in_proj_b": params["in_proj_b"].reshape(1, -1),
    }
    layers = []
    for layer in params["layers"]:
        qkv_w = layer["qkv_w"].at[:, :d_model].multiply(scale)
        qkv_b = layer["qkv_b"].at[:d_model].multiply(scale)
        layers.append(dict(
            qkv_w=qkv_w, qkv_b=qkv_b.reshape(1, -1),
            out_w=layer["out_w"], out_b=layer["out_b"].reshape(1, -1),
            ln1_g=layer["ln1_g"].reshape(1, -1), ln1_b=layer["ln1_b"].reshape(1, -1),
            ff1_w=layer["ff1_w"].astype(jnp.bfloat16),
            ff1_b=layer["ff1_b"].reshape(1, -1).astype(ff_b_dtype),
            ff2_w=layer["ff2_w"].astype(jnp.bfloat16),
            ff2_b=layer["ff2_b"].reshape(1, -1),
            ln2_g=layer["ln2_g"].reshape(1, -1), ln2_b=layer["ln2_b"].reshape(1, -1),
        ))
    pre["layers"] = layers

    out_size = params["fc_w"].shape[1]
    seq_len = params["fc_w"].shape[0] // d_model
    pre["fc_w"] = params["fc_w"].reshape(seq_len, d_model, out_size)
    pre["fc_b"] = params["fc_b"].reshape(1, -1)
    return pre


_LAYER_KEYS = ("qkv_w", "qkv_b", "out_w", "out_b", "ln1_g", "ln1_b",
               "ff1_w", "ff1_b", "ff2_w", "ff2_b", "ln2_g", "ln2_b")


def transformer_forward(pre, x, *, d_model, nhead, eps=1e-5, ff_bf16=True):
    """Whole model (input proj + encoder stack + fc) as one pallas_call.
    x: (B, S, input_size) f32  ->  (B, output_size) f32."""
    B, S, IN = x.shape
    num_layers = len(pre["layers"])
    dim_ff = pre["layers"][0]["ff1_w"].shape[1]
    OUT = pre["fc_w"].shape[2]

    def w_spec(a):
        zeros = (0,) * a.ndim
        return pl.BlockSpec(a.shape, lambda b, _z=zeros: _z)   # VMEM-resident weight

    inputs = [x, pre["in_proj_w"], pre["in_proj_b"]]
    in_specs = [pl.BlockSpec((1, S, IN), lambda b: (b, 0, 0)),
                w_spec(pre["in_proj_w"]), w_spec(pre["in_proj_b"])]
    for layer in pre["layers"]:
        for k in _LAYER_KEYS:
            inputs.append(layer[k])
            in_specs.append(w_spec(layer[k]))
    inputs += [pre["fc_w"], pre["fc_b"]]
    in_specs += [w_spec(pre["fc_w"]), w_spec(pre["fc_b"])]

    # advisory cost estimate for XLA scheduling around the custom call
    flops = int(B * (
        2 * S * IN * d_model
        + num_layers * (
            2 * S * d_model * 3 * d_model          # qkv projection
            + 4 * S * S * d_model                  # q@k^T and p@v over all heads
            + 2 * S * d_model * d_model            # output projection
            + 4 * S * d_model * dim_ff             # ff1 + ff2
        )
        + 2 * S * d_model * OUT                    # fused fc
    ))
    transcendentals = int(B * num_layers * (nhead * S * S + nhead * S + 2 * S))
    bytes_accessed = int(sum(int(a.size) * int(a.dtype.itemsize) for a in inputs)
                         + B * OUT * 4)

    kern = functools.partial(_model_kernel, num_layers=num_layers, nhead=nhead,
                             d_model=d_model, seq_len=S, eps=eps, ff_bf16=ff_bf16)

    out = pl.pallas_call(
        kern,
        grid=(B,),
        out_shape=jax.ShapeDtypeStruct((B, 1, OUT), jnp.float32),
        in_specs=in_specs,
        out_specs=pl.BlockSpec((1, 1, OUT), lambda b: (b, 0, 0)),
        compiler_params=pltpu.CompilerParams(dimension_semantics=("parallel",)),
        cost_estimate=pl.CostEstimate(flops=flops,
                                      transcendentals=transcendentals,
                                      bytes_accessed=bytes_accessed),
    )(*inputs)
    return out.reshape(B, OUT)


# ----------------------------- Parameter init -----------------------------

def _uniform(key, shape, bound):
    return jax.random.uniform(key, shape, jnp.float32, -bound, bound)


def init_params(key, *, input_size, output_size, d_model, num_layers, dim_ff, seq_len):
    keys = jax.random.split(key, 2 + 4 * num_layers)
    ki = iter(range(len(keys)))

    def lin_init(k, fan_in, fan_out):
        bound = 1.0 / math.sqrt(fan_in)
        wk, bk = jax.random.split(k)
        return _uniform(wk, (fan_in, fan_out), bound), _uniform(bk, (fan_out,), bound)

    params = {}
    params["in_proj_w"], params["in_proj_b"] = lin_init(keys[next(ki)], input_size, d_model)

    layers = []
    for _ in range(num_layers):
        qkv_w, qkv_b = lin_init(keys[next(ki)], d_model, 3 * d_model)
        out_w, out_b = lin_init(keys[next(ki)], d_model, d_model)
        ff1_w, ff1_b = lin_init(keys[next(ki)], d_model, dim_ff)
        ff2_w, ff2_b = lin_init(keys[next(ki)], dim_ff, d_model)
        layers.append(dict(
            qkv_w=qkv_w, qkv_b=qkv_b, out_w=out_w, out_b=out_b,
            ff1_w=ff1_w, ff1_b=ff1_b, ff2_w=ff2_w, ff2_b=ff2_b,
            ln1_g=jnp.ones((d_model,), jnp.float32), ln1_b=jnp.zeros((d_model,), jnp.float32),
            ln2_g=jnp.ones((d_model,), jnp.float32), ln2_b=jnp.zeros((d_model,), jnp.float32),
        ))
    params["layers"] = layers

    params["fc_w"], params["fc_b"] = lin_init(keys[next(ki)], d_model * seq_len, output_size)
    return params


# --------------------------------- Main ------------------------------------

if __name__ == "__main__":
    # small but faithful config: fc = Linear(d_model*25, ...) implies seq_len = 25
    INPUT_SIZE = 16
    OUTPUT_SIZE = 10
    D_MODEL = 32
    NHEAD = 4
    NUM_LAYERS = 2
    DIM_FF = 2048          # nn.TransformerEncoderLayer default dim_feedforward
    SEQ_LEN = 25
    BATCH = 2

    # bf16 FF epilogue only on chips with a bf16 VPU path (v6e / v7x); f32 on v5e and older.
    try:
        _kind = jax.devices()[0].device_kind.lower()
    except Exception:
        _kind = ""
    FF_BF16 = not any(v in _kind for v in ("v2", "v3", "v4", "v5"))

    root = jax.random.PRNGKey(0)
    pkey, xkey = jax.random.split(root)

    params = init_params(
        pkey,
        input_size=INPUT_SIZE, output_size=OUTPUT_SIZE, d_model=D_MODEL,
        num_layers=NUM_LAYERS, dim_ff=DIM_FF, seq_len=SEQ_LEN,
    )
    pre = prepack_params(params, d_model=D_MODEL, nhead=NHEAD, ff_bf16=FF_BF16)
    x = jax.random.normal(xkey, (BATCH, SEQ_LEN, INPUT_SIZE), jnp.float32)

    fwd = jax.jit(functools.partial(transformer_forward,
                                    d_model=D_MODEL, nhead=NHEAD, ff_bf16=FF_BF16))
    out = fwd(pre, x)
    out = jax.block_until_ready(out)

    assert out.shape == (BATCH, OUTPUT_SIZE), out.shape
    assert bool(jnp.all(jnp.isfinite(out)))
    print("KERNEL_OK")
</pallas_src>

<mosaic_0001>
module attributes {stable_mosaic.version = 11 : i64} {
  func.func @_model_kernel(%arg0: i32, %arg1: memref<1x25x16xf32, #tpu.memory_space<vmem>>, %arg2: memref<16x32xf32, #tpu.memory_space<vmem>>, %arg3: memref<1x32xf32, #tpu.memory_space<vmem>>, %arg4: memref<32x96xf32, #tpu.memory_space<vmem>>, %arg5: memref<1x96xf32, #tpu.memory_space<vmem>>, %arg6: memref<32x32xf32, #tpu.memory_space<vmem>>, %arg7: memref<1x32xf32, #tpu.memory_space<vmem>>, %arg8: memref<1x32xf32, #tpu.memory_space<vmem>>, %arg9: memref<1x32xf32, #tpu.memory_space<vmem>>, %arg10: memref<32x2048xbf16, #tpu.memory_space<vmem>>, %arg11: memref<1x2048xbf16, #tpu.memory_space<vmem>>, %arg12: memref<2048x32xbf16, #tpu.memory_space<vmem>>, %arg13: memref<1x32xf32, #tpu.memory_space<vmem>>, %arg14: memref<1x32xf32, #tpu.memory_space<vmem>>, %arg15: memref<1x32xf32, #tpu.memory_space<vmem>>, %arg16: memref<32x96xf32, #tpu.memory_space<vmem>>, %arg17: memref<1x96xf32, #tpu.memory_space<vmem>>, %arg18: memref<32x32xf32, #tpu.memory_space<vmem>>, %arg19: memref<1x32xf32, #tpu.memory_space<vmem>>, %arg20: memref<1x32xf32, #tpu.memory_space<vmem>>, %arg21: memref<1x32xf32, #tpu.memory_space<vmem>>, %arg22: memref<32x2048xbf16, #tpu.memory_space<vmem>>, %arg23: memref<1x2048xbf16, #tpu.memory_space<vmem>>, %arg24: memref<2048x32xbf16, #tpu.memory_space<vmem>>, %arg25: memref<1x32xf32, #tpu.memory_space<vmem>>, %arg26: memref<1x32xf32, #tpu.memory_space<vmem>>, %arg27: memref<1x32xf32, #tpu.memory_space<vmem>>, %arg28: memref<25x32x10xf32, #tpu.memory_space<vmem>>, %arg29: memref<1x10xf32, #tpu.memory_space<vmem>>, %arg30: memref<1x1x10xf32, #tpu.memory_space<vmem>>) attributes {dimension_semantics = [#tpu.dimension_semantics<parallel>], iteration_bounds = array<i64: 2>, scalar_prefetch = 0 : i64, scratch_operands = 0 : i64, tpu.core_type = #tpu.core_type<tc>, window_params = [{transform_indices = @transform_0, window_bounds = array<i64: 1, 25, 16>}, {pipeline_mode = #tpu.pipeline_mode<synchronous>, transform_indices = @transform_1, window_bounds = array<i64: 16, 32>}, {pipeline_mode = #tpu.pipeline_mode<synchronous>, transform_indices = @transform_2, window_bounds = array<i64: 1, 32>}, {pipeline_mode = #tpu.pipeline_mode<synchronous>, transform_indices = @transform_3, window_bounds = array<i64: 32, 96>}, {pipeline_mode = #tpu.pipeline_mode<synchronous>, transform_indices = @transform_4, window_bounds = array<i64: 1, 96>}, {pipeline_mode = #tpu.pipeline_mode<synchronous>, transform_indices = @transform_5, window_bounds = array<i64: 32, 32>}, {pipeline_mode = #tpu.pipeline_mode<synchronous>, transform_indices = @transform_6, window_bounds = array<i64: 1, 32>}, {pipeline_mode = #tpu.pipeline_mode<synchronous>, transform_indices = @transform_7, window_bounds = array<i64: 1, 32>}, {pipeline_mode = #tpu.pipeline_mode<synchronous>, transform_indices = @transform_8, window_bounds = array<i64: 1, 32>}, {pipeline_mode = #tpu.pipeline_mode<synchronous>, transform_indices = @transform_9, window_bounds = array<i64: 32, 2048>}, {pipeline_mode = #tpu.pipeline_mode<synchronous>, transform_indices = @transform_10, window_bounds = array<i64: 1, 2048>}, {pipeline_mode = #tpu.pipeline_mode<synchronous>, transform_indices = @transform_11, window_bounds = array<i64: 2048, 32>}, {pipeline_mode = #tpu.pipeline_mode<synchronous>, transform_indices = @transform_12, window_bounds = array<i64: 1, 32>}, {pipeline_mode = #tpu.pipeline_mode<synchronous>, transform_indices = @transform_13, window_bounds = array<i64: 1, 32>}, {pipeline_mode = #tpu.pipeline_mode<synchronous>, transform_indices = @transform_14, window_bounds = array<i64: 1, 32>}, {pipeline_mode = #tpu.pipeline_mode<synchronous>, transform_indices = @transform_15, window_bounds = array<i64: 32, 96>}, {pipeline_mode = #tpu.pipeline_mode<synchronous>, transform_indices = @transform_16, window_bounds = array<i64: 1, 96>}, {pipeline_mode = #tpu.pipeline_mode<synchronous>, transform_indices = @transform_17, window_bounds = array<i64: 32, 32>}, {pipeline_mode = #tpu.pipeline_mode<synchronous>, transform_indices = @transform_18, window_bounds = array<i64: 1, 32>}, {pipeline_mode = #tpu.pipeline_mode<synchronous>, transform_indices = @transform_19, window_bounds = array<i64: 1, 32>}, {pipeline_mode = #tpu.pipeline_mode<synchronous>, transform_indices = @transform_20, window_bounds = array<i64: 1, 32>}, {pipeline_mode = #tpu.pipeline_mode<synchronous>, transform_indices = @transform_21, window_bounds = array<i64: 32, 2048>}, {pipeline_mode = #tpu.pipeline_mode<synchronous>, transform_indices = @transform_22, window_bounds = array<i64: 1, 2048>}, {pipeline_mode = #tpu.pipeline_mode<synchronous>, transform_indices = @transform_23, window_bounds = array<i64: 2048, 32>}, {pipeline_mode = #tpu.pipeline_mode<synchronous>, transform_indices = @transform_24, window_bounds = array<i64: 1, 32>}, {pipeline_mode = #tpu.pipeline_mode<synchronous>, transform_indices = @transform_25, window_bounds = array<i64: 1, 32>}, {pipeline_mode = #tpu.pipeline_mode<synchronous>, transform_indices = @transform_26, window_bounds = array<i64: 1, 32>}, {pipeline_mode = #tpu.pipeline_mode<synchronous>, transform_indices = @transform_27, window_bounds = array<i64: 25, 32, 10>}, {pipeline_mode = #tpu.pipeline_mode<synchronous>, transform_indices = @transform_28, window_bounds = array<i64: 1, 10>}, {transform_indices = @transform_29, window_bounds = array<i64: 1, 1, 10>}]} {
    %c0 = arith.constant 0 : index
    %c0_0 = arith.constant 0 : index
    %c0_1 = arith.constant 0 : index
    %0 = vector.load %arg1[%c0, %c0_0, %c0_1] : memref<1x25x16xf32, #tpu.memory_space<vmem>>, vector<1x25x16xf32>
    %1 = vector.shape_cast %0 : vector<1x25x16xf32> to vector<25x16xf32>
    %c0_2 = arith.constant 0 : index
    %c0_3 = arith.constant 0 : index
    %2 = vector.load %arg2[%c0_2, %c0_3] : memref<16x32xf32, #tpu.memory_space<vmem>>, vector<16x32xf32>
    %cst = arith.constant dense<0.000000e+00> : vector<25x32xf32>
    %3 = tpu.matmul %1, %2, %cst {dimension_numbers = #tpu.dot_dimension_numbers<[1], [0], [0], [1], [0, 0, 1, 1], [], []>} : vector<25x16xf32>, vector<16x32xf32>, vector<25x32xf32> -> vector<25x32xf32>
    %c0_4 = arith.constant 0 : index
    %c0_5 = arith.constant 0 : index
    %4 = vector.load %arg3[%c0_4, %c0_5] : memref<1x32xf32, #tpu.memory_space<vmem>>, vector<1x32xf32>
    %5 = vector.broadcast %4 : vector<1x32xf32> to vector<25x32xf32>
    %6 = arith.addf %3, %5 : vector<25x32xf32>
    %c0_6 = arith.constant 0 : index
    %c0_7 = arith.constant 0 : index
    %7 = vector.load %arg4[%c0_6, %c0_7] : memref<32x96xf32, #tpu.memory_space<vmem>>, vector<32x96xf32>
    %cst_8 = arith.constant dense<0.000000e+00> : vector<25x96xf32>
    %8 = tpu.matmul %6, %7, %cst_8 {dimension_numbers = #tpu.dot_dimension_numbers<[1], [0], [0], [1], [0, 0, 1, 1], [], []>} : vector<25x32xf32>, vector<32x96xf32>, vector<25x96xf32> -> vector<25x96xf32>
    %c0_9 = arith.constant 0 : index
    %c0_10 = arith.constant 0 : index
    %9 = vector.load %arg5[%c0_9, %c0_10] : memref<1x96xf32, #tpu.memory_space<vmem>>, vector<1x96xf32>
    %10 = vector.broadcast %9 : vector<1x96xf32> to vector<25x96xf32>
    %11 = arith.addf %8, %10 : vector<25x96xf32>
    %c0_11 = arith.constant 0 : index
    %c0_12 = arith.constant 0 : index
    %12 = vector.load %arg6[%c0_11, %c0_12] : memref<32x32xf32, #tpu.memory_space<vmem>>, vector<32x32xf32>
    %13 = vector.extract_strided_slice %11 {offsets = [0, 0], sizes = [25, 8], strides = [1, 1]} : vector<25x96xf32> to vector<25x8xf32>
    %14 = vector.extract_strided_slice %11 {offsets = [0, 32], sizes = [25, 8], strides = [1, 1]} : vector<25x96xf32> to vector<25x8xf32>
    %cst_13 = arith.constant dense<0.000000e+00> : vector<25x25xf32>
    %15 = tpu.matmul %13, %14, %cst_13 {dimension_numbers = #tpu.dot_dimension_numbers<[1], [1], [0], [0], [0, 0, 1, 0], [], []>} : vector<25x8xf32>, vector<25x8xf32>, vector<25x25xf32> -> vector<25x25xf32>
    %16 = vector.extract_strided_slice %11 {offsets = [0, 8], sizes = [25, 8], strides = [1, 1]} : vector<25x96xf32> to vector<25x8xf32>
    %17 = vector.extract_strided_slice %11 {offsets = [0, 40], sizes = [25, 8], strides = [1, 1]} : vector<25x96xf32> to vector<25x8xf32>
    %cst_14 = arith.constant dense<0.000000e+00> : vector<25x25xf32>
    %18 = tpu.matmul %16, %17, %cst_14 {dimension_numbers = #tpu.dot_dimension_numbers<[1], [1], [0], [0], [0, 0, 1, 0], [], []>} : vector<25x8xf32>, vector<25x8xf32>, vector<25x25xf32> -> vector<25x25xf32>
    %19 = vector.extract_strided_slice %11 {offsets = [0, 16], sizes = [25, 8], strides = [1, 1]} : vector<25x96xf32> to vector<25x8xf32>
    %20 = vector.extract_strided_slice %11 {offsets = [0, 48], sizes = [25, 8], strides = [1, 1]} : vector<25x96xf32> to vector<25x8xf32>
    %cst_15 = arith.constant dense<0.000000e+00> : vector<25x25xf32>
    %21 = tpu.matmul %19, %20, %cst_15 {dimension_numbers = #tpu.dot_dimension_numbers<[1], [1], [0], [0], [0, 0, 1, 0], [], []>} : vector<25x8xf32>, vector<25x8xf32>, vector<25x25xf32> -> vector<25x25xf32>
    %22 = vector.extract_strided_slice %11 {offsets = [0, 24], sizes = [25, 8], strides = [1, 1]} : vector<25x96xf32> to vector<25x8xf32>
    %23 = vector.extract_strided_slice %11 {offsets = [0, 56], sizes = [25, 8], strides = [1, 1]} : vector<25x96xf32> to vector<25x8xf32>
    %cst_16 = arith.constant dense<0.000000e+00> : vector<25x25xf32>
    %24 = tpu.matmul %22, %23, %cst_16 {dimension_numbers = #tpu.dot_dimension_numbers<[1], [1], [0], [0], [0, 0, 1, 0], [], []>} : vector<25x8xf32>, vector<25x8xf32>, vector<25x25xf32> -> vector<25x25xf32>
    %25 = vector.shape_cast %15 : vector<25x25xf32> to vector<1x25x25xf32>
    %26 = vector.shape_cast %18 : vector<25x25xf32> to vector<1x25x25xf32>
    %27 = vector.shape_cast %21 : vector<25x25xf32> to vector<1x25x25xf32>
    %28 = vector.shape_cast %24 : vector<25x25xf32> to vector<1x25x25xf32>
    %29 = tpu.concatenate %25, %26, %27, %28 in 0 : vector<1x25x25xf32>, vector<1x25x25xf32>, vector<1x25x25xf32>, vector<1x25x25xf32> -> vector<4x25x25xf32>
    %cst_17 = arith.constant dense<0xFF800000> : vector<4x25xf32>
    %30 = vector.multi_reduction <maximumf>, %29, %cst_17 [2] : vector<4x25x25xf32> to vector<4x25xf32>
    %31 = vector.shape_cast %30 : vector<4x25xf32> to vector<4x25x1xf32>
    %32 = vector.broadcast %31 : vector<4x25x1xf32> to vector<4x25x25xf32>
    %33 = arith.subf %29, %32 : vector<4x25x25xf32>
    %34 = math.exp %33 : vector<4x25x25xf32>
    %cst_18 = arith.constant dense<0.000000e+00> : vector<4x25xf32>
    %35 = vector.multi_reduction <add>, %34, %cst_18 [2] : vector<4x25x25xf32> to vector<4x25xf32>
    %36 = vector.shape_cast %35 : vector<4x25xf32> to vector<4x25x1xf32>
    %37 = tpu.reciprocal %36 {approx = true} : vector<4x25x1xf32> -> vector<4x25x1xf32>
    %38 = vector.broadcast %37 : vector<4x25x1xf32> to vector<4x25x25xf32>
    %39 = arith.mulf %34, %38 : vector<4x25x25xf32>
    %c0_19 = arith.constant 0 : index
    %c0_20 = arith.constant 0 : index
    %40 = vector.load %arg7[%c0_19, %c0_20] : memref<1x32xf32, #tpu.memory_space<vmem>>, vector<1x32xf32>
    %41 = vector.extract_strided_slice %11 {offsets = [0, 64], sizes = [25, 8], strides = [1, 1]} : vector<25x96xf32> to vector<25x8xf32>
    %42 = vector.extract_strided_slice %39 {offsets = [0, 0, 0], sizes = [1, 25, 25], strides = [1, 1, 1]} : vector<4x25x25xf32> to vector<1x25x25xf32>
    %43 = vector.shape_cast %42 : vector<1x25x25xf32> to vector<25x25xf32>
    %cst_21 = arith.constant dense<0.000000e+00> : vector<25x8xf32>
    %44 = tpu.matmul %43, %41, %cst_21 {dimension_numbers = #tpu.dot_dimension_numbers<[1], [0], [0], [1], [0, 0, 1, 1], [], []>} : vector<25x25xf32>, vector<25x8xf32>, vector<25x8xf32> -> vector<25x8xf32>
    %45 = vector.extract_strided_slice %12 {offsets = [0, 0], sizes = [8, 32], strides = [1, 1]} : vector<32x32xf32> to vector<8x32xf32>
    %cst_22 = arith.constant dense<0.000000e+00> : vector<25x32xf32>
    %46 = tpu.matmul %44, %45, %cst_22 {dimension_numbers = #tpu.dot_dimension_numbers<[1], [0], [0], [1], [0, 0, 1, 1], [], []>} : vector<25x8xf32>, vector<8x32xf32>, vector<25x32xf32> -> vector<25x32xf32>
    %47 = vector.broadcast %40 : vector<1x32xf32> to vector<25x32xf32>
    %48 = arith.addf %47, %46 : vector<25x32xf32>
    %49 = vector.extract_strided_slice %11 {offsets = [0, 72], sizes = [25, 8], strides = [1, 1]} : vector<25x96xf32> to vector<25x8xf32>
    %50 = vector.extract_strided_slice %39 {offsets = [1, 0, 0], sizes = [1, 25, 25], strides = [1, 1, 1]} : vector<4x25x25xf32> to vector<1x25x25xf32>
    %51 = vector.shape_cast %50 : vector<1x25x25xf32> to vector<25x25xf32>
    %cst_23 = arith.constant dense<0.000000e+00> : vector<25x8xf32>
    %52 = tpu.matmul %51, %49, %cst_23 {dimension_numbers = #tpu.dot_dimension_numbers<[1], [0], [0], [1], [0, 0, 1, 1], [], []>} : vector<25x25xf32>, vector<25x8xf32>, vector<25x8xf32> -> vector<25x8xf32>
    %53 = vector.extract_strided_slice %12 {offsets = [8, 0], sizes = [8, 32], strides = [1, 1]} : vector<32x32xf32> to vector<8x32xf32>
    %cst_24 = arith.constant dense<0.000000e+00> : vector<25x32xf32>
    %54 = tpu.matmul %52, %53, %cst_24 {dimension_numbers = #tpu.dot_dimension_numbers<[1], [0], [0], [1], [0, 0, 1, 1], [], []>} : vector<25x8xf32>, vector<8x32xf32>, vector<25x32xf32> -> vector<25x32xf32>
    %55 = arith.addf %48, %54 : vector<25x32xf32>
    %56 = vector.extract_strided_slice %11 {offsets = [0, 80], sizes = [25, 8], strides = [1, 1]} : vector<25x96xf32> to vector<25x8xf32>
    %57 = vector.extract_strided_slice %39 {offsets = [2, 0, 0], sizes = [1, 25, 25], strides = [1, 1, 1]} : vector<4x25x25xf32> to vector<1x25x25xf32>
    %58 = vector.shape_cast %57 : vector<1x25x25xf32> to vector<25x25xf32>
    %cst_25 = arith.constant dense<0.000000e+00> : vector<25x8xf32>
    %59 = tpu.matmul %58, %56, %cst_25 {dimension_numbers = #tpu.dot_dimension_numbers<[1], [0], [0], [1], [0, 0, 1, 1], [], []>} : vector<25x25xf32>, vector<25x8xf32>, vector<25x8xf32> -> vector<25x8xf32>
    %60 = vector.extract_strided_slice %12 {offsets = [16, 0], sizes = [8, 32], strides = [1, 1]} : vector<32x32xf32> to vector<8x32xf32>
    %cst_26 = arith.constant dense<0.000000e+00> : vector<25x32xf32>
    %61 = tpu.matmul %59, %60, %cst_26 {dimension_numbers = #tpu.dot_dimension_numbers<[1], [0], [0], [1], [0, 0, 1, 1], [], []>} : vector<25x8xf32>, vector<8x32xf32>, vector<25x32xf32> -> vector<25x32xf32>
    %62 = arith.addf %55, %61 : vector<25x32xf32>
    %63 = vector.extract_strided_slice %11 {offsets = [0, 88], sizes = [25, 8], strides = [1, 1]} : vector<25x96xf32> to vector<25x8xf32>
    %64 = vector.extract_strided_slice %39 {offsets = [3, 0, 0], sizes = [1, 25, 25], strides = [1, 1, 1]} : vector<4x25x25xf32> to vector<1x25x25xf32>
    %65 = vector.shape_cast %64 : vector<1x25x25xf32> to vector<25x25xf32>
    %cst_27 = arith.constant dense<0.000000e+00> : vector<25x8xf32>
    %66 = tpu.matmul %65, %63, %cst_27 {dimension_numbers = #tpu.dot_dimension_numbers<[1], [0], [0], [1], [0, 0, 1, 1], [], []>} : vector<25x25xf32>, vector<25x8xf32>, vector<25x8xf32> -> vector<25x8xf32>
    %67 = vector.extract_strided_slice %12 {offsets = [24, 0], sizes = [8, 32], strides = [1, 1]} : vector<32x32xf32> to vector<8x32xf32>
    %cst_28 = arith.constant dense<0.000000e+00> : vector<25x32xf32>
    %68 = tpu.matmul %66, %67, %cst_28 {dimension_numbers = #tpu.dot_dimension_numbers<[1], [0], [0], [1], [0, 0, 1, 1], [], []>} : vector<25x8xf32>, vector<8x32xf32>, vector<25x32xf32> -> vector<25x32xf32>
    %69 = arith.addf %62, %68 : vector<25x32xf32>
    %70 = arith.addf %69, %6 : vector<25x32xf32>
    %c0_29 = arith.constant 0 : index
    %c0_30 = arith.constant 0 : index
    %71 = vector.load %arg8[%c0_29, %c0_30] : memref<1x32xf32, #tpu.memory_space<vmem>>, vector<1x32xf32>
    %c0_31 = arith.constant 0 : index
    %c0_32 = arith.constant 0 : index
    %72 = vector.load %arg9[%c0_31, %c0_32] : memref<1x32xf32, #tpu.memory_space<vmem>>, vector<1x32xf32>
    %cst_33 = arith.constant dense<0.000000e+00> : vector<25xf32>
    %73 = vector.multi_reduction <add>, %70, %cst_33 [1] : vector<25x32xf32> to vector<25xf32>
    %74 = vector.shape_cast %73 : vector<25xf32> to vector<25x1xf32>
    %cst_34 = arith.constant 3.200000e+01 : f32
    %75 = vector.broadcast %cst_34 : f32 to vector<25x1xf32>
    %76 = arith.divf %74, %75 : vector<25x1xf32>
    %77 = vector.broadcast %76 : vector<25x1xf32> to vector<25x32xf32>
    %78 = arith.subf %70, %77 : vector<25x32xf32>
    %79 = arith.mulf %78, %78 : vector<25x32xf32>
    %cst_35 = arith.constant dense<0.000000e+00> : vector<25xf32>
    %80 = vector.multi_reduction <add>, %79, %cst_35 [1] : vector<25x32xf32> to vector<25xf32>
    %81 = vector.shape_cast %80 : vector<25xf32> to vector<25x1xf32>
    %cst_36 = arith.constant 3.200000e+01 : f32
    %82 = vector.broadcast %cst_36 : f32 to vector<25x1xf32>
    %83 = arith.divf %81, %82 : vector<25x1xf32>
    %cst_37 = arith.constant 9.99999974E-6 : f32
    %84 = vector.broadcast %cst_37 : f32 to vector<25x1xf32>
    %85 = arith.addf %83, %84 : vector<25x1xf32>
    %86 = math.rsqrt %85 : vector<25x1xf32>
    %87 = vector.broadcast %86 : vector<25x1xf32> to vector<25x32xf32>
    %88 = arith.mulf %78, %87 : vector<25x32xf32>
    %89 = vector.broadcast %71 : vector<1x32xf32> to vector<25x32xf32>
    %90 = arith.mulf %88, %89 : vector<25x32xf32>
    %91 = vector.broadcast %72 : vector<1x32xf32> to vector<25x32xf32>
    %92 = arith.addf %90, %91 : vector<25x32xf32>
    %93 = arith.truncf %92 : vector<25x32xf32> to vector<25x32xbf16>
    %c0_38 = arith.constant 0 : index
    %c0_39 = arith.constant 0 : index
    %94 = vector.load %arg10[%c0_38, %c0_39] : memref<32x2048xbf16, #tpu.memory_space<vmem>>, vector<32x2048xbf16>
    %cst_40 = arith.constant dense<0.000000e+00> : vector<25x2048xf32>
    %95 = tpu.matmul %93, %94, %cst_40 {dimension_numbers = #tpu.dot_dimension_numbers<[1], [0], [0], [1], [0, 0, 1, 1], [], []>} : vector<25x32xbf16>, vector<32x2048xbf16>, vector<25x2048xf32> -> vector<25x2048xf32>
    %96 = arith.truncf %95 : vector<25x2048xf32> to vector<25x2048xbf16>
    %c0_41 = arith.constant 0 : index
    %c0_42 = arith.constant 0 : index
    %97 = vector.load %arg11[%c0_41, %c0_42] : memref<1x2048xbf16, #tpu.memory_space<vmem>>, vector<1x2048xbf16>
    %98 = vector.broadcast %97 : vector<1x2048xbf16> to vector<25x2048xbf16>
    %99 = arith.addf %96, %98 : vector<25x2048xbf16>
    %cst_43 = arith.constant 0.000000e+00 : bf16
    %100 = vector.broadcast %cst_43 : bf16 to vector<25x2048xbf16>
    %101 = arith.maximumf %99, %100 : vector<25x2048xbf16>
    %c0_44 = arith.constant 0 : index
    %c0_45 = arith.constant 0 : index
    %102 = vector.load %arg12[%c0_44, %c0_45] : memref<2048x32xbf16, #tpu.memory_space<vmem>>, vector<2048x32xbf16>
    %cst_46 = arith.constant dense<0.000000e+00> : vector<25x32xf32>
    %103 = tpu.matmul %101, %102, %cst_46 {dimension_numbers = #tpu.dot_dimension_numbers<[1], [0], [0], [1], [0, 0, 1, 1], [], []>} : vector<25x2048xbf16>, vector<2048x32xbf16>, vector<25x32xf32> -> vector<25x32xf32>
    %c0_47 = arith.constant 0 : index
    %c0_48 = arith.constant 0 : index
    %104 = vector.load %arg13[%c0_47, %c0_48] : memref<1x32xf32, #tpu.memory_space<vmem>>, vector<1x32xf32>
    %105 = vector.broadcast %104 : vector<1x32xf32> to vector<25x32xf32>
    %106 = arith.addf %103, %105 : vector<25x32xf32>
    %107 = arith.addf %106, %92 : vector<25x32xf32>
    %c0_49 = arith.constant 0 : index
    %c0_50 = arith.constant 0 : index
    %108 = vector.load %arg14[%c0_49, %c0_50] : memref<1x32xf32, #tpu.memory_space<vmem>>, vector<1x32xf32>
    %c0_51 = arith.constant 0 : index
    %c0_52 = arith.constant 0 : index
    %109 = vector.load %arg15[%c0_51, %c0_52] : memref<1x32xf32, #tpu.memory_space<vmem>>, vector<1x32xf32>
    %cst_53 = arith.constant dense<0.000000e+00> : vector<25xf32>
    %110 = vector.multi_reduction <add>, %107, %cst_53 [1] : vector<25x32xf32> to vector<25xf32>
    %111 = vector.shape_cast %110 : vector<25xf32> to vector<25x1xf32>
    %cst_54 = arith.constant 3.200000e+01 : f32
    %112 = vector.broadcast %cst_54 : f32 to vector<25x1xf32>
    %113 = arith.divf %111, %112 : vector<25x1xf32>
    %114 = vector.broadcast %113 : vector<25x1xf32> to vector<25x32xf32>
    %115 = arith.subf %107, %114 : vector<25x32xf32>
    %116 = arith.mulf %115, %115 : vector<25x32xf32>
    %cst_55 = arith.constant dense<0.000000e+00> : vector<25xf32>
    %117 = vector.multi_reduction <add>, %116, %cst_55 [1] : vector<25x32xf32> to vector<25xf32>
    %118 = vector.shape_cast %117 : vector<25xf32> to vector<25x1xf32>
    %cst_56 = arith.constant 3.200000e+01 : f32
    %119 = vector.broadcast %cst_56 : f32 to vector<25x1xf32>
    %120 = arith.divf %118, %119 : vector<25x1xf32>
    %cst_57 = arith.constant 9.99999974E-6 : f32
    %121 = vector.broadcast %cst_57 : f32 to vector<25x1xf32>
    %122 = arith.addf %120, %121 : vector<25x1xf32>
    %123 = math.rsqrt %122 : vector<25x1xf32>
    %124 = vector.broadcast %123 : vector<25x1xf32> to vector<25x32xf32>
    %125 = arith.mulf %115, %124 : vector<25x32xf32>
    %126 = vector.broadcast %108 : vector<1x32xf32> to vector<25x32xf32>
    %127 = arith.mulf %125, %126 : vector<25x32xf32>
    %128 = vector.broadcast %109 : vector<1x32xf32> to vector<25x32xf32>
    %129 = arith.addf %127, %128 : vector<25x32xf32>
    %c0_58 = arith.constant 0 : index
    %c0_59 = arith.constant 0 : index
    %130 = vector.load %arg16[%c0_58, %c0_59] : memref<32x96xf32, #tpu.memory_space<vmem>>, vector<32x96xf32>
    %cst_60 = arith.constant dense<0.000000e+00> : vector<25x96xf32>
    %131 = tpu.matmul %129, %130, %cst_60 {dimension_numbers = #tpu.dot_dimension_numbers<[1], [0], [0], [1], [0, 0, 1, 1], [], []>} : vector<25x32xf32>, vector<32x96xf32>, vector<25x96xf32> -> vector<25x96xf32>
    %c0_61 = arith.constant 0 : index
    %c0_62 = arith.constant 0 : index
    %132 = vector.load %arg17[%c0_61, %c0_62] : memref<1x96xf32, #tpu.memory_space<vmem>>, vector<1x96xf32>
    %133 = vector.broadcast %132 : vector<1x96xf32> to vector<25x96xf32>
    %134 = arith.addf %131, %133 : vector<25x96xf32>
    %c0_63 = arith.constant 0 : index
    %c0_64 = arith.constant 0 : index
    %135 = vector.load %arg18[%c0_63, %c0_64] : memref<32x32xf32, #tpu.memory_space<vmem>>, vector<32x32xf32>
    %136 = vector.extract_strided_slice %134 {offsets = [0, 0], sizes = [25, 8], strides = [1, 1]} : vector<25x96xf32> to vector<25x8xf32>
    %137 = vector.extract_strided_slice %134 {offsets = [0, 32], sizes = [25, 8], strides = [1, 1]} : vector<25x96xf32> to vector<25x8xf32>
    %cst_65 = arith.constant dense<0.000000e+00> : vector<25x25xf32>
    %138 = tpu.matmul %136, %137, %cst_65 {dimension_numbers = #tpu.dot_dimension_numbers<[1], [1], [0], [0], [0, 0, 1, 0], [], []>} : vector<25x8xf32>, vector<25x8xf32>, vector<25x25xf32> -> vector<25x25xf32>
    %139 = vector.extract_strided_slice %134 {offsets = [0, 8], sizes = [25, 8], strides = [1, 1]} : vector<25x96xf32> to vector<25x8xf32>
    %140 = vector.extract_strided_slice %134 {offsets = [0, 40], sizes = [25, 8], strides = [1, 1]} : vector<25x96xf32> to vector<25x8xf32>
    %cst_66 = arith.constant dense<0.000000e+00> : vector<25x25xf32>
    %141 = tpu.matmul %139, %140, %cst_66 {dimension_numbers = #tpu.dot_dimension_numbers<[1], [1], [0], [0], [0, 0, 1, 0], [], []>} : vector<25x8xf32>, vector<25x8xf32>, vector<25x25xf32> -> vector<25x25xf32>
    %142 = vector.extract_strided_slice %134 {offsets = [0, 16], sizes = [25, 8], strides = [1, 1]} : vector<25x96xf32> to vector<25x8xf32>
    %143 = vector.extract_strided_slice %134 {offsets = [0, 48], sizes = [25, 8], strides = [1, 1]} : vector<25x96xf32> to vector<25x8xf32>
    %cst_67 = arith.constant dense<0.000000e+00> : vector<25x25xf32>
    %144 = tpu.matmul %142, %143, %cst_67 {dimension_numbers = #tpu.dot_dimension_numbers<[1], [1], [0], [0], [0, 0, 1, 0], [], []>} : vector<25x8xf32>, vector<25x8xf32>, vector<25x25xf32> -> vector<25x25xf32>
    %145 = vector.extract_strided_slice %134 {offsets = [0, 24], sizes = [25, 8], strides = [1, 1]} : vector<25x96xf32> to vector<25x8xf32>
    %146 = vector.extract_strided_slice %134 {offsets = [0, 56], sizes = [25, 8], strides = [1, 1]} : vector<25x96xf32> to vector<25x8xf32>
    %cst_68 = arith.constant dense<0.000000e+00> : vector<25x25xf32>
    %147 = tpu.matmul %145, %146, %cst_68 {dimension_numbers = #tpu.dot_dimension_numbers<[1], [1], [0], [0], [0, 0, 1, 0], [], []>} : vector<25x8xf32>, vector<25x8xf32>, vector<25x25xf32> -> vector<25x25xf32>
    %148 = vector.shape_cast %138 : vector<25x25xf32> to vector<1x25x25xf32>
    %149 = vector.shape_cast %141 : vector<25x25xf32> to vector<1x25x25xf32>
    %150 = vector.shape_cast %144 : vector<25x25xf32> to vector<1x25x25xf32>
    %151 = vector.shape_cast %147 : vector<25x25xf32> to vector<1x25x25xf32>
    %152 = tpu.concatenate %148, %149, %150, %151 in 0 : vector<1x25x25xf32>, vector<1x25x25xf32>, vector<1x25x25xf32>, vector<1x25x25xf32> -> vector<4x25x25xf32>
    %cst_69 = arith.constant dense<0xFF800000> : vector<4x25xf32>
    %153 = vector.multi_reduction <maximumf>, %152, %cst_69 [2] : vector<4x25x25xf32> to vector<4x25xf32>
    %154 = vector.shape_cast %153 : vector<4x25xf32> to vector<4x25x1xf32>
    %155 = vector.broadcast %154 : vector<4x25x1xf32> to vector<4x25x25xf32>
    %156 = arith.subf %152, %155 : vector<4x25x25xf32>
    %157 = math.exp %156 : vector<4x25x25xf32>
    %cst_70 = arith.constant dense<0.000000e+00> : vector<4x25xf32>
    %158 = vector.multi_reduction <add>, %157, %cst_70 [2] : vector<4x25x25xf32> to vector<4x25xf32>
    %159 = vector.shape_cast %158 : vector<4x25xf32> to vector<4x25x1xf32>
    %160 = tpu.reciprocal %159 {approx = true} : vector<4x25x1xf32> -> vector<4x25x1xf32>
    %161 = vector.broadcast %160 : vector<4x25x1xf32> to vector<4x25x25xf32>
    %162 = arith.mulf %157, %161 : vector<4x25x25xf32>
    %c0_71 = arith.constant 0 : index
    %c0_72 = arith.constant 0 : index
    %163 = vector.load %arg19[%c0_71, %c0_72] : memref<1x32xf32, #tpu.memory_space<vmem>>, vector<1x32xf32>
    %164 = vector.extract_strided_slice %134 {offsets = [0, 64], sizes = [25, 8], strides = [1, 1]} : vector<25x96xf32> to vector<25x8xf32>
    %165 = vector.extract_strided_slice %162 {offsets = [0, 0, 0], sizes = [1, 25, 25], strides = [1, 1, 1]} : vector<4x25x25xf32> to vector<1x25x25xf32>
    %166 = vector.shape_cast %165 : vector<1x25x25xf32> to vector<25x25xf32>
    %cst_73 = arith.constant dense<0.000000e+00> : vector<25x8xf32>
    %167 = tpu.matmul %166, %164, %cst_73 {dimension_numbers = #tpu.dot_dimension_numbers<[1], [0], [0], [1], [0, 0, 1, 1], [], []>} : vector<25x25xf32>, vector<25x8xf32>, vector<25x8xf32> -> vector<25x8xf32>
    %168 = vector.extract_strided_slice %135 {offsets = [0, 0], sizes = [8, 32], strides = [1, 1]} : vector<32x32xf32> to vector<8x32xf32>
    %cst_74 = arith.constant dense<0.000000e+00> : vector<25x32xf32>
    %169 = tpu.matmul %167, %168, %cst_74 {dimension_numbers = #tpu.dot_dimension_numbers<[1], [0], [0], [1], [0, 0, 1, 1], [], []>} : vector<25x8xf32>, vector<8x32xf32>, vector<25x32xf32> -> vector<25x32xf32>
    %170 = vector.broadcast %163 : vector<1x32xf32> to vector<25x32xf32>
    %171 = arith.addf %170, %169 : vector<25x32xf32>
    %172 = vector.extract_strided_slice %134 {offsets = [0, 72], sizes = [25, 8], strides = [1, 1]} : vector<25x96xf32> to vector<25x8xf32>
    %173 = vector.extract_strided_slice %162 {offsets = [1, 0, 0], sizes = [1, 25, 25], strides = [1, 1, 1]} : vector<4x25x25xf32> to vector<1x25x25xf32>
    %174 = vector.shape_cast %173 : vector<1x25x25xf32> to vector<25x25xf32>
    %cst_75 = arith.constant dense<0.000000e+00> : vector<25x8xf32>
    %175 = tpu.matmul %174, %172, %cst_75 {dimension_numbers = #tpu.dot_dimension_numbers<[1], [0], [0], [1], [0, 0, 1, 1], [], []>} : vector<25x25xf32>, vector<25x8xf32>, vector<25x8xf32> -> vector<25x8xf32>
    %176 = vector.extract_strided_slice %135 {offsets = [8, 0], sizes = [8, 32], strides = [1, 1]} : vector<32x32xf32> to vector<8x32xf32>
    %cst_76 = arith.constant dense<0.000000e+00> : vector<25x32xf32>
    %177 = tpu.matmul %175, %176, %cst_76 {dimension_numbers = #tpu.dot_dimension_numbers<[1], [0], [0], [1], [0, 0, 1, 1], [], []>} : vector<25x8xf32>, vector<8x32xf32>, vector<25x32xf32> -> vector<25x32xf32>
    %178 = arith.addf %171, %177 : vector<25x32xf32>
    %179 = vector.extract_strided_slice %134 {offsets = [0, 80], sizes = [25, 8], strides = [1, 1]} : vector<25x96xf32> to vector<25x8xf32>
    %180 = vector.extract_strided_slice %162 {offsets = [2, 0, 0], sizes = [1, 25, 25], strides = [1, 1, 1]} : vector<4x25x25xf32> to vector<1x25x25xf32>
    %181 = vector.shape_cast %180 : vector<1x25x25xf32> to vector<25x25xf32>
    %cst_77 = arith.constant dense<0.000000e+00> : vector<25x8xf32>
    %182 = tpu.matmul %181, %179, %cst_77 {dimension_numbers = #tpu.dot_dimension_numbers<[1], [0], [0], [1], [0, 0, 1, 1], [], []>} : vector<25x25xf32>, vector<25x8xf32>, vector<25x8xf32> -> vector<25x8xf32>
    %183 = vector.extract_strided_slice %135 {offsets = [16, 0], sizes = [8, 32], strides = [1, 1]} : vector<32x32xf32> to vector<8x32xf32>
    %cst_78 = arith.constant dense<0.000000e+00> : vector<25x32xf32>
    %184 = tpu.matmul %182, %183, %cst_78 {dimension_numbers = #tpu.dot_dimension_numbers<[1], [0], [0], [1], [0, 0, 1, 1], [], []>} : vector<25x8xf32>, vector<8x32xf32>, vector<25x32xf32> -> vector<25x32xf32>
    %185 = arith.addf %178, %184 : vector<25x32xf32>
    %186 = vector.extract_strided_slice %134 {offsets = [0, 88], sizes = [25, 8], strides = [1, 1]} : vector<25x96xf32> to vector<25x8xf32>
    %187 = vector.extract_strided_slice %162 {offsets = [3, 0, 0], sizes = [1, 25, 25], strides = [1, 1, 1]} : vector<4x25x25xf32> to vector<1x25x25xf32>
    %188 = vector.shape_cast %187 : vector<1x25x25xf32> to vector<25x25xf32>
    %cst_79 = arith.constant dense<0.000000e+00> : vector<25x8xf32>
    %189 = tpu.matmul %188, %186, %cst_79 {dimension_numbers = #tpu.dot_dimension_numbers<[1], [0], [0], [1], [0, 0, 1, 1], [], []>} : vector<25x25xf32>, vector<25x8xf32>, vector<25x8xf32> -> vector<25x8xf32>
    %190 = vector.extract_strided_slice %135 {offsets = [24, 0], sizes = [8, 32], strides = [1, 1]} : vector<32x32xf32> to vector<8x32xf32>
    %cst_80 = arith.constant dense<0.000000e+00> : vector<25x32xf32>
    %191 = tpu.matmul %189, %190, %cst_80 {dimension_numbers = #tpu.dot_dimension_numbers<[1], [0], [0], [1], [0, 0, 1, 1], [], []>} : vector<25x8xf32>, vector<8x32xf32>, vector<25x32xf32> -> vector<25x32xf32>
    %192 = arith.addf %185, %191 : vector<25x32xf32>
    %193 = arith.addf %192, %129 : vector<25x32xf32>
    %c0_81 = arith.constant 0 : index
    %c0_82 = arith.constant 0 : index
    %194 = vector.load %arg20[%c0_81, %c0_82] : memref<1x32xf32, #tpu.memory_space<vmem>>, vector<1x32xf32>
    %c0_83 = arith.constant 0 : index
    %c0_84 = arith.constant 0 : index
    %195 = vector.load %arg21[%c0_83, %c0_84] : memref<1x32xf32, #tpu.memory_space<vmem>>, vector<1x32xf32>
    %cst_85 = arith.constant dense<0.000000e+00> : vector<25xf32>
    %196 = vector.multi_reduction <add>, %193, %cst_85 [1] : vector<25x32xf32> to vector<25xf32>
    %197 = vector.shape_cast %196 : vector<25xf32> to vector<25x1xf32>
    %cst_86 = arith.constant 3.200000e+01 : f32
    %198 = vector.broadcast %cst_86 : f32 to vector<25x1xf32>
    %199 = arith.divf %197, %198 : vector<25x1xf32>
    %200 = vector.broadcast %199 : vector<25x1xf32> to vector<25x32xf32>
    %201 = arith.subf %193, %200 : vector<25x32xf32>
    %202 = arith.mulf %201, %201 : vector<25x32xf32>
    %cst_87 = arith.constant dense<0.000000e+00> : vector<25xf32>
    %203 = vector.multi_reduction <add>, %202, %cst_87 [1] : vector<25x32xf32> to vector<25xf32>
    %204 = vector.shape_cast %203 : vector<25xf32> to vector<25x1xf32>
    %cst_88 = arith.constant 3.200000e+01 : f32
    %205 = vector.broadcast %cst_88 : f32 to vector<25x1xf32>
    %206 = arith.divf %204, %205 : vector<25x1xf32>
    %cst_89 = arith.constant 9.99999974E-6 : f32
    %207 = vector.broadcast %cst_89 : f32 to vector<25x1xf32>
    %208 = arith.addf %206, %207 : vector<25x1xf32>
    %209 = math.rsqrt %208 : vector<25x1xf32>
    %210 = vector.broadcast %209 : vector<25x1xf32> to vector<25x32xf32>
    %211 = arith.mulf %201, %210 : vector<25x32xf32>
    %212 = vector.broadcast %194 : vector<1x32xf32> to vector<25x32xf32>
    %213 = arith.mulf %211, %212 : vector<25x32xf32>
    %214 = vector.broadcast %195 : vector<1x32xf32> to vector<25x32xf32>
    %215 = arith.addf %213, %214 : vector<25x32xf32>
    %216 = arith.truncf %215 : vector<25x32xf32> to vector<25x32xbf16>
    %c0_90 = arith.constant 0 : index
    %c0_91 = arith.constant 0 : index
    %217 = vector.load %arg22[%c0_90, %c0_91] : memref<32x2048xbf16, #tpu.memory_space<vmem>>, vector<32x2048xbf16>
    %cst_92 = arith.constant dense<0.000000e+00> : vector<25x2048xf32>
    %218 = tpu.matmul %216, %217, %cst_92 {dimension_numbers = #tpu.dot_dimension_numbers<[1], [0], [0], [1], [0, 0, 1, 1], [], []>} : vector<25x32xbf16>, vector<32x2048xbf16>, vector<25x2048xf32> -> vector<25x2048xf32>
    %219 = arith.truncf %218 : vector<25x2048xf32> to vector<25x2048xbf16>
    %c0_93 = arith.constant 0 : index
    %c0_94 = arith.constant 0 : index
    %220 = vector.load %arg23[%c0_93, %c0_94] : memref<1x2048xbf16, #tpu.memory_space<vmem>>, vector<1x2048xbf16>
    %221 = vector.broadcast %220 : vector<1x2048xbf16> to vector<25x2048xbf16>
    %222 = arith.addf %219, %221 : vector<25x2048xbf16>
    %cst_95 = arith.constant 0.000000e+00 : bf16
    %223 = vector.broadcast %cst_95 : bf16 to vector<25x2048xbf16>
    %224 = arith.maximumf %222, %223 : vector<25x2048xbf16>
    %c0_96 = arith.constant 0 : index
    %c0_97 = arith.constant 0 : index
    %225 = vector.load %arg24[%c0_96, %c0_97] : memref<2048x32xbf16, #tpu.memory_space<vmem>>, vector<2048x32xbf16>
    %cst_98 = arith.constant dense<0.000000e+00> : vector<25x32xf32>
    %226 = tpu.matmul %224, %225, %cst_98 {dimension_numbers = #tpu.dot_dimension_numbers<[1], [0], [0], [1], [0, 0, 1, 1], [], []>} : vector<25x2048xbf16>, vector<2048x32xbf16>, vector<25x32xf32> -> vector<25x32xf32>
    %c0_99 = arith.constant 0 : index
    %c0_100 = arith.constant 0 : index
    %227 = vector.load %arg25[%c0_99, %c0_100] : memref<1x32xf32, #tpu.memory_space<vmem>>, vector<1x32xf32>
    %228 = vector.broadcast %227 : vector<1x32xf32> to vector<25x32xf32>
    %229 = arith.addf %226, %228 : vector<25x32xf32>
    %230 = arith.addf %229, %215 : vector<25x32xf32>
    %c0_101 = arith.constant 0 : index
    %c0_102 = arith.constant 0 : index
    %231 = vector.load %arg26[%c0_101, %c0_102] : memref<1x32xf32, #tpu.memory_space<vmem>>, vector<1x32xf32>
    %c0_103 = arith.constant 0 : index
    %c0_104 = arith.constant 0 : index
    %232 = vector.load %arg27[%c0_103, %c0_104] : memref<1x32xf32, #tpu.memory_space<vmem>>, vector<1x32xf32>
    %cst_105 = arith.constant dense<0.000000e+00> : vector<25xf32>
    %233 = vector.multi_reduction <add>, %230, %cst_105 [1] : vector<25x32xf32> to vector<25xf32>
    %234 = vector.shape_cast %233 : vector<25xf32> to vector<25x1xf32>
    %cst_106 = arith.constant 3.200000e+01 : f32
    %235 = vector.broadcast %cst_106 : f32 to vector<25x1xf32>
    %236 = arith.divf %234, %235 : vector<25x1xf32>
    %237 = vector.broadcast %236 : vector<25x1xf32> to vector<25x32xf32>
    %238 = arith.subf %230, %237 : vector<25x32xf32>
    %239 = arith.mulf %238, %238 : vector<25x32xf32>
    %cst_107 = arith.constant dense<0.000000e+00> : vector<25xf32>
    %240 = vector.multi_reduction <add>, %239, %cst_107 [1] : vector<25x32xf32> to vector<25xf32>
    %241 = vector.shape_cast %240 : vector<25xf32> to vector<25x1xf32>
    %cst_108 = arith.constant 3.200000e+01 : f32
    %242 = vector.broadcast %cst_108 : f32 to vector<25x1xf32>
    %243 = arith.divf %241, %242 : vector<25x1xf32>
    %cst_109 = arith.constant 9.99999974E-6 : f32
    %244 = vector.broadcast %cst_109 : f32 to vector<25x1xf32>
    %245 = arith.addf %243, %244 : vector<25x1xf32>
    %246 = math.rsqrt %245 : vector<25x1xf32>
    %247 = vector.broadcast %246 : vector<25x1xf32> to vector<25x32xf32>
    %248 = arith.mulf %238, %247 : vector<25x32xf32>
    %249 = vector.broadcast %231 : vector<1x32xf32> to vector<25x32xf32>
    %250 = arith.mulf %248, %249 : vector<25x32xf32>
    %251 = vector.broadcast %232 : vector<1x32xf32> to vector<25x32xf32>
    %252 = arith.addf %250, %251 : vector<25x32xf32>
    %c0_110 = arith.constant 0 : index
    %c0_111 = arith.constant 0 : index
    %253 = vector.load %arg29[%c0_110, %c0_111] : memref<1x10xf32, #tpu.memory_space<vmem>>, vector<1x10xf32>
    %254 = vector.extract_strided_slice %252 {offsets = [0, 0], sizes = [1, 32], strides = [1, 1]} : vector<25x32xf32> to vector<1x32xf32>
    %c0_112 = arith.constant 0 : index
    %c0_113 = arith.constant 0 : index
    %c0_114 = arith.constant 0 : index
    %255 = vector.load %arg28[%c0_112, %c0_113, %c0_114] : memref<25x32x10xf32, #tpu.memory_space<vmem>>, vector<1x32x10xf32>
    %256 = vector.shape_cast %255 : vector<1x32x10xf32> to vector<32x10xf32>
    %cst_115 = arith.constant dense<0.000000e+00> : vector<1x10xf32>
    %257 = tpu.matmul %254, %256, %cst_115 {dimension_numbers = #tpu.dot_dimension_numbers<[1], [0], [0], [1], [0, 0, 1, 1], [], []>} : vector<1x32xf32>, vector<32x10xf32>, vector<1x10xf32> -> vector<1x10xf32>
    %258 = arith.addf %253, %257 : vector<1x10xf32>
    %259 = vector.extract_strided_slice %252 {offsets = [1, 0], sizes = [1, 32], strides = [1, 1]} : vector<25x32xf32> to vector<1x32xf32>
    %c1 = arith.constant 1 : index
    %c0_116 = arith.constant 0 : index
    %c0_117 = arith.constant 0 : index
    %260 = vector.load %arg28[%c1, %c0_116, %c0_117] : memref<25x32x10xf32, #tpu.memory_space<vmem>>, vector<1x32x10xf32>
    %261 = vector.shape_cast %260 : vector<1x32x10xf32> to vector<32x10xf32>
    %cst_118 = arith.constant dense<0.000000e+00> : vector<1x10xf32>
    %262 = tpu.matmul %259, %261, %cst_118 {dimension_numbers = #tpu.dot_dimension_numbers<[1], [0], [0], [1], [0, 0, 1, 1], [], []>} : vector<1x32xf32>, vector<32x10xf32>, vector<1x10xf32> -> vector<1x10xf32>
    %263 = arith.addf %258, %262 : vector<1x10xf32>
    %264 = vector.extract_strided_slice %252 {offsets = [2, 0], sizes = [1, 32], strides = [1, 1]} : vector<25x32xf32> to vector<1x32xf32>
    %c2 = arith.constant 2 : index
    %c0_119 = arith.constant 0 : index
    %c0_120 = arith.constant 0 : index
    %265 = vector.load %arg28[%c2, %c0_119, %c0_120] : memref<25x32x10xf32, #tpu.memory_space<vmem>>, vector<1x32x10xf32>
    %266 = vector.shape_cast %265 : vector<1x32x10xf32> to vector<32x10xf32>
    %cst_121 = arith.constant dense<0.000000e+00> : vector<1x10xf32>
    %267 = tpu.matmul %264, %266, %cst_121 {dimension_numbers = #tpu.dot_dimension_numbers<[1], [0], [0], [1], [0, 0, 1, 1], [], []>} : vector<1x32xf32>, vector<32x10xf32>, vector<1x10xf32> -> vector<1x10xf32>
    %268 = arith.addf %263, %267 : vector<1x10xf32>
    %269 = vector.extract_strided_slice %252 {offsets = [3, 0], sizes = [1, 32], strides = [1, 1]} : vector<25x32xf32> to vector<1x32xf32>
    %c3 = arith.constant 3 : index
    %c0_122 = arith.constant 0 : index
    %c0_123 = arith.constant 0 : index
    %270 = vector.load %arg28[%c3, %c0_122, %c0_123] : memref<25x32x10xf32, #tpu.memory_space<vmem>>, vector<1x32x10xf32>
    %271 = vector.shape_cast %270 : vector<1x32x10xf32> to vector<32x10xf32>
    %cst_124 = arith.constant dense<0.000000e+00> : vector<1x10xf32>
    %272 = tpu.matmul %269, %271, %cst_124 {dimension_numbers = #tpu.dot_dimension_numbers<[1], [0], [0], [1], [0, 0, 1, 1], [], []>} : vector<1x32xf32>, vector<32x10xf32>, vector<1x10xf32> -> vector<1x10xf32>
    %273 = arith.addf %268, %272 : vector<1x10xf32>
    %274 = vector.extract_strided_slice %252 {offsets = [4, 0], sizes = [1, 32], strides = [1, 1]} : vector<25x32xf32> to vector<1x32xf32>
    %c4 = arith.constant 4 : index
    %c0_125 = arith.constant 0 : index
    %c0_126 = arith.constant 0 : index
    %275 = vector.load %arg28[%c4, %c0_125, %c0_126] : memref<25x32x10xf32, #tpu.memory_space<vmem>>, vector<1x32x10xf32>
    %276 = vector.shape_cast %275 : vector<1x32x10xf32> to vector<32x10xf32>
    %cst_127 = arith.constant dense<0.000000e+00> : vector<1x10xf32>
    %277 = tpu.matmul %274, %276, %cst_127 {dimension_numbers = #tpu.dot_dimension_numbers<[1], [0], [0], [1], [0, 0, 1, 1], [], []>} : vector<1x32xf32>, vector<32x10xf32>, vector<1x10xf32> -> vector<1x10xf32>
    %278 = arith.addf %273, %277 : vector<1x10xf32>
    %279 = vector.extract_strided_slice %252 {offsets = [5, 0], sizes = [1, 32], strides = [1, 1]} : vector<25x32xf32> to vector<1x32xf32>
    %c5 = arith.constant 5 : index
    %c0_128 = arith.constant 0 : index
    %c0_129 = arith.constant 0 : index
    %280 = vector.load %arg28[%c5, %c0_128, %c0_129] : memref<25x32x10xf32, #tpu.memory_space<vmem>>, vector<1x32x10xf32>
    %281 = vector.shape_cast %280 : vector<1x32x10xf32> to vector<32x10xf32>
    %cst_130 = arith.constant dense<0.000000e+00> : vector<1x10xf32>
    %282 = tpu.matmul %279, %281, %cst_130 {dimension_numbers = #tpu.dot_dimension_numbers<[1], [0], [0], [1], [0, 0, 1, 1], [], []>} : vector<1x32xf32>, vector<32x10xf32>, vector<1x10xf32> -> vector<1x10xf32>
    %283 = arith.addf %278, %282 : vector<1x10xf32>
    %284 = vector.extract_strided_slice %252 {offsets = [6, 0], sizes = [1, 32], strides = [1, 1]} : vector<25x32xf32> to vector<1x32xf32>
    %c6 = arith.constant 6 : index
    %c0_131 = arith.constant 0 : index
    %c0_132 = arith.constant 0 : index
    %285 = vector.load %arg28[%c6, %c0_131, %c0_132] : memref<25x32x10xf32, #tpu.memory_space<vmem>>, vector<1x32x10xf32>
    %286 = vector.shape_cast %285 : vector<1x32x10xf32> to vector<32x10xf32>
    %cst_133 = arith.constant dense<0.000000e+00> : vector<1x10xf32>
    %287 = tpu.matmul %284, %286, %cst_133 {dimension_numbers = #tpu.dot_dimension_numbers<[1], [0], [0], [1], [0, 0, 1, 1], [], []>} : vector<1x32xf32>, vector<32x10xf32>, vector<1x10xf32> -> vector<1x10xf32>
    %288 = arith.addf %283, %287 : vector<1x10xf32>
    %289 = vector.extract_strided_slice %252 {offsets = [7, 0], sizes = [1, 32], strides = [1, 1]} : vector<25x32xf32> to vector<1x32xf32>
    %c7 = arith.constant 7 : index
    %c0_134 = arith.constant 0 : index
    %c0_135 = arith.constant 0 : index
    %290 = vector.load %arg28[%c7, %c0_134, %c0_135] : memref<25x32x10xf32, #tpu.memory_space<vmem>>, vector<1x32x10xf32>
    %291 = vector.shape_cast %290 : vector<1x32x10xf32> to vector<32x10xf32>
    %cst_136 = arith.constant dense<0.000000e+00> : vector<1x10xf32>
    %292 = tpu.matmul %289, %291, %cst_136 {dimension_numbers = #tpu.dot_dimension_numbers<[1], [0], [0], [1], [0, 0, 1, 1], [], []>} : vector<1x32xf32>, vector<32x10xf32>, vector<1x10xf32> -> vector<1x10xf32>
    %293 = arith.addf %288, %292 : vector<1x10xf32>
    %294 = vector.extract_strided_slice %252 {offsets = [8, 0], sizes = [1, 32], strides = [1, 1]} : vector<25x32xf32> to vector<1x32xf32>
    %c8 = arith.constant 8 : index
    %c0_137 = arith.constant 0 : index
    %c0_138 = arith.constant 0 : index
    %295 = vector.load %arg28[%c8, %c0_137, %c0_138] : memref<25x32x10xf32, #tpu.memory_space<vmem>>, vector<1x32x10xf32>
    %296 = vector.shape_cast %295 : vector<1x32x10xf32> to vector<32x10xf32>
    %cst_139 = arith.constant dense<0.000000e+00> : vector<1x10xf32>
    %297 = tpu.matmul %294, %296, %cst_139 {dimension_numbers = #tpu.dot_dimension_numbers<[1], [0], [0], [1], [0, 0, 1, 1], [], []>} : vector<1x32xf32>, vector<32x10xf32>, vector<1x10xf32> -> vector<1x10xf32>
    %298 = arith.addf %293, %297 : vector<1x10xf32>
    %299 = vector.extract_strided_slice %252 {offsets = [9, 0], sizes = [1, 32], strides = [1, 1]} : vector<25x32xf32> to vector<1x32xf32>
    %c9 = arith.constant 9 : index
    %c0_140 = arith.constant 0 : index
    %c0_141 = arith.constant 0 : index
    %300 = vector.load %arg28[%c9, %c0_140, %c0_141] : memref<25x32x10xf32, #tpu.memory_space<vmem>>, vector<1x32x10xf32>
    %301 = vector.shape_cast %300 : vector<1x32x10xf32> to vector<32x10xf32>
    %cst_142 = arith.constant dense<0.000000e+00> : vector<1x10xf32>
    %302 = tpu.matmul %299, %301, %cst_142 {dimension_numbers = #tpu.dot_dimension_numbers<[1], [0], [0], [1], [0, 0, 1, 1], [], []>} : vector<1x32xf32>, vector<32x10xf32>, vector<1x10xf32> -> vector<1x10xf32>
    %303 = arith.addf %298, %302 : vector<1x10xf32>
    %304 = vector.extract_strided_slice %252 {offsets = [10, 0], sizes = [1, 32], strides = [1, 1]} : vector<25x32xf32> to vector<1x32xf32>
    %c10 = arith.constant 10 : index
    %c0_143 = arith.constant 0 : index
    %c0_144 = arith.constant 0 : index
    %305 = vector.load %arg28[%c10, %c0_143, %c0_144] : memref<25x32x10xf32, #tpu.memory_space<vmem>>, vector<1x32x10xf32>
    %306 = vector.shape_cast %305 : vector<1x32x10xf32> to vector<32x10xf32>
    %cst_145 = arith.constant dense<0.000000e+00> : vector<1x10xf32>
    %307 = tpu.matmul %304, %306, %cst_145 {dimension_numbers = #tpu.dot_dimension_numbers<[1], [0], [0], [1], [0, 0, 1, 1], [], []>} : vector<1x32xf32>, vector<32x10xf32>, vector<1x10xf32> -> vector<1x10xf32>
    %308 = arith.addf %303, %307 : vector<1x10xf32>
    %309 = vector.extract_strided_slice %252 {offsets = [11, 0], sizes = [1, 32], strides = [1, 1]} : vector<25x32xf32> to vector<1x32xf32>
    %c11 = arith.constant 11 : index
    %c0_146 = arith.constant 0 : index
    %c0_147 = arith.constant 0 : index
    %310 = vector.load %arg28[%c11, %c0_146, %c0_147] : memref<25x32x10xf32, #tpu.memory_space<vmem>>, vector<1x32x10xf32>
    %311 = vector.shape_cast %310 : vector<1x32x10xf32> to vector<32x10xf32>
    %cst_148 = arith.constant dense<0.000000e+00> : vector<1x10xf32>
    %312 = tpu.matmul %309, %311, %cst_148 {dimension_numbers = #tpu.dot_dimension_numbers<[1], [0], [0], [1], [0, 0, 1, 1], [], []>} : vector<1x32xf32>, vector<32x10xf32>, vector<1x10xf32> -> vector<1x10xf32>
    %313 = arith.addf %308, %312 : vector<1x10xf32>
    %314 = vector.extract_strided_slice %252 {offsets = [12, 0], sizes = [1, 32], strides = [1, 1]} : vector<25x32xf32> to vector<1x32xf32>
    %c12 = arith.constant 12 : index
    %c0_149 = arith.constant 0 : index
    %c0_150 = arith.constant 0 : index
    %315 = vector.load %arg28[%c12, %c0_149, %c0_150] : memref<25x32x10xf32, #tpu.memory_space<vmem>>, vector<1x32x10xf32>
    %316 = vector.shape_cast %315 : vector<1x32x10xf32> to vector<32x10xf32>
    %cst_151 = arith.constant dense<0.000000e+00> : vector<1x10xf32>
    %317 = tpu.matmul %314, %316, %cst_151 {dimension_numbers = #tpu.dot_dimension_numbers<[1], [0], [0], [1], [0, 0, 1, 1], [], []>} : vector<1x32xf32>, vector<32x10xf32>, vector<1x10xf32> -> vector<1x10xf32>
    %318 = arith.addf %313, %317 : vector<1x10xf32>
    %319 = vector.extract_strided_slice %252 {offsets = [13, 0], sizes = [1, 32], strides = [1, 1]} : vector<25x32xf32> to vector<1x32xf32>
    %c13 = arith.constant 13 : index
    %c0_152 = arith.constant 0 : index
    %c0_153 = arith.constant 0 : index
    %320 = vector.load %arg28[%c13, %c0_152, %c0_153] : memref<25x32x10xf32, #tpu.memory_space<vmem>>, vector<1x32x10xf32>
    %321 = vector.shape_cast %320 : vector<1x32x10xf32> to vector<32x10xf32>
    %cst_154 = arith.constant dense<0.000000e+00> : vector<1x10xf32>
    %322 = tpu.matmul %319, %321, %cst_154 {dimension_numbers = #tpu.dot_dimension_numbers<[1], [0], [0], [1], [0, 0, 1, 1], [], []>} : vector<1x32xf32>, vector<32x10xf32>, vector<1x10xf32> -> vector<1x10xf32>
    %323 = arith.addf %318, %322 : vector<1x10xf32>
    %324 = vector.extract_strided_slice %252 {offsets = [14, 0], sizes = [1, 32], strides = [1, 1]} : vector<25x32xf32> to vector<1x32xf32>
    %c14 = arith.constant 14 : index
    %c0_155 = arith.constant 0 : index
    %c0_156 = arith.constant 0 : index
    %325 = vector.load %arg28[%c14, %c0_155, %c0_156] : memref<25x32x10xf32, #tpu.memory_space<vmem>>, vector<1x32x10xf32>
    %326 = vector.shape_cast %325 : vector<1x32x10xf32> to vector<32x10xf32>
    %cst_157 = arith.constant dense<0.000000e+00> : vector<1x10xf32>
    %327 = tpu.matmul %324, %326, %cst_157 {dimension_numbers = #tpu.dot_dimension_numbers<[1], [0], [0], [1], [0, 0, 1, 1], [], []>} : vector<1x32xf32>, vector<32x10xf32>, vector<1x10xf32> -> vector<1x10xf32>
    %328 = arith.addf %323, %327 : vector<1x10xf32>
    %329 = vector.extract_strided_slice %252 {offsets = [15, 0], sizes = [1, 32], strides = [1, 1]} : vector<25x32xf32> to vector<1x32xf32>
    %c15 = arith.constant 15 : index
    %c0_158 = arith.constant 0 : index
    %c0_159 = arith.constant 0 : index
    %330 = vector.load %arg28[%c15, %c0_158, %c0_159] : memref<25x32x10xf32, #tpu.memory_space<vmem>>, vector<1x32x10xf32>
    %331 = vector.shape_cast %330 : vector<1x32x10xf32> to vector<32x10xf32>
    %cst_160 = arith.constant dense<0.000000e+00> : vector<1x10xf32>
    %332 = tpu.matmul %329, %331, %cst_160 {dimension_numbers = #tpu.dot_dimension_numbers<[1], [0], [0], [1], [0, 0, 1, 1], [], []>} : vector<1x32xf32>, vector<32x10xf32>, vector<1x10xf32> -> vector<1x10xf32>
    %333 = arith.addf %328, %332 : vector<1x10xf32>
    %334 = vector.extract_strided_slice %252 {offsets = [16, 0], sizes = [1, 32], strides = [1, 1]} : vector<25x32xf32> to vector<1x32xf32>
    %c16 = arith.constant 16 : index
    %c0_161 = arith.constant 0 : index
    %c0_162 = arith.constant 0 : index
    %335 = vector.load %arg28[%c16, %c0_161, %c0_162] : memref<25x32x10xf32, #tpu.memory_space<vmem>>, vector<1x32x10xf32>
    %336 = vector.shape_cast %335 : vector<1x32x10xf32> to vector<32x10xf32>
    %cst_163 = arith.constant dense<0.000000e+00> : vector<1x10xf32>
    %337 = tpu.matmul %334, %336, %cst_163 {dimension_numbers = #tpu.dot_dimension_numbers<[1], [0], [0], [1], [0, 0, 1, 1], [], []>} : vector<1x32xf32>, vector<32x10xf32>, vector<1x10xf32> -> vector<1x10xf32>
    %338 = arith.addf %333, %337 : vector<1x10xf32>
    %339 = vector.extract_strided_slice %252 {offsets = [17, 0], sizes = [1, 32], strides = [1, 1]} : vector<25x32xf32> to vector<1x32xf32>
    %c17 = arith.constant 17 : index
    %c0_164 = arith.constant 0 : index
    %c0_165 = arith.constant 0 : index
    %340 = vector.load %arg28[%c17, %c0_164, %c0_165] : memref<25x32x10xf32, #tpu.memory_space<vmem>>, vector<1x32x10xf32>
    %341 = vector.shape_cast %340 : vector<1x32x10xf32> to vector<32x10xf32>
    %cst_166 = arith.constant dense<0.000000e+00> : vector<1x10xf32>
    %342 = tpu.matmul %339, %341, %cst_166 {dimension_numbers = #tpu.dot_dimension_numbers<[1], [0], [0], [1], [0, 0, 1, 1], [], []>} : vector<1x32xf32>, vector<32x10xf32>, vector<1x10xf32> -> vector<1x10xf32>
    %343 = arith.addf %338, %342 : vector<1x10xf32>
    %344 = vector.extract_strided_slice %252 {offsets = [18, 0], sizes = [1, 32], strides = [1, 1]} : vector<25x32xf32> to vector<1x32xf32>
    %c18 = arith.constant 18 : index
    %c0_167 = arith.constant 0 : index
    %c0_168 = arith.constant 0 : index
    %345 = vector.load %arg28[%c18, %c0_167, %c0_168] : memref<25x32x10xf32, #tpu.memory_space<vmem>>, vector<1x32x10xf32>
    %346 = vector.shape_cast %345 : vector<1x32x10xf32> to vector<32x10xf32>
    %cst_169 = arith.constant dense<0.000000e+00> : vector<1x10xf32>
    %347 = tpu.matmul %344, %346, %cst_169 {dimension_numbers = #tpu.dot_dimension_numbers<[1], [0], [0], [1], [0, 0, 1, 1], [], []>} : vector<1x32xf32>, vector<32x10xf32>, vector<1x10xf32> -> vector<1x10xf32>
    %348 = arith.addf %343, %347 : vector<1x10xf32>
    %349 = vector.extract_strided_slice %252 {offsets = [19, 0], sizes = [1, 32], strides = [1, 1]} : vector<25x32xf32> to vector<1x32xf32>
    %c19 = arith.constant 19 : index
    %c0_170 = arith.constant 0 : index
    %c0_171 = arith.constant 0 : index
    %350 = vector.load %arg28[%c19, %c0_170, %c0_171] : memref<25x32x10xf32, #tpu.memory_space<vmem>>, vector<1x32x10xf32>
    %351 = vector.shape_cast %350 : vector<1x32x10xf32> to vector<32x10xf32>
    %cst_172 = arith.constant dense<0.000000e+00> : vector<1x10xf32>
    %352 = tpu.matmul %349, %351, %cst_172 {dimension_numbers = #tpu.dot_dimension_numbers<[1], [0], [0], [1], [0, 0, 1, 1], [], []>} : vector<1x32xf32>, vector<32x10xf32>, vector<1x10xf32> -> vector<1x10xf32>
    %353 = arith.addf %348, %352 : vector<1x10xf32>
    %354 = vector.extract_strided_slice %252 {offsets = [20, 0], sizes = [1, 32], strides = [1, 1]} : vector<25x32xf32> to vector<1x32xf32>
    %c20 = arith.constant 20 : index
    %c0_173 = arith.constant 0 : index
    %c0_174 = arith.constant 0 : index
    %355 = vector.load %arg28[%c20, %c0_173, %c0_174] : memref<25x32x10xf32, #tpu.memory_space<vmem>>, vector<1x32x10xf32>
    %356 = vector.shape_cast %355 : vector<1x32x10xf32> to vector<32x10xf32>
    %cst_175 = arith.constant dense<0.000000e+00> : vector<1x10xf32>
    %357 = tpu.matmul %354, %356, %cst_175 {dimension_numbers = #tpu.dot_dimension_numbers<[1], [0], [0], [1], [0, 0, 1, 1], [], []>} : vector<1x32xf32>, vector<32x10xf32>, vector<1x10xf32> -> vector<1x10xf32>
    %358 = arith.addf %353, %357 : vector<1x10xf32>
    %359 = vector.extract_strided_slice %252 {offsets = [21, 0], sizes = [1, 32], strides = [1, 1]} : vector<25x32xf32> to vector<1x32xf32>
    %c21 = arith.constant 21 : index
    %c0_176 = arith.constant 0 : index
    %c0_177 = arith.constant 0 : index
    %360 = vector.load %arg28[%c21, %c0_176, %c0_177] : memref<25x32x10xf32, #tpu.memory_space<vmem>>, vector<1x32x10xf32>
    %361 = vector.shape_cast %360 : vector<1x32x10xf32> to vector<32x10xf32>
    %cst_178 = arith.constant dense<0.000000e+00> : vector<1x10xf32>
    %362 = tpu.matmul %359, %361, %cst_178 {dimension_numbers = #tpu.dot_dimension_numbers<[1], [0], [0], [1], [0, 0, 1, 1], [], []>} : vector<1x32xf32>, vector<32x10xf32>, vector<1x10xf32> -> vector<1x10xf32>
    %363 = arith.addf %358, %362 : vector<1x10xf32>
    %364 = vector.extract_strided_slice %252 {offsets = [22, 0], sizes = [1, 32], strides = [1, 1]} : vector<25x32xf32> to vector<1x32xf32>
    %c22 = arith.constant 22 : index
    %c0_179 = arith.constant 0 : index
    %c0_180 = arith.constant 0 : index
    %365 = vector.load %arg28[%c22, %c0_179, %c0_180] : memref<25x32x10xf32, #tpu.memory_space<vmem>>, vector<1x32x10xf32>
    %366 = vector.shape_cast %365 : vector<1x32x10xf32> to vector<32x10xf32>
    %cst_181 = arith.constant dense<0.000000e+00> : vector<1x10xf32>
    %367 = tpu.matmul %364, %366, %cst_181 {dimension_numbers = #tpu.dot_dimension_numbers<[1], [0], [0], [1], [0, 0, 1, 1], [], []>} : vector<1x32xf32>, vector<32x10xf32>, vector<1x10xf32> -> vector<1x10xf32>
    %368 = arith.addf %363, %367 : vector<1x10xf32>
    %369 = vector.extract_strided_slice %252 {offsets = [23, 0], sizes = [1, 32], strides = [1, 1]} : vector<25x32xf32> to vector<1x32xf32>
    %c23 = arith.constant 23 : index
    %c0_182 = arith.constant 0 : index
    %c0_183 = arith.constant 0 : index
    %370 = vector.load %arg28[%c23, %c0_182, %c0_183] : memref<25x32x10xf32, #tpu.memory_space<vmem>>, vector<1x32x10xf32>
    %371 = vector.shape_cast %370 : vector<1x32x10xf32> to vector<32x10xf32>
    %cst_184 = arith.constant dense<0.000000e+00> : vector<1x10xf32>
    %372 = tpu.matmul %369, %371, %cst_184 {dimension_numbers = #tpu.dot_dimension_numbers<[1], [0], [0], [1], [0, 0, 1, 1], [], []>} : vector<1x32xf32>, vector<32x10xf32>, vector<1x10xf32> -> vector<1x10xf32>
    %373 = arith.addf %368, %372 : vector<1x10xf32>
    %374 = vector.extract_strided_slice %252 {offsets = [24, 0], sizes = [1, 32], strides = [1, 1]} : vector<25x32xf32> to vector<1x32xf32>
    %c24 = arith.constant 24 : index
    %c0_185 = arith.constant 0 : index
    %c0_186 = arith.constant 0 : index
    %375 = vector.load %arg28[%c24, %c0_185, %c0_186] : memref<25x32x10xf32, #tpu.memory_space<vmem>>, vector<1x32x10xf32>
    %376 = vector.shape_cast %375 : vector<1x32x10xf32> to vector<32x10xf32>
    %cst_187 = arith.constant dense<0.000000e+00> : vector<1x10xf32>
    %377 = tpu.matmul %374, %376, %cst_187 {dimension_numbers = #tpu.dot_dimension_numbers<[1], [0], [0], [1], [0, 0, 1, 1], [], []>} : vector<1x32xf32>, vector<32x10xf32>, vector<1x10xf32> -> vector<1x10xf32>
    %378 = arith.addf %373, %377 : vector<1x10xf32>
    %c0_188 = arith.constant 0 : index
    %c0_189 = arith.constant 0 : index
    %c0_190 = arith.constant 0 : index
    %379 = vector.load %arg30[%c0_188, %c0_189, %c0_190] : memref<1x1x10xf32, #tpu.memory_space<vmem>>, vector<1x1x10xf32>
    %380 = vector.shape_cast %379 : vector<1x1x10xf32> to vector<1x10xf32>
    %381 = vector.shape_cast %378 : vector<1x10xf32> to vector<1x1x10xf32>
    tpu.vector_store %arg30[%c0_188, %c0_189, %c0_190], %381 {strides = array<i32>} : memref<1x1x10xf32, #tpu.memory_space<vmem>>, vector<1x1x10xf32>,
    return
  }
  func.func @transform_0(%arg0: i32) -> (i32, i32, i32) {
    %c0_i32 = arith.constant 0 : i32
    %c0_i32_0 = arith.constant 0 : i32
    %c0_i32_1 = arith.constant 0 : i32
    return %arg0, %c0_i32, %c0_i32_0 : i32, i32, i32
  }
  func.func @transform_1(%arg0: i32) -> (i32, i32) {
    %c0_i32 = arith.constant 0 : i32
    %c0_i32_0 = arith.constant 0 : i32
    %c0_i32_1 = arith.constant 0 : i32
    return %c0_i32, %c0_i32_0 : i32, i32
  }
  func.func @transform_2(%arg0: i32) -> (i32, i32) {
    %c0_i32 = arith.constant 0 : i32
    %c0_i32_0 = arith.constant 0 : i32
    %c0_i32_1 = arith.constant 0 : i32
    return %c0_i32, %c0_i32_0 : i32, i32
  }
  func.func @transform_3(%arg0: i32) -> (i32, i32) {
    %c0_i32 = arith.constant 0 : i32
    %c0_i32_0 = arith.constant 0 : i32
    %c0_i32_1 = arith.constant 0 : i32
    return %c0_i32, %c0_i32_0 : i32, i32
  }
  func.func @transform_4(%arg0: i32) -> (i32, i32) {
    %c0_i32 = arith.constant 0 : i32
    %c0_i32_0 = arith.constant 0 : i32
    %c0_i32_1 = arith.constant 0 : i32
    return %c0_i32, %c0_i32_0 : i32, i32
  }
  func.func @transform_5(%arg0: i32) -> (i32, i32) {
    %c0_i32 = arith.constant 0 : i32
    %c0_i32_0 = arith.constant 0 : i32
    %c0_i32_1 = arith.constant 0 : i32
    return %c0_i32, %c0_i32_0 : i32, i32
  }
  func.func @transform_6(%arg0: i32) -> (i32, i32) {
    %c0_i32 = arith.constant 0 : i32
    %c0_i32_0 = arith.constant 0 : i32
    %c0_i32_1 = arith.constant 0 : i32
    return %c0_i32, %c0_i32_0 : i32, i32
  }
  func.func @transform_7(%arg0: i32) -> (i32, i32) {
    %c0_i32 = arith.constant 0 : i32
    %c0_i32_0 = arith.constant 0 : i32
    %c0_i32_1 = arith.constant 0 : i32
    return %c0_i32, %c0_i32_0 : i32, i32
  }
  func.func @transform_8(%arg0: i32) -> (i32, i32) {
    %c0_i32 = arith.constant 0 : i32
    %c0_i32_0 = arith.constant 0 : i32
    %c0_i32_1 = arith.constant 0 : i32
    return %c0_i32, %c0_i32_0 : i32, i32
  }
  func.func @transform_9(%arg0: i32) -> (i32, i32) {
    %c0_i32 = arith.constant 0 : i32
    %c0_i32_0 = arith.constant 0 : i32
    %c0_i32_1 = arith.constant 0 : i32
    return %c0_i32, %c0_i32_0 : i32, i32
  }
  func.func @transform_10(%arg0: i32) -> (i32, i32) {
    %c0_i32 = arith.constant 0 : i32
    %c0_i32_0 = arith.constant 0 : i32
    %c0_i32_1 = arith.constant 0 : i32
    return %c0_i32, %c0_i32_0 : i32, i32
  }
  func.func @transform_11(%arg0: i32) -> (i32, i32) {
    %c0_i32 = arith.constant 0 : i32
    %c0_i32_0 = arith.constant 0 : i32
    %c0_i32_1 = arith.constant 0 : i32
    return %c0_i32, %c0_i32_0 : i32, i32
  }
  func.func @transform_12(%arg0: i32) -> (i32, i32) {
    %c0_i32 = arith.constant 0 : i32
    %c0_i32_0 = arith.constant 0 : i32
    %c0_i32_1 = arith.constant 0 : i32
    return %c0_i32, %c0_i32_0 : i32, i32
  }
  func.func @transform_13(%arg0: i32) -> (i32, i32) {
    %c0_i32 = arith.constant 0 : i32
    %c0_i32_0 = arith.constant 0 : i32
    %c0_i32_1 = arith.constant 0 : i32
    return %c0_i32, %c0_i32_0 : i32, i32
  }
  func.func @transform_14(%arg0: i32) -> (i32, i32) {
    %c0_i32 = arith.constant 0 : i32
    %c0_i32_0 = arith.constant 0 : i32
    %c0_i32_1 = arith.constant 0 : i32
    return %c0_i32, %c0_i32_0 : i32, i32
  }
  func.func @transform_15(%arg0: i32) -> (i32, i32) {
    %c0_i32 = arith.constant 0 : i32
    %c0_i32_0 = arith.constant 0 : i32
    %c0_i32_1 = arith.constant 0 : i32
    return %c0_i32, %c0_i32_0 : i32, i32
  }
  func.func @transform_16(%arg0: i32) -> (i32, i32) {
    %c0_i32 = arith.constant 0 : i32
    %c0_i32_0 = arith.constant 0 : i32
    %c0_i32_1 = arith.constant 0 : i32
    return %c0_i32, %c0_i32_0 : i32, i32
  }
  func.func @transform_17(%arg0: i32) -> (i32, i32) {
    %c0_i32 = arith.constant 0 : i32
    %c0_i32_0 = arith.constant 0 : i32
    %c0_i32_1 = arith.constant 0 : i32
    return %c0_i32, %c0_i32_0 : i32, i32
  }
  func.func @transform_18(%arg0: i32) -> (i32, i32) {
    %c0_i32 = arith.constant 0 : i32
    %c0_i32_0 = arith.constant 0 : i32
    %c0_i32_1 = arith.constant 0 : i32
    return %c0_i32, %c0_i32_0 : i32, i32
  }
  func.func @transform_19(%arg0: i32) -> (i32, i32) {
    %c0_i32 = arith.constant 0 : i32
    %c0_i32_0 = arith.constant 0 : i32
    %c0_i32_1 = arith.constant 0 : i32
    return %c0_i32, %c0_i32_0 : i32, i32
  }
  func.func @transform_20(%arg0: i32) -> (i32, i32) {
    %c0_i32 = arith.constant 0 : i32
    %c0_i32_0 = arith.constant 0 : i32
    %c0_i32_1 = arith.constant 0 : i32
    return %c0_i32, %c0_i32_0 : i32, i32
  }
  func.func @transform_21(%arg0: i32) -> (i32, i32) {
    %c0_i32 = arith.constant 0 : i32
    %c0_i32_0 = arith.constant 0 : i32
    %c0_i32_1 = arith.constant 0 : i32
    return %c0_i32, %c0_i32_0 : i32, i32
  }
  func.func @transform_22(%arg0: i32) -> (i32, i32) {
    %c0_i32 = arith.constant 0 : i32
    %c0_i32_0 = arith.constant 0 : i32
    %c0_i32_1 = arith.constant 0 : i32
    return %c0_i32, %c0_i32_0 : i32, i32
  }
  func.func @transform_23(%arg0: i32) -> (i32, i32) {
    %c0_i32 = arith.constant 0 : i32
    %c0_i32_0 = arith.constant 0 : i32
    %c0_i32_1 = arith.constant 0 : i32
    return %c0_i32, %c0_i32_0 : i32, i32
  }
  func.func @transform_24(%arg0: i32) -> (i32, i32) {
    %c0_i32 = arith.constant 0 : i32
    %c0_i32_0 = arith.constant 0 : i32
    %c0_i32_1 = arith.constant 0 : i32
    return %c0_i32, %c0_i32_0 : i32, i32
  }
  func.func @transform_25(%arg0: i32) -> (i32, i32) {
    %c0_i32 = arith.constant 0 : i32
    %c0_i32_0 = arith.constant 0 : i32
    %c0_i32_1 = arith.constant 0 : i32
    return %c0_i32, %c0_i32_0 : i32, i32
  }
  func.func @transform_26(%arg0: i32) -> (i32, i32) {
    %c0_i32 = arith.constant 0 : i32
    %c0_i32_0 = arith.constant 0 : i32
    %c0_i32_1 = arith.constant 0 : i32
    return %c0_i32, %c0_i32_0 : i32, i32
  }
  func.func @transform_27(%arg0: i32) -> (i32, i32, i32) {
    %c0_i32 = arith.constant 0 : i32
    %c0_i32_0 = arith.constant 0 : i32
    %c0_i32_1 = arith.constant 0 : i32
    %c0_i32_2 = arith.constant 0 : i32
    return %c0_i32, %c0_i32_0, %c0_i32_1 : i32, i32, i32
  }
  func.func @transform_28(%arg0: i32) -> (i32, i32) {
    %c0_i32 = arith.constant 0 : i32
    %c0_i32_0 = arith.constant 0 : i32
    %c0_i32_1 = arith.constant 0 : i32
    return %c0_i32, %c0_i32_0 : i32, i32
  }
  func.func @transform_29(%arg0: i32) -> (i32, i32, i32) {
    %c0_i32 = arith.constant 0 : i32
    %c0_i32_0 = arith.constant 0 : i32
    %c0_i32_1 = arith.constant 0 : i32
    return %arg0, %c0_i32, %c0_i32_0 : i32, i32, i32
  }
}

</mosaic_0001>

<bundles_post_ra>
// kernel: transformer_forward.1
= control target key start
LH: loop header
LB: loop body
LE: loop exit
PB: predicated region body
PF: predicated region fallthrough
CT: control target
= control target key end

     0   :  { %s14491_s6 = smov 1   ;;  %s14492_s10 = smov 2   ;;  %s16760_s0 = inlined_call_operand.smem [shape: u32[30], index: -1, kind: input, shape index: {}] }
   0x1   :  { %s14546_s5 = sld [smem:[%s16760_s0]]   ;;  %s14493_s14 = smov 3  }
   0x2   :  { %s14551_s9 = sld [smem:[%s16760_s0 + %s14491_s6]]   ;;  %s14494_s18 = smov 4  }
   0x3   :  { %s14556_s13 = sld [smem:[%s16760_s0 + %s14492_s10]]   ;;  %s14495_s22 = smov 5  }
   0x4   :  { %s14561_s17 = sld [smem:[%s16760_s0 + %s14493_s14]]   ;;  %s14496_s26 = smov 6  }
   0x5   :  { %s14566_s21 = sld [smem:[%s16760_s0 + %s14494_s18]]   ;;  %s14497_s30 = smov 7  }
   0x6   :  { %s14571_s25 = sld [smem:[%s16760_s0 + %s14495_s22]]   ;;  %s14498_s4 = smov 8  }
   0x7   :  { %16795 = sst [smem:[#allocation5_spill]] %s14546_s5  ;;  %s14499_s10 = smov 9  }
   0x8   :  { %16796 = sst [smem:[#allocation6_spill]] %s14551_s9  ;;  %s14500_s15 = smov 10  }
   0x9   :  { %16797 = sst [smem:[#allocation7_spill]] %s14556_s13  ;;  %s14501_s20 = smov 11  }
   0xa   :  { %s14576_s29 = sld [smem:[%s16760_s0 + %s14496_s26]]   ;;  %s14502_s26 = smov 12  }
   0xb   :  { %s14581_s3 = sld [smem:[%s16760_s0 + %s14497_s30]]   ;;  %s14503_s1 = smov 13  }
   0xc   :  { %s14586_s8 = sld [smem:[%s16760_s0 + %s14498_s4]]   ;;  %s14504_s7 = smov 14  }
   0xd   :  { %s14591_s14 = sld [smem:[%s16760_s0 + %s14499_s10]]   ;;  %s14506_s22 = smov 16  }
   0xe   :  { %s14596_s19 = sld [smem:[%s16760_s0 + %s14500_s15]]   ;;  %s14505_s15 = smov 15  }
   0xf   :  { %s14601_s24 = sld [smem:[%s16760_s0 + %s14501_s20]]   ;;  %s14507_s28 = smov 17  }
  0x10   :  { %s14606_s30 = sld [smem:[%s16760_s0 + %s14502_s26]]  }
  0x11   :  { %16798 = sst [smem:[#allocation8_spill]] %s14581_s3 }
  0x12   :  { %16799 = sst [smem:[#allocation9_spill]] %s14586_s8 }
  0x13   :  { %16800 = sst [smem:[#allocation10_spill]] %s14591_s14 }
  0x14   :  { %s14611_s6 = sld [smem:[%s16760_s0 + %s14503_s1]]  }
  0x15   :  { %s14616_s12 = sld [smem:[%s16760_s0 + %s14504_s7]]   ;;  %s14508_s7 = smov 18  }
  0x16   :  { %s14621_s20 = sld [smem:[%s16760_s0 + %s14505_s15]]   ;;  %s14509_s15 = smov 19  }
  0x17   :  { %s14626_s27 = sld [smem:[%s16760_s0 + %s14506_s22]]   ;;  %s14510_s22 = smov 20  }
  0x18   :  { %s14631_s4 = sld [smem:[%s16760_s0 + %s14507_s28]]   ;;  %s14511_s28 = smov 21  }
  0x1a   :  { %16801 = sst [smem:[#allocation11_spill]] %s14611_s6 }
  0x1b   :  { %16802 = sst [smem:[#allocation12_spill]] %s14616_s12 }
  0x1c   :  { %s14636_s12 = sld [smem:[%s16760_s0 + %s14508_s7]]   ;;  %s14512_s7 = smov 22  }
  0x1d   :  { %16803 = sst [smem:[#allocation13_spill]] %s14626_s27 }
  0x1e   :  { %16804 = sst [smem:[#allocation14_spill]] %s14631_s4 }
  0x1f   :  { %s14641_s6 = sld [smem:[%s16760_s0 + %s14509_s15]]   ;;  %s14513_s15 = smov 23  }
  0x20   :  { %s14646_s27 = sld [smem:[%s16760_s0 + %s14510_s22]]   ;;  %s14514_s22 = smov 24  }
  0x21   :  { %s14651_s4 = sld [smem:[%s16760_s0 + %s14511_s28]]   ;;  %s14515_s28 = smov 25  }
  0x22   :  { %16805 = sst [smem:[#allocation15_spill]] %s14636_s12 }
  0x23   :  { %s14656_s12 = sld [smem:[%s16760_s0 + %s14512_s7]]   ;;  %s14516_s7 = smov 26  }
  0x25   :  { %16806 = sst [smem:[#allocation16_spill]] %s14641_s6 }
  0x26   :  { %16807 = sst [smem:[#allocation17_spill]] %s14646_s27 }
  0x27   :  { %16808 = sst [smem:[#allocation18_spill]] %s14651_s4 }
  0x28   :  { %s14661_s6 = sld [smem:[%s16760_s0 + %s14513_s15]]   ;;  %s14517_s15 = smov 27  }
  0x29   :  { %16809 = sst [smem:[#allocation19_spill]] %s14656_s12 }
  0x2a   :  { %s14666_s27 = sld [smem:[%s16760_s0 + %s14514_s22]]   ;;  %s14518_s22 = smov 28  }
  0x2b   :  { %s14671_s4 = sld [smem:[%s16760_s0 + %s14515_s28]]   ;;  %s14519_s28 = smov 29  }
  0x2c   :  { %s14676_s12 = sld [smem:[%s16760_s0 + %s14516_s7]]  }
  0x2e   :  { %16810 = sst [smem:[#allocation20_spill]] %s14661_s6 }
  0x2f   :  { %s14681_s6 = sld [smem:[%s16760_s0 + %s14517_s15]]  }
  0x30   :  { %16811 = sst [smem:[#allocation21_spill]] %s14666_s27 }
  0x31   :  { %16812 = sst [smem:[#allocation22_spill]] %s14671_s4 }
  0x32   :  { %16813 = sst [smem:[#allocation23_spill]] %s14676_s12 }
  0x33   :  { %s14686_s27 = sld [smem:[%s16760_s0 + %s14518_s22]]  }
  0x34   :  { %s14691_s4 = sld [smem:[%s16760_s0 + %s14519_s28]]  }
  0x35   :  { %16814 = sst [smem:[#allocation24_spill]] %s14681_s6 }
  0x36   :  { %64 = vsyncpa [#allocation3], 0 }
  0x37   :  { %66 = vsyncpa [#allocation3 + $0x1], 0  ;;  %s14693_s7 = smov 0   ;;  %s14695_s10 = smov 0  }
  0x38   :  { %s14697_s11 = smov 0   ;;  %s14699_s15 = smov 0  }
  0x39 LB: > { %s16815_s14 = sld [smem:[#allocation10_spill]]  ;;  %s16816_s9 = sld [smem:[#allocation6_spill]]  ;;  %s14485_s11 = sphi %s14697_s11, %s16876_s11   ;;  %s14481_s10 = sphi %s14695_s10, %s16875_s10   ;;  %s14477_s7 = sphi %s14693_s7, %s16874_s7   ;;  %s14489_s15 = sphi %s14699_s15, %s16877_s15  }
  0x3a   : > { %s16817_s6 = sld [smem:[#allocation24_spill]]  ;;  %s14714_s0 = sadd.s32 4294967295, %s14489_s15  }
  0x3b   : > { %s11325_s16 = sadd.s32 4294967294, %s14489_s15   ;;  %s14718_s18 = sadd.s32 1, %s14489_s15  }
  0x3c   : > { %s693_s22 = sadd.s32 1, %s14485_s11  ;;  %s690_s23 = ssub.s32 %s14489_s15, %s14718_s18 }
  0x3d   : > { %p703_p0 = scmp.ne.s32.totalorder %s14485_s11, %s14481_s10  ;;  %p691_p1 = scmp.eq.s32.totalorder %s690_s23, 0 }
  0x3e   : > { %p704_p2 = scmp.eq.s32.totalorder %s14714_s0, 1  ;;  %p709_p3 = scmp.ne.s32.totalorder %s14481_s10, %s14477_s7 }
  0x3f   : > { %p710_p4 = scmp.eq.s32.totalorder %s11325_s16, 1  ;;  %p11328_p7 = scmp.ge.s32.totalorder %s14489_s15, 1 }
  0x40   : > { %s14729_s26 = scalar_select %p691_p1, %s14485_s11, %s693_s22  }
  0x41   : > { %p14731_p5 = por %p704_p2, %p703_p0  ;;  %p14735_p6 = por %p710_p4, %p709_p3 }
  0x42   : > { %p820_p8 = scmp.lt.s32.totalorder %s14489_s15, 3 }
  0x44   : > { %p821_p9 = pnand %p11328_p7, %p820_p8 }
  0x46   : > { %824 = sbr.rel (%p821_p9) target bundleno = 5915 (0x171b), region = 136 }
  0x4d   : > { %s16820_s5 = sld [smem:[#allocation5_spill]]  ;;  %v905_v0 = vld [vmem:[%s16816_s9] sm:$0xff]  ;;  %v906_v1 = vld [vmem:[%s16816_s9 + $0x8] sm:$0xff]  ;;  %p895_p10 = scmp.lt.s32.totalorder %s14714_s0, 1  ;;  %vm914_vm0 = vcmask 130048   ;;  %v1014_v10 = vld [vmem:[%s14561_s17 + $0x10] sm:$0xff] }
  0x4e   : > { %v1012_v2 = vld [vmem:[%s14561_s17] sm:$0xff]  ;;  %v13335_v3 = vpack.c.bf16 %v906_v1, %v905_v0  ;;  %v1013_v4 = vld [vmem:[%s14561_s17 + $0x8] sm:$0xff]  ;;  %s16821_s13 = sld [smem:[#allocation7_spill]]  ;;  %v1015_v11 = vld [vmem:[%s14561_s17 + $0x18] sm:$0xff]  ;;  %vm1023_vm1 = vcmask 261120   ;;  %vm1137_vm2 = vcmask 64512  }
  0x4f   : > { %s896_s2 = scalar_select %p895_p10, %s14714_s0, 1  ;;  %v13339_v5 = vpack.c.bf16 %v1013_v4, %v1012_v2  ;;  %v13343_v12 = vpack.c.bf16 %v1015_v11, %v1014_v10  ;;  %v11336_v22 = vld [vmem:[%s14566_s21] ss:$0 sm:$0xff]  ;;  %vm14823_vm3 = vmpackc.low %vm1137_vm2, %vm1137_vm2  ;;  %v16822_v39 = vmov 0  ;;  %vm1590_vm4 = vcmask 203776  }
  0x50   : > { %13336 = vmatprep.subr.bf16.mxu0 %v13335_v3  ;;  %s16765_s23 = smov 88   ;;  %v16823_v39 = vsel %vm14823_vm3, 4294967295, %v16822_v39  ;;  %vm1600_vm5 = vcmask 196608   ;;  %vm1792_vm6 = vcmask 1040384   ;;  %vm14529_vm7 = vmmov 1   ;;  %s16828_s3 = sld [smem:[#allocation8_spill]] }
  0x51   : > { %13338 = vmatpush3.bf16.msra.mxu0 %v13335_v3  ;;  %s11970_s16 = sshll.u32 %s896_s2, 5  ;;  %13340 = vmatprep.subr.bf16.mxu1 %v13339_v5  ;;  %s14521_s2 = smov 96   ;;  %16824 = vst [vmem:[#allocation25_spill] sm:$0xff] %v16823_v39  ;;  %vm14977_vm8 = vmpackc.low %vm1792_vm6, %vm14529_vm7  ;;  %vm2635_vm9 = vcmask 253952   ;;  %vm14535_vm10 = vmmov 0   ;;  %vm11226_vm11 = vcmask 73728  }
  0x52   : > { %13342 = vmatpush3.bf16.msra.mxu1 %v13339_v5  ;;  %s16829_s8 = sld [smem:[#allocation9_spill]]  ;;  %s16873_s12 = sld [smem:[#allocation23_spill]] }
  0x53   : > { %s899_s22 = scalar_lea.vmem %s16820_s5, %s11970_s16  ;;  %13344 = vmatprep.subr.bf16.mxu1 %v13343_v12  ;;  %s14522_s16 = smov 120  }
  0x54   : > { %v901_v6 = vld [vmem:[%s899_s22] sm:$0xff]  ;;  %v902_v7 = vld [vmem:[%s899_s22 + $0x8] sm:$0xff]  ;;  %v903_v8 = vld [vmem:[%s899_s22 + $0x10] sm:$0xff]  ;;  %s16769_s5 = smov 72  }
  0x55   : > { %12738 = vmatprep.mubr.msk.f32.mxu0 %vm914_vm0, %v901_v6  ;;  %v904_v9 = vld [vmem:[%s899_s22 + $0x18] sm:$0x1]  ;;  %v11331_v13 = vld [vmem:[%s16821_s13] ss:$0 sm:$0xff]  ;;  %s16767_s22 = smov 80  }
  0x56   : > { %12739 = vmatmul.mubr.msk.f32.vlgmr.msra.gmra.mrb[0].mxu0 %vm914_vm0, %v902_v7  ;;  %13346 = vmatpush3.bf16.msra.mxu1 %v13343_v12 }
  0x57   : > { %12741 = vmatprep.mubr.msk.f32.mxu0 %vm914_vm0, %v903_v8 }
  0x5a   : > { %12742 = vmatmul.mubr.msk.f32.gmra.mrb[2].mxu0 %vm914_vm0, %v904_v9 }
 0x129   : > { %v12740_v14 = vpop.f32.mrb[0].mxu0 }
 0x12a   : > { %v993_v15 = vpop.f32.mrb[1].mxu0  ;;  %v14753_v17 = vadd.f32 %v12740_v14, %v11331_v13 }
 0x12b   : > { %v14751_v16 = vadd.f32 %v11331_v13, %v993_v15 }
 0x12d   : > { %v12743_v18 = vpop.f32.mrb[2].mxu0  ;;  %12752 = vmatprep.mubr.msk.f32.mxu1 %vm1023_vm1, %v14751_v16 }
 0x12e   : > { %v14757_v19 = vadd.f32 %v12743_v18, %v11331_v13  ;;  %v1003_v20 = vpop.f32.mrb[3].mxu0  ;;  %12753 = vmatmul.mubr.msk.f32.vlgmr.msra.gmra.mrb[0].mxu1 %vm1023_vm1, %v14753_v17 }
 0x12f   : > { %v14761_v21 = vadd.f32 %v11331_v13, %v1003_v20 }
 0x131   : > { %12755 = vmatprep.mubr.msk.f32.mxu1 %vm1023_vm1, %v14761_v21 }
 0x132   : > { %12756 = vmatmul.mubr.msk.f32.gmra.mrb[2].mxu1 %vm1023_vm1, %v14757_v19 }
 0x201   : > { %v12754_v23 = vpop.f32.mrb[0].mxu1 }
 0x202   : > { %v14768_v24 = vadd.f32 %v12754_v23, %v11336_v22  ;;  %v1102_v25 = vpop.f32.mrb[1].mxu1 }
 0x203   : > { %v1103_v26 = vadd.f32 %v11336_v22, %v1102_v25 }
 0x205   : > { %v12757_v27 = vpop.f32.mrb[2].mxu1  ;;  %12766 = vmatprep.mubr.msk.f32.mxu0 %vm1137_vm2, %v1103_v26  ;;  %v14772_v28 = vpack.i.bf16 %v14768_v24, %v1103_v26 }
 0x206   : > { %v14774_v29 = vadd.f32 %v12757_v27, %v11336_v22  ;;  %v1112_v30 = vpop.f32.mrb[3].mxu1 }
 0x207   : > { %v14776_v31 = vadd.f32 %v11336_v22, %v1112_v30  ;;  %13858 = vrot.lane.b32.xlu1 %v14772_v28, %s16765_s23  ;;  %13848 = vrot.lane.b32.xlu0 %v14772_v28, %s14521_s2 }
 0x209   : > { %v14784_v32 = vpack.i.bf16 %v14774_v29, %v14776_v31 }
 0x20b   : > { %13873 = vrot.lane.b32.xlu1 %v14784_v32, %s16765_s23  ;;  %13853 = vrot.lane.b32.xlu0 %v14784_v32, %s14521_s2  ;;  %s16775_s23 = smov 112  }
 0x20f   : > { %1239 = vrot.lane.b32.xlu1 %v1103_v26, %s14522_s16  ;;  %13863 = vrot.lane.b32.xlu0 %v14772_v28, %s16767_s22 }
 0x213   : > { %13878 = vrot.lane.b32.xlu1 %v14784_v32, %s16767_s22  ;;  %13868 = vrot.lane.b32.xlu0 %v14772_v28, %s16769_s5  ;;  %s16771_s22 = smov 104  }
 0x217   : > { %1243 = vrot.lane.b32.xlu1 %v14776_v31, %s14522_s16  ;;  %1241 = vrot.lane.b32.xlu0 %v14768_v24, %s14522_s16 }
 0x21b   : > { %13883 = vrot.lane.b32.xlu1 %v14784_v32, %s16769_s5  ;;  %1245 = vrot.lane.b32.xlu0 %v14774_v29, %s14522_s16  ;;  %s16773_s5 = smov 64  }
 0x21f   : > { %1358 = vrot.lane.b32.xlu1 %v14768_v24, %s16775_s23  ;;  %1356 = vrot.lane.b32.xlu0 %v1103_v26, %s16775_s23 }
 0x223   : > { %1362 = vrot.lane.b32.xlu1 %v14774_v29, %s16775_s23  ;;  %1360 = vrot.lane.b32.xlu0 %v14776_v31, %s16775_s23  ;;  %s16785_s23 = smov 40  }
 0x227   : > { %1475 = vrot.lane.b32.xlu1 %v14768_v24, %s16771_s22  ;;  %1473 = vrot.lane.b32.xlu0 %v1103_v26, %s16771_s22 }
 0x22b   : > { %1479 = vrot.lane.b32.xlu1 %v14774_v29, %s16771_s22  ;;  %1477 = vrot.lane.b32.xlu0 %v14776_v31, %s16771_s22  ;;  %s16789_s22 = smov 56  }
 0x22f   : > { %13888 = vrot.lane.b32.xlu1 %v14772_v28, %s16773_s5 }
 0x279   : > { %v13859_v33 = vpop.permute.xlu1 %13858  ;;  %v13849_v34 = vpop.permute.xlu0 %13848 }
 0x27a   : > { %v13861_v35 = vunpack.i.h.bf16 %v13859_v33  ;;  %v13860_v36 = vunpack.i.l.bf16 %v13859_v33  ;;  %v13851_v37 = vunpack.i.h.bf16 %v13849_v34  ;;  %v13850_v38 = vunpack.i.l.bf16 %v13849_v34 }
 0x27c   : > { %v13359_v40 = vpack.c.bf16 %v13861_v35, %v13860_v36  ;;  %v13347_v41 = vpack.c.bf16 %v13851_v37, %v13850_v38 }
 0x27d   : > { %v13874_v42 = vpop.permute.xlu1 %13873  ;;  %v13854_v43 = vpop.permute.xlu0 %13853 }
 0x27e   : > { %v13876_v44 = vunpack.i.h.bf16 %v13874_v42  ;;  %v13875_v45 = vunpack.i.l.bf16 %v13874_v42  ;;  %v13856_v46 = vunpack.i.h.bf16 %v13854_v43  ;;  %v13855_v47 = vunpack.i.l.bf16 %v13854_v43  ;;  %13349 = vmatprep.subr.msk.bf16.mxu0 %vm14823_vm3, %v13347_v41  ;;  %13361 = vmatprep.subr.msk.bf16.mxu1 %vm14823_vm3, %v13359_v40 }
 0x27f   : > { %13352 = vmatpush3.bf16.xpose.msk.msra.mxu0 %vm14823_vm3, %v13347_v41  ;;  %13364 = vmatpush3.bf16.xpose.msk.msra.mxu1 %vm14823_vm3, %v13359_v40 }
 0x280   : > { %v13365_v48 = vpack.c.bf16 %v13876_v44, %v13875_v45  ;;  %v13353_v49 = vpack.c.bf16 %v13856_v46, %v13855_v47 }
 0x281   : > { %v1240_v50 = vpop.permute.xlu1 %1239  ;;  %v13864_v51 = vpop.permute.xlu0 %13863 }
 0x282   : > { %v13866_v52 = vunpack.i.h.bf16 %v13864_v51  ;;  %v13865_v53 = vunpack.i.l.bf16 %v13864_v51  ;;  %12780 = vmatprep.mubr.msk.f32.mxu1 %vm1137_vm2, %v1240_v50  ;;  %13355 = vmatprep.subr.msk.bf16.mxu0 %vm14823_vm3, %v13353_v49 }
 0x283   : > { %13367 = vmatprep.subr.msk.bf16.mxu1 %vm14823_vm3, %v13365_v48 }
 0x284   : > { %v13371_v56 = vpack.c.bf16 %v13866_v52, %v13865_v53 }
 0x285   : > { %v13879_v54 = vpop.permute.xlu1 %13878  ;;  %v13869_v55 = vpop.permute.xlu0 %13868 }
 0x286   : > { %v13871_v57 = vunpack.i.h.bf16 %v13869_v55  ;;  %v13870_v58 = vunpack.i.l.bf16 %v13869_v55  ;;  %v13881_v62 = vunpack.i.h.bf16 %v13879_v54  ;;  %v13880_v63 = vunpack.i.l.bf16 %v13879_v54 }
 0x287   : > { %13358 = vmatpush3.bf16.xpose.msk.msra.mxu0 %vm14823_vm3, %v13353_v49  ;;  %13370 = vmatpush3.bf16.xpose.msk.msra.mxu1 %vm14823_vm3, %v13365_v48 }
 0x288   : > { %v13383_v59 = vpack.c.bf16 %v13871_v57, %v13870_v58  ;;  %13373 = vmatprep.subr.msk.bf16.mxu0 %vm14823_vm3, %v13371_v56  ;;  %v13377_v4 = vpack.c.bf16 %v13881_v62, %v13880_v63 }
 0x289   : > { %v1244_v60 = vpop.permute.xlu1 %1243  ;;  %v1242_v61 = vpop.permute.xlu0 %1241 }
 0x28a   : > { %13385 = vmatprep.subr.msk.bf16.mxu1 %vm14823_vm3, %v13383_v59 }
 0x28d   : > { %v13884_v0 = vpop.permute.xlu1 %13883  ;;  %v1246_v1 = vpop.permute.xlu0 %1245 }
 0x28e   : > { %v13886_v2 = vunpack.i.h.bf16 %v13884_v0  ;;  %v13885_v3 = vunpack.i.l.bf16 %v13884_v0  ;;  %12767 = vmatmul.mubr.msk.f32.vlgmr.msra.gmra.mrb[4].mxu0 %vm1137_vm2, %v14768_v24  ;;  %12781 = vmatmul.mubr.msk.f32.vlgmr.msra.gmra.mrb[4].mxu1 %vm1137_vm2, %v1242_v61 }
 0x28f   : > { %12769 = vmatprep.mubr.msk.f32.mxu0 %vm1137_vm2, %v14776_v31  ;;  %12783 = vmatprep.mubr.msk.f32.mxu1 %vm1137_vm2, %v1244_v60 }
 0x290   : > { %v13389_v5 = vpack.c.bf16 %v13886_v2, %v13885_v3  ;;  %13376 = vmatpush3.bf16.xpose.msk.msra.mxu0 %vm14823_vm3, %v13371_v56  ;;  %13388 = vmatpush3.bf16.xpose.msk.msra.mxu1 %vm14823_vm3, %v13383_v59 }
 0x291   : > { %13379 = vmatprep.subr.msk.bf16.mxu0 %vm14823_vm3, %v13377_v4  ;;  %v1359_v6 = vpop.permute.xlu1 %1358  ;;  %v1357_v7 = vpop.permute.xlu0 %1356 }
 0x292   : > { %12770 = vmatmul.mubr.msk.f32.gmra.mrb[6].mxu0 %vm1137_vm2, %v14774_v29  ;;  %12784 = vmatmul.mubr.msk.f32.gmra.mrb[6].mxu1 %vm1137_vm2, %v1246_v1 }
 0x293   : > { %13391 = vmatprep.subr.msk.bf16.mxu1 %vm14823_vm3, %v13389_v5  ;;  %12794 = vmatprep.mubr.msk.f32.mxu0 %vm1137_vm2, %v1357_v7 }
 0x295   : > { %v1363_v8 = vpop.permute.xlu1 %1362  ;;  %v1361_v9 = vpop.permute.xlu0 %1360 }
 0x298   : > { %13382 = vmatpush3.bf16.xpose.msk.msra.mxu0 %vm14823_vm3, %v13377_v4  ;;  %13394 = vmatpush3.bf16.xpose.msk.msra.mxu1 %vm14823_vm3, %v13389_v5 }
 0x299   : > { %v1476_v10 = vpop.permute.xlu1 %1475  ;;  %v1474_v11 = vpop.permute.xlu0 %1473 }
 0x29a   : > { %12808 = vmatprep.mubr.msk.f32.mxu1 %vm1137_vm2, %v1474_v11 }
 0x29d   : > { %v1480_v12 = vpop.permute.xlu1 %1479  ;;  %v1478_v13 = vpop.permute.xlu0 %1477 }
 0x29f   : > { %12795 = vmatmul.mubr.msk.f32.vlgmr.msra.gmra.mrb[8].mxu0 %vm1137_vm2, %v1359_v6  ;;  %12809 = vmatmul.mubr.msk.f32.vlgmr.msra.gmra.mrb[8].mxu1 %vm1137_vm2, %v1476_v10 }
 0x2a0   : > { %12797 = vmatprep.mubr.msk.f32.mxu0 %vm1137_vm2, %v1361_v9  ;;  %12811 = vmatprep.mubr.msk.f32.mxu1 %vm1137_vm2, %v1478_v13 }
 0x2a1   : > { %v13889_v14 = vpop.permute.xlu1 %13888 }
 0x2a2   : > { %v13891_v15 = vunpack.i.h.bf16 %v13889_v14  ;;  %v13890_v18 = vunpack.i.l.bf16 %v13889_v14 }
 0x2a3   : > { %12798 = vmatmul.mubr.msk.f32.gmra.mrb[10].mxu0 %vm1137_vm2, %v1363_v8  ;;  %12812 = vmatmul.mubr.msk.f32.gmra.mrb[10].mxu1 %vm1137_vm2, %v1480_v12 }
 0x2a4   : > { %v13395_v20 = vpack.c.bf16 %v13891_v15, %v13890_v18 }
 0x2a6   : > { %13396 = vmatprep.subr.bf16.mxu0 %v13395_v20 }
 0x2a7   : > { %13398 = vmatpush3.bf16.msra.mxu0 %v13395_v20 }
 0x361   : > { %v12768_v22 = vpop.f32.mrb[4].mxu0  ;;  %v12782_v23 = vpop.f32.mrb[4].mxu1 }
 0x362   : > { %v1220_v24 = vpop.f32.mrb[5].mxu0  ;;  %v1337_v25 = vpop.f32.mrb[5].mxu1  ;;  %v1607_v26 = vsel %vm1590_vm4, %v12782_v23, -inf  ;;  %v1594_v27 = vsel %vm1590_vm4, %v12768_v22, -inf }
 0x363   : > { %1608 = vmax.xlane.f32.xlu0 %v1607_v26  ;;  %1595 = vmax.xlane.f32.xlu1 %v1594_v27  ;;  %v1604_v34 = vsel %vm1590_vm4, %v1337_v25, -inf  ;;  %v1591_v35 = vsel %vm1590_vm4, %v1220_v24, -inf }
 0x365   : > { %v12771_v29 = vpop.f32.mrb[6].mxu0  ;;  %v14879_v30 = vpop.f32.mrb[6].mxu1 }
 0x366   : > { %v14881_v31 = vpop.f32.mrb[7].mxu0  ;;  %v14883_v33 = vpop.f32.mrb[7].mxu1  ;;  %v1601_v37 = vsel %vm1600_vm5, %v12771_v29, -inf  ;;  %v1613_v38 = vsel %vm1600_vm5, %v14879_v30, -inf }
 0x367   : > { %1605 = vmax.xlane.f32.xlu1 %v1604_v34  ;;  %1592 = vmax.xlane.f32.xlu0 %v1591_v35  ;;  %v1610_v36 = vsel %vm1590_vm4, %v14883_v33, -inf  ;;  %v1597_v42 = vsel %vm1590_vm4, %v14881_v31, -inf }
 0x36b   : > { %1611 = vmax.xlane.f32.xlu1 %v1610_v36  ;;  %1602 = vmax.xlane.f32.xlu0 %v1601_v37 }
 0x36f   : > { %1614 = vmax.xlane.f32.xlu0 %v1613_v38 }
 0x372   : > { %v14892_v40 = vpop.f32.mrb[8].mxu0  ;;  %v14894_v41 = vpop.f32.mrb[8].mxu1 }
 0x373   : > { %v14898_v43 = vpop.f32.mrb[9].mxu0  ;;  %v14900_v44 = vpop.f32.mrb[9].mxu1  ;;  %1598 = vmax.xlane.f32.xlu0 %v1597_v42  ;;  %v1619_v48 = vsel %vm1590_vm4, %v14892_v40, -inf  ;;  %v1631_v52 = vsel %vm1590_vm4, %v14894_v41, -inf }
 0x374   : > { %v1616_v45 = vsel %vm1590_vm4, %v14898_v43, -inf  ;;  %v1628_v51 = vsel %vm1590_vm4, %v14900_v44, -inf }
 0x375   : > { %1617 = vmax.xlane.f32.xlu1 %v1616_v45 }
 0x376   : > { %v14904_v46 = vpop.f32.mrb[10].mxu0  ;;  %v14906_v47 = vpop.f32.mrb[10].mxu1 }
 0x377   : > { %v14910_v49 = vpop.f32.mrb[11].mxu0  ;;  %v14912_v50 = vpop.f32.mrb[11].mxu1  ;;  %1620 = vmax.xlane.f32.xlu0 %v1619_v48  ;;  %v1625_v54 = vsel %vm1600_vm5, %v14904_v46, -inf  ;;  %v1637_v55 = vsel %vm1600_vm5, %v14906_v47, -inf }
 0x378   : > { %v1622_v53 = vsel %vm1590_vm4, %v14910_v49, -inf  ;;  %v1634_v56 = vsel %vm1590_vm4, %v14912_v50, -inf }
 0x379   : > { %1629 = vmax.xlane.f32.xlu1 %v1628_v51 }
 0x37b   : > { %1632 = vmax.xlane.f32.xlu0 %v1631_v52 }
 0x37d   : > { %1623 = vmax.xlane.f32.xlu1 %v1622_v53 }
 0x37f   : > { %1626 = vmax.xlane.f32.xlu0 %v1625_v54 }
 0x383   : > { %1638 = vmax.xlane.f32.xlu0 %v1637_v55 }
 0x38e   : > { %13898 = vrot.lane.b32.xlu1 %v14772_v28, %s16789_s22 }
 0x399   : > { %13893 = vrot.lane.b32.xlu0 %v14784_v32, %s16773_s5  ;;  %s16787_s5 = smov 48  }
 0x3b2   : > { %1635 = vmax.xlane.f32.xlu1 %v1634_v56 }
 0x3f0   : > { %v1609_v57 = vpop.xlane.xlu0 %1608  ;;  %v1596_v58 = vpop.xlane.xlu1 %1595 }
 0x3f1   : > { %v1645_v59 = vsub.f32 %v12782_v23, %v1609_v57  ;;  %v1641_v60 = vsub.f32 %v12768_v22, %v1596_v58 }
 0x3f3   : > { %v1658_v61 = vmul.f32 1.442695, %v1641_v60  ;;  %v1666_v62 = vmul.f32 1.442695, %v1645_v59 }
 0x3f4   : > { %v1606_v63 = vpop.xlane.xlu1 %1605  ;;  %v1593_v0 = vpop.xlane.xlu0 %1592 }
 0x3f5   : > { %v1644_v1 = vsub.f32 %v1337_v25, %v1606_v63  ;;  %v1640_v2 = vsub.f32 %v1220_v24, %v1593_v0  ;;  %14267 = vpow2.f32 %v1658_v61 }
 0x3f6   : > { %14269 = vpow2.f32 %v1666_v62 }
 0x3f7   : > { %v1656_v3 = vmul.f32 1.442695, %v1640_v2  ;;  %v1664_v4 = vmul.f32 1.442695, %v1644_v1 }
 0x3f8   : > { %v1603_v5 = vpop.xlane.xlu0 %1602  ;;  %v1612_v8 = vpop.xlane.xlu1 %1611 }
 0x3f9   : > { %v1643_v6 = vsub.f32 %v12771_v29, %v1603_v5  ;;  %14271 = vpow2.f32 %v1656_v3  ;;  %v1646_v11 = vsub.f32 %v14883_v33, %v1612_v8 }
 0x3fa   : > { %14273 = vpow2.f32 %v1664_v4 }
 0x3fb   : > { %v1662_v7 = vmul.f32 1.442695, %v1643_v6  ;;  %v1668_v23 = vmul.f32 1.442695, %v1646_v11  ;;  %v16825_v6 = vmov 0 }
 0x3fc   : > { %v1615_v9 = vpop.xlane.xlu0 %1614  ;;  %v16826_v6 = vsel %vm14977_vm8, 4294967295, %v16825_v6 }
 0x3fd   : > { %v1647_v10 = vsub.f32 %v14879_v30, %v1615_v9  ;;  %14275 = vpow2.f32 %v1662_v7  ;;  %16827 = vst [vmem:[#allocation26_spill] sm:$0xff] %v16826_v6 }
 0x3ff   : > { %v1670_v12 = vmul.f32 1.442695, %v1647_v10  ;;  %v14932_v13 = vpop.eup %14267 }
 0x400   : > { %v1599_v14 = vpop.xlane.xlu0 %1598  ;;  %v1691_v18 = vsel %vm1590_vm4, %v14932_v13, 0.0  ;;  %v14937_v20 = vpop.eup %14269 }
 0x401   : > { %14277 = vpow2.f32 %v1670_v12  ;;  %v1642_v15 = vsub.f32 %v14881_v31, %v1599_v14  ;;  %1692 = vadd.xlane.f32.xlu0 %v1691_v18  ;;  %v1703_v30 = vsel %vm1590_vm4, %v14937_v20, 0.0 }
 0x402   : > { %v1618_v22 = vpop.xlane.xlu1 %1617 }
 0x403   : > { %v1660_v24 = vmul.f32 1.442695, %v1642_v15  ;;  %v14939_v25 = vpop.eup %14271  ;;  %v1648_v26 = vsub.f32 %v14898_v43, %v1618_v22 }
 0x404   : > { %v1621_v27 = vpop.xlane.xlu0 %1620  ;;  %v1688_v31 = vsel %vm1590_vm4, %v14939_v25, 0.0  ;;  %v14947_v33 = vpop.eup %14273 }
 0x405   : > { %14279 = vpow2.f32 %v1660_v24  ;;  %v1649_v29 = vsub.f32 %v14892_v40, %v1621_v27  ;;  %1704 = vadd.xlane.f32.xlu0 %v1703_v30  ;;  %1689 = vadd.xlane.f32.xlu1 %v1688_v31  ;;  %v1672_v37 = vmul.f32 1.442695, %v1648_v26  ;;  %v1700_v45 = vsel %vm1590_vm4, %v14947_v33, 0.0 }
 0x406   : > { %v1630_v34 = vpop.xlane.xlu1 %1629  ;;  %14281 = vpow2.f32 %v1668_v23 }
 0x407   : > { %v1674_v35 = vmul.f32 1.442695, %v1649_v29  ;;  %v14949_v36 = vpop.eup %14275  ;;  %v1652_v38 = vsub.f32 %v14900_v44, %v1630_v34 }
 0x408   : > { %v1633_v42 = vpop.xlane.xlu0 %1632  ;;  %v1697_v43 = vsel %vm1600_vm5, %v14949_v36, 0.0 }
 0x409   : > { %14283 = vpow2.f32 %v1674_v35  ;;  %v1653_v40 = vsub.f32 %v14894_v41, %v1633_v42  ;;  %1698 = vadd.xlane.f32.xlu0 %v1697_v43  ;;  %1701 = vadd.xlane.f32.xlu1 %v1700_v45  ;;  %v1680_v44 = vmul.f32 1.442695, %v1652_v38 }
 0x40a   : > { %v1624_v48 = vpop.xlane.xlu1 %1623  ;;  %14285 = vpow2.f32 %v1672_v37 }
 0x40b   : > { %v14957_v51 = vpop.eup %14277  ;;  %v1682_v52 = vmul.f32 1.442695, %v1653_v40  ;;  %v1650_v53 = vsub.f32 %v14910_v49, %v1624_v48 }
 0x40c   : > { %v1627_v54 = vpop.xlane.xlu0 %1626  ;;  %v1709_v41 = vsel %vm1600_vm5, %v14957_v51, 0.0 }
 0x40d   : > { %14287 = vpow2.f32 %v1682_v52  ;;  %v1651_v55 = vsub.f32 %v14904_v46, %v1627_v54  ;;  %1710 = vadd.xlane.f32.xlu0 %v1709_v41  ;;  %v1676_v57 = vmul.f32 1.442695, %v1650_v53 }
 0x40e   : > { %14289 = vpow2.f32 %v1680_v44  ;;  %v13899_v61 = vpop.permute.xlu1 %13898 }
 0x40f   : > { %v14963_v56 = vpop.eup %14279  ;;  %v1678_v58 = vmul.f32 1.442695, %v1651_v55  ;;  %v13901_v1 = vunpack.i.h.bf16 %v13899_v61  ;;  %v13900_v2 = vunpack.i.l.bf16 %v13899_v61 }
 0x410   : > { %v1639_v59 = vpop.xlane.xlu0 %1638  ;;  %v1694_v60 = vsel %vm1590_vm4, %v14963_v56, 0.0  ;;  %v14967_v49 = vpop.eup %14281 }
 0x411   : > { %14291 = vpow2.f32 %v1678_v58  ;;  %1695 = vadd.xlane.f32.xlu1 %v1694_v60  ;;  %v1706_v0 = vsel %vm1590_vm4, %v14967_v49, 0.0  ;;  %v13405_v11 = vpack.c.bf16 %v13901_v1, %v13900_v2  ;;  %v1655_v29 = vsub.f32 %v14906_v47, %v1639_v59 }
 0x412   : > { %14293 = vpow2.f32 %v1676_v57 }
 0x413   : > { %v14969_v62 = vpop.eup %14283  ;;  %v1686_v30 = vmul.f32 1.442695, %v1655_v29 }
 0x414   : > { %v13894_v46 = vpop.permute.xlu0 %13893  ;;  %v1715_v63 = vsel %vm1590_vm4, %v14969_v62, 0.0  ;;  %v14975_v5 = vpop.eup %14285 }
 0x415   : > { %v13896_v3 = vunpack.i.h.bf16 %v13894_v46  ;;  %v13895_v4 = vunpack.i.l.bf16 %v13894_v46  ;;  %1716 = vadd.xlane.f32.xlu0 %v1715_v63  ;;  %1707 = vadd.xlane.f32.xlu1 %v1706_v0  ;;  %v1712_v10 = vsel %vm1590_vm4, %v14975_v5, 0.0 }
 0x417   : > { %v14981_v7 = vpop.eup %14287  ;;  %v13399_v8 = vpack.c.bf16 %v13896_v3, %v13895_v4 }
 0x418   : > { %v1727_v9 = vsel %vm1590_vm4, %v14981_v7, 0.0  ;;  %v14989_v12 = vpop.eup %14289 }
 0x419   : > { %1728 = vadd.xlane.f32.xlu0 %v1727_v9  ;;  %13401 = vmatprep.subr.msk.bf16.mxu0 %vm14977_vm8, %v13399_v8  ;;  %v1724_v22 = vsel %vm1590_vm4, %v14989_v12, 0.0 }
 0x41a   : > { %1713 = vadd.xlane.f32.xlu1 %v1712_v10  ;;  %13404 = vmatpush3.bf16.msk.msra.mxu0 %vm14977_vm8, %v13399_v8 }
 0x41b   : > { %v14993_v14 = vpop.eup %14291  ;;  %13406 = vmatprep.subr.bf16.mxu0 %v13405_v11 }
 0x41c   : > { %v1721_v15 = vsel %vm1600_vm5, %v14993_v14, 0.0  ;;  %v14997_v18 = vpop.eup %14293 }
 0x41d   : > { %1722 = vadd.xlane.f32.xlu0 %v1721_v15  ;;  %v1718_v23 = vsel %vm1590_vm4, %v14997_v18, 0.0 }
 0x41e   : > { %1725 = vadd.xlane.f32.xlu1 %v1724_v22 }
 0x421   : > { %1719 = vadd.xlane.f32.xlu0 %v1718_v23 }
 0x42f   : > { %13908 = vrot.lane.b32.xlu1 %v14772_v28, %s16787_s5 }
 0x433   : > { %13913 = vrot.lane.b32.xlu1 %v14784_v32, %s16787_s5  ;;  %s16851_s5 = sld [smem:[#allocation12_spill]] }
 0x437   : > { %13918 = vrot.lane.b32.xlu1 %v14772_v28, %s16785_s23  ;;  %13903 = vrot.lane.b32.xlu0 %v14784_v32, %s16789_s22  ;;  %s16852_s22 = sld [smem:[#allocation13_spill]] }
 0x43b   : > { %13923 = vrot.lane.b32.xlu1 %v14784_v32, %s16785_s23  ;;  %s16850_s23 = sld [smem:[#allocation11_spill]] }
 0x43f   : > { %v1636_v24 = vpop.xlane.xlu1 %1635 }
 0x440   : > { %v1654_v26 = vsub.f32 %v14912_v50, %v1636_v24 }
 0x442   : > { %v1684_v27 = vmul.f32 1.442695, %v1654_v26 }
 0x444   : > { %14295 = vpow2.f32 %v1684_v27 }
 0x445   : > { %14297 = vpow2.f32 %v1686_v30 }
 0x44e   : > { %v15015_v31 = vpop.eup %14295 }
 0x44f   : > { %v1730_v28 = vsel %vm1590_vm4, %v15015_v31, 0.0  ;;  %v15019_v34 = vpop.eup %14297 }
 0x450   : > { %v1733_v32 = vsel %vm1600_vm5, %v15019_v34, 0.0 }
 0x456   : > { %1731 = vadd.xlane.f32.xlu0 %v1730_v28 }
 0x45f   : > { %1734 = vadd.xlane.f32.xlu1 %v1733_v32 }
 0x48e   : > { %v1693_v35 = vpop.xlane.xlu0 %1692 }
 0x48f   : > { %14299 = vrcp.f32 %v1693_v35 }
 0x492   : > { %v1705_v50 = vpop.xlane.xlu0 %1704  ;;  %v1690_v37 = vpop.xlane.xlu1 %1689 }
 0x493   : > { %14301 = vrcp.f32 %v1690_v37 }
 0x496   : > { %v1699_v47 = vpop.xlane.xlu0 %1698  ;;  %v1702_v38 = vpop.xlane.xlu1 %1701 }
 0x497   : > { %14303 = vrcp.f32 %v1699_v47 }
 0x498   : > { %14305 = vrcp.f32 %v1702_v38 }
 0x499   : > { %v14300_v42 = vpop.eup %14299 }
 0x49a   : > { %v1711_v40 = vpop.xlane.xlu0 %1710  ;;  %v1753_v52 = vmul.f32 %v14300_v42, %v14932_v13 }
 0x49d   : > { %v14302_v45 = vpop.eup %14301 }
 0x49e   : > { %v1696_v43 = vpop.xlane.xlu1 %1695  ;;  %v1752_v48 = vmul.f32 %v14302_v45, %v14939_v25 }
 0x49f   : > { %14307 = vrcp.f32 %v1696_v43 }
 0x4a0   : > { %12822 = vmatprep.mubr.msk.f32.mxu0 %vm1590_vm4, %v1752_v48  ;;  %14309 = vrcp.f32 %v1705_v50 }
 0x4a1   : > { %12823 = vmatmul.mubr.msk.f32.vlgmr.msra.gmra.mrb[12].mxu0 %vm1590_vm4, %v1753_v52  ;;  %v14304_v41 = vpop.eup %14303 }
 0x4a2   : > { %v1717_v53 = vpop.xlane.xlu0 %1716  ;;  %v1708_v44 = vpop.xlane.xlu1 %1707  ;;  %13408 = vmatpush3.bf16.msra.mxu0 %v13405_v11  ;;  %v1755_v25 = vmul.f32 %v14304_v41, %v14949_v36 }
 0x4a3   : > { %v14306_v57 = vpop.eup %14305  ;;  %14311 = vrcp.f32 %v1708_v44  ;;  %v1121_v44 = vld [vmem:[%s14571_s25] sm:$0xff] }
 0x4a4   : > { %v1756_v13 = vmul.f32 %v14306_v57, %v14947_v33  ;;  %14313 = vrcp.f32 %v1711_v40  ;;  %12828 = vmatprep.subr.mxu1 %v1121_v44  ;;  %v1123_v57 = vld [vmem:[%s14571_s25 + $0x10] sm:$0xff] }
 0x4a5   : > { %12829 = vmatpush3.msra.mxu1 %v1121_v44 }
 0x4a6   : > { %v1729_v54 = vpop.xlane.xlu0 %1728 }
 0x4a7   : > { %v1714_v55 = vpop.xlane.xlu1 %1713 }
 0x4a8   : > { %14315 = vrcp.f32 %v1714_v55 }
 0x4a9   : > { %v14308_v58 = vpop.eup %14307  ;;  %14317 = vrcp.f32 %v1717_v53 }
 0x4aa   : > { %v1723_v59 = vpop.xlane.xlu0 %1722  ;;  %v1754_v60 = vmul.f32 %v14308_v58, %v14963_v56  ;;  %v14310_v8 = vpop.eup %14309 }
 0x4ab   : > { %v1726_v61 = vpop.xlane.xlu1 %1725  ;;  %v1757_v22 = vmul.f32 %v14310_v8, %v14937_v20 }
 0x4ac   : > { %12825 = vmatprep.mubr.msk.f32.mxu0 %vm1590_vm4, %v1754_v60  ;;  %v1124_v60 = vld [vmem:[%s14571_s25 + $0x18] sm:$0xff] }
 0x4ad   : > { %12826 = vmatmul.mubr.msk.f32.gmra.mrb[14].mxu0 %vm1590_vm4, %v1755_v25  ;;  %v14312_v33 = vpop.eup %14311 }
 0x4ae   : > { %v1720_v46 = vpop.xlane.xlu0 %1719  ;;  %12844 = vmatprep.mubr.msk.f32.mxu0 %vm1590_vm4, %v1756_v13  ;;  %v14314_v23 = vpop.eup %14313  ;;  %v1758_v24 = vmul.f32 %v14312_v33, %v14967_v49 }
 0x4af   : > { %v13909_v63 = vpop.permute.xlu1 %13908  ;;  %14319 = vrcp.f32 %v1720_v46  ;;  %v1759_v20 = vmul.f32 %v14314_v23, %v14957_v51 }
 0x4b0   : > { %v13911_v1 = vunpack.i.h.bf16 %v13909_v63  ;;  %v13910_v56 = vunpack.i.l.bf16 %v13909_v63  ;;  %14321 = vrcp.f32 %v1723_v59 }
 0x4b1   : > { %14323 = vrcp.f32 %v1726_v61 }
 0x4b2   : > { %v13904_v0 = vpop.permute.xlu0 %13903  ;;  %v13415_v15 = vpack.c.bf16 %v13911_v1, %v13910_v56  ;;  %v14316_v26 = vpop.eup %14315  ;;  %14325 = vrcp.f32 %v1729_v54 }
 0x4b3   : > { %v13906_v2 = vunpack.i.h.bf16 %v13904_v0  ;;  %v13905_v3 = vunpack.i.l.bf16 %v13904_v0  ;;  %v13914_v36 = vpop.permute.xlu1 %13913  ;;  %v14318_v32 = vpop.eup %14317  ;;  %v1760_v35 = vmul.f32 %v14316_v26, %v14975_v5 }
 0x4b4   : > { %v13916_v9 = vunpack.i.h.bf16 %v13914_v36  ;;  %v13915_v10 = vunpack.i.l.bf16 %v13914_v36  ;;  %v1761_v38 = vmul.f32 %v14318_v32, %v14969_v62  ;;  %v11382_v36 = vld [vmem:[%s14576_s29] ss:$0 sm:$0xff] }
 0x4b5   : > { %v13409_v4 = vpack.c.bf16 %v13906_v2, %v13905_v3 }
 0x4b6   : > { %v13419_v27 = vpack.c.bf16 %v13916_v9, %v13915_v10 }
 0x4b7   : > { %v13919_v11 = vpop.permute.xlu1 %13918  ;;  %13411 = vmatprep.subr.msk.bf16.mxu0 %vm14977_vm8, %v13409_v4 }
 0x4b8   : > { %13414 = vmatpush3.bf16.msk.msra.mxu0 %vm14977_vm8, %v13409_v4  ;;  %v13921_v29 = vunpack.i.h.bf16 %v13919_v11  ;;  %v13920_v30 = vunpack.i.l.bf16 %v13919_v11 }
 0x4b9   : > { %13416 = vmatprep.subr.bf16.mxu0 %v13415_v15  ;;  %v14320_v49 = vpop.eup %14319 }
 0x4ba   : > { %v13425_v50 = vpack.c.bf16 %v13921_v29, %v13920_v30  ;;  %v14322_v42 = vpop.eup %14321  ;;  %v1762_v51 = vmul.f32 %v14320_v49, %v14997_v18 }
 0x4bb   : > { %12845 = vmatmul.mubr.msk.f32.vlgmr.msra.gmra.mrb[16].mxu0 %vm1590_vm4, %v1757_v22  ;;  %v13924_v28 = vpop.permute.xlu1 %13923  ;;  %v14324_v40 = vpop.eup %14323  ;;  %v1763_v5 = vmul.f32 %v14322_v42, %v14993_v14  ;;  %v2710_v42 = vld [vmem:[%s16815_s14 + $0x40] sm:$0xff] }
 0x4bc   : > { %12847 = vmatprep.mubr.msk.f32.mxu0 %vm1590_vm4, %v1758_v24  ;;  %13418 = vmatpush3.bf16.msra.mxu0 %v13415_v15  ;;  %v13926_v37 = vunpack.i.h.bf16 %v13924_v28  ;;  %v13925_v47 = vunpack.i.l.bf16 %v13924_v28  ;;  %v14326_v45 = vpop.eup %14325  ;;  %v1764_v62 = vmul.f32 %v14324_v40, %v14989_v12 }
 0x4bd   : > { %13421 = vmatprep.subr.msk.bf16.mxu0 %vm14977_vm8, %v13419_v27  ;;  %v1765_v18 = vmul.f32 %v14326_v45, %v14981_v7  ;;  %v1122_v7 = vld [vmem:[%s14571_s25 + $0x8] sm:$0xff] }
 0x4be   : > { %v13429_v43 = vpack.c.bf16 %v13926_v37, %v13925_v47  ;;  %12850 = vmatprep.subr.mxu1 %v1122_v7 }
 0x4bf   : > { %12848 = vmatmul.mubr.msk.f32.gmra.mrb[18].mxu0 %vm1590_vm4, %v1759_v20 }
 0x4c0   : > { %13424 = vmatpush3.bf16.msk.msra.mxu0 %vm14977_vm8, %v13419_v27  ;;  %12866 = vmatprep.mubr.msk.f32.mxu0 %vm1590_vm4, %v1760_v35 }
 0x4c1   : > { %13426 = vmatprep.subr.bf16.mxu0 %v13425_v50 }
 0x4c3   : > { %12867 = vmatmul.mubr.msk.f32.vlgmr.msra.gmra.mrb[20].mxu0 %vm1590_vm4, %v1761_v38  ;;  %v2702_v38 = vld [vmem:[%s16815_s14] sm:$0xff] }
 0x4c4   : > { %12869 = vmatprep.mubr.msk.f32.mxu0 %vm1590_vm4, %v1762_v51  ;;  %13428 = vmatpush3.bf16.msra.mxu0 %v13425_v50  ;;  %v2703_v51 = vld [vmem:[%s16815_s14 + $0x8] sm:$0xff]  ;;  %v11413_v40 = vcombine.high %v2702_v38, %v2710_v42 }
 0x4c5   : > { %13431 = vmatprep.subr.msk.bf16.mxu0 %vm14977_vm8, %v13429_v43 }
 0x4c7   : > { %12870 = vmatmul.mubr.msk.f32.gmra.mrb[22].mxu0 %vm1590_vm4, %v1763_v5  ;;  %v11412_v5 = vcombine.low %v2702_v38, %v2710_v42 }
 0x4c8   : > { %13434 = vmatpush3.bf16.msk.msra.mxu0 %vm14977_vm8, %v13429_v43  ;;  %12888 = vmatprep.mubr.msk.f32.mxu0 %vm1590_vm4, %v1764_v62  ;;  %v2711_v43 = vld [vmem:[%s16815_s14 + $0x48] sm:$0xff] }
 0x4c9   : > { %v11414_v45 = vcombine.low %v2703_v51, %v2711_v43  ;;  %v11415_v62 = vcombine.high %v2703_v51, %v2711_v43  ;;  %2900 = vmatprep.subr.bf16.mxu0 %v11413_v40 }
 0x4cb   : > { %12889 = vmatmul.mubr.msk.f32.vlgmr.msra.gmra.mrb[24].mxu0 %vm1590_vm4, %v1765_v18  ;;  %v2718_v18 = vld [vmem:[%s16815_s14 + $0x80] sm:$0xff] }
 0x4cc   : > { %2901 = vmatpush1.bf16.msra.mxu0 %v11412_v5 }
 0x4e3   : > { %v1732_v48 = vpop.xlane.xlu0 %1731 }
 0x4e4   : > { %14327 = vrcp.f32 %v1732_v48  ;;  %v2726_v48 = vld [vmem:[%s16815_s14 + $0xc0] sm:$0xff] }
 0x4ec   : > { %v1735_v52 = vpop.xlane.xlu1 %1734 }
 0x4ed   : > { %14329 = vrcp.f32 %v1735_v52  ;;  %v2719_v52 = vld [vmem:[%s16815_s14 + $0x88] sm:$0xff] }
 0x4ee   : > { %v14328_v14 = vpop.eup %14327 }
 0x4ef   : > { %v1766_v12 = vmul.f32 %v14328_v14, %v15015_v31 }
 0x4f1   : > { %12891 = vmatprep.mubr.msk.f32.mxu0 %vm1590_vm4, %v1766_v12  ;;  %v11429_v12 = vcombine.high %v2718_v18, %v2726_v48 }
 0x4f3   : > { %2902 = vmatprep.subr.bf16.mxu0 %v11429_v12 }
 0x4f7   : > { %v14330_v53 = vpop.eup %14329 }
 0x4f8   : > { %v1767_v54 = vmul.f32 %v14330_v53, %v15019_v34  ;;  %v2727_v53 = vld [vmem:[%s16815_s14 + $0xc8] sm:$0xff] }
 0x4fa   : > { %12892 = vmatmul.mubr.msk.f32.gmra.mrb[26].mxu0 %vm1590_vm4, %v1767_v54 }
 0x574   : > { %v12824_v41 = vpop.f32.mrb[12].mxu0 }
 0x575   : > { %v1861_v55 = vpop.f32.mrb[13].mxu0 }
 0x576   : > { %12830 = vmatprep.mubr.msk.f32.mxu1 %vm1137_vm2, %v1861_v55  ;;  %v11431_v55 = vcombine.high %v2719_v52, %v2727_v53 }
 0x577   : > { %12831 = vmatmul.mubr.msk.f32.vlgmr.msra.gmra.mrb[12].mxu1 %vm1137_vm2, %v12824_v41  ;;  %v11430_v41 = vcombine.low %v2719_v52, %v2727_v53 }
 0x578   : > { %12851 = vmatpush3.msra.mxu1 %v1122_v7  ;;  %v11428_v7 = vcombine.low %v2718_v18, %v2726_v48 }
 0x579   : > { %12872 = vmatprep.subr.mxu1 %v1123_v57 }
 0x57a   : > { %2903 = vmatpush1.bf16.msra.mxu0 %v11428_v7 }
 0x580   : > { %v12827_v31 = vpop.f32.mrb[14].mxu0 }
 0x581   : > { %v1871_v58 = vpop.f32.mrb[15].mxu0 }
 0x582   : > { %12833 = vmatprep.mubr.msk.f32.mxu1 %vm1137_vm2, %v1871_v58 }
 0x583   : > { %12834 = vmatmul.mubr.msk.f32.gmra.mrb[14].mxu1 %vm1137_vm2, %v12827_v31 }
 0x58e   : > { %v12846_v34 = vpop.f32.mrb[16].mxu0 }
 0x58f   : > { %v2078_v59 = vpop.f32.mrb[17].mxu0 }
 0x590   : > { %12852 = vmatprep.mubr.msk.f32.mxu1 %vm1137_vm2, %v2078_v59 }
 0x591   : > { %12853 = vmatmul.mubr.msk.f32.vlgmr.msra.gmra.mrb[12].mxu1 %vm1137_vm2, %v12846_v34  ;;  %v16777_v34 = vmov 0  }
 0x592   : > { %v12849_v61 = vpop.f32.mrb[18].mxu0  ;;  %12873 = vmatpush3.msra.mxu1 %v1123_v57  ;;  %2932 = vmatprep.mubr.bf16.mxu0 %v16777_v34 }
 0x593   : > { %v2088_v25 = vpop.f32.mrb[19].mxu0  ;;  %12894 = vmatprep.subr.mxu1 %v1124_v60 }
 0x594   : > { %12855 = vmatprep.mubr.msk.f32.mxu1 %vm1137_vm2, %v2088_v25 }
 0x595   : > { %12856 = vmatmul.mubr.msk.f32.gmra.mrb[14].mxu1 %vm1137_vm2, %v12849_v61 }
 0x596   : > { %v12868_v13 = vpop.f32.mrb[20].mxu0 }
 0x597   : > { %v2289_v46 = vpop.f32.mrb[21].mxu0 }
 0x598   : > { %12874 = vmatprep.mubr.msk.f32.mxu1 %vm1137_vm2, %v2289_v46  ;;  %v2712_v46 = vld [vmem:[%s16815_s14 + $0x50] sm:$0xff] }
 0x599   : > { %12875 = vmatmul.mubr.msk.f32.vlgmr.msra.gmra.mrb[12].mxu1 %vm1137_vm2, %v12868_v13  ;;  %v2704_v13 = vld [vmem:[%s16815_s14 + $0x10] sm:$0xff] }
 0x59a   : > { %v12871_v63 = vpop.f32.mrb[22].mxu0  ;;  %12895 = vmatpush3.msra.mxu1 %v1124_v60 }
 0x59b   : > { %v2299_v0 = vpop.f32.mrb[23].mxu0  ;;  %2953 = vmatprep.subr.bf16.mxu1 %v11415_v62 }
 0x59c   : > { %12877 = vmatprep.mubr.msk.f32.mxu1 %vm1137_vm2, %v2299_v0  ;;  %v11416_v0 = vcombine.low %v2704_v13, %v2712_v46 }
 0x59d   : > { %12878 = vmatmul.mubr.msk.f32.gmra.mrb[14].mxu1 %vm1137_vm2, %v12871_v63  ;;  %v2705_v63 = vld [vmem:[%s16815_s14 + $0x18] sm:$0xff] }
 0x59e   : > { %v12890_v1 = vpop.f32.mrb[24].mxu0 }
 0x59f   : > { %v2500_v56 = vpop.f32.mrb[25].mxu0 }
 0x5a0   : > { %12896 = vmatprep.mubr.msk.f32.mxu1 %vm1137_vm2, %v2500_v56  ;;  %v2713_v56 = vld [vmem:[%s16815_s14 + $0x58] sm:$0xff] }
 0x5a1   : > { %12897 = vmatmul.mubr.msk.f32.vlgmr.msra.gmra.mrb[12].mxu1 %vm1137_vm2, %v12890_v1  ;;  %v11417_v1 = vcombine.high %v2704_v13, %v2712_v46  ;;  %v2708_v46 = vld [vmem:[%s16815_s14 + $0x30] sm:$0xff] }
 0x5a2   : > { %2954 = vmatpush1.bf16.msra.mxu1 %v11414_v45 }
 0x5a3   : > { %2955 = vmatprep.subr.bf16.mxu1 %v11431_v55  ;;  %3006 = vmatprep.subr.bf16.mxu0 %v11417_v1  ;;  %v2717_v1 = vld [vmem:[%s16815_s14 + $0x78] sm:$0xff] }
 0x5a6   : > { %2956 = vmatpush1.bf16.msra.mxu1 %v11430_v41 }
 0x5cd   : > { %v12893_v2 = vpop.f32.mrb[26].mxu0 }
 0x5ce   : > { %v2510_v3 = vpop.f32.mrb[27].mxu0 }
 0x5cf   : > { %12899 = vmatprep.mubr.msk.f32.mxu1 %vm1137_vm2, %v2510_v3  ;;  %v11419_v3 = vcombine.high %v2705_v63, %v2713_v56 }
 0x5d0   : > { %12900 = vmatmul.mubr.msk.f32.gmra.mrb[14].mxu1 %vm1137_vm2, %v12893_v2  ;;  %v11418_v2 = vcombine.low %v2705_v63, %v2713_v56  ;;  %v2716_v63 = vld [vmem:[%s16815_s14 + $0x70] sm:$0xff] }
 0x5d1   : > { %2985 = vmatprep.mubr.bf16.mxu1 %v16777_v34  ;;  %3059 = vmatprep.subr.bf16.mxu1 %v11419_v3  ;;  %v11425_v3 = vcombine.high %v2708_v46, %v2716_v63 }
 0x674   : > { %v12898_v4 = vpop.f32.mrb[12].mxu1 }
 0x675   : > { %v2597_v8 = vpop.f32.mrb[13].mxu1  ;;  %v13681_v33 = vadd.f32 %v12898_v4, %v11382_v36 }
 0x676   : > { %v13682_v9 = vadd.f32 %v11382_v36, %v2597_v8 }
 0x677   : > { %v2621_v15 = vadd.f32 %v13681_v33, %v14753_v17 }
 0x678   : > { %v2620_v10 = vadd.f32 %v13682_v9, %v14751_v16 }
 0x679   : > { %v2629_v22 = vsel %vm1023_vm1, %v2621_v15, 0.0 }
 0x67a   : > { %v2626_v11 = vsel %vm1023_vm1, %v2620_v10, 0.0 }
 0x67b   : > { %2627 = vadd.xlane.f32.xlu0 %v2626_v11 }
 0x67f   : > { %2630 = vadd.xlane.f32.xlu0 %v2629_v22  ;;  %v11410_v22 = vld [vmem:[%s16828_s3] ss:$0 sm:$0xff]  ;;  %s11967_s3 = sshll.u32 %s14714_s0, 4  ;;  %s14537_s0 = smov [#allocation2]  }
 0x680   : > { %s14431_s13 = sshll.u32 %s14537_s0, 4  ;;  %s14432_s13 = int_to_ptr.vmem [resolvable:$false] %s14431_s13 }
 0x6a3   : > { %v12901_v23 = vpop.f32.mrb[14].mxu1 }
 0x6a4   : > { %v13683_v24 = vadd.f32 %v12901_v23, %v11382_v36  ;;  %v2607_v26 = vpop.f32.mrb[15].mxu1 }
 0x6a5   : > { %v13684_v27 = vadd.f32 %v11382_v36, %v2607_v26 }
 0x6a6   : > { %v2623_v29 = vadd.f32 %v13683_v24, %v14757_v19 }
 0x6a7   : > { %v2622_v30 = vadd.f32 %v13684_v27, %v14761_v21  ;;  %v11411_v27 = vld [vmem:[%s16829_s8] ss:$0 sm:$0xff]  ;;  %s16722_s8 = scalar_lea.hbm %s14691_s4, %s11967_s3 }
 0x6a8   : > { %v2636_v28 = vsel %vm2635_vm9, %v2623_v29, 0.0 }
 0x6a9   : > { %2637 = vadd.xlane.f32.xlu0 %v2636_v28  ;;  %v2632_v16 = vsel %vm1023_vm1, %v2622_v30, 0.0 }
 0x6aa   : > { %2633 = vadd.xlane.f32.xlu1 %v2632_v16 }
 0x708   : > { %v2628_v17 = vpop.xlane.xlu0 %2627 }
 0x709   : > { %v2640_v20 = vmul.f32 0.03125, %v2628_v17  ;;  %v2728_v17 = vld [vmem:[%s16815_s14 + $0xd0] sm:$0xff] }
 0x70b   : > { %v15096_v32 = vsub.f32 %v2620_v10, %v2640_v20  ;;  %v2721_v20 = vld [vmem:[%s16815_s14 + $0x98] sm:$0xff] }
 0x70c   : > { %v2631_v35 = vpop.xlane.xlu0 %2630 }
 0x70d   : > { %v2641_v49 = vmul.f32 0.03125, %v2631_v35  ;;  %v2648_v19 = vmul.f32 %v15096_v32, %v15096_v32  ;;  %v2729_v35 = vld [vmem:[%s16815_s14 + $0xd8] sm:$0xff] }
 0x70e   : > { %v11434_v42 = vcombine.low %v2721_v20, %v2729_v35 }
 0x70f   : > { %v15100_v21 = vsub.f32 %v2621_v15, %v2641_v49  ;;  %v2652_v50 = vsel %vm1023_vm1, %v2648_v19, 0.0  ;;  %v11435_v19 = vcombine.high %v2721_v20, %v2729_v35  ;;  %v14012_v20 = vld [vmem:[%s14601_s24 + $0x10] sm:$0xff]   ;;  %v14013_v35 = vld [vmem:[%s14601_s24 + $0x58] sm:$0xff]  }
 0x710   : > { %2653 = vadd.xlane.f32.xlu1 %v2652_v50  ;;  %v2706_v50 = vld [vmem:[%s16815_s14 + $0x20] sm:$0xff] }
 0x711   : > { %v2649_v37 = vmul.f32 %v15100_v21, %v15100_v21 }
 0x713   : > { %v2655_v47 = vsel %vm1023_vm1, %v2649_v37, 0.0  ;;  %v2707_v37 = vld [vmem:[%s16815_s14 + $0x28] sm:$0xff] }
 0x714   : > { %2656 = vadd.xlane.f32.xlu0 %v2655_v47  ;;  %v2715_v47 = vld [vmem:[%s16815_s14 + $0x68] sm:$0xff] }
 0x715   : > { %v11423_v40 = vcombine.high %v2707_v37, %v2715_v47 }
 0x736   : > { %v2638_v14 = vpop.xlane.xlu0 %2637 }
 0x737   : > { %v2643_v44 = vmul.f32 0.03125, %v2638_v14  ;;  %v2634_v54 = vpop.xlane.xlu1 %2633 }
 0x738   : > { %v2642_v57 = vmul.f32 0.03125, %v2634_v54 }
 0x739   : > { %v15114_v31 = vsub.f32 %v2623_v29, %v2643_v44 }
 0x73a   : > { %v15116_v58 = vsub.f32 %v2622_v30, %v2642_v57  ;;  %v2720_v30 = vld [vmem:[%s16815_s14 + $0x90] sm:$0xff]  ;;  %v2722_v57 = vld [vmem:[%s16815_s14 + $0xa0] sm:$0xff] }
 0x73b   : > { %v2651_v59 = vmul.f32 %v15114_v31, %v15114_v31  ;;  %v11433_v49 = vcombine.high %v2720_v30, %v2728_v17  ;;  %v11432_v38 = vcombine.low %v2720_v30, %v2728_v17  ;;  %v14010_v30 = vld [vmem:[%s14601_s24 + $0x8] sm:$0xff]   ;;  %v14011_v17 = vld [vmem:[%s14601_s24 + $0x50] sm:$0xff]  }
 0x73c   : > { %v2650_v60 = vmul.f32 %v15116_v58, %v15116_v58 }
 0x73d   : > { %v2661_v61 = vsel %vm2635_vm9, %v2651_v59, 0.0  ;;  %v2731_v59 = vld [vmem:[%s16815_s14 + $0xe8] sm:$0xff] }
 0x73e   : > { %2662 = vadd.xlane.f32.xlu0 %v2661_v61  ;;  %v2658_v25 = vsel %vm1023_vm1, %v2650_v60, 0.0  ;;  %v11422_v61 = vcombine.low %v2707_v37, %v2715_v47  ;;  %v14019_v37 = vld [vmem:[%s14601_s24 + $0x70] sm:$0xff]  }
 0x73f   : > { %2659 = vadd.xlane.f32.xlu1 %v2658_v25  ;;  %v14020_v47 = vld [vmem:[%s14601_s24 + $0x30] sm:$0xff]  }
 0x79d   : > { %v2654_v36 = vpop.xlane.xlu1 %2653 }
 0x79e   : > { %v2664_v4 = vmul.f32 0.03125, %v2654_v36 }
 0x7a0   : > { %v2668_v8 = vadd.f32 1e-05, %v2664_v4  ;;  %v2724_v4 = vld [vmem:[%s16815_s14 + $0xb0] sm:$0xff] }
 0x7a1   : > { %v2657_v33 = vpop.xlane.xlu0 %2656 }
 0x7a2   : > { %14331 = vrsqrt.f32 %v2668_v8  ;;  %v2665_v9 = vmul.f32 0.03125, %v2657_v33  ;;  %v2732_v8 = vld [vmem:[%s16815_s14 + $0xf0] sm:$0xff]  ;;  %v2725_v33 = vld [vmem:[%s16815_s14 + $0xb8] sm:$0xff] }
 0x7a4   : > { %v2669_v10 = vadd.f32 1e-05, %v2665_v9  ;;  %v2733_v9 = vld [vmem:[%s16815_s14 + $0xf8] sm:$0xff] }
 0x7a6   : > { %14333 = vrsqrt.f32 %v2669_v10  ;;  %v11424_v10 = vcombine.low %v2708_v46, %v2716_v63  ;;  %v15254_v46 = vld [vmem:[%s14596_s19] sm:$0xff] }
 0x7ac   : > { %v14332_v11 = vpop.eup %14331 }
 0x7ad   : > { %v2676_v15 = vmul.f32 %v14332_v11, %v15096_v32 }
 0x7af   : > { %v2686_v24 = vmul.f32 %v11410_v22, %v2676_v15  ;;  %v11441_v15 = vcombine.high %v2724_v4, %v2732_v8 }
 0x7b0   : > { %v14334_v23 = vpop.eup %14333 }
 0x7b1   : > { %v2677_v26 = vmul.f32 %v14334_v23, %v15100_v21  ;;  %v15135_v28 = vadd.f32 %v11411_v27, %v2686_v24  ;;  %v2714_v21 = vld [vmem:[%s16815_s14 + $0x60] sm:$0xff]  ;;  %v11440_v23 = vcombine.low %v2724_v4, %v2732_v8  ;;  %v11442_v24 = vcombine.low %v2725_v33, %v2733_v9 }
 0x7b2   : > { %v11421_v51 = vcombine.high %v2706_v50, %v2714_v21  ;;  %v11420_v60 = vcombine.low %v2706_v50, %v2714_v21  ;;  %v14017_v50 = vld [vmem:[%s14601_s24 + $0x68] sm:$0xff]  }
 0x7b3   : > { %v2687_v29 = vmul.f32 %v11410_v22, %v2677_v26  ;;  %v14007_v26 = vld [vmem:[%s14601_s24 + $0x40] sm:$0xff]   ;;  %v14018_v21 = vld [vmem:[%s14601_s24 + $0x28] sm:$0xff]  }
 0x7b5   : > { %v15137_v16 = vadd.f32 %v11411_v27, %v2687_v29  ;;  %v14009_v29 = vld [vmem:[%s14601_s24 + $0x48] sm:$0xff]  }
 0x7b7   : > { %v15144_v32 = vpack.c.bf16 %v15137_v16, %v15135_v28 }
 0x7b9   : > { %11444 = vmatmul.mubr.msk.bf16.vlgmr.msra.gmra.mrb[28].mxu0 %vm1023_vm1, %v15144_v32  ;;  %11446 = vmatmul.mubr.msk.bf16.vlgmr.msra.gmra.mrb[16].mxu1 %vm1023_vm1, %v15144_v32 }
 0x7ba   : > { %2942 = vmatprep.mubr.bf16.mxu0 %v16777_v34  ;;  %2995 = vmatprep.mubr.bf16.mxu1 %v16777_v34 }
 0x7bb   : > { %3007 = vmatpush1.bf16.msra.mxu0 %v11416_v0  ;;  %3060 = vmatpush1.bf16.msra.mxu1 %v11418_v2  ;;  %v2709_v0 = vld [vmem:[%s16815_s14 + $0x38] sm:$0xff] }
 0x7bc   : > { %3008 = vmatprep.subr.bf16.mxu0 %v11433_v49  ;;  %3061 = vmatprep.subr.bf16.mxu1 %v11435_v19  ;;  %v11427_v36 = vcombine.high %v2709_v0, %v2717_v1  ;;  %v11426_v11 = vcombine.low %v2709_v0, %v2717_v1  ;;  %v14015_v49 = vld [vmem:[%s14601_s24 + $0x60] sm:$0xff]  }
 0x7bd   : > { %v14016_v19 = vld [vmem:[%s14601_s24 + $0x20] sm:$0xff]  }
 0x7bf   : > { %3009 = vmatpush1.bf16.msra.mxu0 %v11432_v38  ;;  %3062 = vmatpush1.bf16.msra.mxu1 %v11434_v42  ;;  %v14021_v38 = vld [vmem:[%s14601_s24 + $0x78] sm:$0xff]  }
 0x7c0   : > { %3112 = vmatprep.subr.bf16.mxu0 %v11421_v51  ;;  %3165 = vmatprep.subr.bf16.mxu1 %v11423_v40  ;;  %v14022_v42 = vld [vmem:[%s14601_s24 + $0x38] sm:$0xff]   ;;  %v14023_v51 = vld [vmem:[%s14601_s24 + $0xc0] sm:$0xff]  }
 0x7c1   : > { %v14042_v40 = vld [vmem:[%s14601_s24 + $0x340] sm:$0xff]  }
 0x7cb   : > { %v2663_v43 = vpop.xlane.xlu0 %2662 }
 0x7cc   : > { %v2667_v5 = vmul.f32 0.03125, %v2663_v43  ;;  %v2660_v45 = vpop.xlane.xlu1 %2659  ;;  %v14043_v43 = vld [vmem:[%s14601_s24 + $0x300] sm:$0xff]  }
 0x7cd   : > { %v2666_v62 = vmul.f32 0.03125, %v2660_v45  ;;  %v14047_v45 = vld [vmem:[%s14601_s24 + $0x308] sm:$0xff]  }
 0x7ce   : > { %v2671_v18 = vadd.f32 1e-05, %v2667_v5  ;;  %v14046_v5 = vld [vmem:[%s14601_s24 + $0x348] sm:$0xff]  }
 0x7cf   : > { %v2670_v48 = vadd.f32 1e-05, %v2666_v62  ;;  %v14050_v62 = vld [vmem:[%s14601_s24 + $0x350] sm:$0xff]  }
 0x7d0   : > { %14335 = vrsqrt.f32 %v2671_v18  ;;  %v14051_v18 = vld [vmem:[%s14601_s24 + $0x310] sm:$0xff]  }
 0x7d1   : > { %14337 = vrsqrt.f32 %v2670_v48  ;;  %v14054_v48 = vld [vmem:[%s14601_s24 + $0x358] sm:$0xff]  }
 0x7da   : > { %v14336_v52 = vpop.eup %14335 }
 0x7db   : > { %v14338_v14 = vpop.eup %14337  ;;  %v2679_v12 = vmul.f32 %v14336_v52, %v15114_v31  ;;  %v2730_v31 = vld [vmem:[%s16815_s14 + $0xe0] sm:$0xff]  ;;  %v14055_v52 = vld [vmem:[%s14601_s24 + $0x318] sm:$0xff]  }
 0x7dc   : > { %v2678_v53 = vmul.f32 %v14338_v14, %v15116_v58  ;;  %v2723_v58 = vld [vmem:[%s16815_s14 + $0xa8] sm:$0xff]  ;;  %v11437_v25 = vcombine.high %v2722_v57, %v2730_v31  ;;  %v11436_v56 = vcombine.low %v2722_v57, %v2730_v31  ;;  %v14058_v14 = vld [vmem:[%s14601_s24 + $0x360] sm:$0xff]   ;;  %v14071_v57 = vld [vmem:[%s14601_s24 + $0x378] sm:$0xff]   ;;  %s14433_s14 = scalar_lea.vmem %s14432_s13, 32 }
 0x7dd   : > { %v2689_v44 = vmul.f32 %v11410_v22, %v2679_v12  ;;  %v11439_v13 = vcombine.high %v2723_v58, %v2731_v59  ;;  %v11438_v2 = vcombine.low %v2723_v58, %v2731_v59  ;;  %v14059_v12 = vld [vmem:[%s14601_s24 + $0x320] sm:$0xff]   ;;  %v14072_v31 = vld [vmem:[%s14601_s24 + $0x338] sm:$0xff]   ;;  %v14533_v58 = vmov 1966171168  }
 0x7de   : > { %v2688_v54 = vmul.f32 %v11410_v22, %v2678_v53  ;;  %v11443_v22 = vcombine.high %v2725_v33, %v2733_v9  ;;  %v14062_v53 = vld [vmem:[%s14601_s24 + $0x368] sm:$0xff]   ;;  %v3362_v59 = vunpack.c.l.s4 %v14533_v58 }
 0x7df   : > { %v15158_v7 = vadd.f32 %v11411_v27, %v2689_v44  ;;  %v14063_v44 = vld [vmem:[%s14601_s24 + $0x328] sm:$0xff]  }
 0x7e0   : > { %v15160_v41 = vadd.f32 %v11411_v27, %v2688_v54  ;;  %v14008_v27 = vld [vmem:[%s14601_s24] sm:$0xff]   ;;  %v14067_v54 = vld [vmem:[%s14601_s24 + $0x370] sm:$0xff]  }
 0x7e1   : > { %16830 = vst [vmem:[#allocation27_spill] sm:$0xff] %v15158_v7 }
 0x7e2   : > { %16831 = vst [vmem:[#allocation28_spill] sm:$0xff] %v15160_v41  ;;  %v15164_v55 = vpack.c.bf16 %v15158_v7, %v15160_v41 }
 0x7e4   : > { %11445 = vmatmul.mubr.msk.bf16.gmra.mrb[32].mxu0 %vm1023_vm1, %v15164_v55  ;;  %11447 = vmatmul.mubr.msk.bf16.gmra.mrb[20].mxu1 %vm1023_vm1, %v15164_v55 }
 0x7e5   : > { %3038 = vmatprep.mubr.bf16.mxu0 %v16777_v34  ;;  %3091 = vmatprep.mubr.bf16.mxu1 %v16777_v34 }
 0x7ec   : > { %11448 = vmatmul.mubr.msk.bf16.vlgmr.msra.gmra.mrb[36].mxu0 %vm1023_vm1, %v15144_v32  ;;  %11450 = vmatmul.mubr.msk.bf16.vlgmr.msra.gmra.mrb[24].mxu1 %vm1023_vm1, %v15144_v32 }
 0x7ed   : > { %3048 = vmatprep.mubr.bf16.mxu0 %v16777_v34  ;;  %3101 = vmatprep.mubr.bf16.mxu1 %v16777_v34 }
 0x7ee   : > { %3113 = vmatpush1.bf16.msra.mxu0 %v11420_v60  ;;  %3166 = vmatpush1.bf16.msra.mxu1 %v11422_v61  ;;  %v3364_v60 = vlaneseq  ;;  %v3363_v61 = vunpack.c.0.s8 %v3362_v59 }
 0x7ef   : > { %3114 = vmatprep.subr.bf16.mxu0 %v11437_v25  ;;  %3167 = vmatprep.subr.bf16.mxu1 %v11439_v13 }
 0x7f0   : > { %v3365_v25 = vshrl.u32 %v3364_v60, 7 }
 0x7f2   : > { %3115 = vmatpush1.bf16.msra.mxu0 %v11436_v56  ;;  %3168 = vmatpush1.bf16.msra.mxu1 %v11438_v2  ;;  %v15251_v13 = vsub.s32 %v3363_v61, %v3365_v25 }
 0x7f3   : > { %3218 = vmatprep.subr.bf16.mxu0 %v11425_v3  ;;  %3271 = vmatprep.subr.bf16.mxu1 %v11427_v36  ;;  %v15260_v3 = vsub.s32 0, %v3365_v25 }
 0x7f4   : > { %11449 = vmatmul.mubr.msk.bf16.gmra.mrb[40].mxu0 %vm1023_vm1, %v15164_v55  ;;  %11451 = vmatmul.mubr.msk.bf16.gmra.mrb[28].mxu1 %vm1023_vm1, %v15164_v55  ;;  %v3367_v63 = vrot.slane %v15254_v46, %v15251_v13 }
 0x7f5   : > { %3144 = vmatprep.mubr.bf16.mxu0 %v16777_v34  ;;  %3197 = vmatprep.mubr.bf16.mxu1 %v16777_v34 }
 0x7f6   : > { %v3375_v0 = vcombine.high %v3367_v63, %v3367_v63  ;;  %v3383_v1 = vrot.slane %v3367_v63, %v15251_v13 }
 0x7f8   : > { %v3397_v56 = vrot.slane %v3375_v0, %v15251_v13  ;;  %v3459_v2 = vpack.i.b16 %v3383_v1, %v3383_v1 }
 0x7fa   : > { %v3466_v36 = vpack.i.b16 %v3397_v56, %v3397_v56 }
 0x7fc   : > { %11452 = vmatmul.mubr.msk.bf16.vlgmr.msra.gmra.mrb[44].mxu0 %vm1023_vm1, %v15144_v32  ;;  %11454 = vmatmul.mubr.msk.bf16.vlgmr.msra.gmra.mrb[32].mxu1 %vm1023_vm1, %v15144_v32 }
 0x7fd   : > { %3154 = vmatprep.mubr.bf16.mxu0 %v16777_v34  ;;  %3207 = vmatprep.mubr.bf16.mxu1 %v16777_v34 }
 0x7fe   : > { %3219 = vmatpush1.bf16.msra.mxu0 %v11424_v10  ;;  %3272 = vmatpush1.bf16.msra.mxu1 %v11426_v11  ;;  %v15267_v10 = vrot.slane %v3459_v2, %v15260_v3 }
 0x7ff   : > { %3220 = vmatprep.subr.bf16.mxu0 %v11441_v15  ;;  %3273 = vmatprep.subr.bf16.mxu1 %v11443_v22  ;;  %v15272_v22 = vrot.slane %v3466_v36, %v15260_v3 }
 0x802   : > { %3221 = vmatpush1.bf16.msra.mxu0 %v11440_v23  ;;  %3274 = vmatpush1.bf16.msra.mxu1 %v11442_v24 }
 0x803   : > { %12069 = vmatprep.subr.bf16.mxu1 %v14007_v26  ;;  %12237 = vmatprep.subr.bf16.mxu0 %v14042_v40  ;;  %v14033_v40 = vld [vmem:[%s14601_s24 + $0xe8] sm:$0xff]  }
 0x804   : > { %11453 = vmatmul.mubr.msk.bf16.gmra.mrb[48].mxu0 %vm1023_vm1, %v15164_v55  ;;  %11455 = vmatmul.mubr.msk.bf16.gmra.mrb[36].mxu1 %vm1023_vm1, %v15164_v55 }
 0x805   : > { %3250 = vmatprep.mubr.bf16.mxu0 %v16777_v34  ;;  %3303 = vmatprep.mubr.bf16.mxu1 %v16777_v34 }
 0x80c   : > { %11456 = vmatmul.mubr.msk.bf16.vlgmr.msra.gmra.mrb[52].mxu0 %vm1023_vm1, %v15144_v32  ;;  %11458 = vmatmul.mubr.msk.bf16.vlgmr.msra.gmra.mrb[40].mxu1 %vm1023_vm1, %v15144_v32  ;;  %v14014_v32 = vld [vmem:[%s14601_s24 + $0x18] sm:$0xff]  }
 0x80d   : > { %3260 = vmatprep.mubr.bf16.mxu0 %v16777_v34  ;;  %3313 = vmatprep.mubr.bf16.mxu1 %v16777_v34 }
 0x80e   : > { %12070 = vmatpush3.bf16.msra.mxu1 %v14008_v27  ;;  %12238 = vmatpush3.bf16.msra.mxu0 %v14043_v43  ;;  %v14034_v43 = vld [vmem:[%s14601_s24 + $0xa8] sm:$0xff]  }
 0x80f   : > { %12071 = vmatprep.subr.bf16.mxu1 %v14009_v29  ;;  %12239 = vmatprep.subr.bf16.mxu0 %v14046_v5  ;;  %v14036_v5 = vld [vmem:[%s14601_s24 + $0xf0] sm:$0xff]  }
 0x812   : > { %12072 = vmatpush3.bf16.msra.mxu1 %v14010_v30  ;;  %12240 = vmatpush3.bf16.msra.mxu0 %v14047_v45  ;;  %v14037_v45 = vld [vmem:[%s14601_s24 + $0xb0] sm:$0xff]  }
 0x813   : > { %12073 = vmatprep.subr.bf16.mxu1 %v14011_v17  ;;  %12241 = vmatprep.subr.bf16.mxu0 %v14050_v62  ;;  %v14038_v62 = vld [vmem:[%s14601_s24 + $0xf8] sm:$0xff]  }
 0x814   : > { %11457 = vmatmul.mubr.msk.bf16.gmra.mrb[56].mxu0 %vm1023_vm1, %v15164_v55  ;;  %11459 = vmatmul.mubr.msk.bf16.gmra.mrb[44].mxu1 %vm1023_vm1, %v15164_v55  ;;  %v14068_v55 = vld [vmem:[%s14601_s24 + $0x330] sm:$0xff]  }
 0x816   : > { %12074 = vmatpush3.bf16.msra.mxu1 %v14012_v20  ;;  %12242 = vmatpush3.bf16.msra.mxu0 %v14051_v18  ;;  %v14039_v18 = vld [vmem:[%s14601_s24 + $0xb8] sm:$0xff]  }
 0x817   : > { %12075 = vmatprep.subr.bf16.mxu1 %v14013_v35  ;;  %12243 = vmatprep.subr.bf16.mxu0 %v14054_v48  ;;  %v3407_v48 = vcombine.high %v3397_v56, %v3397_v56 }
 0x81a   : > { %12076 = vmatpush3.bf16.msra.mxu1 %v14014_v32  ;;  %12244 = vmatpush3.bf16.msra.mxu0 %v14055_v52  ;;  %v14024_v32 = vld [vmem:[%s14601_s24 + $0x80] sm:$0xff]  }
 0x81b   : > { %12077 = vmatprep.subr.bf16.mxu1 %v14015_v49  ;;  %12245 = vmatprep.subr.bf16.mxu0 %v14058_v14  ;;  %v14040_v52 = vld [vmem:[%s14601_s24 + $0x140] sm:$0xff]   ;;  %v3480_v14 = vpack.i.b16 %v3407_v48, %v3407_v48 }
 0x81e   : > { %12078 = vmatpush3.bf16.msra.mxu1 %v14016_v19  ;;  %12246 = vmatpush3.bf16.msra.mxu0 %v14059_v12  ;;  %v14025_v19 = vld [vmem:[%s14601_s24 + $0xc8] sm:$0xff]  }
 0x81f   : > { %12079 = vmatprep.subr.bf16.mxu1 %v14017_v50  ;;  %12247 = vmatprep.subr.bf16.mxu0 %v14062_v53  ;;  %v14026_v50 = vld [vmem:[%s14601_s24 + $0x88] sm:$0xff]  }
 0x822   : > { %12080 = vmatpush3.bf16.msra.mxu1 %v14018_v21  ;;  %12248 = vmatpush3.bf16.msra.mxu0 %v14063_v44  ;;  %v14027_v21 = vld [vmem:[%s14601_s24 + $0xd0] sm:$0xff]   ;;  %v3360_v44 = vcombine.high %v15254_v46, %v15254_v46 }
 0x823   : > { %12081 = vmatprep.subr.bf16.mxu1 %v14019_v37  ;;  %12249 = vmatprep.subr.bf16.mxu0 %v14067_v54  ;;  %v14028_v37 = vld [vmem:[%s14601_s24 + $0x90] sm:$0xff]   ;;  %v3405_v54 = vcombine.high %v3383_v1, %v3383_v1 }
 0x824   : > { %v15304_v2 = vrot.slane %v3360_v44, %v15251_v13 }
 0x825   : > { %v3473_v36 = vpack.i.b16 %v3405_v54, %v3405_v54 }
 0x826   : > { %12082 = vmatpush3.bf16.msra.mxu1 %v14020_v47  ;;  %12250 = vmatpush3.bf16.msra.mxu0 %v14068_v55  ;;  %v14029_v47 = vld [vmem:[%s14601_s24 + $0xd8] sm:$0xff]  }
 0x827   : > { %12083 = vmatprep.subr.bf16.mxu1 %v14021_v38  ;;  %12251 = vmatprep.subr.bf16.mxu0 %v14071_v57  ;;  %v14030_v38 = vld [vmem:[%s14601_s24 + $0x98] sm:$0xff]  }
 0x82a   : > { %12084 = vmatpush3.bf16.msra.mxu1 %v14022_v42  ;;  %12252 = vmatpush3.bf16.msra.mxu0 %v14072_v31  ;;  %v14031_v42 = vld [vmem:[%s14601_s24 + $0xe0] sm:$0xff]   ;;  %v3485_v31 = vrot.slane %v3480_v14, %v15260_v3 }
 0x82b   : > { %12097 = vmatprep.subr.bf16.mxu1 %v14023_v51  ;;  %v14032_v51 = vld [vmem:[%s14601_s24 + $0xa0] sm:$0xff]  }
 0x88c   : > { %v2934_v4 = vpop.f32.mrb[28].mxu0  ;;  %v15262_v8 = vpop.f32.mrb[16].mxu1 }
 0x88d   : > { %v2936_v33 = vpop.f32.mrb[29].mxu0  ;;  %v15264_v9 = vpop.f32.mrb[17].mxu1 }
 0x88e   : > { %v2938_v11 = vpop.f32.mrb[30].mxu0  ;;  %v15269_v15 = vpop.f32.mrb[18].mxu1 }
 0x88f   : > { %v3324_v23 = vpack.c.bf16 %v2938_v11, %v2934_v4  ;;  %v3326_v24 = vpack.c.bf16 %v15269_v15, %v15262_v8  ;;  %v2940_v26 = vpop.f32.mrb[31].mxu0  ;;  %v2993_v27 = vpop.f32.mrb[19].mxu1 }
 0x890   : > { %v3325_v29 = vpack.c.bf16 %v2940_v26, %v2936_v33  ;;  %v3327_v30 = vpack.c.bf16 %v2993_v27, %v15264_v9  ;;  %v3478_v26 = vrot.slane %v3473_v36, %v15260_v3 }
 0x891   : > { %v3570_v17 = vadd.bf16 %v15267_v10, %v3324_v23  ;;  %v3376_v23 = vcombine.high %v15304_v2, %v15304_v2 }
 0x892   : > { %v3571_v20 = vadd.bf16 %v15272_v22, %v3325_v29  ;;  %v3573_v1 = vadd.bf16 %v3485_v31, %v3327_v30 }
 0x893   : > { %v3602_v49 = vmax.bf16 %v16777_v34, %v3570_v17 }
 0x894   : > { %v3603_v35 = vmax.bf16 %v16777_v34, %v3571_v20 }
 0x896   : > { %4697 = vmatprep.mubr.bf16.mxu1 %v3603_v35 }
 0x897   : > { %4698 = vmatmul.mubr.bf16.vlgmr.msra.gmra.mrb[48].mxu1 %v3602_v49 }
 0x898   : > { %12098 = vmatpush3.bf16.msra.mxu1 %v14024_v32 }
 0x899   : > { %12099 = vmatprep.subr.bf16.mxu1 %v14025_v19 }
 0x89c   : > { %12100 = vmatpush3.bf16.msra.mxu1 %v14026_v50  ;;  %v15331_v50 = vrot.slane %v3376_v23, %v15251_v13 }
 0x89d   : > { %12101 = vmatprep.subr.bf16.mxu1 %v14027_v21  ;;  %v14066_v21 = vld [vmem:[%s14601_s24 + $0x130] sm:$0xff]  }
 0x8a0   : > { %12102 = vmatpush3.bf16.msra.mxu1 %v14028_v37  ;;  %v3572_v37 = vadd.bf16 %v3478_v26, %v3326_v24 }
 0x8a1   : > { %12103 = vmatprep.subr.bf16.mxu1 %v14029_v47 }
 0x8a4   : > { %12104 = vmatpush3.bf16.msra.mxu1 %v14030_v38  ;;  %v3494_v38 = vpack.i.b16 %v15331_v50, %v15331_v50 }
 0x8a5   : > { %12105 = vmatprep.subr.bf16.mxu1 %v14031_v42 }
 0x8a6   : > { %v15355_v8 = vrot.slane %v3494_v38, %v15260_v3 }
 0x8a8   : > { %12106 = vmatpush3.bf16.msra.mxu1 %v14032_v51 }
 0x8a9   : > { %12107 = vmatprep.subr.bf16.mxu1 %v14033_v40  ;;  %v14041_v40 = vld [vmem:[%s14601_s24 + $0x100] sm:$0xff]  }
 0x8ac   : > { %12108 = vmatpush3.bf16.msra.mxu1 %v14034_v43  ;;  %v3604_v43 = vmax.bf16 %v16777_v34, %v3572_v37  ;;  %v14053_v37 = vld [vmem:[%s14601_s24 + $0x118] sm:$0xff]  }
 0x8ad   : > { %12109 = vmatprep.subr.bf16.mxu1 %v14036_v5 }
 0x8b0   : > { %12110 = vmatpush3.bf16.msra.mxu1 %v14037_v45 }
 0x8b1   : > { %12111 = vmatprep.subr.bf16.mxu1 %v14038_v62  ;;  %v14044_v62 = vld [vmem:[%s14601_s24 + $0x148] sm:$0xff]  }
 0x8b4   : > { %12112 = vmatpush3.bf16.msra.mxu1 %v14039_v18  ;;  %v15352_v18 = vld [vmem:[%s14596_s19 + $0x8] sm:$0xff] }
 0x8b5   : > { %12125 = vmatprep.subr.bf16.mxu1 %v14040_v52  ;;  %v3409_v52 = vcombine.high %v15352_v18, %v15352_v18 }
 0x8b7   : > { %v2944_v12 = vpop.f32.mrb[32].mxu0  ;;  %v15297_v53 = vpop.f32.mrb[20].mxu1 }
 0x8b8   : > { %v2946_v55 = vpop.f32.mrb[33].mxu0  ;;  %v2999_v57 = vpop.f32.mrb[21].mxu1 }
 0x8b9   : > { %v2948_v58 = vpop.f32.mrb[34].mxu0  ;;  %v3001_v59 = vpop.f32.mrb[22].mxu1 }
 0x8ba   : > { %v3340_v60 = vpack.c.bf16 %v2948_v58, %v2944_v12  ;;  %v3342_v61 = vpack.c.bf16 %v3001_v59, %v15297_v53  ;;  %v2950_v25 = vpop.f32.mrb[35].mxu0  ;;  %v3003_v63 = vpop.f32.mrb[23].mxu1  ;;  %v14048_v58 = vld [vmem:[%s14601_s24 + $0x150] sm:$0xff]  }
 0x8bb   : > { %v3341_v0 = vpack.c.bf16 %v2950_v25, %v2946_v55  ;;  %v3343_v56 = vpack.c.bf16 %v3003_v63, %v2999_v57  ;;  %v14045_v57 = vld [vmem:[%s14601_s24 + $0x108] sm:$0xff]  }
 0x8bc   : > { %v3586_v46 = vadd.bf16 %v15267_v10, %v3340_v60  ;;  %v3423_v60 = vrot.slane %v3409_v52, %v15251_v13 }
 0x8bd   : > { %v3587_v4 = vadd.bf16 %v15272_v22, %v3341_v0  ;;  %v3605_v22 = vmax.bf16 %v16777_v34, %v3573_v1  ;;  %v3589_v47 = vadd.bf16 %v3485_v31, %v3343_v56  ;;  %v3588_v31 = vadd.bf16 %v3478_v26, %v3342_v61  ;;  %v14049_v0 = vld [vmem:[%s14601_s24 + $0x110] sm:$0xff]  }
 0x8be   : > { %v3618_v17 = vmax.bf16 %v16777_v34, %v3586_v46  ;;  %v14052_v46 = vld [vmem:[%s14601_s24 + $0x158] sm:$0xff]   ;;  %v3425_v23 = vcombine.high %v3423_v60, %v3423_v60  ;;  %v3439_v38 = vrot.slane %v3423_v60, %v15251_v13  ;;  %v14065_v26 = vld [vmem:[%s14601_s24 + $0x170] sm:$0xff]  }
 0x8bf   : > { %v15308_v33 = vpop.f32.mrb[36].mxu0  ;;  %v15310_v9 = vpop.f32.mrb[24].mxu1  ;;  %v3619_v11 = vmax.bf16 %v16777_v34, %v3587_v4  ;;  %v3621_v48 = vmax.bf16 %v16777_v34, %v3589_v47  ;;  %v3620_v61 = vmax.bf16 %v16777_v34, %v3588_v31  ;;  %v14056_v47 = vld [vmem:[%s14601_s24 + $0x160] sm:$0xff]   ;;  %v14060_v31 = vld [vmem:[%s14601_s24 + $0x168] sm:$0xff]  }
 0x8c0   : > { %v3042_v27 = vpop.f32.mrb[37].mxu0  ;;  %v15316_v29 = vpop.f32.mrb[25].mxu1 }
 0x8c1   : > { %v15319_v10 = vpop.f32.mrb[38].mxu0  ;;  %v15321_v30 = vpop.f32.mrb[26].mxu1  ;;  %4705 = vmatprep.mubr.bf16.mxu1 %v3619_v11 }
 0x8c2   : > { %v3046_v32 = vpop.f32.mrb[39].mxu0  ;;  %v15328_v49 = vpop.f32.mrb[27].mxu1  ;;  %4706 = vmatmul.mubr.bf16.gmra.mrb[52].mxu1 %v3618_v17 }
 0x8c3   : > { %v3329_v19 = vpack.c.bf16 %v3046_v32, %v3042_v27  ;;  %4746 = vmatprep.mubr.bf16.mxu1 %v3605_v22 }
 0x8c5   : > { %v3575_v59 = vadd.bf16 %v15355_v8, %v3329_v19 }
 0x8c7   : > { %v15340_v42 = vpop.f32.mrb[40].mxu0  ;;  %v15342_v51 = vpop.f32.mrb[28].mxu1  ;;  %v3607_v11 = vmax.bf16 %v16777_v34, %v3575_v59 }
 0x8c8   : > { %v15346_v5 = vpop.f32.mrb[41].mxu0  ;;  %v15348_v45 = vpop.f32.mrb[29].mxu1 }
 0x8c9   : > { %v15357_v15 = vpop.f32.mrb[42].mxu0  ;;  %v15359_v24 = vpop.f32.mrb[30].mxu1 }
 0x8ca   : > { %v15368_v53 = vpop.f32.mrb[43].mxu0  ;;  %v15370_v44 = vpop.f32.mrb[31].mxu1  ;;  %4747 = vmatmul.mubr.bf16.vlgmr.msra.gmra.mrb[56].mxu1 %v3604_v43 }
 0x8cb   : > { %12126 = vmatpush3.bf16.msra.mxu1 %v14041_v40  ;;  %4754 = vmatprep.mubr.bf16.mxu1 %v3621_v48  ;;  %v3453_v40 = vrot.slane %v3425_v23, %v15251_v13  ;;  %v14057_v48 = vld [vmem:[%s14601_s24 + $0x120] sm:$0xff]  }
 0x8cc   : > { %12127 = vmatprep.subr.bf16.mxu1 %v14044_v62 }
 0x8cd   : > { %v3550_v32 = vpack.i.b16 %v3453_v40, %v3453_v40 }
 0x8cf   : > { %12128 = vmatpush3.bf16.msra.mxu1 %v14045_v57  ;;  %v15380_v25 = vpop.f32.mrb[44].mxu0  ;;  %v15382_v63 = vpop.f32.mrb[32].mxu1 }
 0x8d0   : > { %v15385_v56 = vpop.f32.mrb[45].mxu0  ;;  %v15387_v36 = vpop.f32.mrb[33].mxu1  ;;  %12129 = vmatprep.subr.bf16.mxu1 %v14048_v58  ;;  %v3455_v58 = vcombine.high %v3439_v38, %v3439_v38 }
 0x8d1   : > { %v15391_v1 = vpop.f32.mrb[46].mxu0  ;;  %v15393_v4 = vpop.f32.mrb[34].mxu1 }
 0x8d2   : > { %v15400_v17 = vpop.f32.mrb[47].mxu0  ;;  %v15402_v22 = vpop.f32.mrb[35].mxu1  ;;  %4755 = vmatmul.mubr.bf16.gmra.mrb[60].mxu1 %v3620_v61  ;;  %v15428_v61 = vrot.slane %v15304_v2, %v15251_v13  ;;  %v14061_v2 = vld [vmem:[%s14601_s24 + $0x128] sm:$0xff]  }
 0x8d3   : > { %12130 = vmatpush3.bf16.msra.mxu1 %v14049_v0  ;;  %4795 = vmatprep.mubr.bf16.mxu1 %v3607_v11  ;;  %v3457_v0 = vcombine.high %v3453_v40, %v3453_v40  ;;  %v3557_v11 = vpack.i.b16 %v3455_v58, %v3455_v58 }
 0x8d4   : > { %12131 = vmatprep.subr.bf16.mxu1 %v14052_v46  ;;  %v3487_v19 = vpack.i.b16 %v15428_v61, %v15428_v61  ;;  %v3543_v46 = vpack.i.b16 %v3439_v38, %v3439_v38  ;;  %v3408_v38 = vcombine.high %v15331_v50, %v15331_v50 }
 0x8d5   : > { %v3564_v12 = vpack.i.b16 %v3457_v0, %v3457_v0  ;;  %v3562_v34 = vrot.slane %v3557_v11, %v15260_v3  ;;  %v3555_v0 = vrot.slane %v3550_v32, %v15260_v3  ;;  %v16832_v11 = vpack.c.bf16 %v15319_v10, %v15308_v33  ;;  %v14073_v32 = vld [vmem:[%s14601_s24 + $0x1c0] sm:$0xff]  }
 0x8d6   : > { %v16834_v33 = vmov 0  }
 0x8d7   : > { %12132 = vmatpush3.bf16.msra.mxu1 %v14053_v37  ;;  %v15412_v43 = vpop.f32.mrb[48].mxu0  ;;  %v15414_v62 = vpop.f32.mrb[36].mxu1 }
 0x8d8   : > { %v15417_v52 = vpop.f32.mrb[49].mxu0  ;;  %v15419_v57 = vpop.f32.mrb[37].mxu1  ;;  %12133 = vmatprep.subr.bf16.mxu1 %v14056_v47  ;;  %v3492_v47 = vrot.slane %v3487_v19, %v15260_v3 }
 0x8d9   : > { %v15422_v59 = vpop.f32.mrb[50].mxu0  ;;  %v15424_v60 = vpop.f32.mrb[38].mxu1 }
 0x8da   : > { %v15434_v23 = vpop.f32.mrb[51].mxu0  ;;  %v15436_v37 = vpop.f32.mrb[39].mxu1  ;;  %v3574_v50 = vadd.bf16 %v3492_v47, %v16832_v11 }
 0x8db   : > { %12134 = vmatpush3.bf16.msra.mxu1 %v14057_v48  ;;  %v3548_v48 = vrot.slane %v3543_v46, %v15260_v3 }
 0x8dc   : > { %12135 = vmatprep.subr.bf16.mxu1 %v14060_v31  ;;  %v14069_v31 = vld [vmem:[%s14601_s24 + $0x178] sm:$0xff]  }
 0x8df   : > { %12136 = vmatpush3.bf16.msra.mxu1 %v14061_v2  ;;  %v3252_v55 = vpop.f32.mrb[52].mxu0  ;;  %v3305_v35 = vpop.f32.mrb[40].mxu1  ;;  %v3569_v2 = vrot.slane %v3564_v12, %v15260_v3  ;;  %v3508_v12 = vpack.i.b16 %v3408_v38, %v3408_v38 }
 0x8e0   : > { %v3254_v14 = vpop.f32.mrb[53].mxu0  ;;  %v3307_v27 = vpop.f32.mrb[41].mxu1  ;;  %12137 = vmatprep.subr.bf16.mxu1 %v14065_v26  ;;  %v14070_v26 = vld [vmem:[%s14601_s24 + $0x138] sm:$0xff]  }
 0x8e1   : > { %v3256_v40 = vpop.f32.mrb[54].mxu0  ;;  %v3309_v58 = vpop.f32.mrb[42].mxu1 }
 0x8e2   : > { %v3336_v19 = vpack.c.bf16 %v3256_v40, %v3252_v55  ;;  %v3338_v54 = vpack.c.bf16 %v3309_v58, %v3305_v35  ;;  %v3258_v20 = vpop.f32.mrb[55].mxu0  ;;  %v3311_v6 = vpop.f32.mrb[43].mxu1  ;;  %v16833_v35 = vpack.c.bf16 %v15368_v53, %v15346_v5  ;;  %v14075_v58 = vld [vmem:[%s14601_s24 + $0x1c8] sm:$0xff]   ;;  %v15474_v5 = vrot.slane %v3508_v12, %v15260_v3 }
 0x8e3   : > { %v3337_v46 = vpack.c.bf16 %v3258_v20, %v3254_v14  ;;  %v3339_v39 = vpack.c.bf16 %v3311_v6, %v3307_v27  ;;  %12138 = vmatpush3.bf16.msra.mxu1 %v14066_v21  ;;  %v14074_v27 = vld [vmem:[%s14601_s24 + $0x180] sm:$0xff]   ;;  %v16835_v12 = vpack.c.bf16 %v15357_v15, %v15340_v42  ;;  %v14078_v42 = vld [vmem:[%s14601_s24 + $0x190] sm:$0xff]  }
 0x8e4   : > { %v3582_v7 = vadd.bf16 %v3548_v48, %v3336_v19  ;;  %v15459_v41 = vadd.bf16 %v3562_v34, %v3338_v54  ;;  %12139 = vmatprep.subr.bf16.mxu1 %v14069_v31  ;;  %v3591_v20 = vadd.bf16 %v15355_v8, %v16833_v35  ;;  %v3606_v54 = vmax.bf16 %v16834_v33, %v3574_v50 }
 0x8e5   : > { %v3583_v6 = vadd.bf16 %v3555_v0, %v3337_v46  ;;  %v15466_v14 = vadd.bf16 %v3569_v2, %v3339_v39  ;;  %v3590_v35 = vadd.bf16 %v3492_v47, %v16835_v12  ;;  %v14079_v47 = vld [vmem:[%s14601_s24 + $0x1d8] sm:$0xff]  }
 0x8e6   : > { %v3614_v31 = vmax.bf16 %v16834_v33, %v3582_v7  ;;  %v3623_v53 = vmax.bf16 %v16834_v33, %v3591_v20 }
 0x8e7   : > { %12140 = vmatpush3.bf16.msra.mxu1 %v14070_v26  ;;  %v3262_v21 = vpop.f32.mrb[56].mxu0  ;;  %v3315_v55 = vpop.f32.mrb[44].mxu1  ;;  %v3615_v10 = vmax.bf16 %v16834_v33, %v3583_v6 }
 0x8e8   : > { %v3264_v40 = vpop.f32.mrb[57].mxu0  ;;  %v3317_v38 = vpop.f32.mrb[45].mxu1  ;;  %12153 = vmatprep.subr.bf16.mxu1 %v14073_v32  ;;  %v14076_v32 = vld [vmem:[%s14601_s24 + $0x188] sm:$0xff]  }
 0x8e9   : > { %v3266_v39 = vpop.f32.mrb[58].mxu0  ;;  %v3319_v8 = vpop.f32.mrb[46].mxu1  ;;  %4991 = vmatprep.mubr.bf16.mxu0 %v3615_v10 }
 0x8ea   : > { %v3352_v19 = vpack.c.bf16 %v3266_v39, %v3262_v21  ;;  %v3354_v46 = vpack.c.bf16 %v3319_v8, %v3315_v55  ;;  %4796 = vmatmul.mubr.bf16.vlgmr.msra.gmra.mrb[64].mxu1 %v3606_v54  ;;  %v3268_v26 = vpop.f32.mrb[59].mxu0  ;;  %v3321_v11 = vpop.f32.mrb[47].mxu1  ;;  %4992 = vmatmul.mubr.bf16.vlgmr.msra.gmra.mrb[60].mxu0 %v3614_v31  ;;  %v14077_v21 = vld [vmem:[%s14601_s24 + $0x1d0] sm:$0xff]   ;;  %v16836_v55 = vpack.c.bf16 %v15328_v49, %v15316_v29  ;;  %v14080_v49 = vld [vmem:[%s14601_s24 + $0x198] sm:$0xff]  }
 0x8eb   : > { %v3353_v7 = vpack.c.bf16 %v3268_v26, %v3264_v40  ;;  %v3355_v50 = vpack.c.bf16 %v3321_v11, %v3317_v38  ;;  %4803 = vmatprep.mubr.bf16.mxu1 %v3623_v53  ;;  %12154 = vmatpush3.bf16.msra.mxu1 %v14074_v27  ;;  %v14083_v40 = vld [vmem:[%s14601_s24 + $0x1e8] sm:$0xff]   ;;  %v3416_v38 = vrot.slane %v15352_v18, %v15251_v13  ;;  %v14085_v8 = vld [vmem:[%s14601_s24 + $0x1f0] sm:$0xff]   ;;  %v14088_v11 = vld [vmem:[%s14601_s24 + $0x1b8] sm:$0xff]  }
 0x8ec   : > { %v3598_v6 = vadd.bf16 %v3548_v48, %v3352_v19  ;;  %v15481_v20 = vadd.bf16 %v3562_v34, %v3354_v46  ;;  %12155 = vmatprep.subr.bf16.mxu1 %v14075_v58  ;;  %v3577_v10 = vadd.bf16 %v15474_v5, %v16836_v55  ;;  %v3622_v34 = vmax.bf16 %v16834_v33, %v3590_v35  ;;  %v14081_v48 = vld [vmem:[%s14601_s24 + $0x1e0] sm:$0xff]   ;;  %v14084_v58 = vld [vmem:[%s14601_s24 + $0x1a8] sm:$0xff]   ;;  %v14086_v19 = vld [vmem:[%s14601_s24 + $0x1b0] sm:$0xff]  }
 0x8ed   : > { %v3599_v54 = vadd.bf16 %v3555_v0, %v3353_v7  ;;  %v15488_v31 = vadd.bf16 %v3569_v2, %v3355_v50  ;;  %v14082_v0 = vld [vmem:[%s14601_s24 + $0x1a0] sm:$0xff]   ;;  %v3406_v2 = vcombine.high %v15428_v61, %v15428_v61  ;;  %v3424_v53 = vcombine.high %v3416_v38, %v3416_v38  ;;  %v14087_v61 = vld [vmem:[%s14601_s24 + $0x1f8] sm:$0xff]   ;;  %v14091_v55 = vld [vmem:[%s14601_s24 + $0x248] sm:$0xff]  }
 0x8ee   : > { %v3630_v15 = vmax.bf16 %v16834_v33, %v3598_v6  ;;  %v3609_v29 = vmax.bf16 %v16834_v33, %v3577_v10  ;;  %v16837_v18 = vpack.c.bf16 %v15321_v30, %v15310_v9  ;;  %v14089_v50 = vld [vmem:[%s14601_s24 + $0x240] sm:$0xff]   ;;  %v14093_v10 = vld [vmem:[%s14601_s24 + $0x250] sm:$0xff]  }
 0x8ef   : > { %12156 = vmatpush3.bf16.msra.mxu1 %v14076_v32  ;;  %v3631_v27 = vmax.bf16 %v16834_v33, %v3599_v54  ;;  %v3501_v39 = vpack.i.b16 %v3406_v2, %v3406_v2  ;;  %v3446_v26 = vrot.slane %v3424_v53, %v15251_v13  ;;  %v16838_v32 = vpack.c.bf16 %v15370_v44, %v15348_v45  ;;  %v14090_v6 = vld [vmem:[%s14601_s24 + $0x200] sm:$0xff]   ;;  %v14092_v45 = vld [vmem:[%s14601_s24 + $0x208] sm:$0xff]   ;;  %v14102_v2 = vld [vmem:[%s14601_s24 + $0x230] sm:$0xff]  }
 0x8f0   : > { %12157 = vmatprep.subr.bf16.mxu1 %v14077_v21  ;;  %v16839_v44 = vpack.c.bf16 %v15359_v24, %v15342_v51  ;;  %v16840_v54 = vpack.c.bf16 %v15400_v17, %v15385_v56  ;;  %v14096_v51 = vld [vmem:[%s14601_s24 + $0x218] sm:$0xff]   ;;  %v14097_v24 = vld [vmem:[%s14601_s24 + $0x260] sm:$0xff]   ;;  %v14099_v17 = vld [vmem:[%s14601_s24 + $0x268] sm:$0xff]  }
 0x8f1   : > { %4999 = vmatprep.mubr.bf16.mxu0 %v3631_v27  ;;  %v3506_v46 = vrot.slane %v3501_v39, %v15260_v3  ;;  %v3593_v12 = vadd.bf16 %v15474_v5, %v16838_v32  ;;  %v3522_v35 = vpack.i.b16 %v3446_v26, %v3446_v26  ;;  %v14098_v56 = vld [vmem:[%s14601_s24 + $0x220] sm:$0xff]   ;;  %v3456_v39 = vcombine.high %v3446_v26, %v3446_v26  ;;  %v14109_v32 = vld [vmem:[%s14601_s24 + $0x2d0] sm:$0xff]  }
 0x8f2   : > { %4804 = vmatmul.mubr.bf16.gmra.mrb[68].mxu1 %v3622_v34  ;;  %5000 = vmatmul.mubr.bf16.gmra.mrb[64].mxu0 %v3630_v15  ;;  %v14095_v15 = vld [vmem:[%s14601_s24 + $0x258] sm:$0xff]  }
 0x8f3   : > { %12158 = vmatpush3.bf16.msra.mxu1 %v14078_v42  ;;  %4844 = vmatprep.mubr.bf16.mxu1 %v3609_v29  ;;  %v3576_v7 = vadd.bf16 %v3506_v46, %v16837_v18  ;;  %v3527_v9 = vrot.slane %v3522_v35, %v15260_v3  ;;  %v3625_v30 = vmax.bf16 %v16834_v33, %v3593_v12  ;;  %v14094_v42 = vld [vmem:[%s14601_s24 + $0x210] sm:$0xff]   ;;  %v14106_v18 = vld [vmem:[%s14601_s24 + $0x280] sm:$0xff]  }
 0x8f4   : > { %12159 = vmatprep.subr.bf16.mxu1 %v14079_v47  ;;  %v3592_v5 = vadd.bf16 %v3506_v46, %v16839_v44  ;;  %v3432_v29 = vrot.slane %v3416_v38, %v15251_v13  ;;  %v16841_v38 = vpack.c.bf16 %v15391_v1, %v15380_v25  ;;  %v3536_v46 = vpack.i.b16 %v3456_v39, %v3456_v39  ;;  %v14131_v39 = vld [vmem:[%s14601_s24 + $0x3e8] sm:$0xff]  }
 0x8f5   : > { %v3608_v21 = vmax.bf16 %v16834_v33, %v3576_v7  ;;  %v3579_v27 = vadd.bf16 %v3527_v9, %v16840_v54  ;;  %v14107_v7 = vld [vmem:[%s14601_s24 + $0x2c8] sm:$0xff]   ;;  %v16844_v12 = vpack.c.bf16 %v15402_v22, %v15387_v36  ;;  %v14113_v36 = vld [vmem:[%s14601_s24 + $0x2e0] sm:$0xff]  }
 0x8f6   : > { %v3624_v34 = vmax.bf16 %v16834_v33, %v3592_v5  ;;  %v3541_v25 = vrot.slane %v3536_v46, %v15260_v3  ;;  %v14114_v22 = vld [vmem:[%s14601_s24 + $0x2a0] sm:$0xff]   ;;  %v14117_v5 = vld [vmem:[%s14601_s24 + $0x2f0] sm:$0xff]   ;;  %v3616_v46 = vmax.bf16 %v16834_v33, %v15459_v41 }
 0x8f7   : > { %12160 = vmatpush3.bf16.msra.mxu1 %v14080_v49  ;;  %v3611_v47 = vmax.bf16 %v16834_v33, %v3579_v27  ;;  %v14100_v49 = vld [vmem:[%s14601_s24 + $0x228] sm:$0xff]   ;;  %v14119_v27 = vld [vmem:[%s14601_s24 + $0x2f8] sm:$0xff]  }
 0x8f8   : > { %12161 = vmatprep.subr.bf16.mxu1 %v14081_v48  ;;  %v3515_v48 = vpack.i.b16 %v3432_v29, %v3432_v29  ;;  %v3581_v35 = vadd.bf16 %v3541_v25, %v16844_v12 }
 0x8fb   : > { %12162 = vmatpush3.bf16.msra.mxu1 %v14082_v0  ;;  %v14101_v0 = vld [vmem:[%s14601_s24 + $0x270] sm:$0xff]  }
 0x8fc   : > { %12163 = vmatprep.subr.bf16.mxu1 %v14083_v40  ;;  %v3520_v40 = vrot.slane %v3515_v48, %v15260_v3  ;;  %v14126_v48 = vld [vmem:[%s14601_s24 + $0x390] sm:$0xff]  }
 0x8fe   : > { %v3578_v53 = vadd.bf16 %v3520_v40, %v16841_v38  ;;  %v14133_v38 = vld [vmem:[%s14601_s24 + $0x3f0] sm:$0xff]  }
 0x8ff   : > { %12164 = vmatpush3.bf16.msra.mxu1 %v14084_v58  ;;  %v14103_v58 = vld [vmem:[%s14601_s24 + $0x278] sm:$0xff]  }
 0x900   : > { %12165 = vmatprep.subr.bf16.mxu1 %v14085_v8  ;;  %v14104_v8 = vld [vmem:[%s14601_s24 + $0x238] sm:$0xff]   ;;  %v3610_v26 = vmax.bf16 %v16834_v33, %v3578_v53  ;;  %v14134_v53 = vld [vmem:[%s14601_s24 + $0x3b0] sm:$0xff]  }
 0x903   : > { %12166 = vmatpush3.bf16.msra.mxu1 %v14086_v19  ;;  %v14105_v19 = vld [vmem:[%s14601_s24 + $0x2c0] sm:$0xff]  }
 0x904   : > { %12167 = vmatprep.subr.bf16.mxu1 %v14087_v61  ;;  %v16842_v61 = vpack.c.bf16 %v15434_v23, %v15417_v52  ;;  %v16843_v52 = vpack.c.bf16 %v15422_v59, %v15412_v43  ;;  %v14112_v43 = vld [vmem:[%s14601_s24 + $0x298] sm:$0xff]   ;;  %v3454_v59 = vcombine.high %v3432_v29, %v3432_v29  ;;  %v14123_v29 = vld [vmem:[%s14601_s24 + $0x3c8] sm:$0xff]  }
 0x906   : > { %v3594_v23 = vadd.bf16 %v3520_v40, %v16843_v52  ;;  %v3529_v44 = vpack.i.b16 %v3454_v59, %v3454_v59  ;;  %v3617_v40 = vmax.bf16 %v16834_v33, %v15466_v14  ;;  %v14135_v14 = vld [vmem:[%s14601_s24 + $0x3f8] sm:$0xff]  }
 0x907   : > { %12168 = vmatpush3.bf16.msra.mxu1 %v14088_v11  ;;  %v3595_v11 = vadd.bf16 %v3527_v9, %v16842_v61  ;;  %v3613_v9 = vmax.bf16 %v16834_v33, %v3581_v35  ;;  %v3633_v61 = vmax.bf16 %v16834_v33, %v15488_v31  ;;  %v11460_v31 = vld [vmem:[%s14606_s30] ss:$0 sm:$0xff] }
 0x908   : > { %12181 = vmatprep.subr.bf16.mxu1 %v14089_v50  ;;  %v14108_v50 = vld [vmem:[%s14601_s24 + $0x288] sm:$0xff]   ;;  %v3534_v54 = vrot.slane %v3529_v44, %v15260_v3 }
 0x909   : > { %v3627_v1 = vmax.bf16 %v16834_v33, %v3595_v11 }
 0x90a   : > { %4845 = vmatmul.mubr.bf16.vlgmr.msra.gmra.mrb[72].mxu1 %v3608_v21  ;;  %v3626_v21 = vmax.bf16 %v16834_v33, %v3594_v23 }
 0x90b   : > { %4852 = vmatprep.mubr.bf16.mxu1 %v3625_v30  ;;  %12182 = vmatpush3.bf16.msra.mxu1 %v14090_v6  ;;  %v14110_v6 = vld [vmem:[%s14601_s24 + $0x290] sm:$0xff]   ;;  %v14115_v30 = vld [vmem:[%s14601_s24 + $0x2e8] sm:$0xff]  }
 0x90c   : > { %12183 = vmatprep.subr.bf16.mxu1 %v14091_v55  ;;  %v14111_v55 = vld [vmem:[%s14601_s24 + $0x2d8] sm:$0xff]  }
 0x90f   : > { %12184 = vmatpush3.bf16.msra.mxu1 %v14092_v45  ;;  %v14116_v45 = vld [vmem:[%s14601_s24 + $0x2a8] sm:$0xff]  }
 0x910   : > { %12185 = vmatprep.subr.bf16.mxu1 %v14093_v10  ;;  %v14118_v10 = vld [vmem:[%s14601_s24 + $0x2b0] sm:$0xff]  }
 0x912   : > { %4853 = vmatmul.mubr.bf16.gmra.mrb[76].mxu1 %v3624_v34  ;;  %v16845_v34 = vpack.c.bf16 %v15393_v4, %v15382_v63  ;;  %v14124_v63 = vld [vmem:[%s14601_s24 + $0x388] sm:$0xff]   ;;  %v16847_v4 = vpack.c.bf16 %v15424_v60, %v15414_v62  ;;  %v14128_v62 = vld [vmem:[%s14601_s24 + $0x398] sm:$0xff]   ;;  %v14129_v60 = vld [vmem:[%s14601_s24 + $0x3e0] sm:$0xff]  }
 0x913   : > { %12186 = vmatpush3.bf16.msra.mxu1 %v14094_v42  ;;  %4893 = vmatprep.mubr.bf16.mxu1 %v3611_v47  ;;  %v14120_v42 = vld [vmem:[%s14601_s24 + $0x2b8] sm:$0xff]   ;;  %v14121_v47 = vld [vmem:[%s14601_s24 + $0x3c0] sm:$0xff]  }
 0x914   : > { %12187 = vmatprep.subr.bf16.mxu1 %v14095_v15  ;;  %v3580_v15 = vadd.bf16 %v3534_v54, %v16845_v34 }
 0x917   : > { %12188 = vmatpush3.bf16.msra.mxu1 %v14096_v51  ;;  %v16846_v51 = vpack.c.bf16 %v15436_v37, %v15419_v57  ;;  %v3596_v57 = vadd.bf16 %v3534_v54, %v16847_v4  ;;  %v14125_v37 = vld [vmem:[%s14601_s24 + $0x3d0] sm:$0xff]  }
 0x918   : > { %12189 = vmatprep.subr.bf16.mxu1 %v14097_v24 }
 0x919   : > { %v3597_v24 = vadd.bf16 %v3541_v25, %v16846_v51 }
 0x91b   : > { %12190 = vmatpush3.bf16.msra.mxu1 %v14098_v56  ;;  %v14122_v56 = vld [vmem:[%s14601_s24 + $0x380] sm:$0xff]  }
 0x91c   : > { %12191 = vmatprep.subr.bf16.mxu1 %v14099_v17  ;;  %v3612_v17 = vmax.bf16 %v16834_v33, %v3580_v15 }
 0x91f   : > { %12192 = vmatpush3.bf16.msra.mxu1 %v14100_v49  ;;  %v3629_v49 = vmax.bf16 %v16834_v33, %v3597_v24 }
 0x920   : > { %12193 = vmatprep.subr.bf16.mxu1 %v14101_v0  ;;  %v3628_v0 = vmax.bf16 %v16834_v33, %v3596_v57 }
 0x923   : > { %12194 = vmatpush3.bf16.msra.mxu1 %v14102_v2  ;;  %v14127_v2 = vld [vmem:[%s14601_s24 + $0x3d8] sm:$0xff]  }
 0x924   : > { %12195 = vmatprep.subr.bf16.mxu1 %v14103_v58  ;;  %v14130_v58 = vld [vmem:[%s14601_s24 + $0x3a0] sm:$0xff]  }
 0x927   : > { %12196 = vmatpush3.bf16.msra.mxu1 %v14104_v8  ;;  %v14132_v8 = vld [vmem:[%s14601_s24 + $0x3a8] sm:$0xff]  }
 0x928   : > { %12209 = vmatprep.subr.bf16.mxu1 %v14105_v19  ;;  %v14136_v19 = vld [vmem:[%s14601_s24 + $0x3b8] sm:$0xff]  }
 0x92a   : > { %4894 = vmatmul.mubr.bf16.vlgmr.msra.gmra.mrb[80].mxu1 %v3610_v26 }
 0x92b   : > { %4901 = vmatprep.mubr.bf16.mxu1 %v3627_v1  ;;  %12210 = vmatpush3.bf16.msra.mxu1 %v14106_v18 }
 0x92c   : > { %12211 = vmatprep.subr.bf16.mxu1 %v14107_v7 }
 0x92f   : > { %12212 = vmatpush3.bf16.msra.mxu1 %v14108_v50  ;;  %v3632_v50 = vmax.bf16 %v16834_v33, %v15481_v20 }
 0x930   : > { %12213 = vmatprep.subr.bf16.mxu1 %v14109_v32 }
 0x932   : > { %4902 = vmatmul.mubr.bf16.gmra.mrb[84].mxu1 %v3626_v21 }
 0x933   : > { %12214 = vmatpush3.bf16.msra.mxu1 %v14110_v6  ;;  %4942 = vmatprep.mubr.bf16.mxu1 %v3613_v9 }
 0x934   : > { %12215 = vmatprep.subr.bf16.mxu1 %v14111_v55 }
 0x937   : > { %12216 = vmatpush3.bf16.msra.mxu1 %v14112_v43 }
 0x938   : > { %12217 = vmatprep.subr.bf16.mxu1 %v14113_v36 }
 0x93b   : > { %12218 = vmatpush3.bf16.msra.mxu1 %v14114_v22 }
 0x93c   : > { %12219 = vmatprep.subr.bf16.mxu1 %v14115_v30 }
 0x93f   : > { %12220 = vmatpush3.bf16.msra.mxu1 %v14116_v45 }
 0x940   : > { %12221 = vmatprep.subr.bf16.mxu1 %v14117_v5 }
 0x943   : > { %12222 = vmatpush3.bf16.msra.mxu1 %v14118_v10 }
 0x944   : > { %12223 = vmatprep.subr.bf16.mxu1 %v14119_v27 }
 0x947   : > { %12224 = vmatpush3.bf16.msra.mxu1 %v14120_v42 }
 0x948   : > { %12265 = vmatprep.subr.bf16.mxu1 %v14121_v47 }
 0x94a   : > { %4943 = vmatmul.mubr.bf16.vlgmr.msra.gmra.mrb[88].mxu1 %v3612_v17 }
 0x94b   : > { %4950 = vmatprep.mubr.bf16.mxu1 %v3629_v49  ;;  %12266 = vmatpush3.bf16.msra.mxu1 %v14122_v56 }
 0x94c   : > { %12267 = vmatprep.subr.bf16.mxu1 %v14123_v29 }
 0x94f   : > { %12268 = vmatpush3.bf16.msra.mxu1 %v14124_v63 }
 0x950   : > { %12269 = vmatprep.subr.bf16.mxu1 %v14125_v37 }
 0x952   : > { %4951 = vmatmul.mubr.bf16.gmra.mrb[92].mxu1 %v3628_v0 }
 0x953   : > { %12270 = vmatpush3.bf16.msra.mxu1 %v14126_v48  ;;  %5040 = vmatprep.mubr.bf16.mxu1 %v3617_v40 }
 0x954   : > { %12271 = vmatprep.subr.bf16.mxu1 %v14127_v2 }
 0x957   : > { %12272 = vmatpush3.bf16.msra.mxu1 %v14128_v62 }
 0x958   : > { %12273 = vmatprep.subr.bf16.mxu1 %v14129_v60 }
 0x95b   : > { %12274 = vmatpush3.bf16.msra.mxu1 %v14130_v58 }
 0x95c   : > { %12275 = vmatprep.subr.bf16.mxu1 %v14131_v39 }
 0x95f   : > { %12276 = vmatpush3.bf16.msra.mxu1 %v14132_v8 }
 0x960   : > { %12277 = vmatprep.subr.bf16.mxu1 %v14133_v38 }
 0x963   : > { %12278 = vmatpush3.bf16.msra.mxu1 %v14134_v53 }
 0x964   : > { %12279 = vmatprep.subr.bf16.mxu1 %v14135_v14 }
 0x967   : > { %12280 = vmatpush3.bf16.msra.mxu1 %v14136_v19 }
 0x96a   : > { %5041 = vmatmul.mubr.bf16.vlgmr.msra.gmra.mrb[96].mxu1 %v3616_v46  ;;  %v12085_v11 = vpop.f32.mrb[48].mxu1 }
 0x96b   : > { %5048 = vmatprep.mubr.bf16.mxu1 %v3633_v61  ;;  %v12086_v18 = vpop.f32.mrb[49].mxu1 }
 0x96c   : > { %v12087_v26 = vadd.f32 %v12086_v18, %v12085_v11  ;;  %v12088_v7 = vpop.f32.mrb[50].mxu1 }
 0x96d   : > { %v12089_v25 = vpop.f32.mrb[51].mxu1 }
 0x96e   : > { %v12090_v1 = vadd.f32 %v12089_v25, %v12088_v7  ;;  %v4700_v55 = vadd.f32 %v12087_v26, %v11460_v31 }
 0x970   : > { %v4703_v22 = vadd.f32 %v12090_v1, %v11460_v31 }
 0x972   : > { %5049 = vmatmul.mubr.bf16.gmra.mrb[100].mxu1 %v3632_v50 }
 0x995   : > { %v12091_v52 = vpop.f32.mrb[52].mxu1 }
 0x996   : > { %v12092_v23 = vpop.f32.mrb[53].mxu1 }
 0x997   : > { %v12093_v32 = vadd.f32 %v12092_v23, %v12091_v52  ;;  %v12094_v41 = vpop.f32.mrb[54].mxu1 }
 0x998   : > { %v12095_v12 = vpop.f32.mrb[55].mxu1 }
 0x999   : > { %v12096_v35 = vadd.f32 %v12095_v12, %v12094_v41  ;;  %v4708_v5 = vadd.f32 %v12093_v32, %v11460_v31 }
 0x99b   : > { %v4711_v42 = vadd.f32 %v12096_v35, %v11460_v31 }
 0x99d   : > { %v12113_v6 = vpop.f32.mrb[56].mxu1 }
 0x99e   : > { %v12114_v21 = vpop.f32.mrb[57].mxu1 }
 0x99f   : > { %v12115_v9 = vadd.f32 %v12114_v21, %v12113_v6  ;;  %v12116_v43 = vpop.f32.mrb[58].mxu1 }
 0x9a0   : > { %v12117_v36 = vpop.f32.mrb[59].mxu1 }
 0x9a1   : > { %v4749_v59 = vadd.f32 %v12115_v9, %v4700_v55  ;;  %v12118_v30 = vadd.f32 %v12117_v36, %v12116_v43 }
 0x9a3   : > { %v4752_v45 = vadd.f32 %v12118_v30, %v4703_v22 }
 0x9a5   : > { %v12119_v44 = vpop.f32.mrb[60].mxu1 }
 0x9a6   : > { %v12120_v20 = vpop.f32.mrb[61].mxu1 }
 0x9a7   : > { %v12121_v10 = vadd.f32 %v12120_v20, %v12119_v44  ;;  %v12122_v54 = vpop.f32.mrb[62].mxu1 }
 0x9a8   : > { %v12123_v27 = vpop.f32.mrb[63].mxu1 }
 0x9a9   : > { %v4757_v34 = vadd.f32 %v12121_v10, %v4708_v5  ;;  %v12124_v15 = vadd.f32 %v12123_v27, %v12122_v54 }
 0x9ab   : > { %v4760_v47 = vadd.f32 %v12124_v15, %v4711_v42 }
 0x9bd   : > { %v12141_v51 = vpop.f32.mrb[64].mxu1  ;;  %v12253_v24 = vpop.f32.mrb[60].mxu0 }
 0x9be   : > { %v12142_v56 = vpop.f32.mrb[65].mxu1  ;;  %v12254_v17 = vpop.f32.mrb[61].mxu0 }
 0x9bf   : > { %v12143_v29 = vadd.f32 %v12142_v56, %v12141_v51  ;;  %v12144_v49 = vpop.f32.mrb[66].mxu1  ;;  %v12255_v63 = vadd.f32 %v12254_v17, %v12253_v24  ;;  %v12256_v4 = vpop.f32.mrb[62].mxu0 }
 0x9c0   : > { %v12145_v57 = vpop.f32.mrb[67].mxu1  ;;  %v12257_v37 = vpop.f32.mrb[63].mxu0 }
 0x9c1   : > { %v4798_v48 = vadd.f32 %v12143_v29, %v4749_v59  ;;  %v12146_v0 = vadd.f32 %v12145_v57, %v12144_v49  ;;  %v12258_v2 = vadd.f32 %v12257_v37, %v12256_v4 }
 0x9c3   : > { %v4801_v40 = vadd.f32 %v12146_v0, %v4752_v45 }
 0x9c5   : > { %v12147_v62 = vpop.f32.mrb[68].mxu1  ;;  %v12259_v60 = vpop.f32.mrb[64].mxu0 }
 0x9c6   : > { %v12148_v58 = vpop.f32.mrb[69].mxu1  ;;  %v12260_v39 = vpop.f32.mrb[65].mxu0 }
 0x9c7   : > { %v12149_v8 = vadd.f32 %v12148_v58, %v12147_v62  ;;  %v12150_v38 = vpop.f32.mrb[70].mxu1  ;;  %v12261_v53 = vadd.f32 %v12260_v39, %v12259_v60  ;;  %v12262_v14 = vpop.f32.mrb[66].mxu0 }
 0x9c8   : > { %v12151_v19 = vpop.f32.mrb[71].mxu1  ;;  %v12263_v46 = vpop.f32.mrb[67].mxu0 }
 0x9c9   : > { %v4806_v61 = vadd.f32 %v12149_v8, %v4757_v34  ;;  %v12152_v11 = vadd.f32 %v12151_v19, %v12150_v38  ;;  %v12264_v18 = vadd.f32 %v12263_v46, %v12262_v14 }
 0x9cb   : > { %v4809_v26 = vadd.f32 %v12152_v11, %v4760_v47 }
 0x9dd   : > { %v12169_v7 = vpop.f32.mrb[72].mxu1 }
 0x9de   : > { %v12170_v25 = vpop.f32.mrb[73].mxu1 }
 0x9df   : > { %v12171_v1 = vadd.f32 %v12170_v25, %v12169_v7  ;;  %v12172_v50 = vpop.f32.mrb[74].mxu1 }
 0x9e0   : > { %v12173_v52 = vpop.f32.mrb[75].mxu1 }
 0x9e1   : > { %v4847_v23 = vadd.f32 %v12171_v1, %v4798_v48  ;;  %v12174_v32 = vadd.f32 %v12173_v52, %v12172_v50 }
 0x9e3   : > { %v4850_v41 = vadd.f32 %v12174_v32, %v4801_v40 }
 0x9e5   : > { %v12175_v12 = vpop.f32.mrb[76].mxu1 }
 0x9e6   : > { %v12176_v35 = vpop.f32.mrb[77].mxu1 }
 0x9e7   : > { %v12177_v31 = vadd.f32 %v12176_v35, %v12175_v12  ;;  %v12178_v6 = vpop.f32.mrb[78].mxu1 }
 0x9e8   : > { %v12179_v21 = vpop.f32.mrb[79].mxu1 }
 0x9e9   : > { %v4855_v55 = vadd.f32 %v12177_v31, %v4806_v61  ;;  %v12180_v9 = vadd.f32 %v12179_v21, %v12178_v6 }
 0x9eb   : > { %v4858_v43 = vadd.f32 %v12180_v9, %v4809_v26 }
 0x9fd   : > { %v12197_v36 = vpop.f32.mrb[80].mxu1 }
 0x9fe   : > { %v12198_v22 = vpop.f32.mrb[81].mxu1 }
 0x9ff   : > { %v12199_v59 = vadd.f32 %v12198_v22, %v12197_v36  ;;  %v12200_v30 = vpop.f32.mrb[82].mxu1 }
 0xa00   : > { %v12201_v45 = vpop.f32.mrb[83].mxu1 }
 0xa01   : > { %v4896_v44 = vadd.f32 %v12199_v59, %v4847_v23  ;;  %v12202_v20 = vadd.f32 %v12201_v45, %v12200_v30 }
 0xa03   : > { %v4899_v5 = vadd.f32 %v12202_v20, %v4850_v41 }
 0xa05   : > { %v12203_v10 = vpop.f32.mrb[84].mxu1 }
 0xa06   : > { %v12204_v54 = vpop.f32.mrb[85].mxu1 }
 0xa07   : > { %v12205_v27 = vadd.f32 %v12204_v54, %v12203_v10  ;;  %v12206_v42 = vpop.f32.mrb[86].mxu1 }
 0xa08   : > { %v12207_v34 = vpop.f32.mrb[87].mxu1 }
 0xa09   : > { %v4904_v15 = vadd.f32 %v12205_v27, %v4855_v55  ;;  %v12208_v47 = vadd.f32 %v12207_v34, %v12206_v42  ;;  %v16848_v55 = vld [vmem:[#allocation28_spill] sm:$0xff] }
 0xa0b   : > { %v4907_v51 = vadd.f32 %v12208_v47, %v4858_v43  ;;  %v16849_v43 = vld [vmem:[#allocation27_spill] sm:$0xff] }
 0xa1d   : > { %v12225_v24 = vpop.f32.mrb[88].mxu1 }
 0xa1e   : > { %v12226_v56 = vpop.f32.mrb[89].mxu1 }
 0xa1f   : > { %v12227_v17 = vadd.f32 %v12226_v56, %v12225_v24  ;;  %v12228_v29 = vpop.f32.mrb[90].mxu1 }
 0xa20   : > { %v12229_v49 = vpop.f32.mrb[91].mxu1 }
 0xa21   : > { %v4945_v4 = vadd.f32 %v12227_v17, %v4896_v44  ;;  %v12230_v57 = vadd.f32 %v12229_v49, %v12228_v29 }
 0xa23   : > { %v4948_v37 = vadd.f32 %v12230_v57, %v4899_v5  ;;  %v4994_v48 = vadd.f32 %v12255_v63, %v4945_v4  ;;  %v5135_v4 = vld [vmem:[%s14621_s20] sm:$0xff]  ;;  %v5136_v57 = vld [vmem:[%s14621_s20 + $0x8] sm:$0xff] }
 0xa25   : > { %v12231_v0 = vpop.f32.mrb[92].mxu1  ;;  %v4997_v40 = vadd.f32 %v12258_v2, %v4948_v37  ;;  %v13435_v37 = vpack.c.bf16 %v5136_v57, %v5135_v4 }
 0xa26   : > { %v12232_v62 = vpop.f32.mrb[93].mxu1 }
 0xa27   : > { %v12233_v60 = vadd.f32 %v12232_v62, %v12231_v0  ;;  %v12234_v58 = vpop.f32.mrb[94].mxu1  ;;  %13436 = vmatprep.subr.bf16.mxu0 %v13435_v37  ;;  %v5138_v0 = vld [vmem:[%s14621_s20 + $0x18] sm:$0xff] }
 0xa28   : > { %v12235_v39 = vpop.f32.mrb[95].mxu1  ;;  %13438 = vmatpush3.bf16.msra.mxu0 %v13435_v37 }
 0xa29   : > { %v4953_v8 = vadd.f32 %v12233_v60, %v4904_v15  ;;  %v12236_v38 = vadd.f32 %v12235_v39, %v12234_v58 }
 0xa2b   : > { %v4956_v14 = vadd.f32 %v12236_v38, %v4907_v51  ;;  %v5002_v19 = vadd.f32 %v12261_v53, %v4953_v8 }
 0xa2d   : > { %v5005_v46 = vadd.f32 %v12264_v18, %v4956_v14 }
 0xa3d   : > { %v12281_v61 = vpop.f32.mrb[96].mxu1 }
 0xa3e   : > { %v12282_v11 = vpop.f32.mrb[97].mxu1 }
 0xa3f   : > { %v12283_v26 = vadd.f32 %v12282_v11, %v12281_v61  ;;  %v12284_v7 = vpop.f32.mrb[98].mxu1 }
 0xa40   : > { %v12285_v25 = vpop.f32.mrb[99].mxu1 }
 0xa41   : > { %v5043_v1 = vadd.f32 %v12283_v26, %v4994_v48  ;;  %v12286_v50 = vadd.f32 %v12285_v25, %v12284_v7  ;;  %v5137_v48 = vld [vmem:[%s14621_s20 + $0x10] sm:$0xff]  ;;  %v11589_v25 = vld [vmem:[%s16850_s23] ss:$0 sm:$0xff]  ;;  %s16854_s23 = smov 80  }
 0xa43   : > { %v5046_v52 = vadd.f32 %v12286_v50, %v4997_v40  ;;  %v5057_v63 = vadd.f32 %v5043_v1, %v15135_v28  ;;  %v13439_v40 = vpack.c.bf16 %v5138_v0, %v5137_v48 }
 0xa45   : > { %v12287_v2 = vpop.f32.mrb[100].mxu1  ;;  %v5063_v23 = vsel %vm1023_vm1, %v5057_v63, 0.0  ;;  %v5058_v32 = vadd.f32 %v5046_v52, %v15137_v16  ;;  %13440 = vmatprep.subr.bf16.mxu0 %v13439_v40  ;;  %v11590_v52 = vld [vmem:[%s16851_s5] ss:$0 sm:$0xff]  ;;  %s16853_s5 = smov 88  }
 0xa46   : > { %v12288_v41 = vpop.f32.mrb[101].mxu1  ;;  %5064 = vadd.xlane.f32.xlu1 %v5063_v23  ;;  %13442 = vmatpush3.bf16.msra.mxu0 %v13439_v40 }
 0xa47   : > { %v12289_v12 = vadd.f32 %v12288_v41, %v12287_v2  ;;  %v12290_v53 = vpop.f32.mrb[102].mxu1  ;;  %v5066_v18 = vsel %vm1023_vm1, %v5058_v32, 0.0 }
 0xa48   : > { %v12291_v35 = vpop.f32.mrb[103].mxu1  ;;  %5067 = vadd.xlane.f32.xlu0 %v5066_v18 }
 0xa49   : > { %v5051_v31 = vadd.f32 %v12289_v12, %v5002_v19  ;;  %v12292_v6 = vadd.f32 %v12291_v35, %v12290_v53 }
 0xa4b   : > { %v5054_v21 = vadd.f32 %v12292_v6, %v5005_v46  ;;  %v5059_v9 = vadd.f32 %v5051_v31, %v16848_v55 }
 0xa4d   : > { %v5069_v28 = vsel %vm1023_vm1, %v5059_v9, 0.0  ;;  %v5060_v36 = vadd.f32 %v5054_v21, %v16849_v43 }
 0xa4e   : > { %5070 = vadd.xlane.f32.xlu1 %v5069_v28 }
 0xa4f   : > { %v5072_v16 = vsel %vm2635_vm9, %v5060_v36, 0.0 }
 0xa50   : > { %5073 = vadd.xlane.f32.xlu0 %v5072_v16 }
 0xad3   : > { %v5065_v22 = vpop.xlane.xlu1 %5064 }
 0xad4   : > { %v5075_v59 = vmul.f32 0.03125, %v5065_v22 }
 0xad5   : > { %v5068_v30 = vpop.xlane.xlu0 %5067 }
 0xad6   : > { %v5079_v45 = vsub.f32 %v5057_v63, %v5075_v59  ;;  %v5076_v44 = vmul.f32 0.03125, %v5068_v30 }
 0xad8   : > { %v5080_v20 = vsub.f32 %v5058_v32, %v5076_v44  ;;  %v5083_v5 = vmul.f32 %v5079_v45, %v5079_v45 }
 0xada   : > { %v5087_v10 = vsel %vm1023_vm1, %v5083_v5, 0.0  ;;  %v5084_v54 = vmul.f32 %v5080_v20, %v5080_v20 }
 0xadb   : > { %5088 = vadd.xlane.f32.xlu1 %v5087_v10  ;;  %v5071_v27 = vpop.xlane.xlu1 %5070 }
 0xadc   : > { %v5077_v42 = vmul.f32 0.03125, %v5071_v27  ;;  %v5090_v34 = vsel %vm1023_vm1, %v5084_v54, 0.0 }
 0xadd   : > { %5091 = vadd.xlane.f32.xlu0 %v5090_v34  ;;  %v5074_v15 = vpop.xlane.xlu0 %5073 }
 0xade   : > { %v5081_v47 = vsub.f32 %v5059_v9, %v5077_v42  ;;  %v5078_v51 = vmul.f32 0.03125, %v5074_v15  ;;  %v11591_v9 = vld [vmem:[%s16852_s22] ss:$0 sm:$0xff]  ;;  %s16855_s22 = smov 72  }
 0xae0   : > { %v5082_v24 = vsub.f32 %v5060_v36, %v5078_v51  ;;  %v5085_v56 = vmul.f32 %v5081_v47, %v5081_v47 }
 0xae2   : > { %v5093_v17 = vsel %vm1023_vm1, %v5085_v56, 0.0  ;;  %v5086_v29 = vmul.f32 %v5082_v24, %v5082_v24 }
 0xae3   : > { %5094 = vadd.xlane.f32.xlu1 %v5093_v17 }
 0xae4   : > { %v5096_v49 = vsel %vm2635_vm9, %v5086_v29, 0.0 }
 0xae5   : > { %5097 = vadd.xlane.f32.xlu0 %v5096_v49 }
 0xb68   : > { %v5089_v62 = vpop.xlane.xlu1 %5088 }
 0xb69   : > { %v5099_v60 = vmul.f32 0.03125, %v5089_v62 }
 0xb6a   : > { %v5092_v58 = vpop.xlane.xlu0 %5091 }
 0xb6b   : > { %v5103_v39 = vadd.f32 1e-05, %v5099_v60  ;;  %v5100_v8 = vmul.f32 0.03125, %v5092_v58 }
 0xb6d   : > { %14339 = vrsqrt.f32 %v5103_v39  ;;  %v5104_v38 = vadd.f32 1e-05, %v5100_v8 }
 0xb6f   : > { %14341 = vrsqrt.f32 %v5104_v38 }
 0xb70   : > { %v5095_v14 = vpop.xlane.xlu1 %5094 }
 0xb71   : > { %v5101_v19 = vmul.f32 0.03125, %v5095_v14 }
 0xb72   : > { %v5098_v46 = vpop.xlane.xlu0 %5097 }
 0xb73   : > { %v5105_v61 = vadd.f32 1e-05, %v5101_v19  ;;  %v5102_v11 = vmul.f32 0.03125, %v5098_v46 }
 0xb75   : > { %14343 = vrsqrt.f32 %v5105_v61  ;;  %v5106_v26 = vadd.f32 1e-05, %v5102_v11 }
 0xb77   : > { %v14340_v7 = vpop.eup %14339  ;;  %14345 = vrsqrt.f32 %v5106_v26 }
 0xb78   : > { %v5111_v1 = vmul.f32 %v14340_v7, %v5079_v45 }
 0xb79   : > { %v14342_v50 = vpop.eup %14341 }
 0xb7a   : > { %v5112_v63 = vmul.f32 %v14342_v50, %v5080_v20  ;;  %v5121_v2 = vmul.f32 %v11589_v25, %v5111_v1 }
 0xb7c   : > { %v5122_v23 = vmul.f32 %v11589_v25, %v5112_v63  ;;  %v15636_v32 = vadd.f32 %v11590_v52, %v5121_v2 }
 0xb7e   : > { %v15638_v41 = vadd.f32 %v11590_v52, %v5122_v23  ;;  %12910 = vmatprep.mubr.msk.f32.mxu0 %vm1023_vm1, %v15636_v32 }
 0xb7f   : > { %v14344_v12 = vpop.eup %14343 }
 0xb80   : > { %12911 = vmatmul.mubr.msk.f32.vlgmr.msra.gmra.mrb[68].mxu0 %vm1023_vm1, %v15638_v41  ;;  %v5113_v53 = vmul.f32 %v14344_v12, %v5081_v47 }
 0xb81   : > { %v14346_v18 = vpop.eup %14345 }
 0xb82   : > { %v5123_v35 = vmul.f32 %v11589_v25, %v5113_v53  ;;  %v5114_v31 = vmul.f32 %v14346_v18, %v5082_v24 }
 0xb84   : > { %v15644_v6 = vadd.f32 %v11590_v52, %v5123_v35  ;;  %v5124_v21 = vmul.f32 %v11589_v25, %v5114_v31 }
 0xb86   : > { %12913 = vmatprep.mubr.msk.f32.mxu0 %vm1023_vm1, %v15644_v6  ;;  %v15648_v55 = vadd.f32 %v11590_v52, %v5124_v21 }
 0xb88   : > { %12914 = vmatmul.mubr.msk.f32.gmra.mrb[70].mxu0 %vm1023_vm1, %v15648_v55 }
 0xc53   : > { %v12912_v28 = vpop.f32.mrb[68].mxu0 }
 0xc54   : > { %v15653_v43 = vadd.f32 %v12912_v28, %v11591_v9  ;;  %v5224_v36 = vpop.f32.mrb[69].mxu0 }
 0xc55   : > { %v5225_v16 = vadd.f32 %v11591_v9, %v5224_v36 }
 0xc57   : > { %12924 = vmatprep.mubr.msk.f32.mxu1 %vm1137_vm2, %v5225_v16  ;;  %v15657_v22 = vpack.i.bf16 %v15653_v43, %v5225_v16 }
 0xc59   : > { %13928 = vrot.lane.b32.xlu1 %v15657_v22, %s14521_s2 }
 0xc5b   : > { %v12915_v59 = vpop.f32.mrb[70].mxu0 }
 0xc5c   : > { %v15661_v30 = vadd.f32 %v12915_v59, %v11591_v9  ;;  %v5234_v45 = vpop.f32.mrb[71].mxu0 }
 0xc5d   : > { %v15663_v44 = vadd.f32 %v11591_v9, %v5234_v45  ;;  %13938 = vrot.lane.b32.xlu1 %v15657_v22, %s16853_s5 }
 0xc5f   : > { %v15669_v20 = vpack.i.bf16 %v15661_v30, %v15663_v44 }
 0xc61   : > { %13953 = vrot.lane.b32.xlu1 %v15669_v20, %s16853_s5  ;;  %13933 = vrot.lane.b32.xlu0 %v15669_v20, %s14521_s2  ;;  %s16856_s2 = smov 112   ;;  %s16857_s5 = smov 104  }
 0xc65   : > { %5360 = vrot.lane.b32.xlu1 %v5225_v16, %s14522_s16  ;;  %13943 = vrot.lane.b32.xlu0 %v15657_v22, %s16854_s23 }
 0xc69   : > { %13958 = vrot.lane.b32.xlu1 %v15669_v20, %s16854_s23  ;;  %13948 = vrot.lane.b32.xlu0 %v15657_v22, %s16855_s22  ;;  %s16860_s23 = smov 56  }
 0xc6d   : > { %5364 = vrot.lane.b32.xlu1 %v15663_v44, %s14522_s16  ;;  %5362 = vrot.lane.b32.xlu0 %v15653_v43, %s14522_s16 }
 0xc71   : > { %13963 = vrot.lane.b32.xlu1 %v15669_v20, %s16855_s22  ;;  %5366 = vrot.lane.b32.xlu0 %v15661_v30, %s14522_s16  ;;  %s16858_s16 = smov 64   ;;  %s16862_s22 = smov 48  }
 0xc75   : > { %5479 = vrot.lane.b32.xlu1 %v15653_v43, %s16856_s2  ;;  %5477 = vrot.lane.b32.xlu0 %v5225_v16, %s16856_s2 }
 0xc79   : > { %5483 = vrot.lane.b32.xlu1 %v15661_v30, %s16856_s2  ;;  %5481 = vrot.lane.b32.xlu0 %v15663_v44, %s16856_s2  ;;  %s16863_s2 = smov 40  }
 0xc7d   : > { %5596 = vrot.lane.b32.xlu1 %v15653_v43, %s16857_s5  ;;  %5594 = vrot.lane.b32.xlu0 %v5225_v16, %s16857_s5 }
 0xc81   : > { %5600 = vrot.lane.b32.xlu1 %v15661_v30, %s16857_s5  ;;  %5598 = vrot.lane.b32.xlu0 %v15663_v44, %s16857_s5  ;;  %s16864_s5 = sld [smem:[#allocation14_spill]] }
 0xc85   : > { %13968 = vrot.lane.b32.xlu1 %v15657_v22, %s16858_s16 }
 0xccb   : > { %v13929_v5 = vpop.permute.xlu1 %13928 }
 0xccc   : > { %v13931_v10 = vunpack.i.h.bf16 %v13929_v5  ;;  %v13930_v54 = vunpack.i.l.bf16 %v13929_v5 }
 0xcce   : > { %v13443_v27 = vpack.c.bf16 %v13931_v10, %v13930_v54 }
 0xccf   : > { %v13939_v42 = vpop.permute.xlu1 %13938 }
 0xcd0   : > { %v13941_v34 = vunpack.i.h.bf16 %v13939_v42  ;;  %v13940_v15 = vunpack.i.l.bf16 %v13939_v42  ;;  %13445 = vmatprep.subr.msk.bf16.mxu1 %vm14823_vm3, %v13443_v27 }
 0xcd1   : > { %13448 = vmatpush3.bf16.xpose.msk.msra.mxu1 %vm14823_vm3, %v13443_v27 }
 0xcd2   : > { %v13455_v51 = vpack.c.bf16 %v13941_v34, %v13940_v15 }
 0xcd3   : > { %v13934_v24 = vpop.permute.xlu0 %13933  ;;  %v13954_v56 = vpop.permute.xlu1 %13953 }
 0xcd4   : > { %v13936_v17 = vunpack.i.h.bf16 %v13934_v24  ;;  %v13935_v29 = vunpack.i.l.bf16 %v13934_v24  ;;  %v13956_v49 = vunpack.i.h.bf16 %v13954_v56  ;;  %v13955_v4 = vunpack.i.l.bf16 %v13954_v56  ;;  %13457 = vmatprep.subr.msk.bf16.mxu0 %vm14823_vm3, %v13455_v51 }
 0xcd5   : > { %13460 = vmatpush3.bf16.xpose.msk.msra.mxu0 %vm14823_vm3, %v13455_v51 }
 0xcd6   : > { %v13449_v57 = vpack.c.bf16 %v13936_v17, %v13935_v29  ;;  %v13461_v37 = vpack.c.bf16 %v13956_v49, %v13955_v4 }
 0xcd7   : > { %v13944_v48 = vpop.permute.xlu0 %13943  ;;  %v5361_v0 = vpop.permute.xlu1 %5360 }
 0xcd8   : > { %v13946_v40 = vunpack.i.h.bf16 %v13944_v48  ;;  %v13945_v62 = vunpack.i.l.bf16 %v13944_v48  ;;  %13451 = vmatprep.subr.msk.bf16.mxu1 %vm14823_vm3, %v13449_v57  ;;  %13463 = vmatprep.subr.msk.bf16.mxu0 %vm14823_vm3, %v13461_v37 }
 0xcd9   : > { %12938 = vmatprep.mubr.msk.f32.mxu0 %vm1137_vm2, %v5361_v0  ;;  %13454 = vmatpush3.bf16.xpose.msk.msra.mxu1 %vm14823_vm3, %v13449_v57 }
 0xcda   : > { %v13467_v60 = vpack.c.bf16 %v13946_v40, %v13945_v62 }
 0xcdb   : > { %v13949_v58 = vpop.permute.xlu0 %13948  ;;  %v13959_v39 = vpop.permute.xlu1 %13958 }
 0xcdc   : > { %v13951_v8 = vunpack.i.h.bf16 %v13949_v58  ;;  %v13950_v38 = vunpack.i.l.bf16 %v13949_v58  ;;  %v13961_v14 = vunpack.i.h.bf16 %v13959_v39  ;;  %v13960_v19 = vunpack.i.l.bf16 %v13959_v39  ;;  %13469 = vmatprep.subr.msk.bf16.mxu1 %vm14823_vm3, %v13467_v60 }
 0xcdd   : > { %13466 = vmatpush3.bf16.xpose.msk.msra.mxu0 %vm14823_vm3, %v13461_v37 }
 0xcde   : > { %v13479_v46 = vpack.c.bf16 %v13951_v8, %v13950_v38  ;;  %v13473_v26 = vpack.c.bf16 %v13961_v14, %v13960_v19 }
 0xcdf   : > { %v5363_v61 = vpop.permute.xlu0 %5362  ;;  %v5365_v11 = vpop.permute.xlu1 %5364 }
 0xce0   : > { %12925 = vmatmul.mubr.msk.f32.vlgmr.msra.gmra.mrb[104].mxu1 %vm1137_vm2, %v15653_v43  ;;  %13481 = vmatprep.subr.msk.bf16.mxu0 %vm14823_vm3, %v13479_v46 }
 0xce1   : > { %12927 = vmatprep.mubr.msk.f32.mxu1 %vm1137_vm2, %v15663_v44  ;;  %13472 = vmatpush3.bf16.xpose.msk.msra.mxu1 %vm14823_vm3, %v13467_v60 }
 0xce2   : > { %13475 = vmatprep.subr.msk.bf16.mxu1 %vm14823_vm3, %v13473_v26 }
 0xce3   : > { %v5367_v7 = vpop.permute.xlu0 %5366  ;;  %v13964_v25 = vpop.permute.xlu1 %13963 }
 0xce4   : > { %v13966_v1 = vunpack.i.h.bf16 %v13964_v25  ;;  %v13965_v50 = vunpack.i.l.bf16 %v13964_v25  ;;  %12928 = vmatmul.mubr.msk.f32.gmra.mrb[106].mxu1 %vm1137_vm2, %v15661_v30  ;;  %12939 = vmatmul.mubr.msk.f32.vlgmr.msra.gmra.mrb[72].mxu0 %vm1137_vm2, %v5363_v61 }
 0xce5   : > { %12941 = vmatprep.mubr.msk.f32.mxu0 %vm1137_vm2, %v5365_v11  ;;  %13484 = vmatpush3.bf16.xpose.msk.msra.mxu0 %vm14823_vm3, %v13479_v46 }
 0xce6   : > { %v13485_v52 = vpack.c.bf16 %v13966_v1, %v13965_v50 }
 0xce7   : > { %v5478_v63 = vpop.permute.xlu0 %5477  ;;  %v5480_v2 = vpop.permute.xlu1 %5479 }
 0xce8   : > { %12942 = vmatmul.mubr.msk.f32.gmra.mrb[74].mxu0 %vm1137_vm2, %v5367_v7  ;;  %12952 = vmatprep.mubr.msk.f32.mxu1 %vm1137_vm2, %v5478_v63 }
 0xce9   : > { %13487 = vmatprep.subr.msk.bf16.mxu0 %vm14823_vm3, %v13485_v52  ;;  %13478 = vmatpush3.bf16.xpose.msk.msra.mxu1 %vm14823_vm3, %v13473_v26 }
 0xceb   : > { %v5482_v23 = vpop.permute.xlu0 %5481  ;;  %v5484_v12 = vpop.permute.xlu1 %5483 }
 0xced   : > { %13490 = vmatpush3.bf16.xpose.msk.msra.mxu0 %vm14823_vm3, %v13485_v52 }
 0xcef   : > { %v5595_v53 = vpop.permute.xlu0 %5594  ;;  %v5597_v18 = vpop.permute.xlu1 %5596 }
 0xcf0   : > { %12953 = vmatmul.mubr.msk.f32.vlgmr.msra.gmra.mrb[108].mxu1 %vm1137_vm2, %v5480_v2  ;;  %12966 = vmatprep.mubr.msk.f32.mxu0 %vm1137_vm2, %v5595_v53 }
 0xcf1   : > { %12955 = vmatprep.mubr.msk.f32.mxu1 %vm1137_vm2, %v5482_v23 }
 0xcf3   : > { %v5599_v35 = vpop.permute.xlu0 %5598  ;;  %v5601_v31 = vpop.permute.xlu1 %5600 }
 0xcf4   : > { %12956 = vmatmul.mubr.msk.f32.gmra.mrb[110].mxu1 %vm1137_vm2, %v5484_v12  ;;  %12967 = vmatmul.mubr.msk.f32.vlgmr.msra.gmra.mrb[76].mxu0 %vm1137_vm2, %v5597_v18 }
 0xcf5   : > { %12969 = vmatprep.mubr.msk.f32.mxu0 %vm1137_vm2, %v5599_v35 }
 0xcf7   : > { %v13969_v21 = vpop.permute.xlu1 %13968 }
 0xcf8   : > { %v13971_v9 = vunpack.i.h.bf16 %v13969_v21  ;;  %v13970_v28 = vunpack.i.l.bf16 %v13969_v21  ;;  %12970 = vmatmul.mubr.msk.f32.gmra.mrb[78].mxu0 %vm1137_vm2, %v5601_v31 }
 0xcfa   : > { %v13491_v43 = vpack.c.bf16 %v13971_v9, %v13970_v28 }
 0xcfc   : > { %13492 = vmatprep.subr.bf16.mxu1 %v13491_v43 }
 0xcfd   : > { %13494 = vmatpush3.bf16.msra.mxu1 %v13491_v43 }
 0xdb3   : > { %v12926_v36 = vpop.f32.mrb[104].mxu1 }
 0xdb4   : > { %v5341_v16 = vpop.f32.mrb[105].mxu1  ;;  %v5714_v59 = vsel %vm1590_vm4, %v12926_v36, -inf }
 0xdb5   : > { %5715 = vmax.xlane.f32.xlu1 %v5714_v59  ;;  %v5711_v34 = vsel %vm1590_vm4, %v5341_v16, -inf }
 0xdb7   : > { %v15757_v30 = vpop.f32.mrb[106].mxu1  ;;  %v12940_v45 = vpop.f32.mrb[72].mxu0 }
 0xdb8   : > { %v15759_v44 = vpop.f32.mrb[107].mxu1  ;;  %v5458_v5 = vpop.f32.mrb[73].mxu0  ;;  %v5726_v10 = vsel %vm1590_vm4, %v12940_v45, -inf  ;;  %v5720_v47 = vsel %vm1600_vm5, %v15757_v30, -inf }
 0xdb9   : > { %5727 = vmax.xlane.f32.xlu0 %v5726_v10  ;;  %v5723_v54 = vsel %vm1590_vm4, %v5458_v5, -inf  ;;  %v5717_v37 = vsel %vm1590_vm4, %v15759_v44, -inf }
 0xdba   : > { %5724 = vmax.xlane.f32.xlu1 %v5723_v54 }
 0xdbb   : > { %v15763_v27 = vpop.f32.mrb[74].mxu0 }
 0xdbc   : > { %v15765_v42 = vpop.f32.mrb[75].mxu0  ;;  %v5732_v56 = vsel %vm1600_vm5, %v15763_v27, -inf }
 0xdbd   : > { %5712 = vmax.xlane.f32.xlu0 %v5711_v34  ;;  %v5729_v15 = vsel %vm1590_vm4, %v15765_v42, -inf }
 0xdbe   : > { %5730 = vmax.xlane.f32.xlu1 %v5729_v15 }
 0xdc1   : > { %5721 = vmax.xlane.f32.xlu0 %v5720_v47 }
 0xdc3   : > { %v15772_v51 = vpop.f32.mrb[108].mxu1 }
 0xdc4   : > { %v15774_v24 = vpop.f32.mrb[109].mxu1  ;;  %v5738_v62 = vsel %vm1590_vm4, %v15772_v51, -inf }
 0xdc5   : > { %5733 = vmax.xlane.f32.xlu0 %v5732_v56  ;;  %v5735_v17 = vsel %vm1590_vm4, %v15774_v24, -inf }
 0xdc6   : > { %5736 = vmax.xlane.f32.xlu1 %v5735_v17 }
 0xdc7   : > { %v15780_v29 = vpop.f32.mrb[110].mxu1  ;;  %v15782_v49 = vpop.f32.mrb[76].mxu0 }
 0xdc8   : > { %v15784_v4 = vpop.f32.mrb[111].mxu1  ;;  %v15786_v57 = vpop.f32.mrb[77].mxu0  ;;  %v5750_v58 = vsel %vm1590_vm4, %v15782_v49, -inf  ;;  %v5744_v39 = vsel %vm1600_vm5, %v15780_v29, -inf }
 0xdc9   : > { %5718 = vmax.xlane.f32.xlu0 %v5717_v37  ;;  %v5747_v48 = vsel %vm1590_vm4, %v15786_v57, -inf  ;;  %v5741_v60 = vsel %vm1590_vm4, %v15784_v4, -inf }
 0xdca   : > { %5748 = vmax.xlane.f32.xlu1 %v5747_v48 }
 0xdcb   : > { %v15792_v0 = vpop.f32.mrb[78].mxu0 }
 0xdcc   : > { %v15794_v40 = vpop.f32.mrb[79].mxu0  ;;  %v5756_v8 = vsel %vm1600_vm5, %v15792_v0, -inf }
 0xdcd   : > { %5739 = vmax.xlane.f32.xlu0 %v5738_v62  ;;  %v5753_v38 = vsel %vm1590_vm4, %v15794_v40, -inf }
 0xdce   : > { %5742 = vmax.xlane.f32.xlu1 %v5741_v60 }
 0xdd1   : > { %5751 = vmax.xlane.f32.xlu0 %v5750_v58 }
 0xdd5   : > { %5745 = vmax.xlane.f32.xlu0 %v5744_v39 }
 0xdd9   : > { %5757 = vmax.xlane.f32.xlu0 %v5756_v8 }
 0xddf   : > { %13978 = vrot.lane.b32.xlu1 %v15657_v22, %s16860_s23 }
 0xdef   : > { %13973 = vrot.lane.b32.xlu0 %v15669_v20, %s16858_s16  ;;  %s16865_s16 = sld [smem:[#allocation15_spill]] }
 0xe03   : > { %5754 = vmax.xlane.f32.xlu1 %v5753_v38 }
 0xe42   : > { %v5716_v14 = vpop.xlane.xlu1 %5715 }
 0xe43   : > { %v5760_v19 = vsub.f32 %v12926_v36, %v5716_v14 }
 0xe45   : > { %v5777_v46 = vmul.f32 1.442695, %v5760_v19 }
 0xe46   : > { %v5728_v61 = vpop.xlane.xlu0 %5727 }
 0xe47   : > { %14347 = vpow2.f32 %v5777_v46  ;;  %v5764_v11 = vsub.f32 %v12940_v45, %v5728_v61  ;;  %v5725_v26 = vpop.xlane.xlu1 %5724 }
 0xe48   : > { %v5763_v25 = vsub.f32 %v5458_v5, %v5725_v26 }
 0xe49   : > { %v5785_v7 = vmul.f32 1.442695, %v5764_v11 }
 0xe4a   : > { %v5713_v1 = vpop.xlane.xlu0 %5712  ;;  %v5783_v52 = vmul.f32 1.442695, %v5763_v25 }
 0xe4b   : > { %14349 = vpow2.f32 %v5785_v7  ;;  %v5759_v50 = vsub.f32 %v5341_v16, %v5713_v1  ;;  %v5731_v23 = vpop.xlane.xlu1 %5730 }
 0xe4c   : > { %v5765_v43 = vsub.f32 %v15765_v42, %v5731_v23 }
 0xe4d   : > { %v5775_v63 = vmul.f32 1.442695, %v5759_v50 }
 0xe4e   : > { %v5722_v2 = vpop.xlane.xlu0 %5721  ;;  %v5787_v10 = vmul.f32 1.442695, %v5765_v43 }
 0xe4f   : > { %14351 = vpow2.f32 %v5775_v63  ;;  %v5762_v12 = vsub.f32 %v15757_v30, %v5722_v2 }
 0xe50   : > { %14353 = vpow2.f32 %v5783_v52 }
 0xe51   : > { %v15813_v53 = vpop.eup %14347  ;;  %v5781_v18 = vmul.f32 1.442695, %v5762_v12 }
 0xe52   : > { %v5734_v35 = vpop.xlane.xlu0 %5733  ;;  %v5810_v31 = vsel %vm1590_vm4, %v15813_v53, 0.0 }
 0xe53   : > { %14355 = vpow2.f32 %v5781_v18  ;;  %v5766_v21 = vsub.f32 %v15763_v27, %v5734_v35  ;;  %v5737_v9 = vpop.xlane.xlu1 %5736  ;;  %5811 = vadd.xlane.f32.xlu0 %v5810_v31 }
 0xe54   : > { %v5767_v27 = vsub.f32 %v15774_v24, %v5737_v9 }
 0xe55   : > { %v15818_v28 = vpop.eup %14349  ;;  %v5789_v36 = vmul.f32 1.442695, %v5766_v21 }
 0xe56   : > { %v5719_v16 = vpop.xlane.xlu0 %5718  ;;  %v5822_v59 = vsel %vm1590_vm4, %v15818_v28, 0.0  ;;  %v5791_v37 = vmul.f32 1.442695, %v5767_v27 }
 0xe57   : > { %14357 = vpow2.f32 %v5789_v36  ;;  %v5761_v30 = vsub.f32 %v15759_v44, %v5719_v16  ;;  %v5749_v45 = vpop.xlane.xlu1 %5748  ;;  %5823 = vadd.xlane.f32.xlu0 %v5822_v59 }
 0xe58   : > { %v5771_v48 = vsub.f32 %v15786_v57, %v5749_v45 }
 0xe59   : > { %v15824_v5 = vpop.eup %14351  ;;  %v5779_v54 = vmul.f32 1.442695, %v5761_v30 }
 0xe5a   : > { %v5740_v34 = vpop.xlane.xlu0 %5739  ;;  %v5807_v42 = vsel %vm1590_vm4, %v15824_v5, 0.0  ;;  %v15829_v15 = vpop.eup %14353  ;;  %v5799_v19 = vmul.f32 1.442695, %v5771_v48 }
 0xe5b   : > { %14359 = vpow2.f32 %v5779_v54  ;;  %v5768_v47 = vsub.f32 %v15772_v51, %v5740_v34  ;;  %5808 = vadd.xlane.f32.xlu1 %v5807_v42  ;;  %v5743_v56 = vpop.xlane.xlu1 %5742  ;;  %v5819_v60 = vsel %vm1590_vm4, %v15829_v15, 0.0 }
 0xe5c   : > { %14361 = vpow2.f32 %v5787_v10  ;;  %v5769_v14 = vsub.f32 %v15784_v4, %v5743_v56 }
 0xe5d   : > { %v15832_v44 = vpop.eup %14355  ;;  %v5793_v17 = vmul.f32 1.442695, %v5768_v47 }
 0xe5e   : > { %v5752_v62 = vpop.xlane.xlu0 %5751  ;;  %v5816_v24 = vsel %vm1600_vm5, %v15832_v44, 0.0  ;;  %v5795_v7 = vmul.f32 1.442695, %v5769_v14 }
 0xe5f   : > { %14363 = vpow2.f32 %v5793_v17  ;;  %v5772_v58 = vsub.f32 %v15782_v49, %v5752_v62  ;;  %5817 = vadd.xlane.f32.xlu0 %v5816_v24  ;;  %5820 = vadd.xlane.f32.xlu1 %v5819_v60  ;;  %v13979_v51 = vpop.permute.xlu1 %13978 }
 0xe60   : > { %v13981_v39 = vunpack.i.h.bf16 %v13979_v51  ;;  %v13980_v8 = vunpack.i.l.bf16 %v13979_v51  ;;  %14365 = vpow2.f32 %v5791_v37 }
 0xe61   : > { %v15840_v38 = vpop.eup %14357  ;;  %v5801_v57 = vmul.f32 1.442695, %v5772_v58 }
 0xe62   : > { %v13501_v46 = vpack.c.bf16 %v13981_v39, %v13980_v8  ;;  %v5746_v61 = vpop.xlane.xlu0 %5745  ;;  %v5828_v11 = vsel %vm1600_vm5, %v15840_v38, 0.0 }
 0xe63   : > { %14367 = vpow2.f32 %v5801_v57  ;;  %v5770_v49 = vsub.f32 %v15780_v29, %v5746_v61  ;;  %5829 = vadd.xlane.f32.xlu0 %v5828_v11 }
 0xe64   : > { %13502 = vmatprep.subr.bf16.mxu0 %v13501_v46  ;;  %14369 = vpow2.f32 %v5799_v19 }
 0xe65   : > { %v15846_v26 = vpop.eup %14359  ;;  %v5797_v25 = vmul.f32 1.442695, %v5770_v49  ;;  %13504 = vmatpush3.bf16.msra.mxu0 %v13501_v46 }
 0xe66   : > { %v5758_v4 = vpop.xlane.xlu0 %5757  ;;  %v5813_v1 = vsel %vm1590_vm4, %v15846_v26, 0.0  ;;  %v15850_v50 = vpop.eup %14361 }
 0xe67   : > { %14371 = vpow2.f32 %v5797_v25  ;;  %5814 = vadd.xlane.f32.xlu1 %v5813_v1  ;;  %v5825_v2 = vsel %vm1590_vm4, %v15850_v50, 0.0  ;;  %v5774_v42 = vsub.f32 %v15792_v0, %v5758_v4 }
 0xe68   : > { %14373 = vpow2.f32 %v5795_v7 }
 0xe69   : > { %v15852_v52 = vpop.eup %14363  ;;  %v5805_v47 = vmul.f32 1.442695, %v5774_v42 }
 0xe6a   : > { %v13974_v29 = vpop.permute.xlu0 %13973  ;;  %v5834_v63 = vsel %vm1590_vm4, %v15852_v52, 0.0  ;;  %v15858_v18 = vpop.eup %14365 }
 0xe6b   : > { %v13976_v23 = vunpack.i.h.bf16 %v13974_v29  ;;  %v13975_v12 = vunpack.i.l.bf16 %v13974_v29  ;;  %5835 = vadd.xlane.f32.xlu0 %v5834_v63  ;;  %5826 = vadd.xlane.f32.xlu1 %v5825_v2  ;;  %v5831_v43 = vsel %vm1590_vm4, %v15858_v18, 0.0 }
 0xe6d   : > { %v15860_v35 = vpop.eup %14367  ;;  %v13495_v31 = vpack.c.bf16 %v13976_v23, %v13975_v12 }
 0xe6e   : > { %v5846_v21 = vsel %vm1590_vm4, %v15860_v35, 0.0  ;;  %v15868_v36 = vpop.eup %14369 }
 0xe6f   : > { %5847 = vadd.xlane.f32.xlu0 %v5846_v21  ;;  %13497 = vmatprep.subr.msk.bf16.mxu1 %vm14977_vm8, %v13495_v31  ;;  %v5843_v45 = vsel %vm1590_vm4, %v15868_v36, 0.0 }
 0xe70   : > { %5832 = vadd.xlane.f32.xlu1 %v5831_v43  ;;  %13500 = vmatpush3.bf16.msk.msra.mxu1 %vm14977_vm8, %v13495_v31 }
 0xe71   : > { %v15872_v16 = vpop.eup %14371 }
 0xe72   : > { %v5840_v59 = vsel %vm1600_vm5, %v15872_v16, 0.0  ;;  %v15876_v30 = vpop.eup %14373 }
 0xe73   : > { %5841 = vadd.xlane.f32.xlu0 %v5840_v59  ;;  %v5837_v10 = vsel %vm1590_vm4, %v15876_v30, 0.0 }
 0xe74   : > { %5844 = vadd.xlane.f32.xlu1 %v5843_v45 }
 0xe77   : > { %5838 = vadd.xlane.f32.xlu0 %v5837_v10 }
 0xe85   : > { %13988 = vrot.lane.b32.xlu1 %v15657_v22, %s16862_s22 }
 0xe89   : > { %13993 = vrot.lane.b32.xlu1 %v15669_v20, %s16862_s22  ;;  %s16867_s22 = sld [smem:[#allocation16_spill]] }
 0xe8d   : > { %13998 = vrot.lane.b32.xlu1 %v15657_v22, %s16863_s2  ;;  %13983 = vrot.lane.b32.xlu0 %v15669_v20, %s16860_s23  ;;  %s16866_s23 = sld [smem:[#allocation18_spill]] }
 0xe90   : > { %v5755_v54 = vpop.xlane.xlu1 %5754 }
 0xe91   : > { %14003 = vrot.lane.b32.xlu1 %v15669_v20, %s16863_s2  ;;  %v5773_v27 = vsub.f32 %v15794_v40, %v5755_v54  ;;  %s16868_s2 = sld [smem:[#allocation17_spill]] }
 0xe93   : > { %v5803_v34 = vmul.f32 1.442695, %v5773_v27 }
 0xe95   : > { %14375 = vpow2.f32 %v5803_v34 }
 0xe96   : > { %14377 = vpow2.f32 %v5805_v47 }
 0xe9f   : > { %v15894_v56 = vpop.eup %14375 }
 0xea0   : > { %v5849_v22 = vsel %vm1590_vm4, %v15894_v56, 0.0  ;;  %v15898_v17 = vpop.eup %14377 }
 0xea1   : > { %v5852_v20 = vsel %vm1600_vm5, %v15898_v17, 0.0 }
 0xeac   : > { %5850 = vadd.xlane.f32.xlu0 %v5849_v22 }
 0xeb5   : > { %5853 = vadd.xlane.f32.xlu1 %v5852_v20 }
 0xee0   : > { %v5812_v37 = vpop.xlane.xlu0 %5811 }
 0xee1   : > { %14379 = vrcp.f32 %v5812_v37 }
 0xee4   : > { %v5824_v48 = vpop.xlane.xlu0 %5823 }
 0xee8   : > { %v5809_v40 = vpop.xlane.xlu1 %5808 }
 0xee9   : > { %14381 = vrcp.f32 %v5809_v40 }
 0xeeb   : > { %v14380_v24 = vpop.eup %14379 }
 0xeec   : > { %v5821_v0 = vpop.xlane.xlu1 %5820  ;;  %v5818_v62 = vpop.xlane.xlu0 %5817  ;;  %v5872_v8 = vmul.f32 %v14380_v24, %v15813_v53 }
 0xeed   : > { %14383 = vrcp.f32 %v5821_v0 }
 0xeee   : > { %14385 = vrcp.f32 %v5818_v62 }
 0xef0   : > { %v5830_v58 = vpop.xlane.xlu0 %5829 }
 0xef3   : > { %v14382_v60 = vpop.eup %14381 }
 0xef4   : > { %v5815_v51 = vpop.xlane.xlu1 %5814  ;;  %v5871_v39 = vmul.f32 %v14382_v60, %v15824_v5 }
 0xef5   : > { %14387 = vrcp.f32 %v5815_v51 }
 0xef6   : > { %12980 = vmatprep.mubr.msk.f32.mxu1 %vm1590_vm4, %v5871_v39  ;;  %14389 = vrcp.f32 %v5824_v48 }
 0xef7   : > { %12981 = vmatmul.mubr.msk.f32.vlgmr.msra.gmra.mrb[112].mxu1 %vm1590_vm4, %v5872_v8  ;;  %v14384_v14 = vpop.eup %14383 }
 0xef8   : > { %v5836_v57 = vpop.xlane.xlu0 %5835  ;;  %v5827_v19 = vpop.xlane.xlu1 %5826  ;;  %v5875_v46 = vmul.f32 %v14384_v14, %v15829_v15 }
 0xef9   : > { %v14386_v49 = vpop.eup %14385  ;;  %14391 = vrcp.f32 %v5827_v19  ;;  %v5243_v19 = vld [vmem:[%s16864_s5] sm:$0xff] }
 0xefa   : > { %13002 = vmatprep.mubr.msk.f32.mxu0 %vm1590_vm4, %v5875_v46  ;;  %v5874_v4 = vmul.f32 %v14386_v49, %v15832_v44  ;;  %14393 = vrcp.f32 %v5830_v58  ;;  %12986 = vmatprep.subr.mxu1 %v5243_v19 }
 0xefb   : > { %12987 = vmatpush3.msra.mxu1 %v5243_v19  ;;  %v6843_v19 = vld [vmem:[%s16866_s23 + $0xc8] sm:$0xff] }
 0xefc   : > { %v5848_v61 = vpop.xlane.xlu0 %5847 }
 0xefd   : > { %v5833_v11 = vpop.xlane.xlu1 %5832 }
 0xefe   : > { %14395 = vrcp.f32 %v5833_v11 }
 0xeff   : > { %v14388_v7 = vpop.eup %14387  ;;  %14397 = vrcp.f32 %v5836_v57 }
 0xf00   : > { %v5842_v25 = vpop.xlane.xlu0 %5841  ;;  %v5873_v5 = vmul.f32 %v14388_v7, %v15846_v26  ;;  %v14390_v44 = vpop.eup %14389 }
 0xf01   : > { %v5845_v53 = vpop.xlane.xlu1 %5844  ;;  %v5876_v54 = vmul.f32 %v14390_v44, %v15818_v28 }
 0xf02   : > { %12983 = vmatprep.mubr.msk.f32.mxu1 %vm1590_vm4, %v5873_v5  ;;  %v5246_v5 = vld [vmem:[%s16864_s5 + $0x18] sm:$0xff] }
 0xf03   : > { %12984 = vmatmul.mubr.msk.f32.gmra.mrb[114].mxu1 %vm1590_vm4, %v5874_v4  ;;  %v14392_v21 = vpop.eup %14391 }
 0xf04   : > { %v5839_v1 = vpop.xlane.xlu0 %5838  ;;  %v14394_v27 = vpop.eup %14393  ;;  %v5877_v34 = vmul.f32 %v14392_v21, %v15850_v50 }
 0xf05   : > { %v13989_v15 = vpop.permute.xlu1 %13988  ;;  %14399 = vrcp.f32 %v5839_v1  ;;  %v5878_v28 = vmul.f32 %v14394_v27, %v15840_v38 }
 0xf06   : > { %v13991_v63 = vunpack.i.h.bf16 %v13989_v15  ;;  %v13990_v2 = vunpack.i.l.bf16 %v13989_v15  ;;  %14401 = vrcp.f32 %v5842_v25 }
 0xf07   : > { %14403 = vrcp.f32 %v5845_v53 }
 0xf08   : > { %v13984_v29 = vpop.permute.xlu0 %13983  ;;  %v13511_v43 = vpack.c.bf16 %v13991_v63, %v13990_v2  ;;  %v14396_v42 = vpop.eup %14395  ;;  %14405 = vrcp.f32 %v5848_v61 }
 0xf09   : > { %v13986_v23 = vunpack.i.h.bf16 %v13984_v29  ;;  %v13985_v12 = vunpack.i.l.bf16 %v13984_v29  ;;  %v13994_v31 = vpop.permute.xlu1 %13993  ;;  %v14398_v40 = vpop.eup %14397  ;;  %v5879_v48 = vmul.f32 %v14396_v42, %v15858_v18 }
 0xf0a   : > { %v13996_v59 = vunpack.i.h.bf16 %v13994_v31  ;;  %v13995_v45 = vunpack.i.l.bf16 %v13994_v31  ;;  %v5880_v60 = vmul.f32 %v14398_v40, %v15852_v52 }
 0xf0b   : > { %v13505_v26 = vpack.c.bf16 %v13986_v23, %v13985_v12 }
 0xf0c   : > { %v13515_v47 = vpack.c.bf16 %v13996_v59, %v13995_v45 }
 0xf0d   : > { %v13999_v10 = vpop.permute.xlu1 %13998  ;;  %13507 = vmatprep.subr.msk.bf16.mxu0 %vm14977_vm8, %v13505_v26 }
 0xf0e   : > { %13510 = vmatpush3.bf16.msk.msra.mxu0 %vm14977_vm8, %v13505_v26  ;;  %v14001_v22 = vunpack.i.h.bf16 %v13999_v10  ;;  %v14000_v20 = vunpack.i.l.bf16 %v13999_v10  ;;  %v11637_v26 = vld [vmem:[%s16865_s16] ss:$0 sm:$0xff]  ;;  %s16869_s16 = sld [smem:[#allocation20_spill]] }
 0xf0f   : > { %13512 = vmatprep.subr.bf16.mxu0 %v13511_v43  ;;  %v14400_v50 = vpop.eup %14399 }
 0xf10   : > { %v13521_v0 = vpack.c.bf16 %v14001_v22, %v14000_v20  ;;  %v14402_v58 = vpop.eup %14401  ;;  %v5881_v38 = vmul.f32 %v14400_v50, %v15876_v30 }
 0xf11   : > { %13003 = vmatmul.mubr.msk.f32.vlgmr.msra.gmra.mrb[80].mxu0 %vm1590_vm4, %v5876_v54  ;;  %v14004_v37 = vpop.permute.xlu1 %14003  ;;  %v14404_v51 = vpop.eup %14403  ;;  %v5882_v18 = vmul.f32 %v14402_v58, %v15872_v16  ;;  %v6818_v58 = vld [vmem:[%s16866_s23] sm:$0xff] }
 0xf12   : > { %13005 = vmatprep.mubr.msk.f32.mxu0 %vm1590_vm4, %v5877_v34  ;;  %13514 = vmatpush3.bf16.msra.mxu0 %v13511_v43  ;;  %v14006_v62 = vunpack.i.h.bf16 %v14004_v37  ;;  %v14005_v24 = vunpack.i.l.bf16 %v14004_v37  ;;  %v14406_v8 = vpop.eup %14405  ;;  %v5883_v52 = vmul.f32 %v14404_v51, %v15868_v36  ;;  %v6819_v51 = vld [vmem:[%s16866_s23 + $0x8] sm:$0xff] }
 0xf13   : > { %13517 = vmatprep.subr.msk.bf16.mxu0 %vm14977_vm8, %v13515_v47  ;;  %v5884_v30 = vmul.f32 %v14406_v8, %v15860_v35  ;;  %v5244_v35 = vld [vmem:[%s16864_s5 + $0x8] sm:$0xff] }
 0xf14   : > { %v13525_v39 = vpack.c.bf16 %v14006_v62, %v14005_v24  ;;  %13008 = vmatprep.subr.mxu1 %v5244_v35 }
 0xf15   : > { %13006 = vmatmul.mubr.msk.f32.gmra.mrb[82].mxu0 %vm1590_vm4, %v5878_v28 }
 0xf16   : > { %13520 = vmatpush3.bf16.msk.msra.mxu0 %vm14977_vm8, %v13515_v47  ;;  %13024 = vmatprep.mubr.msk.f32.mxu0 %vm1590_vm4, %v5879_v48 }
 0xf17   : > { %13522 = vmatprep.subr.bf16.mxu0 %v13521_v0 }
 0xf19   : > { %13025 = vmatmul.mubr.msk.f32.vlgmr.msra.gmra.mrb[84].mxu0 %vm1590_vm4, %v5880_v60 }
 0xf1a   : > { %13027 = vmatprep.mubr.msk.f32.mxu0 %vm1590_vm4, %v5881_v38  ;;  %13524 = vmatpush3.bf16.msra.mxu0 %v13521_v0  ;;  %v6826_v38 = vld [vmem:[%s16866_s23 + $0x40] sm:$0xff] }
 0xf1b   : > { %13527 = vmatprep.subr.msk.bf16.mxu0 %vm14977_vm8, %v13525_v39  ;;  %v11667_v8 = vcombine.low %v6818_v58, %v6826_v38 }
 0xf1d   : > { %13028 = vmatmul.mubr.msk.f32.gmra.mrb[86].mxu0 %vm1590_vm4, %v5882_v18  ;;  %v6827_v18 = vld [vmem:[%s16866_s23 + $0x48] sm:$0xff] }
 0xf1e   : > { %13530 = vmatpush3.bf16.msk.msra.mxu0 %vm14977_vm8, %v13525_v39  ;;  %13046 = vmatprep.mubr.msk.f32.mxu0 %vm1590_vm4, %v5883_v52  ;;  %v11668_v39 = vcombine.high %v6818_v58, %v6826_v38  ;;  %v11669_v52 = vcombine.low %v6819_v51, %v6827_v18 }
 0xf20   : > { %7016 = vmatprep.subr.bf16.mxu0 %v11668_v39 }
 0xf21   : > { %13047 = vmatmul.mubr.msk.f32.vlgmr.msra.gmra.mrb[88].mxu0 %vm1590_vm4, %v5884_v30  ;;  %v11670_v30 = vcombine.high %v6819_v51, %v6827_v18 }
 0xf22   : > { %7017 = vmatpush1.bf16.msra.mxu0 %v11667_v8 }
 0xf39   : > { %v5851_v14 = vpop.xlane.xlu0 %5850 }
 0xf3a   : > { %14407 = vrcp.f32 %v5851_v14  ;;  %v6834_v14 = vld [vmem:[%s16866_s23 + $0x80] sm:$0xff] }
 0xf42   : > { %v5854_v57 = vpop.xlane.xlu1 %5853 }
 0xf43   : > { %14409 = vrcp.f32 %v5854_v57  ;;  %v6842_v57 = vld [vmem:[%s16866_s23 + $0xc0] sm:$0xff] }
 0xf44   : > { %v14408_v16 = vpop.eup %14407 }
 0xf45   : > { %v5885_v36 = vmul.f32 %v14408_v16, %v15894_v56  ;;  %v5245_v56 = vld [vmem:[%s16864_s5 + $0x10] sm:$0xff]  ;;  %v6835_v16 = vld [vmem:[%s16866_s23 + $0x88] sm:$0xff] }
 0xf47   : > { %13049 = vmatprep.mubr.msk.f32.mxu0 %vm1590_vm4, %v5885_v36  ;;  %v11684_v36 = vcombine.high %v6834_v14, %v6842_v57 }
 0xf49   : > { %7018 = vmatprep.subr.bf16.mxu0 %v11684_v36 }
 0xf4d   : > { %v14410_v9 = vpop.eup %14409 }
 0xf4e   : > { %v5886_v46 = vmul.f32 %v14410_v9, %v15898_v17  ;;  %v11683_v9 = vcombine.low %v6834_v14, %v6842_v57 }
 0xf50   : > { %13050 = vmatmul.mubr.msk.f32.gmra.mrb[90].mxu0 %vm1590_vm4, %v5886_v46  ;;  %v11685_v46 = vcombine.low %v6835_v16, %v6843_v19 }
 0xf51   : > { %7048 = vmatprep.mubr.bf16.mxu0 %v16834_v33  ;;  %7019 = vmatpush1.bf16.msra.mxu0 %v11683_v9 }
 0xfca   : > { %v12982_v61 = vpop.f32.mrb[112].mxu1 }
 0xfcb   : > { %v5979_v11 = vpop.f32.mrb[113].mxu1 }
 0xfcc   : > { %12988 = vmatprep.mubr.msk.f32.mxu1 %vm1137_vm2, %v5979_v11 }
 0xfcd   : > { %12989 = vmatmul.mubr.msk.f32.vlgmr.msra.gmra.mrb[116].mxu1 %vm1137_vm2, %v12982_v61 }
 0xfce   : > { %13009 = vmatpush3.msra.mxu1 %v5244_v35  ;;  %v11686_v35 = vcombine.high %v6835_v16, %v6843_v19 }
 0xfcf   : > { %13030 = vmatprep.subr.mxu1 %v5245_v56 }
 0xfd6   : > { %v12985_v49 = vpop.f32.mrb[114].mxu1 }
 0xfd7   : > { %v5989_v7 = vpop.f32.mrb[115].mxu1 }
 0xfd8   : > { %12991 = vmatprep.mubr.msk.f32.mxu1 %vm1137_vm2, %v5989_v7 }
 0xfd9   : > { %12992 = vmatmul.mubr.msk.f32.gmra.mrb[118].mxu1 %vm1137_vm2, %v12985_v49 }
 0xfe4   : > { %v13004_v17 = vpop.f32.mrb[80].mxu0 }
 0xfe5   : > { %v6196_v25 = vpop.f32.mrb[81].mxu0 }
 0xfe6   : > { %13010 = vmatprep.mubr.msk.f32.mxu1 %vm1137_vm2, %v6196_v25 }
 0xfe7   : > { %13011 = vmatmul.mubr.msk.f32.vlgmr.msra.gmra.mrb[116].mxu1 %vm1137_vm2, %v13004_v17 }
 0xfe8   : > { %v13007_v53 = vpop.f32.mrb[82].mxu0  ;;  %13031 = vmatpush3.msra.mxu1 %v5245_v56 }
 0xfe9   : > { %v6206_v4 = vpop.f32.mrb[83].mxu0  ;;  %13052 = vmatprep.subr.mxu1 %v5246_v5 }
 0xfea   : > { %13013 = vmatprep.mubr.msk.f32.mxu1 %vm1137_vm2, %v6206_v4 }
 0xfeb   : > { %13014 = vmatmul.mubr.msk.f32.gmra.mrb[118].mxu1 %vm1137_vm2, %v13007_v53 }
 0xfec   : > { %v13026_v1 = vpop.f32.mrb[84].mxu0 }
 0xfed   : > { %v6407_v15 = vpop.f32.mrb[85].mxu0 }
 0xfee   : > { %13032 = vmatprep.mubr.msk.f32.mxu1 %vm1137_vm2, %v6407_v15  ;;  %v6828_v15 = vld [vmem:[%s16866_s23 + $0x50] sm:$0xff] }
 0xfef   : > { %13033 = vmatmul.mubr.msk.f32.vlgmr.msra.gmra.mrb[116].mxu1 %vm1137_vm2, %v13026_v1  ;;  %v6820_v1 = vld [vmem:[%s16866_s23 + $0x10] sm:$0xff] }
 0xff0   : > { %v13029_v29 = vpop.f32.mrb[86].mxu0  ;;  %13053 = vmatpush3.msra.mxu1 %v5246_v5 }
 0xff1   : > { %v6417_v63 = vpop.f32.mrb[87].mxu0  ;;  %7069 = vmatprep.subr.bf16.mxu1 %v11670_v30 }
 0xff2   : > { %13035 = vmatprep.mubr.msk.f32.mxu1 %vm1137_vm2, %v6417_v63  ;;  %v11671_v63 = vcombine.low %v6820_v1, %v6828_v15 }
 0xff3   : > { %13036 = vmatmul.mubr.msk.f32.gmra.mrb[118].mxu1 %vm1137_vm2, %v13029_v29  ;;  %v6821_v29 = vld [vmem:[%s16866_s23 + $0x18] sm:$0xff] }
 0xff4   : > { %v13048_v2 = vpop.f32.mrb[88].mxu0 }
 0xff5   : > { %v6618_v23 = vpop.f32.mrb[89].mxu0 }
 0xff6   : > { %13054 = vmatprep.mubr.msk.f32.mxu1 %vm1137_vm2, %v6618_v23  ;;  %v6829_v23 = vld [vmem:[%s16866_s23 + $0x58] sm:$0xff] }
 0xff7   : > { %13055 = vmatmul.mubr.msk.f32.vlgmr.msra.gmra.mrb[116].mxu1 %vm1137_vm2, %v13048_v2  ;;  %v11672_v2 = vcombine.high %v6820_v1, %v6828_v15  ;;  %v6824_v15 = vld [vmem:[%s16866_s23 + $0x30] sm:$0xff] }
 0xff8   : > { %7070 = vmatpush1.bf16.msra.mxu1 %v11669_v52 }
 0xff9   : > { %7071 = vmatprep.subr.bf16.mxu1 %v11686_v35  ;;  %7122 = vmatprep.subr.bf16.mxu0 %v11672_v2  ;;  %v6833_v2 = vld [vmem:[%s16866_s23 + $0x78] sm:$0xff] }
 0xffc   : > { %7072 = vmatpush1.bf16.msra.mxu1 %v11685_v46 }
0x1023   : > { %v13051_v12 = vpop.f32.mrb[90].mxu0 }
0x1024   : > { %v6628_v31 = vpop.f32.mrb[91].mxu0 }
0x1025   : > { %13057 = vmatprep.mubr.msk.f32.mxu1 %vm1137_vm2, %v6628_v31  ;;  %v11674_v31 = vcombine.high %v6821_v29, %v6829_v23 }
0x1026   : > { %13058 = vmatmul.mubr.msk.f32.gmra.mrb[118].mxu1 %vm1137_vm2, %v13051_v12  ;;  %v11673_v12 = vcombine.low %v6821_v29, %v6829_v23  ;;  %v6832_v29 = vld [vmem:[%s16866_s23 + $0x70] sm:$0xff] }
0x1027   : > { %7101 = vmatprep.mubr.bf16.mxu1 %v16834_v33  ;;  %7175 = vmatprep.subr.bf16.mxu1 %v11674_v31  ;;  %v11680_v31 = vcombine.high %v6824_v15, %v6832_v29 }
0x10ca   : > { %v13056_v44 = vpop.f32.mrb[116].mxu1 }
0x10cb   : > { %v6715_v21 = vpop.f32.mrb[117].mxu1  ;;  %v13685_v43 = vadd.f32 %v13056_v44, %v11637_v26 }
0x10cc   : > { %v13686_v59 = vadd.f32 %v11637_v26, %v6715_v21 }
0x10cd   : > { %v6739_v10 = vadd.f32 %v13685_v43, %v15638_v41 }
0x10ce   : > { %v6738_v45 = vadd.f32 %v13686_v59, %v15636_v32 }
0x10cf   : > { %v6747_v27 = vsel %vm1023_vm1, %v6739_v10, 0.0 }
0x10d0   : > { %v6744_v54 = vsel %vm1023_vm1, %v6738_v45, 0.0 }
0x10d1   : > { %6745 = vadd.xlane.f32.xlu0 %v6744_v54 }
0x10d5   : > { %6748 = vadd.xlane.f32.xlu0 %v6747_v27  ;;  %v11665_v27 = vld [vmem:[%s16867_s22] ss:$0 sm:$0xff]  ;;  %s16870_s22 = sld [smem:[#allocation19_spill]] }
0x10f9   : > { %v13059_v34 = vpop.f32.mrb[118].mxu1 }
0x10fa   : > { %v13687_v42 = vadd.f32 %v13059_v34, %v11637_v26  ;;  %v6725_v47 = vpop.f32.mrb[119].mxu1 }
0x10fb   : > { %v13688_v22 = vadd.f32 %v11637_v26, %v6725_v47 }
0x10fc   : > { %v6741_v20 = vadd.f32 %v13687_v42, %v15648_v55 }
0x10fd   : > { %v6740_v37 = vadd.f32 %v13688_v22, %v15644_v6  ;;  %v11666_v22 = vld [vmem:[%s16868_s2] ss:$0 sm:$0xff]  ;;  %s16871_s2 = sld [smem:[#allocation21_spill]] }
0x10fe   : > { %v6753_v28 = vsel %vm2635_vm9, %v6741_v20, 0.0 }
0x10ff   : > { %6754 = vadd.xlane.f32.xlu0 %v6753_v28  ;;  %v6750_v32 = vsel %vm1023_vm1, %v6740_v37, 0.0 }
0x1100   : > { %6751 = vadd.xlane.f32.xlu1 %v6750_v32 }
0x115e   : > { %v6746_v41 = vpop.xlane.xlu0 %6745 }
0x115f   : > { %v6756_v40 = vmul.f32 0.03125, %v6746_v41  ;;  %v6844_v41 = vld [vmem:[%s16866_s23 + $0xd0] sm:$0xff] }
0x1161   : > { %v15977_v48 = vsub.f32 %v6738_v45, %v6756_v40  ;;  %v6837_v40 = vld [vmem:[%s16866_s23 + $0x98] sm:$0xff] }
0x1162   : > { %v6749_v50 = vpop.xlane.xlu0 %6748 }
0x1163   : > { %v6757_v0 = vmul.f32 0.03125, %v6749_v50  ;;  %v6764_v55 = vmul.f32 %v15977_v48, %v15977_v48  ;;  %v6845_v50 = vld [vmem:[%s16866_s23 + $0xd8] sm:$0xff] }
0x1164   : > { %v11689_v38 = vcombine.low %v6837_v40, %v6845_v50 }
0x1165   : > { %v15981_v6 = vsub.f32 %v6739_v10, %v6757_v0  ;;  %v6768_v62 = vsel %vm1023_vm1, %v6764_v55, 0.0  ;;  %v6822_v0 = vld [vmem:[%s16866_s23 + $0x20] sm:$0xff] }
0x1166   : > { %6769 = vadd.xlane.f32.xlu1 %v6768_v62  ;;  %v11690_v62 = vcombine.high %v6837_v40, %v6845_v50  ;;  %v14142_v40 = vld [vmem:[%s16869_s16 + $0xc8] sm:$0xff]  }
0x1167   : > { %v6765_v24 = vmul.f32 %v15981_v6, %v15981_v6  ;;  %v14143_v50 = vld [vmem:[%s16869_s16 + $0x8] sm:$0xff]  }
0x1169   : > { %v6771_v60 = vsel %vm1023_vm1, %v6765_v24, 0.0  ;;  %v6830_v24 = vld [vmem:[%s16866_s23 + $0x60] sm:$0xff] }
0x116a   : > { %6772 = vadd.xlane.f32.xlu0 %v6771_v60  ;;  %v6823_v60 = vld [vmem:[%s16866_s23 + $0x28] sm:$0xff]  ;;  %v11676_v51 = vcombine.high %v6822_v0, %v6830_v24 }
0x118c   : > { %v6755_v61 = vpop.xlane.xlu0 %6754 }
0x118d   : > { %v6759_v11 = vmul.f32 0.03125, %v6755_v61  ;;  %v6752_v56 = vpop.xlane.xlu1 %6751 }
0x118e   : > { %v6758_v49 = vmul.f32 0.03125, %v6752_v56 }
0x118f   : > { %v15995_v7 = vsub.f32 %v6741_v20, %v6759_v11 }
0x1190   : > { %v15997_v17 = vsub.f32 %v6740_v37, %v6758_v49  ;;  %v6836_v37 = vld [vmem:[%s16866_s23 + $0x90] sm:$0xff]  ;;  %v6838_v49 = vld [vmem:[%s16866_s23 + $0xa0] sm:$0xff] }
0x1191   : > { %v6767_v25 = vmul.f32 %v15995_v7, %v15995_v7  ;;  %v11688_v55 = vcombine.high %v6836_v37, %v6844_v41  ;;  %v11687_v58 = vcombine.low %v6836_v37, %v6844_v41  ;;  %v14140_v37 = vld [vmem:[%s16869_s16 + $0x80] sm:$0xff]   ;;  %v14141_v41 = vld [vmem:[%s16869_s16 + $0x48] sm:$0xff]  }
0x1192   : > { %v6766_v5 = vmul.f32 %v15997_v17, %v15997_v17 }
0x1193   : > { %v6777_v53 = vsel %vm2635_vm9, %v6767_v25, 0.0  ;;  %v6847_v25 = vld [vmem:[%s16866_s23 + $0xe8] sm:$0xff] }
0x1194   : > { %6778 = vadd.xlane.f32.xlu0 %v6777_v53  ;;  %v6774_v4 = vsel %vm1023_vm1, %v6766_v5, 0.0  ;;  %v11675_v5 = vcombine.low %v6822_v0, %v6830_v24  ;;  %v14144_v0 = vld [vmem:[%s16869_s16 + $0x88] sm:$0xff]   ;;  %v14148_v24 = vld [vmem:[%s16869_s16 + $0x90] sm:$0xff]  }
0x1195   : > { %6775 = vadd.xlane.f32.xlu1 %v6774_v4 }
0x11f3   : > { %v6770_v26 = vpop.xlane.xlu1 %6769 }
0x11f4   : > { %v6780_v44 = vmul.f32 0.03125, %v6770_v26 }
0x11f6   : > { %v6784_v21 = vadd.f32 1e-05, %v6780_v44  ;;  %v6840_v44 = vld [vmem:[%s16866_s23 + $0xb0] sm:$0xff] }
0x11f7   : > { %v6773_v43 = vpop.xlane.xlu0 %6772 }
0x11f8   : > { %14411 = vrsqrt.f32 %v6784_v21  ;;  %v6781_v59 = vmul.f32 0.03125, %v6773_v43  ;;  %v6848_v21 = vld [vmem:[%s16866_s23 + $0xf0] sm:$0xff]  ;;  %v6841_v43 = vld [vmem:[%s16866_s23 + $0xb8] sm:$0xff] }
0x11fa   : > { %v6785_v45 = vadd.f32 1e-05, %v6781_v59  ;;  %v6849_v59 = vld [vmem:[%s16866_s23 + $0xf8] sm:$0xff] }
0x11fc   : > { %14413 = vrsqrt.f32 %v6785_v45  ;;  %v11679_v45 = vcombine.low %v6824_v15, %v6832_v29 }
0x1202   : > { %v14412_v10 = vpop.eup %14411 }
0x1203   : > { %v6792_v54 = vmul.f32 %v14412_v10, %v15977_v48 }
0x1205   : > { %v6802_v42 = vmul.f32 %v11665_v27, %v6792_v54  ;;  %v11696_v54 = vcombine.high %v6840_v44, %v6848_v21 }
0x1206   : > { %v14414_v34 = vpop.eup %14413 }
0x1207   : > { %v6793_v47 = vmul.f32 %v14414_v34, %v15981_v6  ;;  %v16014_v28 = vadd.f32 %v11666_v22, %v6802_v42  ;;  %v6831_v6 = vld [vmem:[%s16866_s23 + $0x68] sm:$0xff]  ;;  %v11695_v34 = vcombine.low %v6840_v44, %v6848_v21  ;;  %v11697_v42 = vcombine.low %v6841_v43, %v6849_v59 }
0x1208   : > { %v11678_v39 = vcombine.high %v6823_v60, %v6831_v6  ;;  %v11677_v53 = vcombine.low %v6823_v60, %v6831_v6  ;;  %v14149_v60 = vld [vmem:[%s16869_s16 + $0x58] sm:$0xff]  }
0x1209   : > { %v6803_v20 = vmul.f32 %v11665_v27, %v6793_v47  ;;  %v14137_v47 = vld [vmem:[%s16869_s16 + $0x40] sm:$0xff]   ;;  %v14150_v6 = vld [vmem:[%s16869_s16 + $0xd8] sm:$0xff]  }
0x120b   : > { %v16016_v32 = vadd.f32 %v11666_v22, %v6803_v20  ;;  %v14139_v20 = vld [vmem:[%s16869_s16] sm:$0xff]  }
0x120d   : > { %v16023_v48 = vpack.c.bf16 %v16016_v32, %v16014_v28 }
0x120f   : > { %11699 = vmatmul.mubr.msk.bf16.vlgmr.msra.gmra.mrb[92].mxu0 %vm1023_vm1, %v16023_v48  ;;  %11701 = vmatmul.mubr.msk.bf16.vlgmr.msra.gmra.mrb[120].mxu1 %vm1023_vm1, %v16023_v48 }
0x1210   : > { %7123 = vmatpush1.bf16.msra.mxu0 %v11671_v63  ;;  %7176 = vmatpush1.bf16.msra.mxu1 %v11673_v12  ;;  %v6825_v63 = vld [vmem:[%s16866_s23 + $0x38] sm:$0xff] }
0x1211   : > { %7058 = vmatprep.mubr.bf16.mxu0 %v16834_v33  ;;  %7111 = vmatprep.mubr.bf16.mxu1 %v16834_v33  ;;  %v11682_v26 = vcombine.high %v6825_v63, %v6833_v2  ;;  %v11681_v10 = vcombine.low %v6825_v63, %v6833_v2 }
0x1212   : > { %7124 = vmatprep.subr.bf16.mxu0 %v11688_v55  ;;  %7177 = vmatprep.subr.bf16.mxu1 %v11690_v62  ;;  %v14145_v55 = vld [vmem:[%s16869_s16 + $0x50] sm:$0xff]  }
0x1213   : > { %v14146_v62 = vld [vmem:[%s16869_s16 + $0xd0] sm:$0xff]  }
0x1214   : > { %7125 = vmatpush1.bf16.msra.mxu0 %v11687_v58  ;;  %7178 = vmatpush1.bf16.msra.mxu1 %v11689_v38  ;;  %v14151_v58 = vld [vmem:[%s16869_s16 + $0x18] sm:$0xff]  }
0x1215   : > { %7228 = vmatprep.subr.bf16.mxu0 %v11676_v51  ;;  %7281 = vmatprep.subr.bf16.mxu1 %v11678_v39  ;;  %v14152_v38 = vld [vmem:[%s16869_s16 + $0x98] sm:$0xff]   ;;  %v14153_v51 = vld [vmem:[%s16869_s16 + $0x60] sm:$0xff]  }
0x1216   : > { %v14154_v39 = vld [vmem:[%s16869_s16 + $0xe0] sm:$0xff]  }
0x1221   : > { %v6779_v18 = vpop.xlane.xlu0 %6778 }
0x1222   : > { %v6783_v8 = vmul.f32 0.03125, %v6779_v18  ;;  %v6776_v52 = vpop.xlane.xlu1 %6775  ;;  %v14155_v18 = vld [vmem:[%s16869_s16 + $0x20] sm:$0xff]  }
0x1223   : > { %v6782_v30 = vmul.f32 0.03125, %v6776_v52  ;;  %v14157_v52 = vld [vmem:[%s16869_s16 + $0x68] sm:$0xff]  }
0x1224   : > { %v6787_v14 = vadd.f32 1e-05, %v6783_v8  ;;  %v14156_v8 = vld [vmem:[%s16869_s16 + $0xa0] sm:$0xff]  }
0x1225   : > { %v6786_v57 = vadd.f32 1e-05, %v6782_v30  ;;  %v14158_v30 = vld [vmem:[%s16869_s16 + $0xe8] sm:$0xff]  }
0x1226   : > { %14415 = vrsqrt.f32 %v6787_v14  ;;  %v14159_v14 = vld [vmem:[%s16869_s16 + $0x28] sm:$0xff]  }
0x1227   : > { %14417 = vrsqrt.f32 %v6786_v57  ;;  %v14160_v57 = vld [vmem:[%s16869_s16 + $0xa8] sm:$0xff]  }
0x1230   : > { %v14416_v16 = vpop.eup %14415 }
0x1231   : > { %v14418_v36 = vpop.eup %14417  ;;  %v6795_v19 = vmul.f32 %v14416_v16, %v15995_v7  ;;  %v6846_v7 = vld [vmem:[%s16866_s23 + $0xe0] sm:$0xff]  ;;  %v14161_v16 = vld [vmem:[%s16869_s16 + $0x70] sm:$0xff]  }
0x1232   : > { %v6794_v9 = vmul.f32 %v14418_v36, %v15997_v17  ;;  %v6839_v17 = vld [vmem:[%s16866_s23 + $0xa8] sm:$0xff]  ;;  %v11692_v4 = vcombine.high %v6838_v49, %v6846_v7  ;;  %v11691_v23 = vcombine.low %v6838_v49, %v6846_v7  ;;  %v14162_v36 = vld [vmem:[%s16869_s16 + $0xf0] sm:$0xff]   ;;  %v14168_v49 = vld [vmem:[%s16869_s16 + $0xb8] sm:$0xff]  }
0x1233   : > { %v6805_v46 = vmul.f32 %v11665_v27, %v6795_v19  ;;  %v11694_v1 = vcombine.high %v6839_v17, %v6847_v25  ;;  %v11693_v12 = vcombine.low %v6839_v17, %v6847_v25  ;;  %v14163_v19 = vld [vmem:[%s16869_s16 + $0x30] sm:$0xff]   ;;  %v14169_v7 = vld [vmem:[%s16869_s16 + $0x140] sm:$0xff]  }
0x1234   : > { %v6804_v35 = vmul.f32 %v11665_v27, %v6794_v9  ;;  %v11698_v27 = vcombine.high %v6841_v43, %v6849_v59  ;;  %v14164_v9 = vld [vmem:[%s16869_s16 + $0xb0] sm:$0xff]   ;;  %v14170_v17 = vld [vmem:[%s16869_s16 + $0x1c0] sm:$0xff]  }
0x1235   : > { %v16037_v61 = vadd.f32 %v11666_v22, %v6805_v46  ;;  %v14165_v46 = vld [vmem:[%s16869_s16 + $0x78] sm:$0xff]   ;;  %v16132_v25 = vld [vmem:[%s16870_s22] sm:$0xff] }
0x1236   : > { %v16039_v11 = vadd.f32 %v11666_v22, %v6804_v35  ;;  %v14138_v22 = vld [vmem:[%s16869_s16 + $0xc0] sm:$0xff]   ;;  %v14166_v35 = vld [vmem:[%s16869_s16 + $0xf8] sm:$0xff]  }
0x1238   : > { %v16043_v56 = vpack.c.bf16 %v16037_v61, %v16039_v11 }
0x123a   : > { %11700 = vmatmul.mubr.msk.bf16.gmra.mrb[96].mxu0 %vm1023_vm1, %v16043_v56  ;;  %11702 = vmatmul.mubr.msk.bf16.gmra.mrb[124].mxu1 %vm1023_vm1, %v16043_v56 }
0x123b   : > { %7154 = vmatprep.mubr.bf16.mxu0 %v16834_v33  ;;  %7207 = vmatprep.mubr.bf16.mxu1 %v16834_v33 }
0x1242   : > { %11703 = vmatmul.mubr.msk.bf16.vlgmr.msra.gmra.mrb[100].mxu0 %vm1023_vm1, %v16023_v48  ;;  %11705 = vmatmul.mubr.msk.bf16.vlgmr.msra.gmra.mrb[128].mxu1 %vm1023_vm1, %v16023_v48 }
0x1243   : > { %7164 = vmatprep.mubr.bf16.mxu0 %v16834_v33  ;;  %7217 = vmatprep.mubr.bf16.mxu1 %v16834_v33 }
0x1244   : > { %7229 = vmatpush1.bf16.msra.mxu0 %v11675_v5  ;;  %7282 = vmatpush1.bf16.msra.mxu1 %v11677_v53  ;;  %v7483_v5 = vrot.slane %v16132_v25, %v15251_v13 }
0x1245   : > { %7230 = vmatprep.subr.bf16.mxu0 %v11692_v4  ;;  %7283 = vmatprep.subr.bf16.mxu1 %v11694_v1 }
0x1246   : > { %v7491_v53 = vcombine.high %v7483_v5, %v7483_v5  ;;  %v7499_v4 = vrot.slane %v7483_v5, %v15251_v13  ;;  %v7476_v5 = vcombine.high %v16132_v25, %v16132_v25  ;;  %v14202_v25 = vld [vmem:[%s16869_s16 + $0x240] sm:$0xff]  }
0x1248   : > { %7231 = vmatpush1.bf16.msra.mxu0 %v11691_v23  ;;  %7284 = vmatpush1.bf16.msra.mxu1 %v11693_v12  ;;  %v7513_v1 = vrot.slane %v7491_v53, %v15251_v13  ;;  %v7521_v15 = vcombine.high %v7499_v4, %v7499_v4  ;;  %v7575_v63 = vpack.i.b16 %v7499_v4, %v7499_v4  ;;  %v14194_v53 = vld [vmem:[%s16869_s16 + $0x170] sm:$0xff]  }
0x1249   : > { %7334 = vmatprep.subr.bf16.mxu0 %v11680_v31  ;;  %7387 = vmatprep.subr.bf16.mxu1 %v11682_v26  ;;  %v14195_v4 = vld [vmem:[%s16869_s16 + $0x1f0] sm:$0xff]  }
0x124a   : > { %11704 = vmatmul.mubr.msk.bf16.gmra.mrb[104].mxu0 %vm1023_vm1, %v16043_v56  ;;  %11706 = vmatmul.mubr.msk.bf16.gmra.mrb[132].mxu1 %vm1023_vm1, %v16043_v56  ;;  %v7523_v29 = vcombine.high %v7513_v1, %v7513_v1  ;;  %v7589_v2 = vpack.i.b16 %v7521_v15, %v7521_v15  ;;  %v7582_v23 = vpack.i.b16 %v7513_v1, %v7513_v1  ;;  %v14196_v1 = vld [vmem:[%s16869_s16 + $0x130] sm:$0xff]  }
0x124b   : > { %7260 = vmatprep.mubr.bf16.mxu0 %v16834_v33  ;;  %7313 = vmatprep.mubr.bf16.mxu1 %v16834_v33  ;;  %v16139_v43 = vrot.slane %v7575_v63, %v15260_v3  ;;  %v14197_v15 = vld [vmem:[%s16869_s16 + $0x1b0] sm:$0xff]   ;;  %v14198_v63 = vld [vmem:[%s16869_s16 + $0x178] sm:$0xff]  }
0x124c   : > { %v7596_v12 = vpack.i.b16 %v7523_v29, %v7523_v29  ;;  %v16142_v59 = vrot.slane %v7589_v2, %v15260_v3  ;;  %v7490_v29 = vrot.slane %v7476_v5, %v15251_v13  ;;  %v14199_v2 = vld [vmem:[%s16869_s16 + $0x1f8] sm:$0xff]  }
0x1252   : > { %11707 = vmatmul.mubr.msk.bf16.vlgmr.msra.gmra.mrb[108].mxu0 %vm1023_vm1, %v16023_v48  ;;  %11709 = vmatmul.mubr.msk.bf16.vlgmr.msra.gmra.mrb[136].mxu1 %vm1023_vm1, %v16023_v48 }
0x1253   : > { %7270 = vmatprep.mubr.bf16.mxu0 %v16834_v33  ;;  %7323 = vmatprep.mubr.bf16.mxu1 %v16834_v33 }
0x1254   : > { %7335 = vmatpush1.bf16.msra.mxu0 %v11679_v45  ;;  %7388 = vmatpush1.bf16.msra.mxu1 %v11681_v10 }
0x1255   : > { %7336 = vmatprep.subr.bf16.mxu0 %v11696_v54  ;;  %7389 = vmatprep.subr.bf16.mxu1 %v11698_v27  ;;  %v16145_v54 = vrot.slane %v7582_v23, %v15260_v3  ;;  %v16148_v27 = vrot.slane %v7596_v12, %v15260_v3  ;;  %v14200_v23 = vld [vmem:[%s16869_s16 + $0x138] sm:$0xff]  }
0x1256   : > { %v14201_v12 = vld [vmem:[%s16869_s16 + $0x1b8] sm:$0xff]  }
0x1258   : > { %7337 = vmatpush1.bf16.msra.mxu0 %v11695_v34  ;;  %7390 = vmatpush1.bf16.msra.mxu1 %v11697_v42 }
0x1259   : > { %12385 = vmatprep.subr.bf16.mxu0 %v14137_v47  ;;  %12413 = vmatprep.subr.bf16.mxu1 %v14138_v22 }
0x125a   : > { %11708 = vmatmul.mubr.msk.bf16.gmra.mrb[112].mxu0 %vm1023_vm1, %v16043_v56  ;;  %11710 = vmatmul.mubr.msk.bf16.gmra.mrb[140].mxu1 %vm1023_vm1, %v16043_v56 }
0x125b   : > { %7366 = vmatprep.mubr.bf16.mxu0 %v16834_v33  ;;  %7419 = vmatprep.mubr.bf16.mxu1 %v16834_v33 }
0x1262   : > { %11711 = vmatmul.mubr.msk.bf16.vlgmr.msra.gmra.mrb[116].mxu0 %vm1023_vm1, %v16023_v48  ;;  %11713 = vmatmul.mubr.msk.bf16.vlgmr.msra.gmra.mrb[144].mxu1 %vm1023_vm1, %v16023_v48  ;;  %v14147_v48 = vld [vmem:[%s16869_s16 + $0x10] sm:$0xff]  }
0x1263   : > { %7376 = vmatprep.mubr.bf16.mxu0 %v16834_v33  ;;  %7429 = vmatprep.mubr.bf16.mxu1 %v16834_v33 }
0x1264   : > { %12386 = vmatpush3.bf16.msra.mxu0 %v14139_v20  ;;  %12414 = vmatpush3.bf16.msra.mxu1 %v14140_v37 }
0x1265   : > { %12387 = vmatprep.subr.bf16.mxu0 %v14141_v41  ;;  %12415 = vmatprep.subr.bf16.mxu1 %v14142_v40 }
0x1268   : > { %12388 = vmatpush3.bf16.msra.mxu0 %v14143_v50  ;;  %12416 = vmatpush3.bf16.msra.mxu1 %v14144_v0 }
0x1269   : > { %12389 = vmatprep.subr.bf16.mxu0 %v14145_v55  ;;  %12417 = vmatprep.subr.bf16.mxu1 %v14146_v62 }
0x126a   : > { %11712 = vmatmul.mubr.msk.bf16.gmra.mrb[120].mxu0 %vm1023_vm1, %v16043_v56  ;;  %11714 = vmatmul.mubr.msk.bf16.gmra.mrb[148].mxu1 %vm1023_vm1, %v16043_v56  ;;  %v14167_v56 = vld [vmem:[%s16869_s16 + $0x38] sm:$0xff]  }
0x126c   : > { %12390 = vmatpush3.bf16.msra.mxu0 %v14147_v48  ;;  %12418 = vmatpush3.bf16.msra.mxu1 %v14148_v24  ;;  %v14171_v48 = vld [vmem:[%s16869_s16 + $0x100] sm:$0xff]  }
0x126d   : > { %12391 = vmatprep.subr.bf16.mxu0 %v14149_v60  ;;  %12419 = vmatprep.subr.bf16.mxu1 %v14150_v6  ;;  %v14172_v24 = vld [vmem:[%s16869_s16 + $0x180] sm:$0xff]  }
0x1270   : > { %12392 = vmatpush3.bf16.msra.mxu0 %v14151_v58  ;;  %12420 = vmatpush3.bf16.msra.mxu1 %v14152_v38  ;;  %v14173_v58 = vld [vmem:[%s16869_s16 + $0x148] sm:$0xff]  }
0x1271   : > { %12393 = vmatprep.subr.bf16.mxu0 %v14153_v51  ;;  %12421 = vmatprep.subr.bf16.mxu1 %v14154_v39  ;;  %v14174_v38 = vld [vmem:[%s16869_s16 + $0x1c8] sm:$0xff]  }
0x1272   : > { %v14175_v51 = vld [vmem:[%s16869_s16 + $0x108] sm:$0xff]  }
0x1273   : > { %v14176_v39 = vld [vmem:[%s16869_s16 + $0x188] sm:$0xff]  }
0x1274   : > { %12394 = vmatpush3.bf16.msra.mxu0 %v14155_v18  ;;  %12422 = vmatpush3.bf16.msra.mxu1 %v14156_v8  ;;  %v14177_v18 = vld [vmem:[%s16869_s16 + $0x150] sm:$0xff]  }
0x1275   : > { %12395 = vmatprep.subr.bf16.mxu0 %v14157_v52  ;;  %12423 = vmatprep.subr.bf16.mxu1 %v14158_v30  ;;  %v14178_v8 = vld [vmem:[%s16869_s16 + $0x1d0] sm:$0xff]  }
0x1276   : > { %v14179_v52 = vld [vmem:[%s16869_s16 + $0x110] sm:$0xff]  }
0x1277   : > { %v14180_v30 = vld [vmem:[%s16869_s16 + $0x190] sm:$0xff]  }
0x1278   : > { %12396 = vmatpush3.bf16.msra.mxu0 %v14159_v14  ;;  %12424 = vmatpush3.bf16.msra.mxu1 %v14160_v57  ;;  %v14181_v14 = vld [vmem:[%s16869_s16 + $0x158] sm:$0xff]  }
0x1279   : > { %12397 = vmatprep.subr.bf16.mxu0 %v14161_v16  ;;  %12425 = vmatprep.subr.bf16.mxu1 %v14162_v36  ;;  %v14182_v57 = vld [vmem:[%s16869_s16 + $0x1d8] sm:$0xff]  }
0x127a   : > { %v14183_v16 = vld [vmem:[%s16869_s16 + $0x118] sm:$0xff]  }
0x127b   : > { %v14184_v36 = vld [vmem:[%s16869_s16 + $0x198] sm:$0xff]  }
0x127c   : > { %12398 = vmatpush3.bf16.msra.mxu0 %v14163_v19  ;;  %12426 = vmatpush3.bf16.msra.mxu1 %v14164_v9  ;;  %v14185_v19 = vld [vmem:[%s16869_s16 + $0x160] sm:$0xff]  }
0x127d   : > { %12399 = vmatprep.subr.bf16.mxu0 %v14165_v46  ;;  %12427 = vmatprep.subr.bf16.mxu1 %v14166_v35  ;;  %v14186_v9 = vld [vmem:[%s16869_s16 + $0x1e0] sm:$0xff]  }
0x127e   : > { %v14187_v46 = vld [vmem:[%s16869_s16 + $0x120] sm:$0xff]  }
0x127f   : > { %v14188_v35 = vld [vmem:[%s16869_s16 + $0x1a0] sm:$0xff]  }
0x1280   : > { %12400 = vmatpush3.bf16.msra.mxu0 %v14167_v56  ;;  %12428 = vmatpush3.bf16.msra.mxu1 %v14168_v49  ;;  %v14189_v56 = vld [vmem:[%s16869_s16 + $0x168] sm:$0xff]  }
0x1281   : > { %12441 = vmatprep.subr.bf16.mxu0 %v14169_v7  ;;  %12469 = vmatprep.subr.bf16.mxu1 %v14170_v17  ;;  %v14190_v49 = vld [vmem:[%s16869_s16 + $0x1e8] sm:$0xff]  }
0x1282   : > { %v14191_v7 = vld [vmem:[%s16869_s16 + $0x128] sm:$0xff]  }
0x1283   : > { %v14192_v17 = vld [vmem:[%s16869_s16 + $0x1a8] sm:$0xff]  }
0x12e2   : > { %v7050_v31 = vpop.f32.mrb[92].mxu0  ;;  %v7103_v26 = vpop.f32.mrb[120].mxu1 }
0x12e3   : > { %v7052_v44 = vpop.f32.mrb[93].mxu0  ;;  %v7105_v21 = vpop.f32.mrb[121].mxu1 }
0x12e4   : > { %v7054_v45 = vpop.f32.mrb[94].mxu0  ;;  %v7107_v10 = vpop.f32.mrb[122].mxu1 }
0x12e5   : > { %v7440_v34 = vpack.c.bf16 %v7054_v45, %v7050_v31  ;;  %v7442_v42 = vpack.c.bf16 %v7107_v10, %v7103_v26  ;;  %v7056_v47 = vpop.f32.mrb[95].mxu0  ;;  %v7109_v22 = vpop.f32.mrb[123].mxu1  ;;  %v7492_v31 = vcombine.high %v7490_v29, %v7490_v29  ;;  %v14203_v26 = vld [vmem:[%s16869_s16 + $0x2c0] sm:$0xff]  }
0x12e6   : > { %v7441_v20 = vpack.c.bf16 %v7056_v47, %v7052_v44  ;;  %v7443_v37 = vpack.c.bf16 %v7109_v22, %v7105_v21  ;;  %v7506_v44 = vrot.slane %v7490_v29, %v15251_v13 }
0x12e7   : > { %v7686_v41 = vadd.bf16 %v16139_v43, %v7440_v34  ;;  %v7688_v40 = vadd.bf16 %v16142_v59, %v7442_v42  ;;  %v7520_v21 = vrot.slane %v7492_v31, %v15251_v13 }
0x12e8   : > { %v7687_v50 = vadd.bf16 %v16145_v54, %v7441_v20  ;;  %v7689_v0 = vadd.bf16 %v16148_v27, %v7443_v37  ;;  %v7522_v47 = vcombine.high %v7506_v44, %v7506_v44 }
0x12e9   : > { %v7718_v60 = vmax.bf16 %v16834_v33, %v7686_v41  ;;  %v7720_v6 = vmax.bf16 %v16834_v33, %v7688_v40  ;;  %v7524_v37 = vcombine.high %v7520_v21, %v7520_v21 }
0x12ea   : > { %v7719_v55 = vmax.bf16 %v16834_v33, %v7687_v50  ;;  %v7721_v62 = vmax.bf16 %v16834_v33, %v7689_v0 }
0x12ec   : > { %8813 = vmatprep.mubr.bf16.mxu0 %v7719_v55  ;;  %8862 = vmatprep.mubr.bf16.mxu1 %v7721_v62  ;;  %v16196_v55 = vld [vmem:[%s16870_s22 + $0x8] sm:$0xff] }
0x12ed   : > { %8814 = vmatmul.mubr.bf16.vlgmr.msra.gmra.mrb[124].mxu0 %v7718_v60  ;;  %8863 = vmatmul.mubr.bf16.vlgmr.msra.gmra.mrb[152].mxu1 %v7720_v6 }
0x12ee   : > { %12442 = vmatpush3.bf16.msra.mxu0 %v14171_v48  ;;  %12470 = vmatpush3.bf16.msra.mxu1 %v14172_v24  ;;  %v7603_v24 = vpack.i.b16 %v7506_v44, %v7506_v44  ;;  %v14205_v44 = vld [vmem:[%s16869_s16 + $0x280] sm:$0xff]  }
0x12ef   : > { %12443 = vmatprep.subr.bf16.mxu0 %v14173_v58  ;;  %12471 = vmatprep.subr.bf16.mxu1 %v14174_v38  ;;  %v7617_v58 = vpack.i.b16 %v7522_v47, %v7522_v47  ;;  %v7610_v38 = vpack.i.b16 %v7520_v21, %v7520_v21  ;;  %v14207_v47 = vld [vmem:[%s16869_s16 + $0x2c8] sm:$0xff]  }
0x12f2   : > { %12444 = vmatpush3.bf16.msra.mxu0 %v14175_v51  ;;  %12472 = vmatpush3.bf16.msra.mxu1 %v14176_v39 }
0x12f3   : > { %12445 = vmatprep.subr.bf16.mxu0 %v14177_v18  ;;  %12473 = vmatprep.subr.bf16.mxu1 %v14178_v8  ;;  %v7624_v18 = vpack.i.b16 %v7524_v37, %v7524_v37  ;;  %v16204_v8 = vrot.slane %v16196_v55, %v15251_v13 }
0x12f6   : > { %12446 = vmatpush3.bf16.msra.mxu0 %v14179_v52  ;;  %12474 = vmatpush3.bf16.msra.mxu1 %v14180_v30 }
0x12f7   : > { %12447 = vmatprep.subr.bf16.mxu0 %v14181_v14  ;;  %12475 = vmatprep.subr.bf16.mxu1 %v14182_v57 }
0x12fa   : > { %12448 = vmatpush3.bf16.msra.mxu0 %v14183_v16  ;;  %12476 = vmatpush3.bf16.msra.mxu1 %v14184_v36  ;;  %v7622_v36 = vrot.slane %v7617_v58, %v15260_v3 }
0x12fb   : > { %12449 = vmatprep.subr.bf16.mxu0 %v14185_v19  ;;  %12477 = vmatprep.subr.bf16.mxu1 %v14186_v9 }
0x12fe   : > { %12450 = vmatpush3.bf16.msra.mxu0 %v14187_v46  ;;  %12478 = vmatpush3.bf16.msra.mxu1 %v14188_v35  ;;  %v7615_v46 = vrot.slane %v7610_v38, %v15260_v3  ;;  %v7629_v35 = vrot.slane %v7624_v18, %v15260_v3  ;;  %v14210_v38 = vld [vmem:[%s16869_s16 + $0x250] sm:$0xff]  }
0x12ff   : > { %12451 = vmatprep.subr.bf16.mxu0 %v14189_v56  ;;  %12479 = vmatprep.subr.bf16.mxu1 %v14190_v49  ;;  %v7540_v56 = vcombine.high %v16204_v8, %v16204_v8 }
0x1302   : > { %12452 = vmatpush3.bf16.msra.mxu0 %v14191_v7  ;;  %12480 = vmatpush3.bf16.msra.mxu1 %v14192_v17 }
0x1303   : > { %12453 = vmatprep.subr.bf16.mxu0 %v14194_v53  ;;  %12481 = vmatprep.subr.bf16.mxu1 %v14195_v4 }
0x1306   : > { %12454 = vmatpush3.bf16.msra.mxu0 %v14196_v1  ;;  %12482 = vmatpush3.bf16.msra.mxu1 %v14197_v15 }
0x1307   : > { %12455 = vmatprep.subr.bf16.mxu0 %v14198_v63  ;;  %12483 = vmatprep.subr.bf16.mxu1 %v14199_v2  ;;  %v7562_v2 = vrot.slane %v7540_v56, %v15251_v13 }
0x1309   : > { %v7572_v37 = vcombine.high %v7562_v2, %v7562_v2 }
0x130a   : > { %12456 = vmatpush3.bf16.msra.mxu0 %v14200_v23  ;;  %12484 = vmatpush3.bf16.msra.mxu1 %v14201_v12 }
0x130b   : > { %12497 = vmatprep.subr.bf16.mxu0 %v14202_v25  ;;  %12525 = vmatprep.subr.bf16.mxu1 %v14203_v26  ;;  %v14204_v26 = vld [vmem:[%s16869_s16 + $0x200] sm:$0xff]  }
0x130d   : > { %v7060_v45 = vpop.f32.mrb[96].mxu0  ;;  %v7113_v10 = vpop.f32.mrb[124].mxu1 }
0x130e   : > { %v7062_v34 = vpop.f32.mrb[97].mxu0  ;;  %v7115_v42 = vpop.f32.mrb[125].mxu1 }
0x130f   : > { %v7064_v22 = vpop.f32.mrb[98].mxu0  ;;  %v7117_v20 = vpop.f32.mrb[126].mxu1 }
0x1310   : > { %v7456_v41 = vpack.c.bf16 %v7064_v22, %v7060_v45  ;;  %v7458_v40 = vpack.c.bf16 %v7117_v20, %v7113_v10  ;;  %v7066_v50 = vpop.f32.mrb[99].mxu0  ;;  %v7119_v0 = vpop.f32.mrb[127].mxu1 }
0x1311   : > { %v7457_v62 = vpack.c.bf16 %v7066_v50, %v7062_v34  ;;  %v7459_v48 = vpack.c.bf16 %v7119_v0, %v7115_v42  ;;  %v14206_v42 = vld [vmem:[%s16869_s16 + $0x248] sm:$0xff]  }
0x1312   : > { %v7702_v60 = vadd.bf16 %v16139_v43, %v7456_v41  ;;  %v7704_v6 = vadd.bf16 %v16142_v59, %v7458_v40  ;;  %v7608_v59 = vrot.slane %v7603_v24, %v15260_v3  ;;  %v14208_v24 = vld [vmem:[%s16869_s16 + $0x208] sm:$0xff]  }
0x1313   : > { %v7703_v51 = vadd.bf16 %v16145_v54, %v7457_v62  ;;  %v7705_v39 = vadd.bf16 %v16148_v27, %v7459_v48 }
0x1314   : > { %v7734_v54 = vmax.bf16 %v16834_v33, %v7702_v60  ;;  %v7736_v27 = vmax.bf16 %v16834_v33, %v7704_v6  ;;  %v14209_v60 = vld [vmem:[%s16869_s16 + $0x288] sm:$0xff]  }
0x1315   : > { %v7156_v52 = vpop.f32.mrb[100].mxu0  ;;  %v7209_v30 = vpop.f32.mrb[128].mxu1  ;;  %v7735_v14 = vmax.bf16 %v16834_v33, %v7703_v51  ;;  %v7737_v57 = vmax.bf16 %v16834_v33, %v7705_v39  ;;  %v14211_v51 = vld [vmem:[%s16869_s16 + $0x2d0] sm:$0xff]  }
0x1316   : > { %v7158_v43 = vpop.f32.mrb[101].mxu0  ;;  %v7211_v16 = vpop.f32.mrb[129].mxu1 }
0x1317   : > { %v7160_v19 = vpop.f32.mrb[102].mxu0  ;;  %v7213_v9 = vpop.f32.mrb[130].mxu1  ;;  %8821 = vmatprep.mubr.bf16.mxu0 %v7735_v14  ;;  %8870 = vmatprep.mubr.bf16.mxu1 %v7737_v57 }
0x1318   : > { %v7444_v49 = vpack.c.bf16 %v7160_v19, %v7156_v52  ;;  %v7446_v7 = vpack.c.bf16 %v7213_v9, %v7209_v30  ;;  %v7162_v17 = vpop.f32.mrb[103].mxu0  ;;  %v7215_v5 = vpop.f32.mrb[131].mxu1  ;;  %8822 = vmatmul.mubr.bf16.gmra.mrb[128].mxu0 %v7734_v54  ;;  %8871 = vmatmul.mubr.bf16.gmra.mrb[156].mxu1 %v7736_v27  ;;  %v7638_v52 = vpack.i.b16 %v7562_v2, %v7562_v2  ;;  %v14216_v2 = vld [vmem:[%s16869_s16 + $0x218] sm:$0xff]  }
0x1319   : > { %v7445_v53 = vpack.c.bf16 %v7162_v17, %v7158_v43  ;;  %v7447_v4 = vpack.c.bf16 %v7215_v5, %v7211_v16  ;;  %v7652_v30 = vpack.i.b16 %v7572_v37, %v7572_v37  ;;  %v7525_v5 = vcombine.high %v16196_v55, %v16196_v55  ;;  %v14222_v37 = vld [vmem:[%s16869_s16 + $0x268] sm:$0xff]  }
0x131a   : > { %v7690_v1 = vadd.bf16 %v7608_v59, %v7444_v49  ;;  %v7692_v15 = vadd.bf16 %v7622_v36, %v7446_v7  ;;  %v16246_v7 = vrot.slane %v7638_v52, %v15260_v3  ;;  %v7548_v55 = vrot.slane %v16204_v8, %v15251_v13  ;;  %v14227_v52 = vld [vmem:[%s16869_s16 + $0x270] sm:$0xff]  }
0x131b   : > { %v7691_v29 = vadd.bf16 %v7615_v46, %v7445_v53  ;;  %v7693_v63 = vadd.bf16 %v7629_v35, %v7447_v4  ;;  %v16249_v17 = vrot.slane %v7652_v30, %v15260_v3  ;;  %v14228_v30 = vld [vmem:[%s16869_s16 + $0x2f0] sm:$0xff]  }
0x131c   : > { %v7722_v21 = vmax.bf16 %v16834_v33, %v7690_v1  ;;  %v7724_v45 = vmax.bf16 %v16834_v33, %v7692_v15 }
0x131d   : > { %v7166_v23 = vpop.f32.mrb[104].mxu0  ;;  %v7219_v12 = vpop.f32.mrb[132].mxu1  ;;  %v7723_v31 = vmax.bf16 %v16834_v33, %v7691_v29  ;;  %v7725_v25 = vmax.bf16 %v16834_v33, %v7693_v63 }
0x131e   : > { %v7168_v10 = vpop.f32.mrb[105].mxu0  ;;  %v7221_v34 = vpop.f32.mrb[133].mxu1 }
0x131f   : > { %v7170_v22 = vpop.f32.mrb[106].mxu0  ;;  %v7223_v20 = vpop.f32.mrb[134].mxu1  ;;  %8911 = vmatprep.mubr.bf16.mxu0 %v7723_v31  ;;  %8960 = vmatprep.mubr.bf16.mxu1 %v7725_v25  ;;  %v14219_v31 = vld [vmem:[%s16869_s16 + $0x2e0] sm:$0xff]  }
0x1320   : > { %v7460_v41 = vpack.c.bf16 %v7170_v22, %v7166_v23  ;;  %v7462_v40 = vpack.c.bf16 %v7223_v20, %v7219_v12  ;;  %v7172_v50 = vpop.f32.mrb[107].mxu0  ;;  %v7225_v0 = vpop.f32.mrb[135].mxu1  ;;  %8912 = vmatmul.mubr.bf16.vlgmr.msra.gmra.mrb[132].mxu0 %v7722_v21  ;;  %8961 = vmatmul.mubr.bf16.vlgmr.msra.gmra.mrb[160].mxu1 %v7724_v45  ;;  %v14217_v23 = vld [vmem:[%s16869_s16 + $0x298] sm:$0xff]   ;;  %v14218_v12 = vld [vmem:[%s16869_s16 + $0x260] sm:$0xff]  }
0x1321   : > { %v7461_v62 = vpack.c.bf16 %v7172_v50, %v7168_v10  ;;  %v7463_v48 = vpack.c.bf16 %v7225_v0, %v7221_v34  ;;  %12498 = vmatpush3.bf16.msra.mxu0 %v14204_v26  ;;  %12526 = vmatpush3.bf16.msra.mxu1 %v14205_v44  ;;  %v16266_v44 = vrot.slane %v7525_v5, %v15251_v13  ;;  %v14220_v34 = vld [vmem:[%s16869_s16 + $0x220] sm:$0xff]   ;;  %v14232_v5 = vld [vmem:[%s16869_s16 + $0x2f8] sm:$0xff]  }
0x1322   : > { %v7706_v6 = vadd.bf16 %v7608_v59, %v7460_v41  ;;  %v7708_v58 = vadd.bf16 %v7622_v36, %v7462_v40  ;;  %12499 = vmatprep.subr.bf16.mxu0 %v14206_v42  ;;  %12527 = vmatprep.subr.bf16.mxu1 %v14207_v47  ;;  %v14212_v59 = vld [vmem:[%s16869_s16 + $0x210] sm:$0xff]   ;;  %v14221_v42 = vld [vmem:[%s16869_s16 + $0x2a0] sm:$0xff]   ;;  %v7570_v47 = vcombine.high %v7548_v55, %v7548_v55  ;;  %v14223_v41 = vld [vmem:[%s16869_s16 + $0x2e8] sm:$0xff]  }
0x1323   : > { %v7707_v39 = vadd.bf16 %v7615_v46, %v7461_v62  ;;  %v7709_v18 = vadd.bf16 %v7629_v35, %v7463_v48  ;;  %v14213_v36 = vld [vmem:[%s16869_s16 + $0x290] sm:$0xff]   ;;  %v14214_v46 = vld [vmem:[%s16869_s16 + $0x258] sm:$0xff]   ;;  %v7541_v0 = vcombine.high %v16266_v44, %v16266_v44 }
0x1324   : > { %v7738_v19 = vmax.bf16 %v16834_v33, %v7706_v6  ;;  %v7740_v9 = vmax.bf16 %v16834_v33, %v7708_v58  ;;  %v14215_v35 = vld [vmem:[%s16869_s16 + $0x2d8] sm:$0xff]  }
0x1325   : > { %12500 = vmatpush3.bf16.msra.mxu0 %v14208_v24  ;;  %12528 = vmatpush3.bf16.msra.mxu1 %v14209_v60  ;;  %v16229_v14 = vpop.f32.mrb[108].mxu0  ;;  %v16231_v57 = vpop.f32.mrb[136].mxu1  ;;  %v7739_v43 = vmax.bf16 %v16834_v33, %v7707_v39  ;;  %v7741_v16 = vmax.bf16 %v16834_v33, %v7709_v18  ;;  %v7631_v39 = vpack.i.b16 %v7548_v55, %v7548_v55 }
0x1326   : > { %v7264_v54 = vpop.f32.mrb[109].mxu0  ;;  %v7317_v27 = vpop.f32.mrb[137].mxu1  ;;  %12501 = vmatprep.subr.bf16.mxu0 %v14210_v38  ;;  %12529 = vmatprep.subr.bf16.mxu1 %v14211_v51  ;;  %v14224_v38 = vld [vmem:[%s16869_s16 + $0x228] sm:$0xff]   ;;  %v7645_v18 = vpack.i.b16 %v7570_v47, %v7570_v47 }
0x1327   : > { %v16241_v56 = vpop.f32.mrb[110].mxu0  ;;  %v16243_v49 = vpop.f32.mrb[138].mxu1  ;;  %8919 = vmatprep.mubr.bf16.mxu0 %v7739_v43  ;;  %8968 = vmatprep.mubr.bf16.mxu1 %v7741_v16  ;;  %v14225_v51 = vld [vmem:[%s16869_s16 + $0x2a8] sm:$0xff]   ;;  %v7569_v43 = vrot.slane %v7541_v0, %v15251_v13 }
0x1328   : > { %v7448_v53 = vpack.c.bf16 %v16241_v56, %v16229_v14  ;;  %v7450_v4 = vpack.c.bf16 %v16243_v49, %v16231_v57  ;;  %v7268_v1 = vpop.f32.mrb[111].mxu0  ;;  %v7321_v15 = vpop.f32.mrb[139].mxu1  ;;  %8920 = vmatmul.mubr.bf16.gmra.mrb[136].mxu0 %v7738_v19  ;;  %8969 = vmatmul.mubr.bf16.gmra.mrb[164].mxu1 %v7740_v9  ;;  %v7650_v19 = vrot.slane %v7645_v18, %v15260_v3 }
0x1329   : > { %v7449_v29 = vpack.c.bf16 %v7268_v1, %v7264_v54  ;;  %v7451_v63 = vpack.c.bf16 %v7321_v15, %v7317_v27  ;;  %12502 = vmatpush3.bf16.msra.mxu0 %v14212_v59  ;;  %12530 = vmatpush3.bf16.msra.mxu1 %v14213_v36  ;;  %v14229_v36 = vld [vmem:[%s16869_s16 + $0x230] sm:$0xff]   ;;  %v7636_v27 = vrot.slane %v7631_v39, %v15260_v3 }
0x132a   : > { %12503 = vmatprep.subr.bf16.mxu0 %v14214_v46  ;;  %12531 = vmatprep.subr.bf16.mxu1 %v14215_v35  ;;  %v14230_v54 = vld [vmem:[%s16869_s16 + $0x2b0] sm:$0xff]   ;;  %v14231_v35 = vld [vmem:[%s16869_s16 + $0x278] sm:$0xff]  }
0x132b   : > { %v7695_v25 = vadd.bf16 %v16246_v7, %v7449_v29  ;;  %v7697_v26 = vadd.bf16 %v16249_v17, %v7451_v63  ;;  %v7573_v29 = vcombine.high %v7569_v43, %v7569_v43 }
0x132d   : > { %12504 = vmatpush3.bf16.msra.mxu0 %v14216_v2  ;;  %12532 = vmatpush3.bf16.msra.mxu1 %v14217_v23  ;;  %v16268_v21 = vpop.f32.mrb[112].mxu0  ;;  %v16270_v45 = vpop.f32.mrb[140].mxu1  ;;  %v7727_v8 = vmax.bf16 %v16834_v33, %v7695_v25  ;;  %v7729_v10 = vmax.bf16 %v16834_v33, %v7697_v26  ;;  %v14233_v25 = vld [vmem:[%s16869_s16 + $0x238] sm:$0xff]  }
0x132e   : > { %v7274_v22 = vpop.f32.mrb[113].mxu0  ;;  %v7327_v20 = vpop.f32.mrb[141].mxu1  ;;  %12505 = vmatprep.subr.bf16.mxu0 %v14218_v12  ;;  %12533 = vmatprep.subr.bf16.mxu1 %v14219_v31  ;;  %v14234_v26 = vld [vmem:[%s16869_s16 + $0x2b8] sm:$0xff]  }
0x132f   : > { %v16278_v40 = vpop.f32.mrb[114].mxu0  ;;  %v16280_v50 = vpop.f32.mrb[142].mxu1  ;;  %9009 = vmatprep.mubr.bf16.mxu0 %v7727_v8  ;;  %9058 = vmatprep.mubr.bf16.mxu1 %v7729_v10  ;;  %v7694_v8 = vadd.bf16 %v7636_v27, %v7448_v53  ;;  %v7696_v10 = vadd.bf16 %v7650_v19, %v7450_v4 }
0x1330   : > { %v7464_v62 = vpack.c.bf16 %v16278_v40, %v16268_v21  ;;  %v7466_v48 = vpack.c.bf16 %v16280_v50, %v16270_v45  ;;  %v7278_v24 = vpop.f32.mrb[115].mxu0  ;;  %v7331_v60 = vpop.f32.mrb[143].mxu1  ;;  %v14243_v21 = vld [vmem:[%s16869_s16 + $0x350] sm:$0xff]  }
0x1331   : > { %v7465_v6 = vpack.c.bf16 %v7278_v24, %v7274_v22  ;;  %v7467_v58 = vpack.c.bf16 %v7331_v60, %v7327_v20  ;;  %12506 = vmatpush3.bf16.msra.mxu0 %v14220_v34  ;;  %12534 = vmatpush3.bf16.msra.mxu1 %v14221_v42  ;;  %v14235_v34 = vld [vmem:[%s16869_s16 + $0x340] sm:$0xff]   ;;  %v7666_v20 = vpack.i.b16 %v7569_v43, %v7569_v43  ;;  %v14244_v40 = vld [vmem:[%s16869_s16 + $0x3d0] sm:$0xff]  }
0x1332   : > { %12507 = vmatprep.subr.bf16.mxu0 %v14222_v37  ;;  %12535 = vmatprep.subr.bf16.mxu1 %v14223_v41  ;;  %v14236_v42 = vld [vmem:[%s16869_s16 + $0x3c0] sm:$0xff]   ;;  %v7680_v37 = vpack.i.b16 %v7573_v29, %v7573_v29  ;;  %v7726_v57 = vmax.bf16 %v16834_v33, %v7694_v8  ;;  %v7728_v49 = vmax.bf16 %v16834_v33, %v7696_v10 }
0x1333   : > { %v7711_v47 = vadd.bf16 %v16246_v7, %v7465_v6  ;;  %v7713_v22 = vadd.bf16 %v16249_v17, %v7467_v58  ;;  %v14237_v7 = vld [vmem:[%s16869_s16 + $0x300] sm:$0xff]   ;;  %v16342_v41 = vrot.slane %v7666_v20, %v15260_v3 }
0x1334   : > { %v14238_v17 = vld [vmem:[%s16869_s16 + $0x380] sm:$0xff]   ;;  %v16345_v0 = vrot.slane %v7680_v37, %v15260_v3 }
0x1335   : > { %12508 = vmatpush3.bf16.msra.mxu0 %v14224_v38  ;;  %12536 = vmatpush3.bf16.msra.mxu1 %v14225_v51  ;;  %v16293_v16 = vpop.f32.mrb[116].mxu0  ;;  %v16295_v59 = vpop.f32.mrb[144].mxu1  ;;  %v7743_v6 = vmax.bf16 %v16834_v33, %v7711_v47  ;;  %v7745_v58 = vmax.bf16 %v16834_v33, %v7713_v22  ;;  %v14239_v38 = vld [vmem:[%s16869_s16 + $0x348] sm:$0xff]   ;;  %v14252_v8 = vld [vmem:[%s16869_s16 + $0x3e0] sm:$0xff]  }
0x1336   : > { %v16301_v9 = vpop.f32.mrb[117].mxu0  ;;  %v16303_v46 = vpop.f32.mrb[145].mxu1  ;;  %12509 = vmatprep.subr.bf16.mxu0 %v14227_v52  ;;  %12537 = vmatprep.subr.bf16.mxu1 %v14228_v30  ;;  %v14240_v51 = vld [vmem:[%s16869_s16 + $0x3c8] sm:$0xff]   ;;  %v14253_v10 = vld [vmem:[%s16869_s16 + $0x320] sm:$0xff]  }
0x1337   : > { %v16307_v1 = vpop.f32.mrb[118].mxu0  ;;  %v16309_v15 = vpop.f32.mrb[146].mxu1  ;;  %v14255_v47 = vld [vmem:[%s16869_s16 + $0x368] sm:$0xff]  }
0x1338   : > { %v7452_v63 = vpack.c.bf16 %v16307_v1, %v16293_v16  ;;  %v7454_v2 = vpack.c.bf16 %v16309_v15, %v16295_v59  ;;  %v7374_v23 = vpop.f32.mrb[119].mxu0  ;;  %v7427_v55 = vpop.f32.mrb[147].mxu1  ;;  %v14256_v22 = vld [vmem:[%s16869_s16 + $0x3e8] sm:$0xff]  }
0x1339   : > { %v7453_v12 = vpack.c.bf16 %v7374_v23, %v16301_v9  ;;  %v7455_v31 = vpack.c.bf16 %v7427_v55, %v16303_v46  ;;  %12510 = vmatpush3.bf16.msra.mxu0 %v14229_v36  ;;  %12538 = vmatpush3.bf16.msra.mxu1 %v14230_v54  ;;  %v7710_v54 = vadd.bf16 %v7636_v27, %v7464_v62  ;;  %v14241_v46 = vld [vmem:[%s16869_s16 + $0x308] sm:$0xff]   ;;  %v14245_v62 = vld [vmem:[%s16869_s16 + $0x310] sm:$0xff]   ;;  %v14247_v23 = vld [vmem:[%s16869_s16 + $0x358] sm:$0xff]  }
0x133a   : > { %12511 = vmatprep.subr.bf16.mxu0 %v14231_v35  ;;  %12539 = vmatprep.subr.bf16.mxu1 %v14232_v5  ;;  %v7712_v9 = vadd.bf16 %v7650_v19, %v7466_v48  ;;  %v14242_v35 = vld [vmem:[%s16869_s16 + $0x388] sm:$0xff]   ;;  %v14246_v48 = vld [vmem:[%s16869_s16 + $0x390] sm:$0xff]   ;;  %v14248_v55 = vld [vmem:[%s16869_s16 + $0x3d8] sm:$0xff]  }
0x133b   : > { %v7699_v5 = vadd.bf16 %v16342_v41, %v7453_v12  ;;  %v7701_v29 = vadd.bf16 %v16345_v0, %v7455_v31  ;;  %v7742_v45 = vmax.bf16 %v16834_v33, %v7710_v54  ;;  %v14249_v12 = vld [vmem:[%s16869_s16 + $0x318] sm:$0xff]  }
0x133c   : > { %v7744_v50 = vmax.bf16 %v16834_v33, %v7712_v9  ;;  %v14250_v31 = vld [vmem:[%s16869_s16 + $0x398] sm:$0xff]  }
0x133d   : > { %12512 = vmatpush3.bf16.msra.mxu0 %v14233_v25  ;;  %12540 = vmatpush3.bf16.msra.mxu1 %v14234_v26  ;;  %v16329_v14 = vpop.f32.mrb[120].mxu0  ;;  %v16331_v56 = vpop.f32.mrb[148].mxu1  ;;  %v7731_v27 = vmax.bf16 %v16834_v33, %v7699_v5  ;;  %v7733_v19 = vmax.bf16 %v16834_v33, %v7701_v29  ;;  %v7555_v25 = vrot.slane %v16266_v44, %v15251_v13  ;;  %v14251_v26 = vld [vmem:[%s16869_s16 + $0x360] sm:$0xff]   ;;  %v14257_v13 = vld [vmem:[%s16869_s16 + $0x328] sm:$0xff]   ;;  %v14265_v54 = vld [vmem:[%s16869_s16 + $0x338] sm:$0xff]  }
0x133e   : > { %v16335_v53 = vpop.f32.mrb[121].mxu0  ;;  %v16337_v4 = vpop.f32.mrb[149].mxu1  ;;  %12553 = vmatprep.subr.bf16.mxu0 %v14235_v34  ;;  %12581 = vmatprep.subr.bf16.mxu1 %v14236_v42  ;;  %v14254_v34 = vld [vmem:[%s16869_s16 + $0x3a0] sm:$0xff]   ;;  %v14258_v44 = vld [vmem:[%s16869_s16 + $0x3a8] sm:$0xff]   ;;  %v14266_v9 = vld [vmem:[%s16869_s16 + $0x3b8] sm:$0xff]  }
0x133f   : > { %v16347_v24 = vpop.f32.mrb[122].mxu0  ;;  %v16349_v60 = vpop.f32.mrb[150].mxu1  ;;  %v7571_v42 = vcombine.high %v7555_v25, %v7555_v25  ;;  %v7659_v20 = vpack.i.b16 %v7555_v25, %v7555_v25 }
0x1340   : > { %v7468_v39 = vpack.c.bf16 %v16347_v24, %v16329_v14  ;;  %v7470_v18 = vpack.c.bf16 %v16349_v60, %v16331_v56  ;;  %9010 = vmatmul.mubr.bf16.vlgmr.msra.gmra.mrb[140].mxu0 %v7726_v57  ;;  %9059 = vmatmul.mubr.bf16.vlgmr.msra.gmra.mrb[168].mxu1 %v7728_v49  ;;  %v16359_v52 = vpop.f32.mrb[123].mxu0  ;;  %v16361_v30 = vpop.f32.mrb[151].mxu1  ;;  %v14259_v57 = vld [vmem:[%s16869_s16 + $0x370] sm:$0xff]  }
0x1341   : > { %v7469_v43 = vpack.c.bf16 %v16359_v52, %v16335_v53  ;;  %v7471_v36 = vpack.c.bf16 %v16361_v30, %v16337_v4  ;;  %9017 = vmatprep.mubr.bf16.mxu0 %v7743_v6  ;;  %9066 = vmatprep.mubr.bf16.mxu1 %v7745_v58  ;;  %v7673_v37 = vpack.i.b16 %v7571_v42, %v7571_v42  ;;  %v14260_v49 = vld [vmem:[%s16869_s16 + $0x3f0] sm:$0xff]   ;;  %v11715_v52 = vld [vmem:[%s16871_s2] ss:$0 sm:$0xff]  ;;  %s16872_s2 = sld [smem:[#allocation22_spill]] }
0x1342   : > { %12554 = vmatpush3.bf16.msra.mxu0 %v14237_v7  ;;  %12582 = vmatpush3.bf16.msra.mxu1 %v14238_v17  ;;  %v14261_v7 = vld [vmem:[%s16869_s16 + $0x330] sm:$0xff]   ;;  %v7664_v6 = vrot.slane %v7659_v20, %v15260_v3 }
0x1343   : > { %12555 = vmatprep.subr.bf16.mxu0 %v14239_v38  ;;  %12583 = vmatprep.subr.bf16.mxu1 %v14240_v51  ;;  %v14262_v17 = vld [vmem:[%s16869_s16 + $0x3b0] sm:$0xff]   ;;  %v7678_v58 = vrot.slane %v7673_v37, %v15260_v3  ;;  %v14263_v38 = vld [vmem:[%s16869_s16 + $0x378] sm:$0xff]   ;;  %v7715_v3 = vadd.bf16 %v16342_v41, %v7469_v43  ;;  %v7717_v5 = vadd.bf16 %v16345_v0, %v7471_v36 }
0x1344   : > { %v14264_v51 = vld [vmem:[%s16869_s16 + $0x3f8] sm:$0xff]  }
0x1345   : > { %v7747_v1 = vmax.bf16 %v16834_v33, %v7715_v3  ;;  %v7749_v15 = vmax.bf16 %v16834_v33, %v7717_v5 }
0x1346   : > { %12556 = vmatpush3.bf16.msra.mxu0 %v14241_v46  ;;  %12584 = vmatpush3.bf16.msra.mxu1 %v14242_v35  ;;  %v7698_v46 = vadd.bf16 %v7664_v6, %v7452_v63  ;;  %v7700_v35 = vadd.bf16 %v7678_v58, %v7454_v2  ;;  %v7714_v63 = vadd.bf16 %v7664_v6, %v7468_v39 }
0x1347   : > { %12557 = vmatprep.subr.bf16.mxu0 %v14243_v21  ;;  %12585 = vmatprep.subr.bf16.mxu1 %v14244_v40  ;;  %v7716_v2 = vadd.bf16 %v7678_v58, %v7470_v18 }
0x1348   : > { %9018 = vmatmul.mubr.bf16.gmra.mrb[144].mxu0 %v7742_v45  ;;  %9067 = vmatmul.mubr.bf16.gmra.mrb[172].mxu1 %v7744_v50  ;;  %v7730_v16 = vmax.bf16 %v16834_v33, %v7698_v46  ;;  %v7732_v59 = vmax.bf16 %v16834_v33, %v7700_v35  ;;  %v7746_v53 = vmax.bf16 %v16834_v33, %v7714_v63 }
0x1349   : > { %9107 = vmatprep.mubr.bf16.mxu0 %v7731_v27  ;;  %9156 = vmatprep.mubr.bf16.mxu1 %v7733_v19  ;;  %v7748_v4 = vmax.bf16 %v16834_v33, %v7716_v2 }
0x134a   : > { %12558 = vmatpush3.bf16.msra.mxu0 %v14245_v62  ;;  %12586 = vmatpush3.bf16.msra.mxu1 %v14246_v48 }
0x134b   : > { %12559 = vmatprep.subr.bf16.mxu0 %v14247_v23  ;;  %12587 = vmatprep.subr.bf16.mxu1 %v14248_v55 }
0x134e   : > { %12560 = vmatpush3.bf16.msra.mxu0 %v14249_v12  ;;  %12588 = vmatpush3.bf16.msra.mxu1 %v14250_v31 }
0x134f   : > { %12561 = vmatprep.subr.bf16.mxu0 %v14251_v26  ;;  %12589 = vmatprep.subr.bf16.mxu1 %v14252_v8 }
0x1352   : > { %12562 = vmatpush3.bf16.msra.mxu0 %v14253_v10  ;;  %12590 = vmatpush3.bf16.msra.mxu1 %v14254_v34 }
0x1353   : > { %12563 = vmatprep.subr.bf16.mxu0 %v14255_v47  ;;  %12591 = vmatprep.subr.bf16.mxu1 %v14256_v22 }
0x1356   : > { %12564 = vmatpush3.bf16.msra.mxu0 %v14257_v13  ;;  %12592 = vmatpush3.bf16.msra.mxu1 %v14258_v44 }
0x1357   : > { %12565 = vmatprep.subr.bf16.mxu0 %v14259_v57  ;;  %12593 = vmatprep.subr.bf16.mxu1 %v14260_v49 }
0x135a   : > { %12566 = vmatpush3.bf16.msra.mxu0 %v14261_v7  ;;  %12594 = vmatpush3.bf16.msra.mxu1 %v14262_v17 }
0x135b   : > { %12567 = vmatprep.subr.bf16.mxu0 %v14263_v38  ;;  %12595 = vmatprep.subr.bf16.mxu1 %v14264_v51 }
0x135e   : > { %12568 = vmatpush3.bf16.msra.mxu0 %v14265_v54  ;;  %12596 = vmatpush3.bf16.msra.mxu1 %v14266_v9 }
0x1361   : > { %9108 = vmatmul.mubr.bf16.vlgmr.msra.gmra.mrb[148].mxu0 %v7730_v16  ;;  %9157 = vmatmul.mubr.bf16.vlgmr.msra.gmra.mrb[176].mxu1 %v7732_v59 }
0x1362   : > { %9115 = vmatprep.mubr.bf16.mxu0 %v7747_v1  ;;  %9164 = vmatprep.mubr.bf16.mxu1 %v7749_v15 }
0x1369   : > { %9116 = vmatmul.mubr.bf16.gmra.mrb[152].mxu0 %v7746_v53  ;;  %9165 = vmatmul.mubr.bf16.gmra.mrb[180].mxu1 %v7748_v4 }
0x13c0   : > { %v12401_v41 = vpop.f32.mrb[124].mxu0  ;;  %v12429_v0 = vpop.f32.mrb[152].mxu1 }
0x13c1   : > { %v12402_v30 = vpop.f32.mrb[125].mxu0  ;;  %v12430_v43 = vpop.f32.mrb[153].mxu1 }
0x13c2   : > { %v12403_v36 = vadd.f32 %v12402_v30, %v12401_v41  ;;  %v12431_v29 = vadd.f32 %v12430_v43, %v12429_v0  ;;  %v12404_v21 = vpop.f32.mrb[126].mxu0  ;;  %v12432_v14 = vpop.f32.mrb[154].mxu1 }
0x13c3   : > { %v12405_v24 = vpop.f32.mrb[127].mxu0  ;;  %v12433_v39 = vpop.f32.mrb[155].mxu1 }
0x13c4   : > { %v8816_v40 = vadd.f32 %v12403_v36, %v11715_v52  ;;  %v12406_v56 = vadd.f32 %v12405_v24, %v12404_v21  ;;  %v12434_v60 = vadd.f32 %v12433_v39, %v12432_v14 }
0x13c6   : > { %v8865_v18 = vadd.f32 %v12431_v29, %v8816_v40  ;;  %v8819_v45 = vadd.f32 %v12406_v56, %v11715_v52 }
0x13c8   : > { %v8868_v50 = vadd.f32 %v12434_v60, %v8819_v45 }
0x13eb   : > { %v12407_v33 = vpop.f32.mrb[128].mxu0  ;;  %v12435_v62 = vpop.f32.mrb[156].mxu1 }
0x13ec   : > { %v12408_v48 = vpop.f32.mrb[129].mxu0  ;;  %v12436_v27 = vpop.f32.mrb[157].mxu1 }
0x13ed   : > { %v12409_v19 = vadd.f32 %v12408_v48, %v12407_v33  ;;  %v12437_v23 = vadd.f32 %v12436_v27, %v12435_v62  ;;  %v12410_v55 = vpop.f32.mrb[130].mxu0  ;;  %v12438_v12 = vpop.f32.mrb[158].mxu1 }
0x13ee   : > { %v12411_v31 = vpop.f32.mrb[131].mxu0  ;;  %v12439_v25 = vpop.f32.mrb[159].mxu1 }
0x13ef   : > { %v8824_v26 = vadd.f32 %v12409_v19, %v11715_v52  ;;  %v12412_v8 = vadd.f32 %v12411_v31, %v12410_v55  ;;  %v12440_v10 = vadd.f32 %v12439_v25, %v12438_v12 }
0x13f1   : > { %v8873_v34 = vadd.f32 %v12437_v23, %v8824_v26  ;;  %v8827_v42 = vadd.f32 %v12412_v8, %v11715_v52 }
0x13f3   : > { %v8876_v47 = vadd.f32 %v12440_v10, %v8827_v42  ;;  %v12457_v22 = vpop.f32.mrb[132].mxu0  ;;  %v12485_v13 = vpop.f32.mrb[160].mxu1 }
0x13f4   : > { %v12458_v44 = vpop.f32.mrb[133].mxu0  ;;  %v12486_v20 = vpop.f32.mrb[161].mxu1 }
0x13f5   : > { %v12459_v37 = vadd.f32 %v12458_v44, %v12457_v22  ;;  %v12487_v57 = vadd.f32 %v12486_v20, %v12485_v13  ;;  %v12460_v49 = vpop.f32.mrb[134].mxu0  ;;  %v12488_v7 = vpop.f32.mrb[162].mxu1 }
0x13f6   : > { %v12461_v17 = vpop.f32.mrb[135].mxu0  ;;  %v12489_v6 = vpop.f32.mrb[163].mxu1 }
0x13f7   : > { %v8914_v58 = vadd.f32 %v12459_v37, %v8865_v18  ;;  %v12462_v38 = vadd.f32 %v12461_v17, %v12460_v49  ;;  %v12490_v51 = vadd.f32 %v12489_v6, %v12488_v7 }
0x13f9   : > { %v8963_v54 = vadd.f32 %v12487_v57, %v8914_v58  ;;  %v8917_v9 = vadd.f32 %v12462_v38, %v8868_v50 }
0x13fb   : > { %v8966_v46 = vadd.f32 %v12490_v51, %v8917_v9  ;;  %v12463_v35 = vpop.f32.mrb[136].mxu0  ;;  %v12491_v3 = vpop.f32.mrb[164].mxu1 }
0x13fc   : > { %v12464_v5 = vpop.f32.mrb[137].mxu0  ;;  %v12492_v16 = vpop.f32.mrb[165].mxu1 }
0x13fd   : > { %v12465_v59 = vadd.f32 %v12464_v5, %v12463_v35  ;;  %v12493_v1 = vadd.f32 %v12492_v16, %v12491_v3  ;;  %v12466_v15 = vpop.f32.mrb[138].mxu0  ;;  %v12494_v63 = vpop.f32.mrb[166].mxu1 }
0x13fe   : > { %v12467_v2 = vpop.f32.mrb[139].mxu0  ;;  %v12495_v53 = vpop.f32.mrb[167].mxu1 }
0x13ff   : > { %v8922_v4 = vadd.f32 %v12465_v59, %v8873_v34  ;;  %v12468_v41 = vadd.f32 %v12467_v2, %v12466_v15  ;;  %v12496_v0 = vadd.f32 %v12495_v53, %v12494_v63 }
0x1401   : > { %v8971_v52 = vadd.f32 %v12493_v1, %v8922_v4  ;;  %v8925_v30 = vadd.f32 %v12468_v41, %v8876_v47 }
0x1403   : > { %v8974_v43 = vadd.f32 %v12496_v0, %v8925_v30 }
0x1413   : > { %v12513_v36 = vpop.f32.mrb[140].mxu0  ;;  %v12541_v29 = vpop.f32.mrb[168].mxu1 }
0x1414   : > { %v12514_v21 = vpop.f32.mrb[141].mxu0  ;;  %v12542_v14 = vpop.f32.mrb[169].mxu1 }
0x1415   : > { %v12515_v24 = vadd.f32 %v12514_v21, %v12513_v36  ;;  %v12543_v39 = vadd.f32 %v12542_v14, %v12541_v29  ;;  %v12516_v40 = vpop.f32.mrb[142].mxu0  ;;  %v12544_v56 = vpop.f32.mrb[170].mxu1 }
0x1416   : > { %v12517_v60 = vpop.f32.mrb[143].mxu0  ;;  %v12545_v18 = vpop.f32.mrb[171].mxu1 }
0x1417   : > { %v9012_v45 = vadd.f32 %v12515_v24, %v8963_v54  ;;  %v12518_v50 = vadd.f32 %v12517_v60, %v12516_v40  ;;  %v12546_v33 = vadd.f32 %v12545_v18, %v12544_v56 }
0x1419   : > { %v9061_v62 = vadd.f32 %v12543_v39, %v9012_v45  ;;  %v9015_v48 = vadd.f32 %v12518_v50, %v8966_v46 }
0x141b   : > { %v9064_v27 = vadd.f32 %v12546_v33, %v9015_v48  ;;  %v12519_v19 = vpop.f32.mrb[144].mxu0  ;;  %v12547_v23 = vpop.f32.mrb[172].mxu1 }
0x141c   : > { %v12520_v55 = vpop.f32.mrb[145].mxu0  ;;  %v12548_v12 = vpop.f32.mrb[173].mxu1 }
0x141d   : > { %v12521_v31 = vadd.f32 %v12520_v55, %v12519_v19  ;;  %v12549_v25 = vadd.f32 %v12548_v12, %v12547_v23  ;;  %v12522_v26 = vpop.f32.mrb[146].mxu0  ;;  %v12550_v8 = vpop.f32.mrb[174].mxu1 }
0x141e   : > { %v12523_v10 = vpop.f32.mrb[147].mxu0  ;;  %v12551_v34 = vpop.f32.mrb[175].mxu1 }
0x141f   : > { %v9020_v42 = vadd.f32 %v12521_v31, %v8971_v52  ;;  %v12524_v47 = vadd.f32 %v12523_v10, %v12522_v26  ;;  %v12552_v22 = vadd.f32 %v12551_v34, %v12550_v8 }
0x1421   : > { %v9069_v13 = vadd.f32 %v12549_v25, %v9020_v42  ;;  %v9023_v44 = vadd.f32 %v12524_v47, %v8974_v43 }
0x1423   : > { %v9072_v20 = vadd.f32 %v12552_v22, %v9023_v44  ;;  %v9252_v22 = vld [vmem:[%s16817_s6] sm:$0xff] }
0x1434   : > { %v12569_v37 = vpop.f32.mrb[148].mxu0  ;;  %v12597_v57 = vpop.f32.mrb[176].mxu1 }
0x1435   : > { %v12570_v49 = vpop.f32.mrb[149].mxu0  ;;  %v12598_v7 = vpop.f32.mrb[177].mxu1 }
0x1436   : > { %v12571_v17 = vadd.f32 %v12570_v49, %v12569_v37  ;;  %v12599_v6 = vadd.f32 %v12598_v7, %v12597_v57  ;;  %v12572_v58 = vpop.f32.mrb[150].mxu0  ;;  %v12600_v38 = vpop.f32.mrb[178].mxu1  ;;  %v9254_v37 = vld [vmem:[%s16817_s6 + $0x10] sm:$0xff]  ;;  %v9255_v57 = vld [vmem:[%s16817_s6 + $0x18] sm:$0xff]  ;;  %v14536_v7 = vmov 0.0  }
0x1437   : > { %v12573_v51 = vpop.f32.mrb[151].mxu0  ;;  %v12601_v54 = vpop.f32.mrb[179].mxu1  ;;  %v13535_v49 = vpack.c.bf16 %v9255_v57, %v9254_v37  ;;  %13068 = vmatprep.mubr.msk.f32.mxu0 %vm14535_vm10, %v14536_v7 }
0x1438   : > { %v9110_v9 = vadd.f32 %v12571_v17, %v9061_v62  ;;  %v12574_v46 = vadd.f32 %v12573_v51, %v12572_v58  ;;  %v12602_v35 = vadd.f32 %v12601_v54, %v12600_v38 }
0x143a   : > { %v9159_v3 = vadd.f32 %v12599_v6, %v9110_v9  ;;  %v9113_v5 = vadd.f32 %v12574_v46, %v9064_v27 }
0x143c   : > { %v9162_v16 = vadd.f32 %v12602_v35, %v9113_v5  ;;  %v12575_v59 = vpop.f32.mrb[152].mxu0  ;;  %v12603_v1 = vpop.f32.mrb[180].mxu1  ;;  %v9173_v15 = vadd.f32 %v9159_v3, %v16014_v28 }
0x143d   : > { %v12576_v63 = vpop.f32.mrb[153].mxu0  ;;  %v12604_v2 = vpop.f32.mrb[181].mxu1 }
0x143e   : > { %v12577_v53 = vadd.f32 %v12576_v63, %v12575_v59  ;;  %v12605_v4 = vadd.f32 %v12604_v2, %v12603_v1  ;;  %v12578_v41 = vpop.f32.mrb[154].mxu0  ;;  %v12606_v0 = vpop.f32.mrb[182].mxu1  ;;  %v9179_v52 = vsel %vm1023_vm1, %v9173_v15, 0.0  ;;  %v9174_v30 = vadd.f32 %v9162_v16, %v16016_v32  ;;  %v11844_v59 = vld [vmem:[%s16872_s2] ss:$0 sm:$0xff]  ;;  %v11848_v2 = vld [vmem:[%s16817_s6 + $0x28] sm:$0xff] }
0x143f   : > { %v12607_v43 = vpop.f32.mrb[183].mxu1  ;;  %9180 = vadd.xlane.f32.xlu1 %v9179_v52  ;;  %v12579_v36 = vpop.f32.mrb[155].mxu0  ;;  %v11847_v63 = vld [vmem:[%s16817_s6 + $0x20] sm:$0xff]  ;;  %s893_s2 = sand.u32 1, %s14481_s10  }
0x1440   : > { %v9118_v29 = vadd.f32 %v12577_v53, %v9069_v13  ;;  %v12608_v21 = vadd.f32 %v12607_v43, %v12606_v0  ;;  %v12580_v14 = vadd.f32 %v12579_v36, %v12578_v41  ;;  %v9182_v24 = vsel %vm1023_vm1, %v9174_v30, 0.0  ;;  %v9253_v13 = vld [vmem:[%s16817_s6 + $0x8] sm:$0xff]  ;;  %v11845_v53 = vld [vmem:[%s16873_s12] ss:$0 sm:$0xff]  ;;  %v11849_v43 = vld [vmem:[%s16817_s6 + $0x30] sm:$0xff]  ;;  %s894_s5 = scalar_lea.vmem [#allocation2], %s893_s2 }
0x1441   : > { %9183 = vadd.xlane.f32.xlu0 %v9182_v24  ;;  %v13532_v44 = vpack.c.bf16 %v9253_v13, %v9252_v22  ;;  %v13538_v0 = vpack.c.bf16 %v11848_v2, %v11847_v63  ;;  %v11850_v36 = vld [vmem:[%s16817_s6 + $0x38] sm:$0xff]  ;;  %v11867_v13 = vld [vmem:[%s16817_s6 + $0xa0] sm:$0xff]  ;;  %s11229_s9 = scalar_lea.sflag [#allocation3], %s893_s2 }
0x1442   : > { %v9167_v28 = vadd.f32 %v12605_v4, %v9118_v29  ;;  %v9121_v39 = vadd.f32 %v12580_v14, %v9072_v20  ;;  %v14534_v20 = vmov 0.0|0.0   ;;  %v13541_v14 = vpack.c.bf16 %v11850_v36, %v11849_v43  ;;  %v11882_v2 = vld [vmem:[%s16817_s6 + $0x100] sm:$0xff] }
0x1443   : > { %13531 = vmatprep.subr.bf16.mxu0 %v14534_v20  ;;  %v11887_v36 = vld [vmem:[%s16817_s6 + $0x120] sm:$0xff] }
0x1444   : > { %v9170_v40 = vadd.f32 %v12608_v21, %v9121_v39  ;;  %v9175_v56 = vadd.f32 %v9167_v28, %v16039_v11  ;;  %13533 = vmatpush3.bf16.msra.mxu0 %v13532_v44  ;;  %v11852_v39 = vld [vmem:[%s16817_s6 + $0x40] sm:$0xff]  ;;  %v11868_v44 = vld [vmem:[%s16817_s6 + $0xa8] sm:$0xff] }
0x1445   : > { %13534 = vmatprep.subr.bf16.mxu0 %v14534_v20  ;;  %v13562_v37 = vpack.c.bf16 %v11868_v44, %v11867_v13  ;;  %v11909_v13 = vld [vmem:[%s16817_s6 + $0x1b0] sm:$0xff]  ;;  %v11910_v44 = vld [vmem:[%s16817_s6 + $0x1b8] sm:$0xff] }
0x1446   : > { %v9185_v60 = vsel %vm1023_vm1, %v9175_v56, 0.0  ;;  %v9176_v18 = vadd.f32 %v9170_v40, %v16037_v61  ;;  %v11853_v40 = vld [vmem:[%s16817_s6 + $0x48] sm:$0xff] }
0x1447   : > { %9186 = vadd.xlane.f32.xlu0 %v9185_v60 }
0x1448   : > { %v9188_v32 = vsel %vm2635_vm9, %v9176_v18, 0.0  ;;  %13536 = vmatpush3.bf16.msra.mxu0 %v13535_v49  ;;  %v11869_v49 = vld [vmem:[%s16817_s6 + $0xb0] sm:$0xff] }
0x1449   : > { %13537 = vmatprep.subr.bf16.mxu0 %v14534_v20 }
0x144b   : > { %9189 = vadd.xlane.f32.xlu0 %v9188_v32 }
0x14cc   : > { %v9181_v45 = vpop.xlane.xlu1 %9180 }
0x14cd   : > { %v9191_v50 = vmul.f32 0.03125, %v9181_v45 }
0x14ce   : > { %v9184_v33 = vpop.xlane.xlu0 %9183 }
0x14cf   : > { %v9195_v62 = vsub.f32 %v9173_v15, %v9191_v50  ;;  %v9192_v48 = vmul.f32 0.03125, %v9184_v33  ;;  %v11854_v33 = vld [vmem:[%s16817_s6 + $0x50] sm:$0xff] }
0x14d1   : > { %v9196_v27 = vsub.f32 %v9174_v30, %v9192_v48  ;;  %v9199_v19 = vmul.f32 %v9195_v62, %v9195_v62 }
0x14d3   : > { %v9203_v23 = vsel %vm1023_vm1, %v9199_v19, 0.0  ;;  %v9200_v55 = vmul.f32 %v9196_v27, %v9196_v27  ;;  %v11857_v19 = vld [vmem:[%s16817_s6 + $0x60] sm:$0xff] }
0x14d4   : > { %9204 = vadd.xlane.f32.xlu1 %v9203_v23  ;;  %v9187_v11 = vpop.xlane.xlu0 %9186  ;;  %v11858_v23 = vld [vmem:[%s16817_s6 + $0x68] sm:$0xff] }
0x14d5   : > { %v9193_v12 = vmul.f32 0.03125, %v9187_v11  ;;  %v9206_v31 = vsel %vm1023_vm1, %v9200_v55, 0.0  ;;  %v13550_v11 = vpack.c.bf16 %v11858_v23, %v11857_v19  ;;  %v11899_v19 = vld [vmem:[%s16817_s6 + $0x170] sm:$0xff]  ;;  %v11900_v23 = vld [vmem:[%s16817_s6 + $0x178] sm:$0xff] }
0x14d7   : > { %v16445_v61 = vsub.f32 %v9175_v56, %v9193_v12 }
0x14d8   : > { %9207 = vadd.xlane.f32.xlu1 %v9206_v31  ;;  %v9190_v25 = vpop.xlane.xlu0 %9189  ;;  %v11860_v31 = vld [vmem:[%s16817_s6 + $0x78] sm:$0xff] }
0x14d9   : > { %v9194_v26 = vmul.f32 0.03125, %v9190_v25  ;;  %v9201_v8 = vmul.f32 %v16445_v61, %v16445_v61 }
0x14db   : > { %v16450_v10 = vsub.f32 %v9176_v18, %v9194_v26  ;;  %v9209_v34 = vsel %vm1023_vm1, %v9201_v8, 0.0  ;;  %v13544_v18 = vpack.c.bf16 %v11853_v40, %v11852_v39  ;;  %v11862_v26 = vld [vmem:[%s16817_s6 + $0x80] sm:$0xff]  ;;  %v11863_v8 = vld [vmem:[%s16817_s6 + $0x88] sm:$0xff] }
0x14dc   : > { %9210 = vadd.xlane.f32.xlu1 %v9209_v34  ;;  %v11892_v39 = vld [vmem:[%s16817_s6 + $0x140] sm:$0xff]  ;;  %v11893_v40 = vld [vmem:[%s16817_s6 + $0x148] sm:$0xff] }
0x14dd   : > { %v9202_v42 = vmul.f32 %v16450_v10, %v16450_v10 }
0x14df   : > { %v9212_v47 = vsel %vm2635_vm9, %v9202_v42, 0.0  ;;  %v11864_v42 = vld [vmem:[%s16817_s6 + $0x90] sm:$0xff] }
0x14e0   : > { %9213 = vadd.xlane.f32.xlu0 %v9212_v47  ;;  %v11865_v47 = vld [vmem:[%s16817_s6 + $0x98] sm:$0xff] }
0x14e1   : > { %v13559_v22 = vpack.c.bf16 %v11865_v47, %v11864_v42  ;;  %v11908_v42 = vld [vmem:[%s16817_s6 + $0x1a8] sm:$0xff] }
0x1561   : > { %v9205_v17 = vpop.xlane.xlu1 %9204 }
0x1562   : > { %v9215_v6 = vmul.f32 0.03125, %v9205_v17  ;;  %v11870_v17 = vld [vmem:[%s16817_s6 + $0xb8] sm:$0xff] }
0x1564   : > { %v9219_v58 = vadd.f32 1e-05, %v9215_v6  ;;  %v13565_v6 = vpack.c.bf16 %v11870_v17, %v11869_v49  ;;  %v11913_v49 = vld [vmem:[%s16817_s6 + $0x1c8] sm:$0xff] }
0x1565   : > { %v9208_v38 = vpop.xlane.xlu1 %9207 }
0x1566   : > { %14419 = vrsqrt.f32 %v9219_v58  ;;  %v9216_v51 = vmul.f32 0.03125, %v9208_v38  ;;  %v11872_v58 = vld [vmem:[%s16817_s6 + $0xc0] sm:$0xff]  ;;  %v11873_v38 = vld [vmem:[%s16817_s6 + $0xc8] sm:$0xff] }
0x1568   : > { %v9220_v54 = vadd.f32 1e-05, %v9216_v51  ;;  %v13568_v51 = vpack.c.bf16 %v11873_v38, %v11872_v58  ;;  %v11914_v58 = vld [vmem:[%s16817_s6 + $0x1d0] sm:$0xff]  ;;  %v11915_v38 = vld [vmem:[%s16817_s6 + $0x1d8] sm:$0xff] }
0x1569   : > { %v9211_v9 = vpop.xlane.xlu1 %9210 }
0x156a   : > { %14421 = vrsqrt.f32 %v9220_v54  ;;  %v9217_v46 = vmul.f32 0.03125, %v9211_v9  ;;  %v11874_v9 = vld [vmem:[%s16817_s6 + $0xd0] sm:$0xff] }
0x156c   : > { %v9221_v35 = vadd.f32 1e-05, %v9217_v46  ;;  %v11875_v46 = vld [vmem:[%s16817_s6 + $0xd8] sm:$0xff] }
0x156d   : > { %v9214_v3 = vpop.xlane.xlu0 %9213 }
0x156e   : > { %14423 = vrsqrt.f32 %v9221_v35  ;;  %v9218_v5 = vmul.f32 0.03125, %v9214_v3  ;;  %v13571_v35 = vpack.c.bf16 %v11875_v46, %v11874_v9  ;;  %v11877_v3 = vld [vmem:[%s16817_s6 + $0xe0] sm:$0xff]  ;;  %v11918_v9 = vld [vmem:[%s16817_s6 + $0x1e8] sm:$0xff] }
0x1570   : > { %v14420_v16 = vpop.eup %14419  ;;  %v9222_v1 = vadd.f32 1e-05, %v9218_v5  ;;  %v11878_v5 = vld [vmem:[%s16817_s6 + $0xe8] sm:$0xff] }
0x1571   : > { %v9227_v15 = vmul.f32 %v14420_v16, %v9195_v62  ;;  %v11855_v62 = vld [vmem:[%s16817_s6 + $0x58] sm:$0xff]  ;;  %v13574_v16 = vpack.c.bf16 %v11878_v5, %v11877_v3  ;;  %v11919_v3 = vld [vmem:[%s16817_s6 + $0x1f0] sm:$0xff] }
0x1572   : > { %14425 = vrsqrt.f32 %v9222_v1  ;;  %v11879_v1 = vld [vmem:[%s16817_s6 + $0xf0] sm:$0xff]  ;;  %v11920_v5 = vld [vmem:[%s16817_s6 + $0x1f8] sm:$0xff] }
0x1573   : > { %v9237_v4 = vmul.f32 %v11844_v59, %v9227_v15  ;;  %v11880_v15 = vld [vmem:[%s16817_s6 + $0xf8] sm:$0xff] }
0x1574   : > { %v14422_v41 = vpop.eup %14421  ;;  %v13577_v63 = vpack.c.bf16 %v11880_v15, %v11879_v1  ;;  %v11923_v1 = vld [vmem:[%s16817_s6 + $0x208] sm:$0xff] }
0x1575   : > { %v16469_v52 = vadd.f32 %v11845_v53, %v9237_v4  ;;  %v9228_v30 = vmul.f32 %v14422_v41, %v9196_v27  ;;  %v13547_v27 = vpack.c.bf16 %v11855_v62, %v11854_v33  ;;  %v11897_v33 = vld [vmem:[%s16817_s6 + $0x160] sm:$0xff]  ;;  %v11898_v62 = vld [vmem:[%s16817_s6 + $0x168] sm:$0xff] }
0x1577   : > { %v9238_v29 = vmul.f32 %v11844_v59, %v9228_v30  ;;  %13069 = vmatmul.mubr.msk.f32.vlgmr.msra.gmra.mrb[156].mxu0 %vm1023_vm1, %v16469_v52  ;;  %v9335_v50 = vrot.slane %v16469_v52, 1  ;;  %v9414_v12 = vrot.slane %v16469_v52, 2  ;;  %v9493_v34 = vrot.slane %v16469_v52, 3  ;;  %v11885_v30 = vld [vmem:[%s16817_s6 + $0x118] sm:$0xff] }
0x1578   : > { %v14424_v21 = vpop.eup %14423  ;;  %13539 = vmatpush3.bf16.msra.mxu0 %v13538_v0  ;;  %13079 = vmatprep.mubr.msk.f32.mxu0 %vm14535_vm10, %v14536_v7  ;;  %v9572_v57 = vrot.slane %v16469_v52, 4  ;;  %v9651_v54 = vrot.slane %v16469_v52, 5  ;;  %v9809_v41 = vrot.slane %v16469_v52, 7  ;;  %v11884_v0 = vld [vmem:[%s16817_s6 + $0x110] sm:$0xff] }
0x1579   : > { %v16477_v24 = vadd.f32 %v11845_v53, %v9238_v29  ;;  %v9229_v28 = vmul.f32 %v14424_v21, %v16445_v61  ;;  %13540 = vmatprep.subr.bf16.mxu0 %v14534_v20  ;;  %v11859_v61 = vld [vmem:[%s16817_s6 + $0x70] sm:$0xff]  ;;  %v13583_v43 = vpack.c.bf16 %v11885_v30, %v11884_v0  ;;  %v11888_v29 = vld [vmem:[%s16817_s6 + $0x128] sm:$0xff] }
0x157a   : > { %v13553_v25 = vpack.c.bf16 %v11860_v31, %v11859_v61  ;;  %v13586_v21 = vpack.c.bf16 %v11888_v29, %v11887_v36  ;;  %v11903_v61 = vld [vmem:[%s16817_s6 + $0x188] sm:$0xff]  ;;  %v11932_v29 = vld [vmem:[%s16817_s6 + $0x240] sm:$0xff] }
0x157b   : > { %v9239_v56 = vmul.f32 %v11844_v59, %v9229_v28  ;;  %v11928_v0 = vld [vmem:[%s16817_s6 + $0x228] sm:$0xff] }
0x157c   : > { %v14426_v60 = vpop.eup %14425  ;;  %13542 = vmatpush3.bf16.msra.mxu0 %v13541_v14  ;;  %v11890_v14 = vld [vmem:[%s16817_s6 + $0x138] sm:$0xff] }
0x157d   : > { %v16483_v32 = vadd.f32 %v11845_v53, %v9239_v56  ;;  %v9230_v45 = vmul.f32 %v14426_v60, %v16450_v10  ;;  %13543 = vmatprep.subr.bf16.mxu0 %v14534_v20  ;;  %v13556_v10 = vpack.c.bf16 %v11863_v8, %v11862_v26  ;;  %v13592_v56 = vpack.c.bf16 %v11893_v40, %v11892_v39  ;;  %v11904_v26 = vld [vmem:[%s16817_s6 + $0x190] sm:$0xff]  ;;  %v11905_v8 = vld [vmem:[%s16817_s6 + $0x198] sm:$0xff] }
0x157e   : > { %v9967_v60 = vrot.slane %v16477_v24, 1  ;;  %v11935_v39 = vld [vmem:[%s16817_s6 + $0x258] sm:$0xff] }
0x157f   : > { %v9240_v48 = vmul.f32 %v11844_v59, %v9230_v45  ;;  %13080 = vmatmul.mubr.msk.f32.vlgmr.msra.gmra.mrb[156].mxu0 %vm1023_vm1, %v9335_v50  ;;  %v9730_v59 = vrot.slane %v16469_v52, 6  ;;  %v11889_v52 = vld [vmem:[%s16817_s6 + $0x130] sm:$0xff]  ;;  %v11895_v45 = vld [vmem:[%s16817_s6 + $0x158] sm:$0xff] }
0x1580   : > { %13545 = vmatpush3.bf16.msra.mxu0 %v13544_v18  ;;  %13090 = vmatprep.mubr.msk.f32.mxu0 %vm14535_vm10, %v14536_v7  ;;  %v13589_v28 = vpack.c.bf16 %v11890_v14, %v11889_v52  ;;  %v11894_v18 = vld [vmem:[%s16817_s6 + $0x150] sm:$0xff]  ;;  %v10599_v14 = vrot.slane %v16483_v32, 1 }
0x1581   : > { %13546 = vmatprep.subr.bf16.mxu0 %v14534_v20  ;;  %v16496_v55 = vadd.f32 %v11845_v53, %v9240_v48  ;;  %v11883_v53 = vld [vmem:[%s16817_s6 + $0x108] sm:$0xff]  ;;  %v13595_v50 = vpack.c.bf16 %v11895_v45, %v11894_v18  ;;  %v13598_v48 = vpack.c.bf16 %v11898_v62, %v11897_v33  ;;  %v10678_v45 = vrot.slane %v16483_v32, 2  ;;  %v11940_v33 = vld [vmem:[%s16817_s6 + $0x278] sm:$0xff] }
0x1582   : > { %v13580_v4 = vpack.c.bf16 %v11883_v53, %v11882_v2  ;;  %v11924_v2 = vld [vmem:[%s16817_s6 + $0x210] sm:$0xff]  ;;  %v11925_v53 = vld [vmem:[%s16817_s6 + $0x218] sm:$0xff] }
0x1584   : > { %13548 = vmatpush3.bf16.msra.mxu0 %v13547_v27  ;;  %v10046_v27 = vrot.slane %v16477_v24, 2 }
0x1585   : > { %13549 = vmatprep.subr.bf16.mxu0 %v14534_v20 }
0x1587   : > { %13091 = vmatmul.mubr.msk.f32.vlgmr.msra.gmra.mrb[156].mxu0 %vm1023_vm1, %v9414_v12  ;;  %v11902_v12 = vld [vmem:[%s16817_s6 + $0x180] sm:$0xff] }
0x1588   : > { %13551 = vmatpush3.bf16.msra.mxu0 %v13550_v11  ;;  %13101 = vmatprep.mubr.msk.f32.mxu0 %vm14535_vm10, %v14536_v7  ;;  %v13601_v11 = vpack.c.bf16 %v11900_v23, %v11899_v19  ;;  %v13604_v31 = vpack.c.bf16 %v11903_v61, %v11902_v12  ;;  %v10757_v23 = vrot.slane %v16483_v32, 3  ;;  %v11945_v12 = vld [vmem:[%s16817_s6 + $0x298] sm:$0xff] }
0x1589   : > { %13552 = vmatprep.subr.bf16.mxu0 %v14534_v20 }
0x158c   : > { %13554 = vmatpush3.bf16.msra.mxu0 %v13553_v25  ;;  %v10125_v25 = vrot.slane %v16477_v24, 3 }
0x158d   : > { %13555 = vmatprep.subr.bf16.mxu0 %v14534_v20 }
0x158f   : > { %13102 = vmatmul.mubr.msk.f32.vlgmr.msra.gmra.mrb[156].mxu0 %vm1023_vm1, %v9493_v34  ;;  %v11907_v34 = vld [vmem:[%s16817_s6 + $0x1a0] sm:$0xff] }
0x1590   : > { %13557 = vmatpush3.bf16.msra.mxu0 %v13556_v10  ;;  %13112 = vmatprep.mubr.msk.f32.mxu0 %vm14535_vm10, %v14536_v7  ;;  %v13607_v10 = vpack.c.bf16 %v11905_v8, %v11904_v26  ;;  %v13610_v47 = vpack.c.bf16 %v11908_v42, %v11907_v34  ;;  %v10836_v8 = vrot.slane %v16483_v32, 4  ;;  %v11950_v34 = vld [vmem:[%s16817_s6 + $0x2b8] sm:$0xff] }
0x1591   : > { %13558 = vmatprep.subr.bf16.mxu0 %v14534_v20 }
0x1594   : > { %13560 = vmatpush3.bf16.msra.mxu0 %v13559_v22  ;;  %v10204_v22 = vrot.slane %v16477_v24, 4 }
0x1595   : > { %13561 = vmatprep.subr.bf16.mxu0 %v14534_v20 }
0x1597   : > { %13113 = vmatmul.mubr.msk.f32.vlgmr.msra.gmra.mrb[156].mxu0 %vm1023_vm1, %v9572_v57  ;;  %v11912_v57 = vld [vmem:[%s16817_s6 + $0x1c0] sm:$0xff] }
0x1598   : > { %13563 = vmatpush3.bf16.msra.mxu0 %v13562_v37  ;;  %13123 = vmatprep.mubr.msk.f32.mxu0 %vm14535_vm10, %v14536_v7  ;;  %v13613_v37 = vpack.c.bf16 %v11910_v44, %v11909_v13  ;;  %v13616_v17 = vpack.c.bf16 %v11913_v49, %v11912_v57  ;;  %v10915_v44 = vrot.slane %v16483_v32, 5  ;;  %v11955_v57 = vld [vmem:[%s16817_s6 + $0x2d8] sm:$0xff] }
0x1599   : > { %13564 = vmatprep.subr.bf16.mxu0 %v14534_v20 }
0x159c   : > { %13566 = vmatpush3.bf16.msra.mxu0 %v13565_v6  ;;  %v10283_v6 = vrot.slane %v16477_v24, 5 }
0x159d   : > { %13567 = vmatprep.subr.bf16.mxu0 %v14534_v20 }
0x159f   : > { %13124 = vmatmul.mubr.msk.f32.vlgmr.msra.gmra.mrb[156].mxu0 %vm1023_vm1, %v9651_v54  ;;  %v11917_v54 = vld [vmem:[%s16817_s6 + $0x1e0] sm:$0xff] }
0x15a0   : > { %13569 = vmatpush3.bf16.msra.mxu0 %v13568_v51  ;;  %13134 = vmatprep.mubr.msk.f32.mxu0 %vm14535_vm10, %v14536_v7  ;;  %v13619_v51 = vpack.c.bf16 %v11915_v38, %v11914_v58  ;;  %v13622_v46 = vpack.c.bf16 %v11918_v9, %v11917_v54  ;;  %v10994_v38 = vrot.slane %v16483_v32, 6  ;;  %v11960_v54 = vld [vmem:[%s16817_s6 + $0x2f8] sm:$0xff] }
0x15a1   : > { %13570 = vmatprep.subr.bf16.mxu0 %v14534_v20 }
0x15a4   : > { %13572 = vmatpush3.bf16.msra.mxu0 %v13571_v35  ;;  %v10362_v35 = vrot.slane %v16477_v24, 6 }
0x15a5   : > { %13573 = vmatprep.subr.bf16.mxu0 %v14534_v20 }
0x15a7   : > { %13135 = vmatmul.mubr.msk.f32.vlgmr.msra.gmra.mrb[156].mxu0 %vm1023_vm1, %v9730_v59  ;;  %v11922_v59 = vld [vmem:[%s16817_s6 + $0x200] sm:$0xff] }
0x15a8   : > { %13575 = vmatpush3.bf16.msra.mxu0 %v13574_v16  ;;  %13145 = vmatprep.mubr.msk.f32.mxu0 %vm14535_vm10, %v14536_v7  ;;  %v13625_v16 = vpack.c.bf16 %v11920_v5, %v11919_v3  ;;  %v13628_v15 = vpack.c.bf16 %v11923_v1, %v11922_v59  ;;  %v11073_v5 = vrot.slane %v16483_v32, 7  ;;  %v11965_v59 = vld [vmem:[%s16817_s6 + $0x318] sm:$0xff] }
0x15a9   : > { %13576 = vmatprep.subr.bf16.mxu0 %v14534_v20 }
0x15ac   : > { %13578 = vmatpush3.bf16.msra.mxu0 %v13577_v63  ;;  %v10441_v63 = vrot.slane %v16477_v24, 7 }
0x15ad   : > { %13579 = vmatprep.subr.bf16.mxu0 %v14534_v20 }
0x15af   : > { %13146 = vmatmul.mubr.msk.f32.vlgmr.msra.gmra.mrb[156].mxu0 %vm1023_vm1, %v9809_v41  ;;  %v11927_v41 = vld [vmem:[%s16817_s6 + $0x220] sm:$0xff] }
0x15b0   : > { %13581 = vmatpush3.bf16.msra.mxu0 %v13580_v4  ;;  %13156 = vmatprep.mubr.msk.f32.mxu0 %vm14535_vm10, %v14536_v7  ;;  %v13631_v4 = vpack.c.bf16 %v11925_v53, %v11924_v2  ;;  %v13634_v30 = vpack.c.bf16 %v11928_v0, %v11927_v41 }
0x15b1   : > { %13582 = vmatprep.subr.bf16.mxu0 %v14534_v20 }
0x15b4   : > { %13584 = vmatpush3.bf16.msra.mxu0 %v13583_v43  ;;  %v11930_v43 = vld [vmem:[%s16817_s6 + $0x238] sm:$0xff] }
0x15b5   : > { %13585 = vmatprep.subr.bf16.mxu0 %v14534_v20 }
0x15b7   : > { %13157 = vmatmul.mubr.msk.f32.vlgmr.msra.gmra.mrb[156].mxu0 %vm1023_vm1, %v16477_v24  ;;  %v11929_v24 = vld [vmem:[%s16817_s6 + $0x230] sm:$0xff] }
0x15b8   : > { %13587 = vmatpush3.bf16.msra.mxu0 %v13586_v21  ;;  %13167 = vmatprep.mubr.msk.f32.mxu0 %vm14535_vm10, %v14536_v7  ;;  %v13637_v36 = vpack.c.bf16 %v11930_v43, %v11929_v24  ;;  %v11933_v21 = vld [vmem:[%s16817_s6 + $0x248] sm:$0xff] }
0x15b9   : > { %13588 = vmatprep.subr.bf16.mxu0 %v14534_v20  ;;  %v13640_v52 = vpack.c.bf16 %v11933_v21, %v11932_v29 }
0x15bc   : > { %13590 = vmatpush3.bf16.msra.mxu0 %v13589_v28  ;;  %v11934_v28 = vld [vmem:[%s16817_s6 + $0x250] sm:$0xff] }
0x15bd   : > { %13591 = vmatprep.subr.bf16.mxu0 %v14534_v20  ;;  %v13643_v40 = vpack.c.bf16 %v11935_v39, %v11934_v28 }
0x15bf   : > { %13168 = vmatmul.mubr.msk.f32.vlgmr.msra.gmra.mrb[156].mxu0 %vm1023_vm1, %v9967_v60  ;;  %v11938_v60 = vld [vmem:[%s16817_s6 + $0x268] sm:$0xff] }
0x15c0   : > { %13593 = vmatpush3.bf16.msra.mxu0 %v13592_v56  ;;  %13178 = vmatprep.mubr.msk.f32.mxu0 %vm14535_vm10, %v14536_v7  ;;  %v11937_v56 = vld [vmem:[%s16817_s6 + $0x260] sm:$0xff] }
0x15c1   : > { %13594 = vmatprep.subr.bf16.mxu0 %v14534_v20  ;;  %v13646_v18 = vpack.c.bf16 %v11938_v60, %v11937_v56 }
0x15c4   : > { %13596 = vmatpush3.bf16.msra.mxu0 %v13595_v50  ;;  %v11939_v50 = vld [vmem:[%s16817_s6 + $0x270] sm:$0xff] }
0x15c5   : > { %13597 = vmatprep.subr.bf16.mxu0 %v14534_v20  ;;  %v13649_v62 = vpack.c.bf16 %v11940_v33, %v11939_v50 }
0x15c7   : > { %13179 = vmatmul.mubr.msk.f32.vlgmr.msra.gmra.mrb[156].mxu0 %vm1023_vm1, %v10046_v27  ;;  %v11943_v27 = vld [vmem:[%s16817_s6 + $0x288] sm:$0xff] }
0x15c8   : > { %13599 = vmatpush3.bf16.msra.mxu0 %v13598_v48  ;;  %13189 = vmatprep.mubr.msk.f32.mxu0 %vm14535_vm10, %v14536_v7  ;;  %v11942_v48 = vld [vmem:[%s16817_s6 + $0x280] sm:$0xff] }
0x15c9   : > { %13600 = vmatprep.subr.bf16.mxu0 %v14534_v20  ;;  %v13652_v19 = vpack.c.bf16 %v11943_v27, %v11942_v48 }
0x15cc   : > { %13602 = vmatpush3.bf16.msra.mxu0 %v13601_v11  ;;  %v11944_v11 = vld [vmem:[%s16817_s6 + $0x290] sm:$0xff] }
0x15cd   : > { %13603 = vmatprep.subr.bf16.mxu0 %v14534_v20  ;;  %v13655_v61 = vpack.c.bf16 %v11945_v12, %v11944_v11 }
0x15cf   : > { %13190 = vmatmul.mubr.msk.f32.vlgmr.msra.gmra.mrb[156].mxu0 %vm1023_vm1, %v10125_v25  ;;  %v11948_v25 = vld [vmem:[%s16817_s6 + $0x2a8] sm:$0xff] }
0x15d0   : > { %13605 = vmatpush3.bf16.msra.mxu0 %v13604_v31  ;;  %13200 = vmatprep.mubr.msk.f32.mxu0 %vm14535_vm10, %v14536_v7  ;;  %v11947_v31 = vld [vmem:[%s16817_s6 + $0x2a0] sm:$0xff] }
0x15d1   : > { %13606 = vmatprep.subr.bf16.mxu0 %v14534_v20  ;;  %v13658_v26 = vpack.c.bf16 %v11948_v25, %v11947_v31 }
0x15d4   : > { %13608 = vmatpush3.bf16.msra.mxu0 %v13607_v10  ;;  %v11949_v10 = vld [vmem:[%s16817_s6 + $0x2b0] sm:$0xff] }
0x15d5   : > { %13609 = vmatprep.subr.bf16.mxu0 %v14534_v20  ;;  %v13661_v42 = vpack.c.bf16 %v11950_v34, %v11949_v10 }
0x15d7   : > { %13201 = vmatmul.mubr.msk.f32.vlgmr.msra.gmra.mrb[156].mxu0 %vm1023_vm1, %v10204_v22  ;;  %v11953_v22 = vld [vmem:[%s16817_s6 + $0x2c8] sm:$0xff] }
0x15d8   : > { %13611 = vmatpush3.bf16.msra.mxu0 %v13610_v47  ;;  %13211 = vmatprep.mubr.msk.f32.mxu0 %vm14535_vm10, %v14536_v7  ;;  %v11952_v47 = vld [vmem:[%s16817_s6 + $0x2c0] sm:$0xff] }
0x15d9   : > { %13612 = vmatprep.subr.bf16.mxu0 %v14534_v20  ;;  %v13664_v13 = vpack.c.bf16 %v11953_v22, %v11952_v47 }
0x15dc   : > { %13614 = vmatpush3.bf16.msra.mxu0 %v13613_v37  ;;  %v11954_v37 = vld [vmem:[%s16817_s6 + $0x2d0] sm:$0xff] }
0x15dd   : > { %13615 = vmatprep.subr.bf16.mxu0 %v14534_v20  ;;  %v13667_v49 = vpack.c.bf16 %v11955_v57, %v11954_v37 }
0x15df   : > { %13212 = vmatmul.mubr.msk.f32.vlgmr.msra.gmra.mrb[156].mxu0 %vm1023_vm1, %v10283_v6  ;;  %v11958_v6 = vld [vmem:[%s16817_s6 + $0x2e8] sm:$0xff] }
0x15e0   : > { %13617 = vmatpush3.bf16.msra.mxu0 %v13616_v17  ;;  %13222 = vmatprep.mubr.msk.f32.mxu0 %vm14535_vm10, %v14536_v7  ;;  %v11957_v17 = vld [vmem:[%s16817_s6 + $0x2e0] sm:$0xff] }
0x15e1   : > { %13618 = vmatprep.subr.bf16.mxu0 %v14534_v20  ;;  %v13670_v58 = vpack.c.bf16 %v11958_v6, %v11957_v17 }
0x15e4   : > { %13620 = vmatpush3.bf16.msra.mxu0 %v13619_v51  ;;  %v11959_v51 = vld [vmem:[%s16817_s6 + $0x2f0] sm:$0xff] }
0x15e5   : > { %13621 = vmatprep.subr.bf16.mxu0 %v14534_v20  ;;  %v13673_v9 = vpack.c.bf16 %v11960_v54, %v11959_v51 }
0x15e7   : > { %13223 = vmatmul.mubr.msk.f32.vlgmr.msra.gmra.mrb[156].mxu0 %vm1023_vm1, %v10362_v35  ;;  %v11963_v35 = vld [vmem:[%s16817_s6 + $0x308] sm:$0xff] }
0x15e8   : > { %13623 = vmatpush3.bf16.msra.mxu0 %v13622_v46  ;;  %13233 = vmatprep.mubr.msk.f32.mxu0 %vm14535_vm10, %v14536_v7  ;;  %v11962_v46 = vld [vmem:[%s16817_s6 + $0x300] sm:$0xff] }
0x15e9   : > { %13624 = vmatprep.subr.bf16.mxu0 %v14534_v20  ;;  %v13676_v3 = vpack.c.bf16 %v11963_v35, %v11962_v46 }
0x15ec   : > { %13626 = vmatpush3.bf16.msra.mxu0 %v13625_v16  ;;  %v11964_v16 = vld [vmem:[%s16817_s6 + $0x310] sm:$0xff]  ;;  %s11241_s6 = sshll.u32 %s894_s5, 4  ;;  %s16724_s6 = int_to_ptr.vmem [resolvable:$true] %s11241_s6 }
0x15ed   : > { %13627 = vmatprep.subr.bf16.mxu0 %v14534_v20  ;;  %v13679_v1 = vpack.c.bf16 %v11965_v59, %v11964_v16  ;;  %s14427_s12 = scalar_lea.vmem %s16724_s6, 16  ;;  %p14434_p0 = scmp.lt.s32.totalorder %s16724_s6, %s14432_s13 }
0x15ee   : > { %p14428_p11 = scmp.ne.s32.totalorder %s16724_s6, %s14427_s12  ;;  %p14435_p1 = scmp.lt.s32.totalorder %s14433_s14, %s14427_s12 }
0x15ef   : > { %13234 = vmatmul.mubr.msk.f32.vlgmr.msra.gmra.mrb[156].mxu0 %vm1023_vm1, %v10441_v63 }
0x15f0   : > { %13629 = vmatpush3.bf16.msra.mxu0 %v13628_v15  ;;  %13244 = vmatprep.mubr.msk.f32.mxu0 %vm14535_vm10, %v14536_v7  ;;  %v9251_v15 = vld [vmem:[%s14686_s27] sm:$0x1]  ;;  %p14429_p12 = pnand %p14428_p11, %p14731_p5  ;;  %p14436_p2 = por %p14435_p1, %p14434_p0 }
0x15f1   : > { %13630 = vmatprep.subr.bf16.mxu0 %v14534_v20 }
0x15f2   : > { %p14430_p13 = pneg %p14429_p12 }
0x15f4   : > { %13632 = vmatpush3.bf16.msra.mxu0 %v13631_v4  ;;  %p14437_p3 = pnand %p14436_p2, %p14430_p13 }
0x15f5   : > { %13633 = vmatprep.subr.bf16.mxu0 %v14534_v20 }
0x15f7   : > { %13245 = vmatmul.mubr.msk.f32.vlgmr.msra.gmra.mrb[156].mxu0 %vm1023_vm1, %v16483_v32 }
0x15f8   : > { %13635 = vmatpush3.bf16.msra.mxu0 %v13634_v30  ;;  %13255 = vmatprep.mubr.msk.f32.mxu0 %vm14535_vm10, %v14536_v7 }
0x15f9   : > { %13636 = vmatprep.subr.bf16.mxu0 %v14534_v20 }
0x15fc   : > { %13638 = vmatpush3.bf16.msra.mxu0 %v13637_v36 }
0x15fd   : > { %13639 = vmatprep.subr.bf16.mxu0 %v14534_v20 }
0x15ff   : > { %13256 = vmatmul.mubr.msk.f32.vlgmr.msra.gmra.mrb[156].mxu0 %vm1023_vm1, %v10599_v14 }
0x1600   : > { %13641 = vmatpush3.bf16.msra.mxu0 %v13640_v52  ;;  %13266 = vmatprep.mubr.msk.f32.mxu0 %vm14535_vm10, %v14536_v7 }
0x1601   : > { %13642 = vmatprep.subr.bf16.mxu0 %v14534_v20 }
0x1604   : > { %13644 = vmatpush3.bf16.msra.mxu0 %v13643_v40 }
0x1605   : > { %13645 = vmatprep.subr.bf16.mxu0 %v14534_v20 }
0x1607   : > { %13267 = vmatmul.mubr.msk.f32.vlgmr.msra.gmra.mrb[156].mxu0 %vm1023_vm1, %v10678_v45 }
0x1608   : > { %13647 = vmatpush3.bf16.msra.mxu0 %v13646_v18  ;;  %13277 = vmatprep.mubr.msk.f32.mxu0 %vm14535_vm10, %v14536_v7 }
0x1609   : > { %13648 = vmatprep.subr.bf16.mxu0 %v14534_v20 }
0x160c   : > { %13650 = vmatpush3.bf16.msra.mxu0 %v13649_v62 }
0x160d   : > { %13651 = vmatprep.subr.bf16.mxu0 %v14534_v20 }
0x160f   : > { %13278 = vmatmul.mubr.msk.f32.vlgmr.msra.gmra.mrb[156].mxu0 %vm1023_vm1, %v10757_v23 }
0x1610   : > { %13653 = vmatpush3.bf16.msra.mxu0 %v13652_v19  ;;  %13288 = vmatprep.mubr.msk.f32.mxu0 %vm14535_vm10, %v14536_v7 }
0x1611   : > { %13654 = vmatprep.subr.bf16.mxu0 %v14534_v20 }
0x1614   : > { %13656 = vmatpush3.bf16.msra.mxu0 %v13655_v61 }
0x1615   : > { %13657 = vmatprep.subr.bf16.mxu0 %v14534_v20 }
0x1617   : > { %13289 = vmatmul.mubr.msk.f32.vlgmr.msra.gmra.mrb[156].mxu0 %vm1023_vm1, %v10836_v8 }
0x1618   : > { %13659 = vmatpush3.bf16.msra.mxu0 %v13658_v26  ;;  %13299 = vmatprep.mubr.msk.f32.mxu0 %vm14535_vm10, %v14536_v7 }
0x1619   : > { %13660 = vmatprep.subr.bf16.mxu0 %v14534_v20 }
0x161c   : > { %13662 = vmatpush3.bf16.msra.mxu0 %v13661_v42 }
0x161d   : > { %13663 = vmatprep.subr.bf16.mxu0 %v14534_v20 }
0x161f   : > { %13300 = vmatmul.mubr.msk.f32.vlgmr.msra.gmra.mrb[156].mxu0 %vm1023_vm1, %v10915_v44 }
0x1620   : > { %13665 = vmatpush3.bf16.msra.mxu0 %v13664_v13  ;;  %13310 = vmatprep.mubr.msk.f32.mxu0 %vm14535_vm10, %v14536_v7 }
0x1621   : > { %13666 = vmatprep.subr.bf16.mxu0 %v14534_v20 }
0x1624   : > { %13668 = vmatpush3.bf16.msra.mxu0 %v13667_v49 }
0x1625   : > { %13669 = vmatprep.subr.bf16.mxu0 %v14534_v20 }
0x1627   : > { %13311 = vmatmul.mubr.msk.f32.vlgmr.msra.gmra.mrb[156].mxu0 %vm1023_vm1, %v10994_v38 }
0x1628   : > { %13671 = vmatpush3.bf16.msra.mxu0 %v13670_v58  ;;  %13321 = vmatprep.mubr.msk.f32.mxu0 %vm14535_vm10, %v14536_v7 }
0x1629   : > { %13672 = vmatprep.subr.bf16.mxu0 %v14534_v20 }
0x162c   : > { %13674 = vmatpush3.bf16.msra.mxu0 %v13673_v9 }
0x162d   : > { %13675 = vmatprep.subr.bf16.mxu0 %v14534_v20 }
0x162f   : > { %13322 = vmatmul.mubr.msk.f32.vlgmr.msra.gmra.mrb[156].mxu0 %vm1023_vm1, %v11073_v5 }
0x1630   : > { %13677 = vmatpush3.bf16.msra.mxu0 %v13676_v3  ;;  %13332 = vmatprep.mubr.msk.f32.mxu0 %vm14535_vm10, %v14536_v7 }
0x1631   : > { %13678 = vmatprep.subr.bf16.mxu0 %v14534_v20 }
0x1634   : > { %13680 = vmatpush3.bf16.msra.mxu0 %v13679_v1 }
0x1637   : > { %13333 = vmatmul.mubr.msk.f32.vlgmr.msra.gmra.mrb[156].mxu0 %vm1023_vm1, %v16496_v55 }
0x170a   : > { %v11221_v32 = vpop.f32.mrb[156].mxu0 }
0x170b   : > { %v13689_v63 = vadd.f32 %v11221_v32, %v9251_v15  ;;  %v13334_v2 = vpop.f32.mrb[157].mxu0 }
0x170d   : > { %11227 = vst.msk [vmem:[%s894_s5] sm:$0x1] %vm11226_vm11, %v13689_v63 }
0x170e   : > { %14440 = shalt.err (!%p14437_p3)
}
0x170f   : > { %s14441_s3 = scalar_lea.hbm %s16722_s8, 16  ;;  %s14445_s5 = scalar_lea.hbm %s14691_s4, 32 }
0x1710   : > { %p14442_p4 = scmp.ne.s32.totalorder %s16722_s8, %s14441_s3  ;;  %p14446_p9 = scmp.lt.u32.totalorder %s16722_s8, %s14691_s4 }
0x1711   : > { %p14447_p10 = scmp.lt.u32.totalorder %s14445_s5, %s14441_s3  ;;  %p14449_p12 = scmp.lt.u32.totalorder %s14441_s3, %s16722_s8 }
0x1712   : > { %p14443_p7 = pnand %p14442_p4, %p14731_p5 }
0x1713   : > { %p14448_p11 = por %p14447_p10, %p14446_p9 }
0x1714   : > { %p14444_p8 = pneg %p14443_p7 }
0x1715   : > { %p14450_p0 = por %p14449_p12, %p14448_p11 }
0x1717   : > { %p14451_p13 = pnand %p14450_p0, %p14444_p8 }
0x1719   : > { %14454 = shalt.err (!%p14451_p13)
}
0x171a   : > { %13762 = dma.vmem_to_hbm [thread:$0]  (%p14731_p5), %s16724_s6, 16, %s16722_s8, %s11229_s9  }
0x171b PF: > { %p13768_p1 = scmp.ge.s32.totalorder %s14489_s15, 2  ;;  %s11253_s13 = sand.u32 1, %s14477_s7  }
0x171c   : > { %s11254_s14 = scalar_lea.sflag [#allocation3], %s11253_s13 }
0x171d   : > { %p13765_p2 = pnand %p13768_p1, %p14735_p6 }
0x171f   : > { %14472 = dma.done.wait (!%p13765_p2), %s11254_s14, 16  }
0x1720   : > { %14474 = vsyncadd (!%p13765_p2), %s11254_s14, 4294967280  ;;  %p69_p3 = scmp.ge.s32.totalorder %s14718_s18, 4   ;;  %s16874_s7 = smov %s14481_s10 }
0x1721   : > { %s16875_s10 = smov %s14485_s11  ;;  %s16876_s11 = smov %s14729_s26 }
0x1722   : > { %s16877_s15 = smov %s14718_s18  ;;  %71 = sbr.rel (!%p69_p3) target bundleno = 57 (0x39), region = 224 }
0x1729   :  { %11258 = vsyncpa [#allocation3], 1 }
0x172a   :  { %11260 = vsyncpa [#allocation3 + $0x1], 1 }

</bundles_post_ra>
